<compile_context>
chip_gen: v7x
topology: tpu7x:2x2x1
jax: 0.10.0
libtpu: 0.0.40
codegen_flags: <defaults>
</compile_context>

<pallas_src>
import jax
import jax.numpy as jnp
import numpy as np
from jax import lax
from jax.experimental import pallas as pl
from jax.experimental.pallas import tpu as pltpu

NUM_CLASSES = 4
BATCH = 8          # forced by `x7 = x6.view(8, 256*12)` in the reference module
C_IN = 64
L_IN = 106         # conv/pool chain then yields exactly 256 channels x 12 steps
DROPOUT_P = 0.6    # TODO(synk): F.dropout(p=0.6, training=True) is stochastic; implemented as identity (inference semantics).

# Derived static sizes.
_T1 = (L_IN - 3) // 2 + 1       # 52  conv1 output length (k=3, stride 2)
_P1 = _T1 // 2                  # 26  after MaxPool1d(2,2)
_T2 = _P1 - 3 + 1               # 24  conv2 output length (k=3, stride 1)
_P2 = _T2 // 2                  # 12  after MaxPool1d(2,2)
_HALF_B = BATCH // 2            # 4   batches per grid step (2 steps -> both TCs on v7x)
_U = _P1 // 2                   # 13  rows per batch in each pool1-parity stream


# ---------------------------- Pallas kernels ----------------------------

def _conv_stack_kernel(p1_ref, w1_ref, b1_ref, w2_ref, b2_ref, o_ref):
    """Fused conv1+pool1+relu+conv2+pool2+relu for one batch half (_HALF_B batches).

    p1_ref: (1, 4*_HALF_B*_U, 192) conv1 im2col patches grouped by
            (conv-position mod 4, local batch, position // 4); feature = kk*64 + ci.
    w1_ref: (192, 128), w2_ref: (384, 256): kk-major reordered conv weights.
    o_ref : (_HALF_B*_P2, 256) channels-last pooled conv2 activations (rows b*12+t).
    """
    q = _HALF_B * _U                                                          # 52 rows per phase
    # conv1 for all 4 phases / all local batches in one MXU matmul (208x192x128).
    c1 = jnp.dot(p1_ref[0], w1_ref[...], preferred_element_type=jnp.float32)  # (208, 128)
    b1 = b1_ref[...]
    # MaxPool1d(2,2) over conv1 positions == max over phase pairs (0,1) and (2,3).
    h_e = jnp.maximum(jnp.maximum(c1[0:q], c1[q:2 * q]) + b1, 0.0)            # h1[:, 0::2]
    h_o = jnp.maximum(jnp.maximum(c1[2 * q:3 * q], c1[3 * q:4 * q]) + b1, 0.0)  # h1[:, 1::2]

    def window(h, off):   # rows bl*_P2+s = h[bl*_U + off + s], s = 0.._P2-1
        return jnp.concatenate(
            [h[bl * _U + off: bl * _U + off + _P2] for bl in range(_HALF_B)], axis=0)

    e0, e1 = window(h_e, 0), window(h_e, 1)
    o0, o1 = window(h_o, 0), window(h_o, 1)
    # conv2 (stride 1, k=3) + MaxPool(2,2): even conv positions use
    # (h1[2s], h1[2s+1], h1[2s+2]); odd positions use (h1[2s+1], h1[2s+2], h1[2s+3]).
    p2 = jnp.concatenate(
        [jnp.concatenate([e0, o0, e1], axis=-1),
         jnp.concatenate([o0, e1, o1], axis=-1)], axis=0)                     # (96, 384)
    c2 = jnp.dot(p2, w2_ref[...], preferred_element_type=jnp.float32)         # (96, 256)
    nh = _HALF_B * _P2                                                        # 48
    o_ref[...] = jnp.maximum(jnp.maximum(c2[0:nh], c2[nh:2 * nh]) + b2_ref[...], 0.0)


def _linear_stack_kernel(x_ref, w1_ref, b1_ref, w2_ref, x8_ref, part_ref):
    """lin1 (bf16 weights, f32 accumulation) + ReLU, with lin2 fused as a partial epilogue."""
    x = x_ref[...].astype(jnp.bfloat16)                                       # (8, 3072)
    y = jnp.dot(x, w1_ref[...], preferred_element_type=jnp.float32)           # (8, 768)
    x8 = jnp.maximum(y + b1_ref[...], 0.0)
    x8_ref[...] = x8
    # lin2 partial product for this N-half (output lanes zero-padded to 128).
    part_ref[0] = jnp.dot(x8.astype(jnp.bfloat16), w2_ref[...],
                          preferred_element_type=jnp.float32)                 # (8, 128)


# ---------------------------- Pallas wrappers ----------------------------

def conv_stack(p1, w1, b1, w2, b2):
    rows = _HALF_B * _P2                      # 48 output rows per grid step
    return pl.pallas_call(
        _conv_stack_kernel,
        out_shape=jax.ShapeDtypeStruct((BATCH * _P2, 256), jnp.float32),
        grid_spec=pltpu.PrefetchScalarGridSpec(
            num_scalar_prefetch=0,
            grid=(2,),                                   # batch halves -> 2 TCs on v7x
            in_specs=[
                pl.BlockSpec((1, 4 * _HALF_B * _U, 3 * C_IN), lambda h: (h, 0, 0)),
                pl.BlockSpec((3 * C_IN, 128), lambda h: (0, 0)),
                pl.BlockSpec((1, 128), lambda h: (0, 0)),
                pl.BlockSpec((3 * 128, 256), lambda h: (0, 0)),
                pl.BlockSpec((1, 256), lambda h: (0, 0)),
            ],
            out_specs=pl.BlockSpec((rows, 256), lambda h: (h, 0)),
        ),
        compiler_params=pltpu.CompilerParams(dimension_semantics=("parallel",)),
    )(p1, w1, b1, w2, b2)


def linear_stack(x7, w1, b1, w2pad):
    M, K = x7.shape                      # (8, 3072)
    N = w1.shape[1]                      # 1536
    TN = N // 2                          # 768 per grid step
    NP = w2pad.shape[1]                  # 128 (lane-padded lin2 output)
    return pl.pallas_call(
        _linear_stack_kernel,
        out_shape=(jax.ShapeDtypeStruct((M, N), jnp.float32),
                   jax.ShapeDtypeStruct((2, M, NP), jnp.float32)),
        grid_spec=pltpu.PrefetchScalarGridSpec(
            num_scalar_prefetch=0,
            grid=(2,),                                   # N halves -> 2 TCs / 2 DMA streams
            in_specs=[
                pl.BlockSpec((M, K), lambda j: (0, 0)),
                pl.BlockSpec((K, TN), lambda j: (0, j)),
                pl.BlockSpec((1, TN), lambda j: (0, j)),
                pl.BlockSpec((TN, NP), lambda j: (j, 0)),
            ],
            out_specs=[
                pl.BlockSpec((M, TN), lambda j: (0, j)),
                pl.BlockSpec((1, M, NP), lambda j: (j, 0, 0)),
            ],
        ),
        compiler_params=pltpu.CompilerParams(dimension_semantics=("parallel",)),
    )(x7, w1, b1, w2pad)


# ---------------------------- JAX glue (patch layout, params) ----------------------------

def _conv1_patches(xcl):
    """xcl: (8, 106, 64) channels-last -> (2, 208, 192) phase-grouped im2col patches.

    Per batch half, row = (p mod 4) * (_HALF_B*_U) + local_b * _U + p // 4 for conv1
    position p; feature = kk*64 + ci (kk-major, matching the reordered conv1 weight).
    """
    u = jnp.arange(_U)
    r = jnp.arange(4)
    kk = jnp.arange(3)
    tidx = 8 * u[None, :, None] + 2 * r[:, None, None] + kk[None, None, :]   # (4, 13, 3)
    p = xcl[:, tidx, :]                                   # (8, 4, 13, 3, 64)
    p = p.reshape(2, _HALF_B, 4, _U, 3, C_IN)             # (half, bl, r, u, kk, ci)
    p = p.transpose(0, 2, 1, 3, 4, 5)                     # (half, r, bl, u, kk, ci)
    return p.reshape(2, 4 * _HALF_B * _U, 3 * C_IN)       # (2, 208, 192)


def init_params(key):
    ks = jax.random.split(key, 9)
    p = {}
    p["attn_w"] = jax.random.normal(ks[0], (C_IN,), jnp.float32)
    p["conv1_w"] = 0.05 * jax.random.normal(ks[1], (128, 64, 3), jnp.float32)
    p["conv1_b"] = 0.01 * jax.random.normal(ks[2], (128,), jnp.float32)
    p["conv2_w"] = 0.05 * jax.random.normal(ks[3], (256, 128, 3), jnp.float32)
    p["conv2_b"] = 0.01 * jax.random.normal(ks[4], (256,), jnp.float32)
    p["lin1_w"] = 0.02 * jax.random.normal(ks[5], (256 * 6, 256 * 12), jnp.float32)
    p["lin1_b"] = 0.01 * jax.random.normal(ks[6], (256 * 6,), jnp.float32)
    p["lin2_w"] = 0.02 * jax.random.normal(ks[7], (NUM_CLASSES, 256 * 6), jnp.float32)
    p["lin2_b"] = 0.01 * jax.random.normal(ks[8], (NUM_CLASSES,), jnp.float32)
    return p


def prepare_params(p):
    """One-time (init-time) re-layout of the PyTorch-format weights for the kernels."""
    kp = {"attn_w": p["attn_w"]}
    # conv weights -> (Cin*K, Cout) with kk-major K ordering (matches in-kernel patches).
    kp["w1"] = jnp.transpose(p["conv1_w"], (2, 1, 0)).reshape(3 * C_IN, 128)
    kp["b1"] = p["conv1_b"].reshape(1, 128)
    kp["w2"] = jnp.transpose(p["conv2_w"], (2, 1, 0)).reshape(3 * 128, 256)
    kp["b2"] = p["conv2_b"].reshape(1, 256)
    # lin1: permute K so the kernel consumes the natural channels-last flatten
    # (t*256 + c) instead of PyTorch's channel-major view (c*12 + t); store bf16.
    l1 = p["lin1_w"].reshape(256 * 6, 256, _P2).transpose(0, 2, 1).reshape(256 * 6, 256 * _P2)
    kp["l1"] = l1.T.astype(jnp.bfloat16)                  # (3072, 1536)
    kp["l1_b"] = p["lin1_b"].reshape(1, 256 * 6)
    # lin2: transposed and zero-padded to 128 output lanes (lane-dense epilogue stores).
    l2 = jnp.zeros((256 * 6, 128), jnp.bfloat16)
    kp["l2"] = l2.at[:, :NUM_CLASSES].set(p["lin2_w"].T.astype(jnp.bfloat16))
    kp["l2_b"] = p["lin2_b"]
    return kp


def sc_ae_aa_stub(x, attn_w):
    # TODO(synk): SC_AE_AA_model is an external injected sub-module (not defined in the
    # reference file); stand-in = deterministic softmax channel-attention scaling that
    # returns four identical feature maps plus the attention weight vector.
    w = jax.nn.softmax(attn_w)
    scaled = x * w[None, :, None, None]
    return scaled, scaled, scaled, scaled, w


@jax.jit
def msscaeaa_forward(x, kp):
    aaf1, aaf2, aaf3, aaf4, weight = sc_ae_aa_stub(x, kp["attn_w"])
    del aaf1, aaf2, aaf4                                   # created but unused by reference forward
    x03 = aaf3.reshape(BATCH, C_IN, L_IN)
    xcl = jnp.transpose(x03, (0, 2, 1))                    # channels-last (8, 106, 64)
    p1 = _conv1_patches(xcl)                               # (2, 208, 192)

    # Fused conv1 + pool1 + relu + conv2 + pool2 + relu (one pallas_call, 2 parallel steps).
    h2 = conv_stack(p1, kp["w1"], kp["b1"], kp["w2"], kp["b2"])   # (96, 256), rows b*12+t
    # dropout(p=0.6) after each conv stage: identity (see TODO at top).

    x7 = h2.reshape(BATCH, _P2 * 256)                      # natural channels-last flatten (free)
    # Fused lin1(bf16 weights)+ReLU with lin2 partial epilogue (one pallas_call, 2 parallel steps).
    x8, part = linear_stack(x7, kp["l1"], kp["l1_b"], kp["l2"])
    out = part[0] + part[1]                                # combine per-N-half lin2 partials
    out = out[:, :NUM_CLASSES] + kp["l2_b"][None, :]
    return out, x8, weight


# ---------------------------- pure-JAX reference (for sanity check) ----------------------------

def reference_forward(x, params):
    w = jax.nn.softmax(params["attn_w"])
    x03 = (x * w[None, :, None, None]).reshape(BATCH, C_IN, L_IN)
    y = lax.conv_general_dilated(x03, params["conv1_w"], (2,), "VALID",
                                 dimension_numbers=("NCH", "OIH", "NCH"))
    y = y + params["conv1_b"][None, :, None]
    y = jnp.max(y.reshape(BATCH, 128, _P1, 2), axis=-1)
    y = jnp.maximum(y, 0.0)
    y = lax.conv_general_dilated(y, params["conv2_w"], (1,), "VALID",
                                 dimension_numbers=("NCH", "OIH", "NCH"))
    y = y + params["conv2_b"][None, :, None]
    y = jnp.max(y.reshape(BATCH, 256, _P2, 2), axis=-1)
    y = jnp.maximum(y, 0.0)
    x7 = y.reshape(BATCH, 256 * _P2)
    x8 = jnp.maximum(x7 @ params["lin1_w"].T + params["lin1_b"], 0.0)
    out = x8 @ params["lin2_w"].T + params["lin2_b"]
    return out, x8, w


if __name__ == "__main__":
    key = jax.random.PRNGKey(0)
    kx, kparam = jax.random.split(key)
    x = jax.random.normal(kx, (BATCH, C_IN, 1, L_IN), jnp.float32)
    params = init_params(kparam)
    kparams = prepare_params(params)         # one-time weight re-layout (not per forward)

    out, x8, weight = msscaeaa_forward(x, kparams)
    jax.block_until_ready((out, x8, weight))

    assert out.shape == (BATCH, NUM_CLASSES)
    assert x8.shape == (BATCH, 256 * 6)
    assert weight.shape == (C_IN,)

    ref_out, ref_x8, _ = reference_forward(x, params)
    np.testing.assert_allclose(np.asarray(x8), np.asarray(ref_x8), rtol=5e-2, atol=3e-3)
    np.testing.assert_allclose(np.asarray(out), np.asarray(ref_out), rtol=5e-2, atol=3e-3)

    print("KERNEL_OK")
</pallas_src>

<mosaic_0001>
module attributes {stable_mosaic.version = 11 : i64} {
  func.func @_conv_stack_kernel(%arg0: i32, %arg1: memref<1x208x192xf32, #tpu.memory_space<vmem>>, %arg2: memref<192x128xf32, #tpu.memory_space<vmem>>, %arg3: memref<1x128xf32, #tpu.memory_space<vmem>>, %arg4: memref<384x256xf32, #tpu.memory_space<vmem>>, %arg5: memref<1x256xf32, #tpu.memory_space<vmem>>, %arg6: memref<48x256xf32, #tpu.memory_space<vmem>>) attributes {dimension_semantics = [#tpu.dimension_semantics<parallel>], iteration_bounds = array<i64: 2>, scalar_prefetch = 0 : i64, scratch_operands = 0 : i64, tpu.core_type = #tpu.core_type<tc>, window_params = [{transform_indices = @transform_0, window_bounds = array<i64: 1, 208, 192>}, {pipeline_mode = #tpu.pipeline_mode<synchronous>, transform_indices = @transform_1, window_bounds = array<i64: 192, 128>}, {pipeline_mode = #tpu.pipeline_mode<synchronous>, transform_indices = @transform_2, window_bounds = array<i64: 1, 128>}, {pipeline_mode = #tpu.pipeline_mode<synchronous>, transform_indices = @transform_3, window_bounds = array<i64: 384, 256>}, {pipeline_mode = #tpu.pipeline_mode<synchronous>, transform_indices = @transform_4, window_bounds = array<i64: 1, 256>}, {transform_indices = @transform_5, window_bounds = array<i64: 48, 256>}]} {
    %c0 = arith.constant 0 : index
    %c0_0 = arith.constant 0 : index
    %c0_1 = arith.constant 0 : index
    %0 = vector.load %arg1[%c0, %c0_0, %c0_1] : memref<1x208x192xf32, #tpu.memory_space<vmem>>, vector<1x208x192xf32>
    %1 = vector.shape_cast %0 : vector<1x208x192xf32> to vector<208x192xf32>
    %c0_2 = arith.constant 0 : index
    %c0_3 = arith.constant 0 : index
    %2 = vector.load %arg2[%c0_2, %c0_3] : memref<192x128xf32, #tpu.memory_space<vmem>>, vector<192x128xf32>
    %cst = arith.constant dense<0.000000e+00> : vector<208x128xf32>
    %3 = tpu.matmul %1, %2, %cst {dimension_numbers = #tpu.dot_dimension_numbers<[1], [0], [0], [1], [0, 0, 1, 1], [], []>} : vector<208x192xf32>, vector<192x128xf32>, vector<208x128xf32> -> vector<208x128xf32>
    %c0_4 = arith.constant 0 : index
    %c0_5 = arith.constant 0 : index
    %4 = vector.load %arg3[%c0_4, %c0_5] : memref<1x128xf32, #tpu.memory_space<vmem>>, vector<1x128xf32>
    %5 = vector.extract_strided_slice %3 {offsets = [0, 0], sizes = [52, 128], strides = [1, 1]} : vector<208x128xf32> to vector<52x128xf32>
    %6 = vector.extract_strided_slice %3 {offsets = [52, 0], sizes = [52, 128], strides = [1, 1]} : vector<208x128xf32> to vector<52x128xf32>
    %7 = arith.maximumf %5, %6 : vector<52x128xf32>
    %8 = vector.broadcast %4 : vector<1x128xf32> to vector<52x128xf32>
    %9 = arith.addf %7, %8 : vector<52x128xf32>
    %cst_6 = arith.constant 0.000000e+00 : f32
    %10 = vector.broadcast %cst_6 : f32 to vector<52x128xf32>
    %11 = arith.maximumf %9, %10 : vector<52x128xf32>
    %12 = vector.extract_strided_slice %3 {offsets = [104, 0], sizes = [52, 128], strides = [1, 1]} : vector<208x128xf32> to vector<52x128xf32>
    %13 = vector.extract_strided_slice %3 {offsets = [156, 0], sizes = [52, 128], strides = [1, 1]} : vector<208x128xf32> to vector<52x128xf32>
    %14 = arith.maximumf %12, %13 : vector<52x128xf32>
    %15 = vector.broadcast %4 : vector<1x128xf32> to vector<52x128xf32>
    %16 = arith.addf %14, %15 : vector<52x128xf32>
    %cst_7 = arith.constant 0.000000e+00 : f32
    %17 = vector.broadcast %cst_7 : f32 to vector<52x128xf32>
    %18 = arith.maximumf %16, %17 : vector<52x128xf32>
    %19 = vector.extract_strided_slice %11 {offsets = [0, 0], sizes = [12, 128], strides = [1, 1]} : vector<52x128xf32> to vector<12x128xf32>
    %20 = vector.extract_strided_slice %11 {offsets = [13, 0], sizes = [12, 128], strides = [1, 1]} : vector<52x128xf32> to vector<12x128xf32>
    %21 = vector.extract_strided_slice %11 {offsets = [26, 0], sizes = [12, 128], strides = [1, 1]} : vector<52x128xf32> to vector<12x128xf32>
    %22 = vector.extract_strided_slice %11 {offsets = [39, 0], sizes = [12, 128], strides = [1, 1]} : vector<52x128xf32> to vector<12x128xf32>
    %23 = tpu.concatenate %19, %20, %21, %22 in 0 : vector<12x128xf32>, vector<12x128xf32>, vector<12x128xf32>, vector<12x128xf32> -> vector<48x128xf32>
    %24 = vector.extract_strided_slice %11 {offsets = [1, 0], sizes = [12, 128], strides = [1, 1]} : vector<52x128xf32> to vector<12x128xf32>
    %25 = vector.extract_strided_slice %11 {offsets = [14, 0], sizes = [12, 128], strides = [1, 1]} : vector<52x128xf32> to vector<12x128xf32>
    %26 = vector.extract_strided_slice %11 {offsets = [27, 0], sizes = [12, 128], strides = [1, 1]} : vector<52x128xf32> to vector<12x128xf32>
    %27 = vector.extract_strided_slice %11 {offsets = [40, 0], sizes = [12, 128], strides = [1, 1]} : vector<52x128xf32> to vector<12x128xf32>
    %28 = tpu.concatenate %24, %25, %26, %27 in 0 : vector<12x128xf32>, vector<12x128xf32>, vector<12x128xf32>, vector<12x128xf32> -> vector<48x128xf32>
    %29 = vector.extract_strided_slice %18 {offsets = [0, 0], sizes = [12, 128], strides = [1, 1]} : vector<52x128xf32> to vector<12x128xf32>
    %30 = vector.extract_strided_slice %18 {offsets = [13, 0], sizes = [12, 128], strides = [1, 1]} : vector<52x128xf32> to vector<12x128xf32>
    %31 = vector.extract_strided_slice %18 {offsets = [26, 0], sizes = [12, 128], strides = [1, 1]} : vector<52x128xf32> to vector<12x128xf32>
    %32 = vector.extract_strided_slice %18 {offsets = [39, 0], sizes = [12, 128], strides = [1, 1]} : vector<52x128xf32> to vector<12x128xf32>
    %33 = tpu.concatenate %29, %30, %31, %32 in 0 : vector<12x128xf32>, vector<12x128xf32>, vector<12x128xf32>, vector<12x128xf32> -> vector<48x128xf32>
    %34 = vector.extract_strided_slice %18 {offsets = [1, 0], sizes = [12, 128], strides = [1, 1]} : vector<52x128xf32> to vector<12x128xf32>
    %35 = vector.extract_strided_slice %18 {offsets = [14, 0], sizes = [12, 128], strides = [1, 1]} : vector<52x128xf32> to vector<12x128xf32>
    %36 = vector.extract_strided_slice %18 {offsets = [27, 0], sizes = [12, 128], strides = [1, 1]} : vector<52x128xf32> to vector<12x128xf32>
    %37 = vector.extract_strided_slice %18 {offsets = [40, 0], sizes = [12, 128], strides = [1, 1]} : vector<52x128xf32> to vector<12x128xf32>
    %38 = tpu.concatenate %34, %35, %36, %37 in 0 : vector<12x128xf32>, vector<12x128xf32>, vector<12x128xf32>, vector<12x128xf32> -> vector<48x128xf32>
    %39 = tpu.concatenate %23, %33, %28 in 1 : vector<48x128xf32>, vector<48x128xf32>, vector<48x128xf32> -> vector<48x384xf32>
    %40 = tpu.concatenate %33, %28, %38 in 1 : vector<48x128xf32>, vector<48x128xf32>, vector<48x128xf32> -> vector<48x384xf32>
    %41 = tpu.concatenate %39, %40 in 0 : vector<48x384xf32>, vector<48x384xf32> -> vector<96x384xf32>
    %c0_8 = arith.constant 0 : index
    %c0_9 = arith.constant 0 : index
    %42 = vector.load %arg4[%c0_8, %c0_9] : memref<384x256xf32, #tpu.memory_space<vmem>>, vector<384x256xf32>
    %cst_10 = arith.constant dense<0.000000e+00> : vector<96x256xf32>
    %43 = tpu.matmul %41, %42, %cst_10 {dimension_numbers = #tpu.dot_dimension_numbers<[1], [0], [0], [1], [0, 0, 1, 1], [], []>} : vector<96x384xf32>, vector<384x256xf32>, vector<96x256xf32> -> vector<96x256xf32>
    %44 = vector.extract_strided_slice %43 {offsets = [0, 0], sizes = [48, 256], strides = [1, 1]} : vector<96x256xf32> to vector<48x256xf32>
    %45 = vector.extract_strided_slice %43 {offsets = [48, 0], sizes = [48, 256], strides = [1, 1]} : vector<96x256xf32> to vector<48x256xf32>
    %46 = arith.maximumf %44, %45 : vector<48x256xf32>
    %c0_11 = arith.constant 0 : index
    %c0_12 = arith.constant 0 : index
    %47 = vector.load %arg5[%c0_11, %c0_12] : memref<1x256xf32, #tpu.memory_space<vmem>>, vector<1x256xf32>
    %48 = vector.broadcast %47 : vector<1x256xf32> to vector<48x256xf32>
    %49 = arith.addf %46, %48 : vector<48x256xf32>
    %cst_13 = arith.constant 0.000000e+00 : f32
    %50 = vector.broadcast %cst_13 : f32 to vector<48x256xf32>
    %51 = arith.maximumf %49, %50 : vector<48x256xf32>
    %c0_14 = arith.constant 0 : index
    %c0_15 = arith.constant 0 : index
    %52 = vector.load %arg6[%c0_14, %c0_15] : memref<48x256xf32, #tpu.memory_space<vmem>>, vector<48x256xf32>
    tpu.vector_store %arg6[%c0_14, %c0_15], %51 {strides = array<i32>} : memref<48x256xf32, #tpu.memory_space<vmem>>, vector<48x256xf32>,
    return
  }
  func.func @transform_0(%arg0: i32) -> (i32, i32, i32) {
    %c0_i32 = arith.constant 0 : i32
    %c0_i32_0 = arith.constant 0 : i32
    %c0_i32_1 = arith.constant 0 : i32
    return %arg0, %c0_i32, %c0_i32_0 : i32, i32, i32
  }
  func.func @transform_1(%arg0: i32) -> (i32, i32) {
    %c0_i32 = arith.constant 0 : i32
    %c0_i32_0 = arith.constant 0 : i32
    %c0_i32_1 = arith.constant 0 : i32
    return %c0_i32, %c0_i32_0 : i32, i32
  }
  func.func @transform_2(%arg0: i32) -> (i32, i32) {
    %c0_i32 = arith.constant 0 : i32
    %c0_i32_0 = arith.constant 0 : i32
    %c0_i32_1 = arith.constant 0 : i32
    return %c0_i32, %c0_i32_0 : i32, i32
  }
  func.func @transform_3(%arg0: i32) -> (i32, i32) {
    %c0_i32 = arith.constant 0 : i32
    %c0_i32_0 = arith.constant 0 : i32
    %c0_i32_1 = arith.constant 0 : i32
    return %c0_i32, %c0_i32_0 : i32, i32
  }
  func.func @transform_4(%arg0: i32) -> (i32, i32) {
    %c0_i32 = arith.constant 0 : i32
    %c0_i32_0 = arith.constant 0 : i32
    %c0_i32_1 = arith.constant 0 : i32
    return %c0_i32, %c0_i32_0 : i32, i32
  }
  func.func @transform_5(%arg0: i32) -> (i32, i32) {
    %c0_i32 = arith.constant 0 : i32
    %c0_i32_0 = arith.constant 0 : i32
    return %arg0, %c0_i32 : i32, i32
  }
}

module attributes {stable_mosaic.version = 11 : i64} {
  func.func @_linear_stack_kernel(%arg0: i32, %arg1: memref<8x3072xf32, #tpu.memory_space<vmem>>, %arg2: memref<3072x768xbf16, #tpu.memory_space<vmem>>, %arg3: memref<1x768xf32, #tpu.memory_space<vmem>>, %arg4: memref<768x128xbf16, #tpu.memory_space<vmem>>, %arg5: memref<8x768xf32, #tpu.memory_space<vmem>>, %arg6: memref<1x8x128xf32, #tpu.memory_space<vmem>>) attributes {dimension_semantics = [#tpu.dimension_semantics<parallel>], iteration_bounds = array<i64: 2>, scalar_prefetch = 0 : i64, scratch_operands = 0 : i64, tpu.core_type = #tpu.core_type<tc>, window_params = [{pipeline_mode = #tpu.pipeline_mode<synchronous>, transform_indices = @transform_0, window_bounds = array<i64: 8, 3072>}, {transform_indices = @transform_1, window_bounds = array<i64: 3072, 768>}, {transform_indices = @transform_2, window_bounds = array<i64: 1, 768>}, {transform_indices = @transform_3, window_bounds = array<i64: 768, 128>}, {transform_indices = @transform_4, window_bounds = array<i64: 8, 768>}, {transform_indices = @transform_5, window_bounds = array<i64: 1, 8, 128>}]} {
    %c0 = arith.constant 0 : index
    %c0_0 = arith.constant 0 : index
    %0 = vector.load %arg1[%c0, %c0_0] : memref<8x3072xf32, #tpu.memory_space<vmem>>, vector<8x3072xf32>
    %1 = arith.truncf %0 : vector<8x3072xf32> to vector<8x3072xbf16>
    %c0_1 = arith.constant 0 : index
    %c0_2 = arith.constant 0 : index
    %2 = vector.load %arg2[%c0_1, %c0_2] : memref<3072x768xbf16, #tpu.memory_space<vmem>>, vector<3072x768xbf16>
    %cst = arith.constant dense<0.000000e+00> : vector<8x768xf32>
    %3 = tpu.matmul %1, %2, %cst {dimension_numbers = #tpu.dot_dimension_numbers<[1], [0], [0], [1], [0, 0, 1, 1], [], []>} : vector<8x3072xbf16>, vector<3072x768xbf16>, vector<8x768xf32> -> vector<8x768xf32>
    %c0_3 = arith.constant 0 : index
    %c0_4 = arith.constant 0 : index
    %4 = vector.load %arg3[%c0_3, %c0_4] : memref<1x768xf32, #tpu.memory_space<vmem>>, vector<1x768xf32>
    %5 = vector.broadcast %4 : vector<1x768xf32> to vector<8x768xf32>
    %6 = arith.addf %3, %5 : vector<8x768xf32>
    %cst_5 = arith.constant 0.000000e+00 : f32
    %7 = vector.broadcast %cst_5 : f32 to vector<8x768xf32>
    %8 = arith.maximumf %6, %7 : vector<8x768xf32>
    %c0_6 = arith.constant 0 : index
    %c0_7 = arith.constant 0 : index
    %9 = vector.load %arg5[%c0_6, %c0_7] : memref<8x768xf32, #tpu.memory_space<vmem>>, vector<8x768xf32>
    tpu.vector_store %arg5[%c0_6, %c0_7], %8 {strides = array<i32>} : memref<8x768xf32, #tpu.memory_space<vmem>>, vector<8x768xf32>,
    %10 = arith.truncf %8 : vector<8x768xf32> to vector<8x768xbf16>
    %c0_8 = arith.constant 0 : index
    %c0_9 = arith.constant 0 : index
    %11 = vector.load %arg4[%c0_8, %c0_9] : memref<768x128xbf16, #tpu.memory_space<vmem>>, vector<768x128xbf16>
    %cst_10 = arith.constant dense<0.000000e+00> : vector<8x128xf32>
    %12 = tpu.matmul %10, %11, %cst_10 {dimension_numbers = #tpu.dot_dimension_numbers<[1], [0], [0], [1], [0, 0, 1, 1], [], []>} : vector<8x768xbf16>, vector<768x128xbf16>, vector<8x128xf32> -> vector<8x128xf32>
    %c0_11 = arith.constant 0 : index
    %c0_12 = arith.constant 0 : index
    %c0_13 = arith.constant 0 : index
    %13 = vector.load %arg6[%c0_11, %c0_12, %c0_13] : memref<1x8x128xf32, #tpu.memory_space<vmem>>, vector<1x8x128xf32>
    %14 = vector.shape_cast %13 : vector<1x8x128xf32> to vector<8x128xf32>
    %15 = vector.shape_cast %12 : vector<8x128xf32> to vector<1x8x128xf32>
    tpu.vector_store %arg6[%c0_11, %c0_12, %c0_13], %15 {strides = array<i32>} : memref<1x8x128xf32, #tpu.memory_space<vmem>>, vector<1x8x128xf32>,
    return
  }
  func.func @transform_0(%arg0: i32) -> (i32, i32) {
    %c0_i32 = arith.constant 0 : i32
    %c0_i32_0 = arith.constant 0 : i32
    %c0_i32_1 = arith.constant 0 : i32
    return %c0_i32, %c0_i32_0 : i32, i32
  }
  func.func @transform_1(%arg0: i32) -> (i32, i32) {
    %c0_i32 = arith.constant 0 : i32
    %c0_i32_0 = arith.constant 0 : i32
    return %c0_i32, %arg0 : i32, i32
  }
  func.func @transform_2(%arg0: i32) -> (i32, i32) {
    %c0_i32 = arith.constant 0 : i32
    %c0_i32_0 = arith.constant 0 : i32
    return %c0_i32, %arg0 : i32, i32
  }
  func.func @transform_3(%arg0: i32) -> (i32, i32) {
    %c0_i32 = arith.constant 0 : i32
    %c0_i32_0 = arith.constant 0 : i32
    return %arg0, %c0_i32 : i32, i32
  }
  func.func @transform_4(%arg0: i32) -> (i32, i32) {
    %c0_i32 = arith.constant 0 : i32
    %c0_i32_0 = arith.constant 0 : i32
    return %c0_i32, %arg0 : i32, i32
  }
  func.func @transform_5(%arg0: i32) -> (i32, i32, i32) {
    %c0_i32 = arith.constant 0 : i32
    %c0_i32_0 = arith.constant 0 : i32
    %c0_i32_1 = arith.constant 0 : i32
    return %arg0, %c0_i32, %c0_i32_0 : i32, i32, i32
  }
}

</mosaic_0001>

<bundles_post_ra>
// kernel: msscaeaa_forward.2
= control target key start
LH: loop header
LB: loop body
LE: loop exit
PB: predicated region body
PF: predicated region fallthrough
CT: control target
= control target key end

     0   :  { %10 = vsyncpa [#allocation3], 0  ;;  %s2229_s0 = inlined_call_operand.vmem [shape: f32[2,208,192], index: 0, kind: input, shape index: {}]   ;;  %s2230_s1 = inlined_call_operand.hbm [shape: f32[192,128], index: 1, kind: input, shape index: {}]   ;;  %s2231_s2 = inlined_call_operand.hbm [shape: f32[1,128], index: 2, kind: input, shape index: {}]   ;;  %s2232_s3 = inlined_call_operand.hbm [shape: f32[384,256], index: 3, kind: input, shape index: {}]   ;;  %s2233_s4 = inlined_call_operand.hbm [shape: f32[1,256], index: 4, kind: input, shape index: {}]   ;;  %s2234_s5 = inlined_call_operand.vmem [shape: f32[96,256], index: 5, kind: output, shape index: {}]  }
   0x1   :  { %11 = vsyncpa [#allocation5], 0 }
   0x2   :  { %12 = vsyncpa [#allocation8], 0  ;;  %s1829_s18 = smov 0  }
   0x3 LB: > { %s1789_s19 = smov [#allocation4]   ;;  %s1835_s21 = sadd.s32 4294967295, %s1787_s18   ;;  %s1787_s18 = sphi %s1829_s18, %s18_s18  }
   0x4   : > { %s185_s20 = sshll.u32 %s1789_s19, 4  ;;  %p1369_p0 = scmp.ge.s32.totalorder %s1787_s18, 1  ;;  %s186_s20 = int_to_ptr.vmem [resolvable:$true] %s185_s20 }
   0x5   : > { %p159_p1 = scmp.lt.s32.totalorder %s1787_s18, 3  ;;  %p2235_p2 = scmp.eq.s32.totalorder %s1835_s21, 0 }
   0x6   : > { %s1790_s23 = smov [#allocation2]   ;;  %s1791_s26 = smov [#allocation6]  }
   0x7   : > { %p1840_p3 = pnand %p1369_p0, %p159_p1  ;;  %s171_s24 = sshll.u32 %s1790_s23, 4  ;;  %s1846_s24 = int_to_ptr.vmem [resolvable:$true] %s171_s24 }
   0x8   : > { %s195_s27 = sshll.u32 %s1791_s26, 4  ;;  %s1657_s30 = scalar_lea.hbm %s2231_s2, 16  ;;  %s1854_s27 = int_to_ptr.vmem [resolvable:$true] %s195_s27 }
   0x9   : > { %s2237_s22 = scalar_select %p1840_p3, 1, 0 }
   0xa   : > { %p1618_p4 = pneg %p1840_p3  ;;  %p1658_p6 = scmp.ne.s32.totalorder %s2231_s2, %s1657_s30 }
   0xb   : > { %p1664_p10 = scmp.lt.u32.totalorder %s1657_s30, %s2231_s2 }
   0xc   : > { %p1850_p5 = pnand %p2235_p2, %p1618_p4 }
   0xe   : > { %p1864_p7 = pneg %p1850_p5 }
  0x10   : > { %p1660_p8 = pnand %p1864_p7, %p1658_p6 }
  0x12   : > { %p1661_p9 = pneg %p1660_p8 }
  0x14   : > { %p1666_p11 = pnand %p1664_p10, %p1661_p9 }
  0x16   : > { %1669 = shalt.err (!%p1666_p11)
}
  0x17   : > { %s1670_s11 = scalar_lea.vmem %s186_s20, 16  ;;  %s1677_s12 = scalar_lea.vmem %s186_s20, 32 }
  0x18   : > { %p1671_p12 = scmp.ne.s32.totalorder %s186_s20, %s1670_s11  ;;  %p1678_p1 = scmp.lt.s32.totalorder %s186_s20, %s186_s20 }
  0x19   : > { %p1679_p4 = scmp.lt.s32.totalorder %s1677_s12, %s1670_s11 }
  0x1a   : > { %p1673_p13 = pnand %p1671_p12, %p1864_p7 }
  0x1b   : > { %p1680_p2 = por %p1679_p4, %p1678_p1 }
  0x1c   : > { %p1674_p0 = pneg %p1673_p13 }
  0x1e   : > { %p1681_p3 = pnand %p1680_p2, %p1674_p0 }
  0x20   : > { %1684 = shalt.err (!%p1681_p3)
}
  0x21   : > { %1624 = dma.hbm_to_vmem [thread:$0]  (!%p1850_p5), %s2231_s2, 16, %s186_s20, [#allocation5]  }
  0x22   : > { %s1685_s17 = scalar_lea.hbm %s2230_s1, 3072 }
  0x23   : > { %p1686_p6 = scmp.ne.s32.totalorder %s2230_s1, %s1685_s17  ;;  %p1692_p2 = scmp.lt.u32.totalorder %s1685_s17, %s2230_s1 }
  0x25   : > { %p1688_p8 = pnand %p1686_p6, %p1864_p7 }
  0x27   : > { %p1689_p9 = pneg %p1688_p8 }
  0x29   : > { %p1694_p3 = pnand %p1692_p2, %p1689_p9 }
  0x2b   : > { %1697 = shalt.err (!%p1694_p3)
}
  0x2c   : > { %s1698_s20 = scalar_lea.vmem %s1846_s24, 3072  ;;  %p1706_p13 = scmp.lt.s32.totalorder %s1846_s24, %s1846_s24 }
  0x2d   : > { %p1699_p10 = scmp.ne.s32.totalorder %s1846_s24, %s1698_s20  ;;  %p1707_p0 = scmp.lt.s32.totalorder %s1698_s20, %s1698_s20 }
  0x2f   : > { %p1701_p11 = pnand %p1699_p10, %p1864_p7  ;;  %p1708_p1 = por %p1707_p0, %p1706_p13 }
  0x31   : > { %p1702_p12 = pneg %p1701_p11 }
  0x33   : > { %p1709_p4 = pnand %p1708_p1, %p1702_p12 }
  0x35   : > { %1712 = shalt.err (!%p1709_p4)
}
  0x36   : > { %s1792_s29 = smov 128   ;;  %s1793_s30 = smov 8  }
  0x37   : > { %1621 = dma.hbm_to_vmem [thread:$0]  (!%p1850_p5), %s2230_s1, 3072, %s1846_s24, [#allocation3], %s1792_s29, %s1792_s29, %s1793_s30  }
  0x38   : > { %s1713_s11 = scalar_lea.hbm %s2232_s3, 12288 }
  0x39   : > { %p1714_p6 = scmp.ne.s32.totalorder %s2232_s3, %s1713_s11  ;;  %p1720_p2 = scmp.lt.u32.totalorder %s1713_s11, %s2232_s3 }
  0x3b   : > { %p1716_p8 = pnand %p1714_p6, %p1864_p7 }
  0x3d   : > { %p1717_p9 = pneg %p1716_p8 }
  0x3f   : > { %p1722_p3 = pnand %p1720_p2, %p1717_p9 }
  0x41   : > { %1725 = shalt.err (!%p1722_p3)
}
  0x42   : > { %s1726_s24 = scalar_lea.vmem %s1854_s27, 12288  ;;  %p1734_p13 = scmp.lt.s32.totalorder %s1854_s27, %s1854_s27 }
  0x43   : > { %p1727_p10 = scmp.ne.s32.totalorder %s1854_s27, %s1726_s24  ;;  %p1735_p0 = scmp.lt.s32.totalorder %s1726_s24, %s1726_s24 }
  0x45   : > { %p1729_p11 = pnand %p1727_p10, %p1864_p7  ;;  %p1736_p1 = por %p1735_p0, %p1734_p13 }
  0x47   : > { %p1730_p12 = pneg %p1729_p11 }
  0x49   : > { %p1737_p4 = pnand %p1736_p1, %p1730_p12 }
  0x4b   : > { %1740 = shalt.err (!%p1737_p4)
}
  0x4c   : > { %s1794_s16 = smov 256   ;;  %s1795_s17 = smov 16  }
  0x4d   : > { %1627 = dma.hbm_to_vmem [thread:$0]  (!%p1850_p5), %s2232_s3, 12288, %s1854_s27, [#allocation5], %s1794_s16, %s1794_s16, %s1795_s17  }
  0x4e   : > { %s1796_s26 = smov [#allocation7]   ;;  %s1741_s30 = scalar_lea.hbm %s2233_s4, 32 }
  0x4f   : > { %s209_s28 = sshll.u32 %s1796_s26, 4  ;;  %p1742_p6 = scmp.ne.s32.totalorder %s2233_s4, %s1741_s30  ;;  %s210_s28 = int_to_ptr.vmem [resolvable:$true] %s209_s28 }
  0x50   : > { %p1748_p2 = scmp.lt.u32.totalorder %s1741_s30, %s2233_s4 }
  0x51   : > { %p1744_p8 = pnand %p1742_p6, %p1864_p7 }
  0x53   : > { %p1745_p9 = pneg %p1744_p8 }
  0x55   : > { %p1750_p3 = pnand %p1748_p2, %p1745_p9 }
  0x57   : > { %1753 = shalt.err (!%p1750_p3)
}
  0x58   : > { %s1754_s27 = scalar_lea.vmem %s210_s28, 32  ;;  %p1762_p13 = scmp.lt.s32.totalorder %s210_s28, %s210_s28 }
  0x59   : > { %p1755_p10 = scmp.ne.s32.totalorder %s210_s28, %s1754_s27  ;;  %p1763_p0 = scmp.lt.s32.totalorder %s1754_s27, %s1754_s27 }
  0x5b   : > { %p1757_p11 = pnand %p1755_p10, %p1864_p7  ;;  %p1764_p1 = por %p1763_p0, %p1762_p13 }
  0x5d   : > { %p1758_p12 = pneg %p1757_p11 }
  0x5f   : > { %p1765_p4 = pnand %p1764_p1, %p1758_p12 }
  0x61   : > { %1768 = shalt.err (!%p1765_p4)
}
  0x62   : > { %1630 = dma.hbm_to_vmem [thread:$0]  (!%p1850_p5), %s2233_s4, 32, %s210_s28, [#allocation8]  }
  0x63   : > { %p2240_p6 = scmp.ne.s32.totalorder %s2237_s22, 0 }
  0x64   : > { %p2241_p8 = scmp.eq.s32.totalorder (!%p2240_p6), %s1835_s21, 0 }
  0x65   : > { %230 = sbr.rel (%p2240_p6) target bundleno = 788 (0x314), region = 40 }
  0x6c   : > { %1774 = dma.done.wait (%p2241_p8), [#allocation3], 3072   ;;  %p2242_p7 = pmov %p2241_p8 }
  0x6e   : > { %1776 = vsyncadd (%p2242_p7), [#allocation3], 4294964224  ;;  %p2243_p9 = pmov %p2242_p7 }
  0x6f   : > { %p2244_p2 = pmov %p2242_p7 }
  0x70   : > { %1778 = dma.done.wait (%p2243_p9), [#allocation5], 12304  }
  0x71   : > { %1780 = vsyncadd (%p2244_p2), [#allocation5], 4294954992  ;;  %p2245_p3 = pmov %p2244_p2 }
  0x72   : > { %p2246_p5 = pmov %p2244_p2 }
  0x73   : > { %1782 = dma.done.wait (%p2245_p3), [#allocation8], 32  }
  0x74   : > { %1784 = vsyncadd (%p2246_p5), [#allocation8], 4294967264  ;;  %p271_p10 = scmp.lt.s32.totalorder %s1835_s21, 1  ;;  %v1797_v0 = vmov 0.0|0.0   ;;  %v335_v1 = vld [vmem:[#allocation2] sm:$0xff]  ;;  %v336_v2 = vld [vmem:[#allocation2 + $0x8] sm:$0xff] }
  0x75   : > { %1413 = vmatprep.subr.bf16.mxu0 %v1797_v0  ;;  %v337_v3 = vld [vmem:[#allocation2 + $0x10] sm:$0xff]  ;;  %v1414_v4 = vpack.c.bf16 %v336_v2, %v335_v1  ;;  %v338_v5 = vld [vmem:[#allocation2 + $0x18] sm:$0xff]  ;;  %v339_v7 = vld [vmem:[#allocation2 + $0x20] sm:$0xff]  ;;  %vm359_vm0 = vcmask 523264   ;;  %vm641_vm1 = vcmask 1043456   ;;  %vm740_vm2 = vcmask 1046528  }
  0x76   : > { %s272_s22 = scalar_select %p271_p10, %s1835_s21, 1  ;;  %v1417_v6 = vpack.c.bf16 %v338_v5, %v337_v3  ;;  %v340_v8 = vld [vmem:[#allocation2 + $0x28] sm:$0xff]  ;;  %v341_v10 = vld [vmem:[#allocation2 + $0x30] sm:$0xff]  ;;  %v342_v11 = vld [vmem:[#allocation2 + $0x38] sm:$0xff]  ;;  %vm749_vm3 = vcmask 1045504   ;;  %vm757_vm4 = vcmask 1044480  }
  0x77   : > { %1415 = vmatpush1.bf16.msra.mxu0 %v1414_v4  ;;  %v1420_v9 = vpack.c.bf16 %v340_v8, %v339_v7  ;;  %v1423_v13 = vpack.c.bf16 %v342_v11, %v341_v10  ;;  %v343_v14 = vld [vmem:[#allocation2 + $0x40] sm:$0xff]  ;;  %v344_v15 = vld [vmem:[#allocation2 + $0x48] sm:$0xff]  ;;  %v345_v17 = vld [vmem:[#allocation2 + $0x50] sm:$0xff]  ;;  %s276_s15 = smul.u32 6, %s1835_s21 }
  0x78   : > { %s1601_s25 = smul.u32 416, %s272_s22  ;;  %1416 = vmatprep.subr.bf16.mxu0 %v1797_v0  ;;  %v1426_v16 = vpack.c.bf16 %v344_v15, %v343_v14  ;;  %v346_v18 = vld [vmem:[#allocation2 + $0x58] sm:$0xff]  ;;  %v347_v20 = vld [vmem:[#allocation2 + $0x60] sm:$0xff]  ;;  %v348_v21 = vld [vmem:[#allocation2 + $0x68] sm:$0xff] }
  0x79   : > { %v1429_v19 = vpack.c.bf16 %v346_v18, %v345_v17  ;;  %v1432_v22 = vpack.c.bf16 %v348_v21, %v347_v20  ;;  %v349_v23 = vld [vmem:[#allocation2 + $0x70] sm:$0xff]  ;;  %v350_v24 = vld [vmem:[#allocation2 + $0x78] sm:$0xff]  ;;  %v351_v26 = vld [vmem:[#allocation2 + $0x80] sm:$0xff]  ;;  %p277_p11 = scmp.lt.s32.totalorder %s276_s15, 11 }
  0x7a   : > { %s1965_s14 = scalar_lea.vmem %s2229_s0, %s1601_s25  ;;  %v1435_v25 = vpack.c.bf16 %v350_v24, %v349_v23  ;;  %v352_v27 = vld [vmem:[#allocation2 + $0x88] sm:$0xff]  ;;  %v353_v29 = vld [vmem:[#allocation2 + $0x90] sm:$0xff]  ;;  %v354_v30 = vld [vmem:[#allocation2 + $0x98] sm:$0xff] }
  0x7b   : > { %1418 = vmatpush1.bf16.msra.mxu0 %v1417_v6  ;;  %v284_v12 = vld [vmem:[%s1965_s14 + $0x8] sm:$0xff]  ;;  %v1438_v28 = vpack.c.bf16 %v352_v27, %v351_v26  ;;  %v1441_v31 = vpack.c.bf16 %v354_v30, %v353_v29  ;;  %v355_v32 = vld [vmem:[#allocation2 + $0xa0] sm:$0xff]  ;;  %v357_v35 = vld [vmem:[#allocation2 + $0xb0] sm:$0xff]  ;;  %s2248_s15 = smov (!%p277_p11, %s276_s15), 11 }
  0x7c   : > { %1419 = vmatprep.subr.bf16.mxu0 %v1797_v0  ;;  %1383 = vmatprep.mubr.msk.f32.mxu0 %vm359_vm0, %v284_v12  ;;  %v356_v33 = vld [vmem:[#allocation2 + $0xa8] sm:$0xff]  ;;  %v358_v36 = vld [vmem:[#allocation2 + $0xb8] sm:$0xff]  ;;  %v283_v38 = vld [vmem:[%s1965_s14] sm:$0xff]  ;;  %s1412_s24 = sshll.u32 %s2248_s15, 4 }
  0x7d   : > { %v1444_v34 = vpack.c.bf16 %v356_v33, %v355_v32  ;;  %v1447_v37 = vpack.c.bf16 %v358_v36, %v357_v35  ;;  %v286_v39 = vld [vmem:[%s1965_s14 + $0x18] sm:$0xff]  ;;  %v285_v40 = vld [vmem:[%s1965_s14 + $0x10] sm:$0xff]  ;;  %v288_v41 = vld [vmem:[%s1965_s14 + $0x28] sm:$0xff]  ;;  %s2211_s17 = scalar_lea.vmem %s2234_s5, %s1412_s24 }
  0x7e   : > { %v287_v42 = vld [vmem:[%s1965_s14 + $0x20] sm:$0xff]  ;;  %v290_v43 = vld [vmem:[%s1965_s14 + $0x38] sm:$0xff]  ;;  %v289_v44 = vld [vmem:[%s1965_s14 + $0x30] sm:$0xff] }
  0x7f   : > { %1421 = vmatpush1.bf16.msra.mxu0 %v1420_v9  ;;  %v292_v45 = vld [vmem:[%s1965_s14 + $0x48] sm:$0xff]  ;;  %v291_v46 = vld [vmem:[%s1965_s14 + $0x40] sm:$0xff]  ;;  %v294_v47 = vld [vmem:[%s1965_s14 + $0x58] sm:$0xff] }
  0x80   : > { %1422 = vmatprep.subr.bf16.mxu0 %v1797_v0  ;;  %v293_v48 = vld [vmem:[%s1965_s14 + $0x50] sm:$0xff]  ;;  %v296_v49 = vld [vmem:[%s1965_s14 + $0x68] sm:$0xff]  ;;  %v295_v50 = vld [vmem:[%s1965_s14 + $0x60] sm:$0xff] }
  0x81   : > { %v298_v51 = vld [vmem:[%s1965_s14 + $0x78] sm:$0xff]  ;;  %v297_v52 = vld [vmem:[%s1965_s14 + $0x70] sm:$0xff]  ;;  %v300_v53 = vld [vmem:[%s1965_s14 + $0x88] sm:$0xff] }
  0x82   : > { %v299_v54 = vld [vmem:[%s1965_s14 + $0x80] sm:$0xff]  ;;  %v302_v55 = vld [vmem:[%s1965_s14 + $0x98] sm:$0xff]  ;;  %v301_v56 = vld [vmem:[%s1965_s14 + $0x90] sm:$0xff] }
  0x83   : > { %1424 = vmatpush1.bf16.msra.mxu0 %v1423_v13  ;;  %v304_v57 = vld [vmem:[%s1965_s14 + $0xa8] sm:$0xff]  ;;  %v303_v58 = vld [vmem:[%s1965_s14 + $0xa0] sm:$0xff]  ;;  %v306_v59 = vld [vmem:[%s1965_s14 + $0xb8] sm:$0xff] }
  0x84   : > { %1425 = vmatprep.subr.bf16.mxu0 %v1797_v0  ;;  %v305_v60 = vld [vmem:[%s1965_s14 + $0xb0] sm:$0xff]  ;;  %v308_v61 = vld [vmem:[%s1965_s14 + $0xc8] sm:$0xff]  ;;  %v307_v62 = vld [vmem:[%s1965_s14 + $0xc0] sm:$0xff] }
  0x85   : > { %v310_v63 = vld [vmem:[%s1965_s14 + $0xd8] sm:$0xff]  ;;  %v312_v1 = vld [vmem:[%s1965_s14 + $0xe8] sm:$0xff]  ;;  %v311_v2 = vld [vmem:[%s1965_s14 + $0xe0] sm:$0xff] }
  0x86   : > { %v314_v3 = vld [vmem:[%s1965_s14 + $0xf8] sm:$0xff]  ;;  %v313_v4 = vld [vmem:[%s1965_s14 + $0xf0] sm:$0xff]  ;;  %v316_v5 = vld [vmem:[%s1965_s14 + $0x108] sm:$0xff] }
  0x87   : > { %1427 = vmatpush1.bf16.msra.mxu0 %v1426_v16  ;;  %v315_v6 = vld [vmem:[%s1965_s14 + $0x100] sm:$0xff]  ;;  %v318_v7 = vld [vmem:[%s1965_s14 + $0x118] sm:$0xff]  ;;  %v317_v8 = vld [vmem:[%s1965_s14 + $0x110] sm:$0xff] }
  0x88   : > { %1428 = vmatprep.subr.bf16.mxu0 %v1797_v0  ;;  %v320_v9 = vld [vmem:[%s1965_s14 + $0x128] sm:$0xff]  ;;  %v319_v10 = vld [vmem:[%s1965_s14 + $0x120] sm:$0xff]  ;;  %v322_v11 = vld [vmem:[%s1965_s14 + $0x138] sm:$0xff] }
  0x89   : > { %v321_v12 = vld [vmem:[%s1965_s14 + $0x130] sm:$0xff]  ;;  %v324_v13 = vld [vmem:[%s1965_s14 + $0x148] sm:$0xff]  ;;  %v323_v14 = vld [vmem:[%s1965_s14 + $0x140] sm:$0xff] }
  0x8a   : > { %v326_v15 = vld [vmem:[%s1965_s14 + $0x158] sm:$0xff]  ;;  %v325_v16 = vld [vmem:[%s1965_s14 + $0x150] sm:$0xff]  ;;  %v328_v17 = vld [vmem:[%s1965_s14 + $0x168] sm:$0xff] }
  0x8b   : > { %1430 = vmatpush1.bf16.msra.mxu0 %v1429_v19  ;;  %v327_v18 = vld [vmem:[%s1965_s14 + $0x160] sm:$0xff]  ;;  %v330_v19 = vld [vmem:[%s1965_s14 + $0x178] sm:$0xff]  ;;  %v329_v20 = vld [vmem:[%s1965_s14 + $0x170] sm:$0xff] }
  0x8c   : > { %1431 = vmatprep.subr.bf16.mxu0 %v1797_v0  ;;  %v332_v21 = vld [vmem:[%s1965_s14 + $0x188] sm:$0xff]  ;;  %v334_v23 = vld [vmem:[%s1965_s14 + $0x198] sm:$0xff]  ;;  %v333_v24 = vld [vmem:[%s1965_s14 + $0x190] sm:$0xff] }
  0x8d   : > { %v841_v26 = vld [vmem:[#allocation6 + $0x18] sm:$0xff]  ;;  %v840_v29 = vld [vmem:[#allocation6 + $0x10] sm:$0xff] }
  0x8e   : > { %v845_v32 = vld [vmem:[#allocation6 + $0x38] sm:$0xff]  ;;  %v844_v35 = vld [vmem:[#allocation6 + $0x30] sm:$0xff] }
  0x8f   : > { %1433 = vmatpush1.bf16.msra.mxu0 %v1432_v22  ;;  %v331_v22 = vld [vmem:[%s1965_s14 + $0x180] sm:$0xff] }
  0x90   : > { %1434 = vmatprep.subr.bf16.mxu0 %v1797_v0 }
  0x93   : > { %1436 = vmatpush1.bf16.msra.mxu0 %v1435_v25  ;;  %v839_v25 = vld [vmem:[#allocation6 + $0x8] sm:$0xff] }
  0x94   : > { %1437 = vmatprep.subr.bf16.mxu0 %v1797_v0  ;;  %v1449_v27 = vpack.c.bf16 %v841_v26, %v839_v25  ;;  %v880_v25 = vld [vmem:[#allocation6 + $0x150] sm:$0xff] }
  0x96   : > { %1545 = vmatprep.subr.bf16.mxu1 %v1449_v27 }
  0x97   : > { %1439 = vmatpush1.bf16.msra.mxu0 %v1438_v28  ;;  %v838_v28 = vld [vmem:[#allocation6] sm:$0xff] }
  0x98   : > { %1440 = vmatprep.subr.bf16.mxu0 %v1797_v0  ;;  %v1451_v30 = vpack.c.bf16 %v840_v29, %v838_v28  ;;  %v885_v28 = vld [vmem:[#allocation6 + $0x178] sm:$0xff] }
  0x9a   : > { %1561 = vmatpush1.bf16.msra.mxu1 %v1451_v30 }
  0x9b   : > { %1442 = vmatpush1.bf16.msra.mxu0 %v1441_v31  ;;  %v843_v31 = vld [vmem:[#allocation6 + $0x28] sm:$0xff] }
  0x9c   : > { %1443 = vmatprep.subr.bf16.mxu0 %v1797_v0  ;;  %v1453_v33 = vpack.c.bf16 %v845_v32, %v843_v31  ;;  %v884_v31 = vld [vmem:[#allocation6 + $0x170] sm:$0xff] }
  0x9e   : > { %1546 = vmatprep.subr.bf16.mxu1 %v1453_v33 }
  0x9f   : > { %1445 = vmatpush1.bf16.msra.mxu0 %v1444_v34  ;;  %v842_v34 = vld [vmem:[#allocation6 + $0x20] sm:$0xff] }
  0xa0   : > { %1446 = vmatprep.subr.bf16.mxu0 %v1797_v0  ;;  %v309_v0 = vld [vmem:[%s1965_s14 + $0xd0] sm:$0xff]  ;;  %v1455_v36 = vpack.c.bf16 %v844_v35, %v842_v34  ;;  %v889_v34 = vld [vmem:[#allocation6 + $0x198] sm:$0xff] }
  0xa2   : > { %1562 = vmatpush1.bf16.msra.mxu1 %v1455_v36 }
  0xa3   : > { %1448 = vmatpush1.bf16.msra.mxu0 %v1447_v37  ;;  %v847_v37 = vld [vmem:[#allocation6 + $0x48] sm:$0xff] }
  0xa4   : > { %1450 = vmatprep.subr.bf16.mxu0 %v1449_v27  ;;  %v883_v27 = vld [vmem:[#allocation6 + $0x168] sm:$0xff] }
  0xa5   : > { %v1493_v29 = vpack.c.bf16 %v885_v28, %v883_v27 }
  0xa6   : > { %503 = vmatmul.mubr.f32.vlgmr.msra.gmra.mrb[0].mxu0 %v283_v38  ;;  %v849_v38 = vld [vmem:[#allocation6 + $0x58] sm:$0xff] }
  0xa7   : > { %1384 = vmatprep.mubr.msk.f32.mxu0 %vm359_vm0, %v286_v39  ;;  %1452 = vmatpush1.bf16.msra.mxu0 %v1451_v30  ;;  %v1457_v39 = vpack.c.bf16 %v849_v38, %v847_v37  ;;  %v882_v30 = vld [vmem:[#allocation6 + $0x160] sm:$0xff]  ;;  %v888_v37 = vld [vmem:[#allocation6 + $0x190] sm:$0xff] }
  0xa8   : > { %1454 = vmatprep.subr.bf16.mxu0 %v1453_v33  ;;  %v1495_v32 = vpack.c.bf16 %v884_v31, %v882_v30  ;;  %v887_v33 = vld [vmem:[#allocation6 + $0x188] sm:$0xff] }
  0xa9   : > { %1547 = vmatprep.subr.bf16.mxu1 %v1457_v39  ;;  %v1497_v35 = vpack.c.bf16 %v889_v34, %v887_v33 }
  0xaa   : > { %508 = vmatmul.mubr.f32.gmra.mrb[2].mxu0 %v285_v40  ;;  %v846_v40 = vld [vmem:[#allocation6 + $0x40] sm:$0xff] }
  0xab   : > { %1385 = vmatprep.mubr.msk.f32.mxu0 %vm359_vm0, %v288_v41  ;;  %1456 = vmatpush1.bf16.msra.mxu0 %v1455_v36  ;;  %v848_v41 = vld [vmem:[#allocation6 + $0x50] sm:$0xff]  ;;  %v886_v36 = vld [vmem:[#allocation6 + $0x180] sm:$0xff] }
  0xac   : > { %1458 = vmatprep.subr.bf16.mxu0 %v1457_v39  ;;  %v1499_v38 = vpack.c.bf16 %v888_v37, %v886_v36  ;;  %v891_v39 = vld [vmem:[#allocation6 + $0x1a8] sm:$0xff] }
  0xae   : > { %513 = vmatmul.mubr.f32.gmra.mrb[4].mxu0 %v287_v42  ;;  %v1459_v42 = vpack.c.bf16 %v848_v41, %v846_v40  ;;  %v893_v40 = vld [vmem:[#allocation6 + $0x1b8] sm:$0xff] }
  0xaf   : > { %1386 = vmatprep.mubr.msk.f32.mxu0 %vm359_vm0, %v290_v43  ;;  %v851_v43 = vld [vmem:[#allocation6 + $0x68] sm:$0xff]  ;;  %v1501_v41 = vpack.c.bf16 %v893_v40, %v891_v39 }
  0xb0   : > { %1460 = vmatpush1.bf16.msra.mxu0 %v1459_v42  ;;  %1563 = vmatpush1.bf16.msra.mxu1 %v1459_v42  ;;  %v890_v42 = vld [vmem:[#allocation6 + $0x1a0] sm:$0xff] }
  0xb2   : > { %518 = vmatmul.mubr.f32.gmra.mrb[6].mxu0 %v289_v44  ;;  %v853_v44 = vld [vmem:[#allocation6 + $0x78] sm:$0xff] }
  0xb3   : > { %1387 = vmatprep.mubr.msk.f32.mxu0 %vm359_vm0, %v292_v45  ;;  %v1461_v45 = vpack.c.bf16 %v853_v44, %v851_v43  ;;  %v892_v43 = vld [vmem:[#allocation6 + $0x1b0] sm:$0xff] }
  0xb4   : > { %v1503_v44 = vpack.c.bf16 %v892_v43, %v890_v42 }
  0xb5   : > { %1462 = vmatprep.subr.bf16.mxu0 %v1461_v45  ;;  %1548 = vmatprep.subr.bf16.mxu1 %v1461_v45  ;;  %v895_v45 = vld [vmem:[#allocation6 + $0x1c8] sm:$0xff] }
  0xb6   : > { %523 = vmatmul.mubr.f32.gmra.mrb[8].mxu0 %v291_v46  ;;  %v850_v46 = vld [vmem:[#allocation6 + $0x60] sm:$0xff] }
  0xb7   : > { %1388 = vmatprep.mubr.msk.f32.mxu0 %vm359_vm0, %v294_v47  ;;  %v852_v47 = vld [vmem:[#allocation6 + $0x70] sm:$0xff] }
  0xba   : > { %528 = vmatmul.mubr.f32.gmra.mrb[10].mxu0 %v293_v48  ;;  %v1463_v48 = vpack.c.bf16 %v852_v47, %v850_v46  ;;  %v897_v46 = vld [vmem:[#allocation6 + $0x1d8] sm:$0xff] }
  0xbb   : > { %1389 = vmatprep.mubr.msk.f32.mxu0 %vm359_vm0, %v296_v49  ;;  %v855_v49 = vld [vmem:[#allocation6 + $0x88] sm:$0xff]  ;;  %v1505_v47 = vpack.c.bf16 %v897_v46, %v895_v45 }
  0xbc   : > { %1464 = vmatpush1.bf16.msra.mxu0 %v1463_v48  ;;  %1564 = vmatpush1.bf16.msra.mxu1 %v1463_v48  ;;  %v894_v48 = vld [vmem:[#allocation6 + $0x1c0] sm:$0xff] }
  0xbe   : > { %533 = vmatmul.mubr.f32.gmra.mrb[12].mxu0 %v295_v50  ;;  %v857_v50 = vld [vmem:[#allocation6 + $0x98] sm:$0xff] }
  0xbf   : > { %1390 = vmatprep.mubr.msk.f32.mxu0 %vm359_vm0, %v298_v51  ;;  %v1465_v51 = vpack.c.bf16 %v857_v50, %v855_v49  ;;  %v896_v49 = vld [vmem:[#allocation6 + $0x1d0] sm:$0xff] }
  0xc0   : > { %v1507_v50 = vpack.c.bf16 %v896_v49, %v894_v48 }
  0xc1   : > { %1466 = vmatprep.subr.bf16.mxu0 %v1465_v51  ;;  %1549 = vmatprep.subr.bf16.mxu1 %v1465_v51  ;;  %v899_v51 = vld [vmem:[#allocation6 + $0x1e8] sm:$0xff] }
  0xc2   : > { %538 = vmatmul.mubr.f32.gmra.mrb[14].mxu0 %v297_v52  ;;  %v854_v52 = vld [vmem:[#allocation6 + $0x80] sm:$0xff] }
  0xc3   : > { %1391 = vmatprep.mubr.msk.f32.mxu0 %vm359_vm0, %v300_v53  ;;  %v856_v53 = vld [vmem:[#allocation6 + $0x90] sm:$0xff] }
  0xc6   : > { %543 = vmatmul.mubr.f32.gmra.mrb[16].mxu0 %v299_v54  ;;  %v1467_v54 = vpack.c.bf16 %v856_v53, %v854_v52  ;;  %v901_v52 = vld [vmem:[#allocation6 + $0x1f8] sm:$0xff] }
  0xc7   : > { %1392 = vmatprep.mubr.msk.f32.mxu0 %vm359_vm0, %v302_v55  ;;  %v859_v55 = vld [vmem:[#allocation6 + $0xa8] sm:$0xff]  ;;  %v1509_v53 = vpack.c.bf16 %v901_v52, %v899_v51 }
  0xc8   : > { %1468 = vmatpush1.bf16.msra.mxu0 %v1467_v54  ;;  %1565 = vmatpush1.bf16.msra.mxu1 %v1467_v54  ;;  %v898_v54 = vld [vmem:[#allocation6 + $0x1e0] sm:$0xff] }
  0xca   : > { %548 = vmatmul.mubr.f32.gmra.mrb[18].mxu0 %v301_v56  ;;  %v861_v56 = vld [vmem:[#allocation6 + $0xb8] sm:$0xff] }
  0xcb   : > { %1393 = vmatprep.mubr.msk.f32.mxu0 %vm359_vm0, %v304_v57  ;;  %v1469_v57 = vpack.c.bf16 %v861_v56, %v859_v55  ;;  %v900_v55 = vld [vmem:[#allocation6 + $0x1f0] sm:$0xff] }
  0xcc   : > { %v1511_v56 = vpack.c.bf16 %v900_v55, %v898_v54 }
  0xcd   : > { %1470 = vmatprep.subr.bf16.mxu0 %v1469_v57  ;;  %1550 = vmatprep.subr.bf16.mxu1 %v1469_v57  ;;  %v903_v57 = vld [vmem:[#allocation6 + $0x208] sm:$0xff] }
  0xce   : > { %553 = vmatmul.mubr.f32.gmra.mrb[20].mxu0 %v303_v58  ;;  %v858_v58 = vld [vmem:[#allocation6 + $0xa0] sm:$0xff] }
  0xcf   : > { %1394 = vmatprep.mubr.msk.f32.mxu0 %vm359_vm0, %v306_v59  ;;  %v860_v59 = vld [vmem:[#allocation6 + $0xb0] sm:$0xff] }
  0xd2   : > { %558 = vmatmul.mubr.f32.gmra.mrb[22].mxu0 %v305_v60  ;;  %v1471_v60 = vpack.c.bf16 %v860_v59, %v858_v58  ;;  %v905_v58 = vld [vmem:[#allocation6 + $0x218] sm:$0xff] }
  0xd3   : > { %1395 = vmatprep.mubr.msk.f32.mxu0 %vm359_vm0, %v308_v61  ;;  %v863_v61 = vld [vmem:[#allocation6 + $0xc8] sm:$0xff]  ;;  %v1513_v59 = vpack.c.bf16 %v905_v58, %v903_v57 }
  0xd4   : > { %1472 = vmatpush1.bf16.msra.mxu0 %v1471_v60  ;;  %1566 = vmatpush1.bf16.msra.mxu1 %v1471_v60 }
  0xd6   : > { %563 = vmatmul.mubr.f32.gmra.mrb[24].mxu0 %v307_v62  ;;  %v865_v62 = vld [vmem:[#allocation6 + $0xd8] sm:$0xff] }
  0xd7   : > { %1396 = vmatprep.mubr.msk.f32.mxu0 %vm359_vm0, %v310_v63  ;;  %v1473_v63 = vpack.c.bf16 %v865_v62, %v863_v61 }
  0xd9   : > { %1474 = vmatprep.subr.bf16.mxu0 %v1473_v63  ;;  %1551 = vmatprep.subr.bf16.mxu1 %v1473_v63 }
  0xda   : > { %568 = vmatmul.mubr.f32.gmra.mrb[26].mxu0 %v309_v0  ;;  %v862_v0 = vld [vmem:[#allocation6 + $0xc0] sm:$0xff] }
  0xdb   : > { %1397 = vmatprep.mubr.msk.f32.mxu0 %vm359_vm0, %v312_v1  ;;  %v864_v1 = vld [vmem:[#allocation6 + $0xd0] sm:$0xff] }
  0xde   : > { %573 = vmatmul.mubr.f32.gmra.mrb[28].mxu0 %v311_v2  ;;  %v1475_v2 = vpack.c.bf16 %v864_v1, %v862_v0 }
  0xdf   : > { %1398 = vmatprep.mubr.msk.f32.mxu0 %vm359_vm0, %v314_v3  ;;  %v867_v3 = vld [vmem:[#allocation6 + $0xe8] sm:$0xff] }
  0xe0   : > { %1476 = vmatpush1.bf16.msra.mxu0 %v1475_v2  ;;  %1567 = vmatpush1.bf16.msra.mxu1 %v1475_v2 }
  0xe2   : > { %578 = vmatmul.mubr.f32.gmra.mrb[30].mxu0 %v313_v4  ;;  %v869_v4 = vld [vmem:[#allocation6 + $0xf8] sm:$0xff] }
  0xe3   : > { %1399 = vmatprep.mubr.msk.f32.mxu0 %vm359_vm0, %v316_v5  ;;  %v1477_v5 = vpack.c.bf16 %v869_v4, %v867_v3 }
  0xe5   : > { %1478 = vmatprep.subr.bf16.mxu0 %v1477_v5  ;;  %1552 = vmatprep.subr.bf16.mxu1 %v1477_v5 }
  0xe6   : > { %583 = vmatmul.mubr.f32.gmra.mrb[32].mxu0 %v315_v6  ;;  %v866_v6 = vld [vmem:[#allocation6 + $0xe0] sm:$0xff] }
  0xe7   : > { %1400 = vmatprep.mubr.msk.f32.mxu0 %vm359_vm0, %v318_v7  ;;  %v868_v7 = vld [vmem:[#allocation6 + $0xf0] sm:$0xff] }
  0xea   : > { %588 = vmatmul.mubr.f32.gmra.mrb[34].mxu0 %v317_v8  ;;  %v1479_v8 = vpack.c.bf16 %v868_v7, %v866_v6 }
  0xeb   : > { %1401 = vmatprep.mubr.msk.f32.mxu0 %vm359_vm0, %v320_v9  ;;  %v871_v9 = vld [vmem:[#allocation6 + $0x108] sm:$0xff] }
  0xec   : > { %1480 = vmatpush1.bf16.msra.mxu0 %v1479_v8  ;;  %1568 = vmatpush1.bf16.msra.mxu1 %v1479_v8 }
  0xee   : > { %593 = vmatmul.mubr.f32.gmra.mrb[36].mxu0 %v319_v10  ;;  %v873_v10 = vld [vmem:[#allocation6 + $0x118] sm:$0xff] }
  0xef   : > { %1402 = vmatprep.mubr.msk.f32.mxu0 %vm359_vm0, %v322_v11  ;;  %v1481_v11 = vpack.c.bf16 %v873_v10, %v871_v9 }
  0xf1   : > { %1482 = vmatprep.subr.bf16.mxu0 %v1481_v11  ;;  %1553 = vmatprep.subr.bf16.mxu1 %v1481_v11 }
  0xf2   : > { %598 = vmatmul.mubr.f32.gmra.mrb[38].mxu0 %v321_v12  ;;  %v870_v12 = vld [vmem:[#allocation6 + $0x100] sm:$0xff] }
  0xf3   : > { %1403 = vmatprep.mubr.msk.f32.mxu0 %vm359_vm0, %v324_v13  ;;  %v872_v13 = vld [vmem:[#allocation6 + $0x110] sm:$0xff] }
  0xf6   : > { %603 = vmatmul.mubr.f32.gmra.mrb[40].mxu0 %v323_v14  ;;  %v1483_v14 = vpack.c.bf16 %v872_v13, %v870_v12 }
  0xf7   : > { %1404 = vmatprep.mubr.msk.f32.mxu0 %vm359_vm0, %v326_v15  ;;  %v875_v15 = vld [vmem:[#allocation6 + $0x128] sm:$0xff] }
  0xf8   : > { %1484 = vmatpush1.bf16.msra.mxu0 %v1483_v14  ;;  %1569 = vmatpush1.bf16.msra.mxu1 %v1483_v14  ;;  %v2057_v14 = vld [vmem:[#allocation4] ss:$0 sm:$0xff] }
  0xfa   : > { %608 = vmatmul.mubr.f32.gmra.mrb[42].mxu0 %v325_v16  ;;  %v877_v16 = vld [vmem:[#allocation6 + $0x138] sm:$0xff] }
  0xfb   : > { %1405 = vmatprep.mubr.msk.f32.mxu0 %vm359_vm0, %v328_v17  ;;  %v1485_v17 = vpack.c.bf16 %v877_v16, %v875_v15 }
  0xfd   : > { %1486 = vmatprep.subr.bf16.mxu0 %v1485_v17  ;;  %1554 = vmatprep.subr.bf16.mxu1 %v1485_v17 }
  0xfe   : > { %613 = vmatmul.mubr.f32.gmra.mrb[44].mxu0 %v327_v18  ;;  %v874_v18 = vld [vmem:[#allocation6 + $0x120] sm:$0xff] }
  0xff   : > { %1406 = vmatprep.mubr.msk.f32.mxu0 %vm359_vm0, %v330_v19  ;;  %v876_v19 = vld [vmem:[#allocation6 + $0x130] sm:$0xff] }
 0x102   : > { %618 = vmatmul.mubr.f32.gmra.mrb[46].mxu0 %v329_v20  ;;  %v1487_v20 = vpack.c.bf16 %v876_v19, %v874_v18 }
 0x103   : > { %1407 = vmatprep.mubr.msk.f32.mxu0 %vm359_vm0, %v332_v21  ;;  %v879_v21 = vld [vmem:[#allocation6 + $0x148] sm:$0xff] }
 0x104   : > { %1488 = vmatpush1.bf16.msra.mxu0 %v1487_v20  ;;  %1570 = vmatpush1.bf16.msra.mxu1 %v1487_v20 }
 0x106   : > { %623 = vmatmul.mubr.f32.gmra.mrb[48].mxu0 %v331_v22  ;;  %v881_v22 = vld [vmem:[#allocation6 + $0x158] sm:$0xff] }
 0x107   : > { %1408 = vmatprep.mubr.msk.f32.mxu0 %vm359_vm0, %v334_v23  ;;  %v1489_v23 = vpack.c.bf16 %v881_v22, %v879_v21 }
 0x109   : > { %1490 = vmatprep.subr.bf16.mxu0 %v1489_v23  ;;  %1555 = vmatprep.subr.bf16.mxu1 %v1489_v23 }
 0x10a   : > { %628 = vmatmul.mubr.f32.gmra.mrb[50].mxu0 %v333_v24  ;;  %v878_v24 = vld [vmem:[#allocation6 + $0x140] sm:$0xff] }
 0x10b   : > { %v1491_v26 = vpack.c.bf16 %v880_v25, %v878_v24 }
 0x10d   : > { %1492 = vmatpush1.bf16.msra.mxu0 %v1491_v26  ;;  %1571 = vmatpush1.bf16.msra.mxu1 %v1491_v26 }
 0x10e   : > { %1494 = vmatprep.subr.bf16.mxu0 %v1493_v29  ;;  %1556 = vmatprep.subr.bf16.mxu1 %v1493_v29 }
 0x111   : > { %1496 = vmatpush1.bf16.msra.mxu0 %v1495_v32  ;;  %1572 = vmatpush1.bf16.msra.mxu1 %v1495_v32 }
 0x112   : > { %1498 = vmatprep.subr.bf16.mxu0 %v1497_v35  ;;  %1557 = vmatprep.subr.bf16.mxu1 %v1497_v35 }
 0x115   : > { %1500 = vmatpush1.bf16.msra.mxu0 %v1499_v38  ;;  %1573 = vmatpush1.bf16.msra.mxu1 %v1499_v38 }
 0x116   : > { %1502 = vmatprep.subr.bf16.mxu0 %v1501_v41  ;;  %1558 = vmatprep.subr.bf16.mxu1 %v1501_v41 }
 0x119   : > { %1504 = vmatpush1.bf16.msra.mxu0 %v1503_v44  ;;  %1574 = vmatpush1.bf16.msra.mxu1 %v1503_v44 }
 0x11a   : > { %1506 = vmatprep.subr.bf16.mxu0 %v1505_v47  ;;  %1559 = vmatprep.subr.bf16.mxu1 %v1505_v47 }
 0x11d   : > { %1508 = vmatpush1.bf16.msra.mxu0 %v1507_v50  ;;  %1575 = vmatpush1.bf16.msra.mxu1 %v1507_v50 }
 0x11e   : > { %1510 = vmatprep.subr.bf16.mxu0 %v1509_v53  ;;  %1560 = vmatprep.subr.bf16.mxu1 %v1509_v53 }
 0x121   : > { %1512 = vmatpush1.bf16.msra.mxu0 %v1511_v56  ;;  %1576 = vmatpush1.bf16.msra.mxu1 %v1511_v56 }
 0x122   : > { %1514 = vmatprep.subr.bf16.mxu1 %v1513_v59 }
 0x179   : > { %v504_v60 = vpop.f32.mrb[0].mxu0 }
 0x17a   : > { %v506_v61 = vpop.f32.mrb[1].mxu0 }
 0x17d   : > { %v509_v62 = vpop.f32.mrb[2].mxu0 }
 0x17e   : > { %v511_v63 = vpop.f32.mrb[3].mxu0 }
 0x181   : > { %v514_v0 = vpop.f32.mrb[4].mxu0 }
 0x182   : > { %v516_v1 = vpop.f32.mrb[5].mxu0 }
 0x185   : > { %v519_v2 = vpop.f32.mrb[6].mxu0 }
 0x186   : > { %v521_v3 = vpop.f32.mrb[7].mxu0 }
 0x189   : > { %v524_v4 = vpop.f32.mrb[8].mxu0 }
 0x18a   : > { %v526_v5 = vpop.f32.mrb[9].mxu0 }
 0x18d   : > { %v2055_v6 = vpop.f32.mrb[10].mxu0 }
 0x18e   : > { %v531_v7 = vpop.f32.mrb[11].mxu0 }
 0x191   : > { %v534_v8 = vpop.f32.mrb[12].mxu0 }
 0x192   : > { %v536_v9 = vpop.f32.mrb[13].mxu0  ;;  %v642_v11 = vrot.slane %v534_v8, 4 }
 0x195   : > { %v539_v10 = vpop.f32.mrb[14].mxu0 }
 0x196   : > { %v643_v12 = vrot.slane %v539_v10, 4  ;;  %v541_v13 = vpop.f32.mrb[15].mxu0 }
 0x198   : > { %v644_v15 = vsel %vm641_vm1, %v642_v11, %v643_v12 }
 0x199   : > { %v662_v16 = vmax.f32 %v504_v60, %v644_v15  ;;  %v544_v17 = vpop.f32.mrb[16].mxu0 }
 0x19a   : > { %v645_v18 = vrot.slane %v544_v17, 4  ;;  %v546_v19 = vpop.f32.mrb[17].mxu0 }
 0x19b   : > { %v2061_v20 = vadd.f32 %v2057_v14, %v662_v16 }
 0x19c   : > { %v646_v21 = vsel %vm641_vm1, %v643_v12, %v645_v18 }
 0x19d   : > { %v663_v22 = vmax.f32 %v509_v62, %v646_v21  ;;  %v549_v23 = vpop.f32.mrb[18].mxu0  ;;  %v682_v26 = vmax.f32 %v2061_v20, 0.0 }
 0x19e   : > { %v647_v24 = vrot.slane %v549_v23, 4  ;;  %v551_v25 = vpop.f32.mrb[19].mxu0 }
 0x19f   : > { %v676_v27 = vadd.f32 %v2057_v14, %v663_v22  ;;  %v768_v36 = vrot.slane %v682_v26, 1 }
 0x1a0   : > { %v648_v28 = vsel %vm641_vm1, %v645_v18, %v647_v24 }
 0x1a1   : > { %v664_v29 = vmax.f32 %v514_v0, %v648_v28  ;;  %v554_v30 = vpop.f32.mrb[20].mxu0  ;;  %v683_v31 = vmax.f32 %v676_v27, 0.0 }
 0x1a2   : > { %v649_v32 = vrot.slane %v554_v30, 4  ;;  %v556_v33 = vpop.f32.mrb[21].mxu0 }
 0x1a3   : > { %v677_v34 = vadd.f32 %v2057_v14, %v664_v29  ;;  %v741_v35 = vrot.slane %v683_v31, 1  ;;  %v772_v46 = vrot.slane %v683_v31, 2 }
 0x1a4   : > { %v650_v37 = vsel %vm641_vm1, %v647_v24, %v649_v32 }
 0x1a5   : > { %v684_v38 = vmax.f32 %v677_v34, 0.0  ;;  %v665_v39 = vmax.f32 %v519_v2, %v650_v37  ;;  %v559_v40 = vpop.f32.mrb[22].mxu0  ;;  %v2072_v41 = vsel %vm740_vm2, %v768_v36, %v741_v35 }
 0x1a6   : > { %v651_v42 = vrot.slane %v559_v40, 4  ;;  %v561_v43 = vpop.f32.mrb[23].mxu0 }
 0x1a7   : > { %v678_v44 = vadd.f32 %v2057_v14, %v665_v39  ;;  %v742_v45 = vrot.slane %v684_v38, 1  ;;  %v773_v47 = vrot.slane %v684_v38, 2 }
 0x1a8   : > { %v652_v48 = vsel %vm641_vm1, %v649_v32, %v651_v42 }
 0x1a9   : > { %v685_v49 = vmax.f32 %v678_v44, 0.0  ;;  %v666_v50 = vmax.f32 %v524_v4, %v652_v48  ;;  %v564_v51 = vpop.f32.mrb[24].mxu0  ;;  %v743_v52 = vsel %vm740_vm2, %v741_v35, %v742_v45  ;;  %v774_v53 = vsel %vm749_vm3, %v772_v46, %v773_v47 }
 0x1aa   : > { %v653_v54 = vrot.slane %v564_v51, 4  ;;  %v566_v55 = vpop.f32.mrb[25].mxu0  ;;  %v2079_v56 = vsel %vm641_vm1, %v683_v31, %v743_v52  ;;  %v2082_v57 = vsel %vm641_vm1, %v741_v35, %v774_v53 }
 0x1ab   : > { %v679_v58 = vadd.f32 %v2057_v14, %v666_v50  ;;  %v744_v59 = vrot.slane %v685_v49, 1  ;;  %v750_v60 = vrot.slane %v685_v49, 2  ;;  %v778_v11 = vrot.slane %v685_v49, 3 }
 0x1ac   : > { %v654_v61 = vsel %vm641_vm1, %v651_v42, %v653_v54  ;;  %v668_v62 = vmax.f32 %v534_v8, %v653_v54 }
 0x1ad   : > { %v667_v63 = vmax.f32 %v2055_v6, %v654_v61  ;;  %v569_v0 = vpop.f32.mrb[26].mxu0  ;;  %v2088_v1 = vsel %vm740_vm2, %v742_v45, %v744_v59  ;;  %v686_v2 = vmax.f32 %v679_v58, 0.0  ;;  %v2091_v3 = vsel %vm749_vm3, %v773_v47, %v750_v60 }
 0x1ae   : > { %v681_v4 = vadd.f32 %v2057_v14, %v668_v62  ;;  %v571_v5 = vpop.f32.mrb[27].mxu0 }
 0x1af   : > { %v680_v7 = vadd.f32 %v2057_v14, %v667_v63  ;;  %v751_v9 = vrot.slane %v686_v2, 2  ;;  %v758_v10 = vrot.slane %v686_v2, 3 }
 0x1b0   : > { %v688_v8 = vmax.f32 %v681_v4, 0.0 }
 0x1b1   : > { %v687_v12 = vmax.f32 %v680_v7, 0.0  ;;  %v574_v6 = vpop.f32.mrb[28].mxu0  ;;  %v2096_v13 = vsel %vm749_vm3, %v750_v60, %v751_v9  ;;  %v2099_v15 = vsel %vm757_vm4, %v778_v11, %v758_v10  ;;  %v902_v11 = vld [vmem:[#allocation6 + $0x200] sm:$0xff] }
 0x1b2   : > { %v576_v16 = vpop.f32.mrb[29].mxu0  ;;  %v761_v17 = vrot.slane %v688_v8, 3  ;;  %v783_v18 = vrot.slane %v688_v8, 4  ;;  %v904_v8 = vld [vmem:[#allocation6 + $0x210] sm:$0xff] }
 0x1b3   : > { %v759_v19 = vrot.slane %v687_v12, 3  ;;  %v782_v21 = vrot.slane %v687_v12, 4 }
 0x1b5   : > { %v579_v22 = vpop.f32.mrb[30].mxu0  ;;  %v760_v23 = vsel %vm757_vm4, %v758_v10, %v759_v19  ;;  %v2103_v24 = vsel %vm757_vm4, %v759_v19, %v761_v17  ;;  %v2106_v25 = vsel %vm641_vm1, %v758_v10, %v782_v21  ;;  %v2109_v27 = vsel %vm641_vm1, %v782_v21, %v783_v18  ;;  %v907_v17 = vld [vmem:[#allocation6 + $0x228] sm:$0xff]  ;;  %v909_v18 = vld [vmem:[#allocation6 + $0x238] sm:$0xff] }
 0x1b6   : > { %v581_v28 = vpop.f32.mrb[31].mxu0  ;;  %v2112_v29 = vsel %vm641_vm1, %v751_v9, %v760_v23  ;;  %v1515_v23 = vpack.c.bf16 %v904_v8, %v902_v11  ;;  %v916_v11 = vld [vmem:[#allocation6 + $0x270] sm:$0xff] }
 0x1b9   : > { %v584_v30 = vpop.f32.mrb[32].mxu0 }
 0x1ba   : > { %v586_v31 = vpop.f32.mrb[33].mxu0 }
 0x1bd   : > { %v2114_v32 = vpop.f32.mrb[34].mxu0 }
 0x1be   : > { %v591_v33 = vpop.f32.mrb[35].mxu0 }
 0x1c1   : > { %v2116_v34 = vpop.f32.mrb[36].mxu0 }
 0x1c2   : > { %v596_v35 = vpop.f32.mrb[37].mxu0 }
 0x1c3   : > { %v906_v35 = vld [vmem:[#allocation6 + $0x220] sm:$0xff] }
 0x1c5   : > { %v2118_v36 = vpop.f32.mrb[38].mxu0 }
 0x1c6   : > { %v601_v37 = vpop.f32.mrb[39].mxu0  ;;  %v696_v39 = vrot.slane %v2118_v36, 4 }
 0x1c7   : > { %v908_v37 = vld [vmem:[#allocation6 + $0x230] sm:$0xff] }
 0x1c9   : > { %v604_v38 = vpop.f32.mrb[40].mxu0 }
 0x1ca   : > { %v697_v40 = vrot.slane %v604_v38, 4  ;;  %v606_v42 = vpop.f32.mrb[41].mxu0 }
 0x1cc   : > { %v698_v43 = vsel %vm641_vm1, %v696_v39, %v697_v40 }
 0x1cd   : > { %v716_v44 = vmax.f32 %v569_v0, %v698_v43  ;;  %v609_v45 = vpop.f32.mrb[42].mxu0  ;;  %v1517_v43 = vpack.c.bf16 %v909_v18, %v907_v17 }
 0x1ce   : > { %v699_v46 = vrot.slane %v609_v45, 4  ;;  %v611_v47 = vpop.f32.mrb[43].mxu0 }
 0x1cf   : > { %v723_v48 = vadd.f32 %v2057_v14, %v716_v44  ;;  %v911_v47 = vld [vmem:[#allocation6 + $0x248] sm:$0xff] }
 0x1d0   : > { %v700_v49 = vsel %vm641_vm1, %v697_v40, %v699_v46 }
 0x1d1   : > { %v717_v50 = vmax.f32 %v574_v6, %v700_v49  ;;  %v614_v51 = vpop.f32.mrb[44].mxu0  ;;  %v2124_v52 = vmax.f32 %v723_v48, 0.0  ;;  %v913_v48 = vld [vmem:[#allocation6 + $0x258] sm:$0xff] }
 0x1d2   : > { %v701_v53 = vrot.slane %v614_v51, 4  ;;  %v616_v54 = vpop.f32.mrb[45].mxu0  ;;  %v1519_v51 = vpack.c.bf16 %v908_v37, %v906_v35  ;;  %v925_v35 = vld [vmem:[#allocation6 + $0x2b8] sm:$0xff] }
 0x1d3   : > { %998 = vmatprep.mubr.f32.mxu0 %v2124_v52  ;;  %v724_v55 = vadd.f32 %v2057_v14, %v717_v50  ;;  %v817_v4 = vrot.slane %v2124_v52, 1 }
 0x1d4   : > { %v702_v58 = vsel %vm641_vm1, %v699_v46, %v701_v53  ;;  %999 = vmatmul.mubr.f32.vlgmr.msra.gmra.mrb[52].mxu0 %v682_v26 }
 0x1d5   : > { %v718_v59 = vmax.f32 %v579_v22, %v702_v58  ;;  %v619_v60 = vpop.f32.mrb[46].mxu0  ;;  %v731_v61 = vmax.f32 %v724_v55, 0.0 }
 0x1d6   : > { %v703_v62 = vrot.slane %v619_v60, 4  ;;  %v621_v63 = vpop.f32.mrb[47].mxu0  ;;  %v1521_v60 = vpack.c.bf16 %v913_v48, %v911_v47  ;;  %v926_v47 = vld [vmem:[#allocation6 + $0x2c0] sm:$0xff]  ;;  %v928_v48 = vld [vmem:[#allocation6 + $0x2d0] sm:$0xff] }
 0x1d7   : > { %v725_v0 = vadd.f32 %v2057_v14, %v718_v59  ;;  %v792_v2 = vrot.slane %v731_v61, 1  ;;  %v821_v19 = vrot.slane %v731_v61, 2  ;;  %v915_v63 = vld [vmem:[#allocation6 + $0x268] sm:$0xff] }
 0x1d8   : > { %v704_v5 = vsel %vm641_vm1, %v701_v53, %v703_v62 }
 0x1d9   : > { %v732_v7 = vmax.f32 %v725_v0, 0.0  ;;  %v719_v9 = vmax.f32 %v584_v30, %v704_v5  ;;  %v624_v10 = vpop.f32.mrb[48].mxu0  ;;  %v2135_v20 = vsel %vm740_vm2, %v817_v4, %v792_v2  ;;  %v917_v0 = vld [vmem:[#allocation6 + $0x278] sm:$0xff] }
 0x1da   : > { %v705_v26 = vrot.slane %v624_v10, 4  ;;  %v626_v12 = vpop.f32.mrb[49].mxu0  ;;  %v914_v10 = vld [vmem:[#allocation6 + $0x260] sm:$0xff] }
 0x1db   : > { %v726_v6 = vadd.f32 %v2057_v14, %v719_v9  ;;  %v793_v16 = vrot.slane %v732_v7, 1  ;;  %v822_v21 = vrot.slane %v732_v7, 2  ;;  %v1527_v18 = vpack.c.bf16 %v916_v11, %v914_v10 }
 0x1dc   : > { %v706_v22 = vsel %vm641_vm1, %v703_v62, %v705_v26 }
 0x1dd   : > { %v733_v28 = vmax.f32 %v726_v6, 0.0  ;;  %v720_v30 = vmax.f32 %v2114_v32, %v706_v22  ;;  %v629_v31 = vpop.f32.mrb[50].mxu0  ;;  %v794_v33 = vsel %vm740_vm2, %v792_v2, %v793_v16  ;;  %v823_v38 = vsel %vm749_vm3, %v821_v19, %v822_v21 }
 0x1de   : > { %v707_v39 = vrot.slane %v629_v31, 4  ;;  %v631_v40 = vpop.f32.mrb[51].mxu0  ;;  %v2143_v42 = vsel %vm641_vm1, %v731_v61, %v794_v33  ;;  %v2146_v44 = vsel %vm641_vm1, %v792_v2, %v823_v38  ;;  %v912_v61 = vld [vmem:[#allocation6 + $0x250] sm:$0xff]  ;;  %v918_v31 = vld [vmem:[#allocation6 + $0x280] sm:$0xff] }
 0x1df   : > { %v727_v45 = vadd.f32 %v2057_v14, %v720_v30  ;;  %1004 = vmatprep.mubr.f32.mxu1 %v2143_v42  ;;  %v795_v32 = vrot.slane %v733_v28, 1  ;;  %v800_v46 = vrot.slane %v733_v28, 2  ;;  %v827_v2 = vrot.slane %v733_v28, 3  ;;  %v920_v33 = vld [vmem:[#allocation6 + $0x290] sm:$0xff] }
 0x1e0   : > { %v708_v49 = vsel %vm641_vm1, %v705_v26, %v707_v39  ;;  %v722_v50 = vmax.f32 %v2118_v36, %v707_v39  ;;  %1005 = vmatmul.mubr.f32.vlgmr.msra.gmra.mrb[0].mxu1 %v2079_v56  ;;  %v910_v36 = vld [vmem:[#allocation6 + $0x240] sm:$0xff]  ;;  %v1525_v26 = vpack.c.bf16 %v917_v0, %v915_v63  ;;  %v1531_v37 = vpack.c.bf16 %v920_v33, %v918_v31  ;;  %v924_v40 = vld [vmem:[#allocation6 + $0x2b0] sm:$0xff] }
 0x1e1   : > { %v721_v53 = vmax.f32 %v2116_v34, %v708_v49  ;;  %1516 = vmatpush1.bf16.msra.mxu1 %v1515_v23  ;;  %v2155_v54 = vsel %vm740_vm2, %v793_v16, %v795_v32  ;;  %v734_v55 = vmax.f32 %v727_v45, 0.0  ;;  %v2158_v58 = vsel %vm749_vm3, %v822_v21, %v800_v46  ;;  %v919_v16 = vld [vmem:[#allocation6 + $0x288] sm:$0xff]  ;;  %v922_v39 = vld [vmem:[#allocation6 + $0x2a0] sm:$0xff]  ;;  %v929_v45 = vld [vmem:[#allocation6 + $0x2d8] sm:$0xff] }
 0x1e2   : > { %v729_v59 = vadd.f32 %v2057_v14, %v722_v50  ;;  %1010 = vmatprep.mubr.f32.mxu1 %v2155_v54  ;;  %1518 = vmatprep.subr.bf16.mxu1 %v1517_v43  ;;  %v1523_v9 = vpack.c.bf16 %v912_v61, %v910_v36  ;;  %v927_v43 = vld [vmem:[#allocation6 + $0x2c8] sm:$0xff]  ;;  %v1535_v32 = vpack.c.bf16 %v924_v40, %v922_v39  ;;  %v933_v49 = vld [vmem:[#allocation6 + $0x2f8] sm:$0xff]  ;;  %v1220_v63 = vld [vmem:[#allocation7] sm:$0x3] }
 0x1e3   : > { %v728_v56 = vadd.f32 %v2057_v14, %v721_v53  ;;  %v801_v62 = vrot.slane %v734_v55, 2  ;;  %v807_v34 = vrot.slane %v734_v55, 3  ;;  %v1539_v50 = vpack.c.bf16 %v928_v48, %v926_v47  ;;  %v930_v53 = vld [vmem:[#allocation6 + $0x2e0] sm:$0xff] }
 0x1e4   : > { %v736_v4 = vmax.f32 %v729_v59, 0.0  ;;  %1011 = vmatmul.mubr.f32.gmra.mrb[2].mxu1 %v2088_v1  ;;  %v921_v1 = vld [vmem:[#allocation6 + $0x298] sm:$0xff] }
 0x1e5   : > { %v735_v5 = vmax.f32 %v728_v56, 0.0  ;;  %v2165_v7 = vsel %vm749_vm3, %v800_v46, %v801_v62  ;;  %1520 = vmatpush1.bf16.msra.mxu1 %v1519_v51  ;;  %v2168_v8 = vsel %vm757_vm4, %v827_v2, %v807_v34  ;;  %v1529_v30 = vpack.c.bf16 %v921_v1, %v919_v16 }
 0x1e6   : > { %1016 = vmatprep.mubr.f32.mxu1 %v2165_v7  ;;  %1522 = vmatprep.subr.bf16.mxu1 %v1521_v60  ;;  %v810_v14 = vrot.slane %v736_v4, 3  ;;  %v832_v12 = vrot.slane %v736_v4, 4  ;;  %v1537_v46 = vpack.c.bf16 %v929_v45, %v927_v43 }
 0x1e7   : > { %v808_v6 = vrot.slane %v735_v5, 3  ;;  %v831_v17 = vrot.slane %v735_v5, 4 }
 0x1e8   : > { %1017 = vmatmul.mubr.f32.gmra.mrb[4].mxu1 %v2096_v13  ;;  %v923_v13 = vld [vmem:[#allocation6 + $0x2a8] sm:$0xff] }
 0x1e9   : > { %v809_v19 = vsel %vm757_vm4, %v807_v34, %v808_v6  ;;  %1524 = vmatpush1.bf16.msra.mxu1 %v1523_v9  ;;  %v811_v21 = vsel %vm757_vm4, %v808_v6, %v810_v14  ;;  %v2175_v22 = vsel %vm641_vm1, %v807_v34, %v831_v17  ;;  %v2178_v23 = vsel %vm641_vm1, %v831_v17, %v832_v12 }
 0x1ea   : > { %v815_v28 = vsel %vm641_vm1, %v801_v62, %v809_v19  ;;  %1526 = vmatprep.subr.bf16.mxu1 %v1525_v26  ;;  %v1533_v38 = vpack.c.bf16 %v925_v35, %v923_v13 }
 0x1eb   : > { %1022 = vmatprep.mubr.f32.mxu1 %v815_v28 }
 0x1ec   : > { %1023 = vmatmul.mubr.f32.gmra.mrb[6].mxu1 %v2112_v29  ;;  %v931_v29 = vld [vmem:[#allocation6 + $0x2e8] sm:$0xff] }
 0x1ed   : > { %1028 = vmatprep.mubr.f32.mxu1 %v811_v21  ;;  %1528 = vmatpush1.bf16.msra.mxu1 %v1527_v18  ;;  %v1541_v51 = vpack.c.bf16 %v933_v49, %v931_v29 }
 0x1ee   : > { %1530 = vmatprep.subr.bf16.mxu1 %v1529_v30 }
 0x1f0   : > { %1029 = vmatmul.mubr.f32.gmra.mrb[8].mxu1 %v2103_v24  ;;  %v932_v24 = vld [vmem:[#allocation6 + $0x2f0] sm:$0xff] }
 0x1f1   : > { %1034 = vmatprep.mubr.f32.mxu1 %v2072_v41  ;;  %1532 = vmatpush1.bf16.msra.mxu1 %v1531_v37  ;;  %v1543_v55 = vpack.c.bf16 %v932_v24, %v930_v53 }
 0x1f2   : > { %1534 = vmatprep.subr.bf16.mxu1 %v1533_v38 }
 0x1f4   : > { %1035 = vmatmul.mubr.f32.gmra.mrb[10].mxu1 %v2124_v52  ;;  %v1798_v52 = vmov 0.0  }
 0x1f5   : > { %1040 = vmatprep.mubr.f32.mxu1 %v2082_v57  ;;  %1536 = vmatpush1.bf16.msra.mxu1 %v1535_v32 }
 0x1f6   : > { %1538 = vmatprep.subr.bf16.mxu1 %v1537_v46 }
 0x1f8   : > { %1041 = vmatmul.mubr.f32.gmra.mrb[12].mxu1 %v2143_v42 }
 0x1f9   : > { %1046 = vmatprep.mubr.f32.mxu1 %v2091_v3  ;;  %1540 = vmatpush1.bf16.msra.mxu1 %v1539_v50 }
 0x1fa   : > { %1542 = vmatprep.subr.bf16.mxu1 %v1541_v51 }
 0x1fc   : > { %1047 = vmatmul.mubr.f32.gmra.mrb[14].mxu1 %v2155_v54 }
 0x1fd   : > { %1052 = vmatprep.mubr.f32.mxu1 %v2099_v15  ;;  %1544 = vmatpush1.bf16.msra.mxu1 %v1543_v55 }
 0x200   : > { %1053 = vmatmul.mubr.f32.gmra.mrb[16].mxu1 %v2165_v7 }
 0x201   : > { %1058 = vmatprep.mubr.f32.mxu1 %v2106_v25 }
 0x204   : > { %1059 = vmatmul.mubr.f32.gmra.mrb[18].mxu1 %v815_v28 }
 0x205   : > { %1064 = vmatprep.mubr.f32.mxu1 %v2109_v27 }
 0x208   : > { %1065 = vmatmul.mubr.f32.gmra.mrb[20].mxu1 %v811_v21 }
 0x209   : > { %1135 = vmatprep.mubr.f32.mxu1 %v1798_v52 }
 0x20c   : > { %1136 = vmatmul.mubr.f32.vlgmr.msra.gmra.mrb[22].mxu1 %v2072_v41 }
 0x20d   : > { %1141 = vmatprep.mubr.f32.mxu1 %v1798_v52 }
 0x210   : > { %1142 = vmatmul.mubr.f32.gmra.mrb[0].mxu1 %v2082_v57 }
 0x211   : > { %1147 = vmatprep.mubr.f32.mxu1 %v1798_v52 }
 0x214   : > { %1148 = vmatmul.mubr.f32.gmra.mrb[2].mxu1 %v2091_v3 }
 0x215   : > { %1153 = vmatprep.mubr.f32.mxu1 %v1798_v52 }
 0x218   : > { %1154 = vmatmul.mubr.f32.gmra.mrb[4].mxu1 %v2099_v15 }
 0x219   : > { %1159 = vmatprep.mubr.f32.mxu1 %v1798_v52 }
 0x21c   : > { %1160 = vmatmul.mubr.f32.gmra.mrb[6].mxu1 %v2106_v25 }
 0x21d   : > { %1165 = vmatprep.mubr.f32.mxu1 %v1798_v52 }
 0x220   : > { %1166 = vmatmul.mubr.f32.gmra.mrb[8].mxu1 %v2109_v27 }
 0x221   : > { %1171 = vmatprep.mubr.f32.mxu1 %v1798_v52 }
 0x224   : > { %1172 = vmatmul.mubr.f32.gmra.mrb[10].mxu1 %v2135_v20 }
 0x225   : > { %1177 = vmatprep.mubr.f32.mxu1 %v1798_v52 }
 0x228   : > { %1178 = vmatmul.mubr.f32.gmra.mrb[12].mxu1 %v2146_v44 }
 0x229   : > { %1183 = vmatprep.mubr.f32.mxu1 %v1798_v52 }
 0x22c   : > { %1184 = vmatmul.mubr.f32.gmra.mrb[14].mxu1 %v2158_v58  ;;  %v1222_v58 = vlaneseq }
 0x22d   : > { %1189 = vmatprep.mubr.f32.mxu1 %v1798_v52 }
 0x22e   : > { %v1223_v36 = vshrl.u32 %v1222_v58, 7 }
 0x230   : > { %1190 = vmatmul.mubr.f32.gmra.mrb[16].mxu1 %v2168_v8  ;;  %v1224_v62 = vsub.s32 0, %v1223_v36  ;;  %v1228_v0 = vsub.s32 1, %v1223_v36 }
 0x231   : > { %1195 = vmatprep.mubr.f32.mxu1 %v1798_v52 }
 0x232   : > { %v1225_v4 = vrot.slane %v1220_v63, %v1224_v62  ;;  %v1229_v7 = vrot.slane %v1220_v63, %v1228_v0 }
 0x234   : > { %1196 = vmatmul.mubr.f32.gmra.mrb[18].mxu1 %v2175_v22 }
 0x235   : > { %1201 = vmatprep.mubr.f32.mxu1 %v1798_v52 }
 0x238   : > { %1202 = vmatmul.mubr.f32.gmra.mrb[20].mxu1 %v2178_v23 }
 0x2a7   : > { %v1000_v41 = vpop.f32.mrb[52].mxu0 }
 0x2a8   : > { %v1002_v57 = vpop.f32.mrb[53].mxu0 }
 0x2df   : > { %v1137_v3 = vpop.f32.mrb[22].mxu1 }
 0x2e0   : > { %v1138_v15 = vadd.f32 %v1137_v3, %v1000_v41  ;;  %v1139_v25 = vpop.f32.mrb[23].mxu1 }
 0x2e1   : > { %v1140_v27 = vadd.f32 %v1139_v25, %v1002_v57 }
 0x2e3   : > { %v1143_v20 = vpop.f32.mrb[0].mxu1 }
 0x2e4   : > { %v1145_v42 = vpop.f32.mrb[1].mxu1 }
 0x2e7   : > { %v1149_v44 = vpop.f32.mrb[2].mxu1 }
 0x2e8   : > { %v1151_v54 = vpop.f32.mrb[3].mxu1 }
 0x2eb   : > { %v1155_v59 = vpop.f32.mrb[4].mxu1 }
 0x2ec   : > { %v1157_v60 = vpop.f32.mrb[5].mxu1 }
 0x2ef   : > { %v1161_v61 = vpop.f32.mrb[6].mxu1 }
 0x2f0   : > { %v1163_v56 = vpop.f32.mrb[7].mxu1 }
 0x2f3   : > { %v2206_v34 = vpop.f32.mrb[8].mxu1 }
 0x2f4   : > { %v1169_v2 = vpop.f32.mrb[9].mxu1 }
 0x2f7   : > { %v1173_v5 = vpop.f32.mrb[10].mxu1 }
 0x2f8   : > { %v1208_v9 = vmax.f32 %v1138_v15, %v1173_v5  ;;  %v1175_v10 = vpop.f32.mrb[11].mxu1 }
 0x2f9   : > { %v1209_v11 = vmax.f32 %v1140_v27, %v1175_v10 }
 0x2fa   : > { %v1232_v8 = vadd.f32 %v1225_v4, %v1208_v9 }
 0x2fb   : > { %v1233_v14 = vadd.f32 %v1229_v7, %v1209_v11  ;;  %v1179_v26 = vpop.f32.mrb[12].mxu1 }
 0x2fc   : > { %v1244_v12 = vmax.f32 %v1232_v8, 0.0  ;;  %v1210_v6 = vmax.f32 %v1143_v20, %v1179_v26  ;;  %v1181_v16 = vpop.f32.mrb[13].mxu1 }
 0x2fd   : > { %v1245_v1 = vmax.f32 %v1233_v14, 0.0  ;;  %v1211_v17 = vmax.f32 %v1145_v42, %v1181_v16 }
 0x2fe   : > { %1256 = vst [vmem:[%s2211_s17] sm:$0xff] %v1244_v12  ;;  %v1234_v18 = vadd.f32 %v1225_v4, %v1210_v6 }
 0x2ff   : > { %1257 = vst [vmem:[%s2211_s17 + $0x8] sm:$0xff] %v1245_v1  ;;  %v1235_v19 = vadd.f32 %v1229_v7, %v1211_v17  ;;  %v1185_v21 = vpop.f32.mrb[14].mxu1 }
 0x300   : > { %v1246_v22 = vmax.f32 %v1234_v18, 0.0  ;;  %v1212_v23 = vmax.f32 %v1149_v44, %v1185_v21  ;;  %v1187_v28 = vpop.f32.mrb[15].mxu1 }
 0x301   : > { %v1247_v30 = vmax.f32 %v1235_v19, 0.0  ;;  %v1213_v31 = vmax.f32 %v1151_v54, %v1187_v28 }
 0x302   : > { %1258 = vst [vmem:[%s2211_s17 + $0x10] sm:$0xff] %v1246_v22  ;;  %v1236_v33 = vadd.f32 %v1225_v4, %v1212_v23 }
 0x303   : > { %1259 = vst [vmem:[%s2211_s17 + $0x18] sm:$0xff] %v1247_v30  ;;  %v1237_v13 = vadd.f32 %v1229_v7, %v1213_v31  ;;  %v1191_v35 = vpop.f32.mrb[16].mxu1 }
 0x304   : > { %v1248_v37 = vmax.f32 %v1236_v33, 0.0  ;;  %v1214_v38 = vmax.f32 %v1155_v59, %v1191_v35  ;;  %v1193_v39 = vpop.f32.mrb[17].mxu1 }
 0x305   : > { %v1249_v40 = vmax.f32 %v1237_v13, 0.0  ;;  %v1215_v43 = vmax.f32 %v1157_v60, %v1193_v39 }
 0x306   : > { %1260 = vst [vmem:[%s2211_s17 + $0x20] sm:$0xff] %v1248_v37  ;;  %v1238_v45 = vadd.f32 %v1225_v4, %v1214_v38 }
 0x307   : > { %1261 = vst [vmem:[%s2211_s17 + $0x28] sm:$0xff] %v1249_v40  ;;  %v1239_v32 = vadd.f32 %v1229_v7, %v1215_v43  ;;  %v1197_v46 = vpop.f32.mrb[18].mxu1 }
 0x308   : > { %v1250_v47 = vmax.f32 %v1238_v45, 0.0  ;;  %v1216_v48 = vmax.f32 %v1161_v61, %v1197_v46  ;;  %v1199_v29 = vpop.f32.mrb[19].mxu1 }
 0x309   : > { %v1251_v49 = vmax.f32 %v1239_v32, 0.0  ;;  %v1217_v50 = vmax.f32 %v1163_v56, %v1199_v29 }
 0x30a   : > { %1262 = vst [vmem:[%s2211_s17 + $0x30] sm:$0xff] %v1250_v47  ;;  %v1240_v51 = vadd.f32 %v1225_v4, %v1216_v48 }
 0x30b   : > { %1263 = vst [vmem:[%s2211_s17 + $0x38] sm:$0xff] %v1251_v49  ;;  %v1241_v53 = vadd.f32 %v1229_v7, %v1217_v50  ;;  %v1203_v24 = vpop.f32.mrb[20].mxu1 }
 0x30c   : > { %v1252_v55 = vmax.f32 %v1240_v51, 0.0  ;;  %v1218_v52 = vmax.f32 %v2206_v34, %v1203_v24  ;;  %v1205_v41 = vpop.f32.mrb[21].mxu1 }
 0x30d   : > { %v1253_v57 = vmax.f32 %v1241_v53, 0.0  ;;  %v1219_v3 = vmax.f32 %v1169_v2, %v1205_v41 }
 0x30e   : > { %1264 = vst [vmem:[%s2211_s17 + $0x40] sm:$0xff] %v1252_v55  ;;  %v1242_v15 = vadd.f32 %v1225_v4, %v1218_v52 }
 0x30f   : > { %1265 = vst [vmem:[%s2211_s17 + $0x48] sm:$0xff] %v1253_v57  ;;  %v1243_v25 = vadd.f32 %v1229_v7, %v1219_v3 }
 0x310   : > { %v1254_v27 = vmax.f32 %v1242_v15, 0.0 }
 0x311   : > { %v1255_v20 = vmax.f32 %v1243_v25, 0.0 }
 0x312   : > { %1266 = vst [vmem:[%s2211_s17 + $0x50] sm:$0xff] %v1254_v27 }
 0x313   : > { %1267 = vst [vmem:[%s2211_s17 + $0x58] sm:$0xff] %v1255_v20 }
 0x314 PF: > { %s18_s18 = sadd.s32 1, %s1787_s18  }
 0x315   : > { %p15_p12 = scmp.ge.s32.totalorder %s18_s18, 4  }
 0x317   :  { %17 = sbr.rel (!%p15_p12) target bundleno = 3 (0x3), region = 87 }
 0x31e   :  { %1292 = vsyncpa [#allocation3], 1 }
 0x31f   :  { %1294 = vsyncpa [#allocation3 + $0x1], 1 }
 0x320   :  { %1295 = vsyncpa [#allocation5], 1 }
 0x321   :  { %1296 = vsyncpa [#allocation8], 1 }

// kernel: msscaeaa_forward.3
= control target key start
LH: loop header
LB: loop body
LE: loop exit
PB: predicated region body
PF: predicated region fallthrough
CT: control target
= control target key end

     0   :  { %s14615_s0 = inlined_call_operand.vmem [shape: f32[8,3072], index: 0, kind: input, shape index: {}]   ;;  %s14616_s1 = inlined_call_operand.hbm [shape: bf16[3072,1536], index: 1, kind: input, shape index: {}]   ;;  %s14617_s2 = inlined_call_operand.hbm [shape: f32[1,1536], index: 2, kind: input, shape index: {}]   ;;  %s14618_s3 = inlined_call_operand.hbm [shape: bf16[1536,128], index: 3, kind: input, shape index: {}]   ;;  %s14619_s4 = inlined_call_operand.hbm [shape: f32[8,1536], index: 4, kind: output, shape index: {0}]   ;;  %s14620_s5 = inlined_call_operand.vmem [shape: f32[2,8,128], index: 5, kind: output, shape index: {1}]  }
   0x1   :  { %14624 = sst [smem:[#allocation14_spill]] %s14616_s1 }
   0x2   :  { %14625 = sst [smem:[#allocation15_spill]] %s14617_s2 }
   0x3   :  { %11 = vsyncpa [#allocation3], 0 }
   0x4   :  { %13 = vsyncpa [#allocation3 + $0x1], 0 }
   0x5   :  { %14 = vsyncpa [#allocation6], 0 }
   0x6   :  { %16 = vsyncpa [#allocation6 + $0x1], 0 }
   0x7   :  { %17 = vsyncpa [#allocation4], 0 }
   0x8   :  { %19 = vsyncpa [#allocation4 + $0x1], 0  ;;  %s12949_s18 = smov 0   ;;  %s12951_s19 = smov 0  }
   0x9   :  { %s12953_s20 = smov 0   ;;  %s12955_s21 = smov 0  }
   0xa LB: > { %14626 = sst [smem:[#allocation12_spill]] %s12904_s20  ;;  %s12970_s22 = sadd.s32 4294967295, %s12908_s21   ;;  %s12908_s21 = sphi %s12955_s21, %s14646_s21   ;;  %s12904_s20 = sphi %s12953_s20, %s14643_s20   ;;  %s12900_s19 = sphi %s12951_s19, %s14645_s19   ;;  %s12896_s18 = sphi %s12949_s18, %s14644_s18  }
   0xb   : > { %s9484_s23 = sadd.s32 4294967294, %s12908_s21   ;;  %s12974_s24 = sadd.s32 1, %s12908_s21  }
   0xc   : > { %s53_s25 = sadd.s32 1, %s12904_s20  ;;  %s50_s26 = ssub.s32 %s12908_s21, %s12974_s24 }
   0xd   : > { %p60_p0 = scmp.ne.s32.totalorder %s12904_s20, %s12900_s19  ;;  %p51_p1 = scmp.eq.s32.totalorder %s50_s26, 0 }
   0xe   : > { %p61_p2 = scmp.eq.s32.totalorder %s12908_s21, 0  ;;  %p66_p3 = scmp.ne.s32.totalorder %s12900_s19, %s12896_s18 }
   0xf   : > { %p67_p4 = scmp.eq.s32.totalorder %s12970_s22, 0  ;;  %p142_p7 = scmp.eq.s32.totalorder %s12970_s22, 1 }
  0x10   : > { %s12986_s27 = scalar_select %p51_p1, %s12904_s20, %s53_s25  }
  0x11   : > { %p62_p5 = por %p61_p2, %p60_p0  ;;  %p12988_p6 = por %p67_p4, %p66_p3 }
  0x12   : > { %14627 = sst [smem:[#allocation13_spill]] %s12986_s27  ;;  %p148_p8 = scmp.eq.s32.totalorder %s9484_s23, 1 }
  0x13   : > { %s14628_s28 = scalar_select %p12988_p6, 1, 0 }
  0x14   : > { %p10930_p10 = scmp.lt.s32.totalorder %s12908_s21, 2  ;;  %p12995_p11 = por %p142_p7, %p60_p0 }
  0x15   : > { %p12999_p12 = por %p148_p8, %p66_p3  ;;  %s13004_s6 = sand.u32 1, %s12904_s20  }
  0x16   : > { %s14629_s29 = scalar_select %p12995_p11, 1, 0 }
  0x17   : > { %s14630_s30 = scalar_select %p12999_p12, 1, 0 }
  0x18   : > { %p13006_p13 = pnand %p10930_p10, %p62_p5  ;;  %s10901_s8 = smul.u32 9216, %s13004_s6 }
  0x19   : > { %s218_s9 = sand.u32 1, %s12908_s21   ;;  %s10902_s10 = smul.u32 6, %s13004_s6 }
  0x1a   : > { %p9490_p0 = scmp.ge.s32.totalorder %s12908_s21, 1  ;;  %s10696_s11 = smul.u32 96, %s12908_s21 }
  0x1b   : > { %p256_p1 = scmp.lt.s32.totalorder %s12908_s21, 3  ;;  %s14632_s2 = sld [smem:[#allocation15_spill]] }
  0x1c   : > { %s222_s16 = scalar_lea.vmem [#allocation5], %s10902_s10  ;;  %s13028_s25 = scalar_lea.sflag [#allocation6], %s218_s9 }
  0x1d   : > { %s230_s17 = sshll.u32 %s222_s16, 4  ;;  %p13024_p2 = pnand %p9490_p0, %p256_p1  ;;  %s13022_s17 = int_to_ptr.vmem [resolvable:$true] %s230_s17 }
  0x1e   : > { %p13034_p4 = pneg %p13006_p13 }
  0x1f   : > { %s14633_s23 = scalar_select %p13024_p2, 1, 0 }
  0x21   : > { %s13020_s15 = scalar_lea.hbm %s14632_s2, %s10696_s11  ;;  %s12753_s14 = scalar_lea.hbm %s14632_s2, 192 }
  0x22   : > { %s12748_s26 = scalar_lea.hbm %s13020_s15, 96  ;;  %p12754_p8 = scmp.lt.u32.totalorder %s13020_s15, %s14632_s2 }
  0x23   : > { %p12749_p3 = scmp.ne.s32.totalorder %s13020_s15, %s12748_s26  ;;  %p12755_p10 = scmp.lt.u32.totalorder %s12753_s14, %s12748_s26 }
  0x24   : > { %p12757_p1 = scmp.lt.u32.totalorder %s12748_s26, %s13020_s15 }
  0x25   : > { %p12751_p5 = pnand %p13034_p4, %p12749_p3  ;;  %p12756_p0 = por %p12755_p10, %p12754_p8 }
  0x27   : > { %p12752_p7 = pneg %p12751_p5  ;;  %p12758_p9 = por %p12757_p1, %p12756_p0 }
  0x29   : > { %p12759_p12 = pnand %p12758_p9, %p12752_p7 }
  0x2b   : > { %12762 = shalt.err (!%p12759_p12)
}
  0x2c   : > { %s12763_s9 = scalar_lea.vmem %s13022_s17, 96  ;;  %s12910_s10 = smov [#allocation5]  }
  0x2d   : > { %p12764_p3 = scmp.ne.s32.totalorder %s13022_s17, %s12763_s9  ;;  %s12768_s13 = sshll.u32 %s12910_s10, 4  ;;  %s12769_s13 = int_to_ptr.vmem [resolvable:$false] %s12768_s13 }
  0x2e   : > { %s12770_s12 = scalar_lea.vmem %s12769_s13, 192  ;;  %p12771_p6 = scmp.lt.s32.totalorder %s13022_s17, %s12769_s13 }
  0x2f   : > { %p12766_p5 = pnand %p12764_p3, %p13034_p4  ;;  %p12772_p2 = scmp.lt.s32.totalorder %s12770_s12, %s12763_s9 }
  0x31   : > { %p12767_p11 = pneg %p12766_p5  ;;  %p12773_p8 = por %p12772_p2, %p12771_p6 }
  0x33   : > { %p12774_p10 = pnand %p12773_p8, %p12767_p11 }
  0x35   : > { %12777 = shalt.err (!%p12774_p10)
}
  0x36   : > { %10922 = dma.hbm_to_vmem [thread:$0]  (!%p13006_p13), %s13020_s15, 96, %s13022_s17, %s13028_s25  }
  0x37   : > { %s10695_s26 = smul.u32 384, %s12908_s21  ;;  %s201_s14 = scalar_lea.vmem [#allocation2], %s10901_s8 }
  0x38   : > { %s208_s16 = sshll.u32 %s201_s14, 4  ;;  %s14635_s1 = sld [smem:[#allocation14_spill]]  ;;  %s13061_s16 = int_to_ptr.vmem [resolvable:$true] %s208_s16 }
  0x39   : > { %s198_s12 = scalar_lea.sflag [#allocation3], %s13004_s6 }
  0x3e   : > { %s13066_s13 = scalar_lea.hbm %s14635_s1, %s10695_s26  ;;  %s12783_s17 = scalar_lea.hbm %s14635_s1, 294912 }
  0x3f   : > { %s12778_s2 = scalar_lea.hbm %s13066_s13, 147456  ;;  %p12784_p12 = scmp.lt.u32.totalorder %s13066_s13, %s14635_s1 }
  0x40   : > { %p12779_p6 = scmp.ne.s32.totalorder %s13066_s13, %s12778_s2  ;;  %p12785_p2 = scmp.lt.u32.totalorder %s12783_s17, %s12778_s2 }
  0x41   : > { %p12787_p0 = scmp.lt.u32.totalorder %s12778_s2, %s13066_s13 }
  0x42   : > { %p12781_p9 = pnand %p12779_p6, %p13034_p4  ;;  %p12786_p7 = por %p12785_p2, %p12784_p12 }
  0x44   : > { %p12782_p11 = pneg %p12781_p9  ;;  %p12788_p1 = por %p12787_p0, %p12786_p7 }
  0x46   : > { %p12789_p3 = pnand %p12788_p1, %p12782_p11 }
  0x48   : > { %12792 = shalt.err (!%p12789_p3)
}
  0x49   : > { %s12793_s26 = scalar_lea.vmem %s13061_s16, 147456  ;;  %s12911_s9 = smov [#allocation2]  }
  0x4a   : > { %p12794_p5 = scmp.ne.s32.totalorder %s13061_s16, %s12793_s26  ;;  %s12798_s10 = sshll.u32 %s12911_s9, 4  ;;  %s12799_s10 = int_to_ptr.vmem [resolvable:$false] %s12798_s10 }
  0x4b   : > { %s12800_s27 = scalar_lea.vmem %s12799_s10, 294912  ;;  %p12801_p6 = scmp.lt.s32.totalorder %s13061_s16, %s12799_s10 }
  0x4c   : > { %p12796_p8 = pnand %p12794_p5, %p13034_p4  ;;  %p12802_p9 = scmp.lt.s32.totalorder %s12800_s27, %s12793_s26 }
  0x4e   : > { %p12797_p10 = pneg %p12796_p8  ;;  %p12803_p12 = por %p12802_p9, %p12801_p6 }
  0x50   : > { %p12804_p2 = pnand %p12803_p12, %p12797_p10 }
  0x52   : > { %12807 = shalt.err (!%p12804_p2)
}
  0x53   : > { %s12912_s2 = smov 768   ;;  %s12913_s15 = smov 384  }
  0x54   : > { %s12914_s8 = smov 24   ;;  %s10697_s17 = smul.u32 6144, %s12908_s21 }
  0x55   : > { %10919 = dma.hbm_to_vmem [thread:$0]  (!%p13006_p13), %s13066_s13, 147456, %s13061_s16, %s198_s12, %s12912_s2, %s12913_s15, %s12914_s8  }
  0x56   : > { %s14636_s14 = smul.u32 384, %s13004_s6  ;;  %s13100_s1 = scalar_lea.hbm %s14618_s3, %s10697_s17 }
  0x57   : > { %s12808_s20 = scalar_lea.hbm %s13100_s1, 6144  ;;  %s12813_s13 = scalar_lea.hbm %s14618_s3, 12288 }
  0x58   : > { %s241_s9 = scalar_lea.vmem [#allocation7], %s14636_s14  ;;  %p12809_p11 = scmp.ne.s32.totalorder %s13100_s1, %s12808_s20 }
  0x59   : > { %s248_s26 = sshll.u32 %s241_s9, 4  ;;  %p12814_p1 = scmp.lt.u32.totalorder %s13100_s1, %s14618_s3  ;;  %s13095_s26 = int_to_ptr.vmem [resolvable:$true] %s248_s26 }
  0x5a   : > { %p12811_p7 = pnand %p12809_p11, %p13034_p4  ;;  %p12815_p3 = scmp.lt.u32.totalorder %s12813_s13, %s12808_s20 }
  0x5b   : > { %p12817_p8 = scmp.lt.u32.totalorder %s12808_s20, %s13100_s1 }
  0x5c   : > { %p12812_p0 = pneg %p12811_p7  ;;  %p12816_p5 = por %p12815_p3, %p12814_p1 }
  0x5e   : > { %p12818_p10 = por %p12817_p8, %p12816_p5 }
  0x60   : > { %p12819_p6 = pnand %p12818_p10, %p12812_p0 }
  0x62   : > { %12822 = shalt.err (!%p12819_p6)
}
  0x63   : > { %s12823_s15 = scalar_lea.vmem %s13095_s26, 6144  ;;  %s12915_s8 = smov [#allocation7]  }
  0x64   : > { %p12824_p9 = scmp.ne.s32.totalorder %s13095_s26, %s12823_s15  ;;  %s12828_s17 = sshll.u32 %s12915_s8, 4  ;;  %s12829_s17 = int_to_ptr.vmem [resolvable:$false] %s12828_s17 }
  0x65   : > { %s12830_s14 = scalar_lea.vmem %s12829_s17, 12288  ;;  %p12831_p11 = scmp.lt.s32.totalorder %s13095_s26, %s12829_s17 }
  0x66   : > { %p12826_p12 = pnand %p12824_p9, %p13034_p4  ;;  %p12832_p7 = scmp.lt.s32.totalorder %s12830_s14, %s12823_s15 }
  0x68   : > { %p12827_p2 = pneg %p12826_p12  ;;  %p12833_p1 = por %p12832_p7, %p12831_p11 }
  0x6a   : > { %p12834_p3 = pnand %p12833_p1, %p12827_p2 }
  0x6c   : > { %12837 = shalt.err (!%p12834_p3)
}
  0x6d   : > { %s12916_s20 = smov 64   ;;  %s12917_s9 = smov 4  }
  0x6e   : > { %10925 = dma.hbm_to_vmem [thread:$0]  (!%p13006_p13), %s13100_s1, 6144, %s13095_s26, %s13028_s25, %s12916_s20, %s12916_s20, %s12917_s9  }
  0x6f   : > { %p14637_p4 = scmp.ne.s32.totalorder %s14633_s23, 0 }
  0x70   : > { %s13127_s11 = sand.u32 (!%p14637_p4), 1, %s12900_s19   ;;  %p14638_p0 = scmp.ne.s32.totalorder (!%p14637_p4), %s14628_s28, 0 }
  0x71   : > { %260 = sbr.rel (%p14637_p4) target bundleno = 1781 (0x6f5), region = 36  ;;  %s263_s27 = scalar_lea.sflag (!%p14637_p4), [#allocation3], %s13127_s11 }
  0x72   : > { %s10904_s10 = smul.u32 (!%p14637_p4), 9216, %s13127_s11 }
  0x74   : > { %s13131_s16 = scalar_lea.vmem (!%p14637_p4), [#allocation2], %s10904_s10 }
  0x78   : > { %12883 = dma.done.wait (%p14638_p0), %s263_s27, 147456  }
  0x79   : > { %12885 = vsyncadd (%p14638_p0), %s263_s27, 4294819840  ;;  %s271_s1 = sand.u32 1, %s12970_s22   ;;  %s10905_s7 = smul.u32 6, %s13127_s11 }
  0x7a   : > { %s272_s23 = scalar_lea.sflag [#allocation6], %s271_s1 }
  0x7b   : > { %s13139_s25 = scalar_lea.vmem [#allocation5], %s10905_s7 }
  0x7c   : > { %12887 = dma.done.wait (%p14638_p0), %s272_s23, 6240  }
  0x7d   : > { %12889 = vsyncadd (%p14638_p0), %s272_s23, 4294961056  ;;  %v10969_v0 = vld [vmem:[%s13131_s16 + $0x4] ss:$24 sps:$4 sm:$0xff]   ;;  %v10973_v2 = vld [vmem:[%s13131_s16] ss:$24 sps:$4 sm:$0xff]   ;;  %s10907_s1 = smul.u32 48, %s13127_s11 }
  0x7e   : > { %v10971_v1 = vld [vmem:[%s13131_s16 + $0xf04] ss:$24 sps:$4 sm:$0xff]   ;;  %7326 = vmatprep.subr.bf16.mxu1 %v10969_v0  ;;  %v10974_v3 = vld [vmem:[%s13131_s16 + $0xf00] ss:$24 sps:$4 sm:$0xff]   ;;  %v10975_v4 = vld [vmem:[%s13131_s16 + $0x34] ss:$24 sps:$4 sm:$0xff]  }
  0x7f   : > { %7531 = vmatprep.subr.bf16.mxu0 %v10971_v1  ;;  %7327 = vmatpush1.bf16.msra.mxu1 %v10973_v2  ;;  %v10977_v5 = vld [vmem:[%s13131_s16 + $0xf34] ss:$24 sps:$4 sm:$0xff]   ;;  %v10979_v6 = vld [vmem:[%s13131_s16 + $0x30] ss:$24 sps:$4 sm:$0xff]   ;;  %v10981_v8 = vld [vmem:[%s13131_s16 + $0x64] ss:$24 sps:$4 sm:$0xff]  }
  0x80   : > { %7532 = vmatpush1.bf16.msra.mxu0 %v10974_v3  ;;  %7328 = vmatprep.subr.bf16.mxu1 %v10975_v4  ;;  %v10980_v7 = vld [vmem:[%s13131_s16 + $0xf30] ss:$24 sps:$4 sm:$0xff]   ;;  %v10983_v9 = vld [vmem:[%s13131_s16 + $0xf64] ss:$24 sps:$4 sm:$0xff]   ;;  %v10985_v10 = vld [vmem:[%s13131_s16 + $0x60] ss:$24 sps:$4 sm:$0xff]  }
  0x81   : > { %7533 = vmatprep.subr.bf16.mxu0 %v10977_v5  ;;  %v10986_v11 = vld [vmem:[%s13131_s16 + $0xf60] ss:$24 sps:$4 sm:$0xff]   ;;  %v10987_v12 = vld [vmem:[%s13131_s16 + $0x94] ss:$24 sps:$4 sm:$0xff]   ;;  %v10991_v14 = vld [vmem:[%s13131_s16 + $0x90] ss:$24 sps:$4 sm:$0xff]  }
  0x82   : > { %v10989_v13 = vld [vmem:[%s13131_s16 + $0xf94] ss:$24 sps:$4 sm:$0xff]   ;;  %v10992_v15 = vld [vmem:[%s13131_s16 + $0xf90] ss:$24 sps:$4 sm:$0xff]   ;;  %v10993_v16 = vld [vmem:[%s13131_s16 + $0xc4] ss:$24 sps:$4 sm:$0xff]  }
  0x83   : > { %7329 = vmatpush1.bf16.msra.mxu1 %v10979_v6  ;;  %v10995_v17 = vld [vmem:[%s13131_s16 + $0xfc4] ss:$24 sps:$4 sm:$0xff]   ;;  %v10997_v18 = vld [vmem:[%s13131_s16 + $0xc0] ss:$24 sps:$4 sm:$0xff]   ;;  %v10999_v20 = vld [vmem:[%s13131_s16 + $0xf4] ss:$24 sps:$4 sm:$0xff]  }
  0x84   : > { %7534 = vmatpush1.bf16.msra.mxu0 %v10980_v7  ;;  %7330 = vmatprep.subr.bf16.mxu1 %v10981_v8  ;;  %v10998_v19 = vld [vmem:[%s13131_s16 + $0xfc0] ss:$24 sps:$4 sm:$0xff]   ;;  %v11001_v21 = vld [vmem:[%s13131_s16 + $0xff4] ss:$24 sps:$4 sm:$0xff]   ;;  %v11003_v22 = vld [vmem:[%s13131_s16 + $0xf0] ss:$24 sps:$4 sm:$0xff]  }
  0x85   : > { %7535 = vmatprep.subr.bf16.mxu0 %v10983_v9  ;;  %v11004_v23 = vld [vmem:[%s13131_s16 + $0xff0] ss:$24 sps:$4 sm:$0xff]   ;;  %v11005_v24 = vld [vmem:[%s13131_s16 + $0x124] ss:$24 sps:$4 sm:$0xff]   ;;  %v11009_v26 = vld [vmem:[%s13131_s16 + $0x120] ss:$24 sps:$4 sm:$0xff]  }
  0x86   : > { %v11007_v25 = vld [vmem:[%s13131_s16 + $0x1024] ss:$24 sps:$4 sm:$0xff]   ;;  %v11010_v27 = vld [vmem:[%s13131_s16 + $0x1020] ss:$24 sps:$4 sm:$0xff]   ;;  %v11011_v28 = vld [vmem:[%s13131_s16 + $0x154] ss:$24 sps:$4 sm:$0xff]  }
  0x87   : > { %7331 = vmatpush1.bf16.msra.mxu1 %v10985_v10  ;;  %v11013_v29 = vld [vmem:[%s13131_s16 + $0x1054] ss:$24 sps:$4 sm:$0xff]   ;;  %v11015_v30 = vld [vmem:[%s13131_s16 + $0x150] ss:$24 sps:$4 sm:$0xff]   ;;  %v11017_v32 = vld [vmem:[%s13131_s16 + $0x184] ss:$24 sps:$4 sm:$0xff]  }
  0x88   : > { %7536 = vmatpush1.bf16.msra.mxu0 %v10986_v11  ;;  %7332 = vmatprep.subr.bf16.mxu1 %v10987_v12  ;;  %v11016_v31 = vld [vmem:[%s13131_s16 + $0x1050] ss:$24 sps:$4 sm:$0xff]   ;;  %v11019_v33 = vld [vmem:[%s13131_s16 + $0x1084] ss:$24 sps:$4 sm:$0xff]   ;;  %v11021_v34 = vld [vmem:[%s13131_s16 + $0x180] ss:$24 sps:$4 sm:$0xff]  }
  0x89   : > { %7537 = vmatprep.subr.bf16.mxu0 %v10989_v13  ;;  %v11022_v35 = vld [vmem:[%s13131_s16 + $0x1080] ss:$24 sps:$4 sm:$0xff]   ;;  %v11023_v36 = vld [vmem:[%s13131_s16 + $0x1b4] ss:$24 sps:$4 sm:$0xff]   ;;  %v11027_v38 = vld [vmem:[%s13131_s16 + $0x1b0] ss:$24 sps:$4 sm:$0xff]  }
  0x8a   : > { %v11025_v37 = vld [vmem:[%s13131_s16 + $0x10b4] ss:$24 sps:$4 sm:$0xff]   ;;  %v11028_v39 = vld [vmem:[%s13131_s16 + $0x10b0] ss:$24 sps:$4 sm:$0xff]   ;;  %v11029_v40 = vld [vmem:[%s13131_s16 + $0x1e4] ss:$24 sps:$4 sm:$0xff]  }
  0x8b   : > { %7333 = vmatpush1.bf16.msra.mxu1 %v10991_v14  ;;  %v11031_v41 = vld [vmem:[%s13131_s16 + $0x10e4] ss:$24 sps:$4 sm:$0xff]   ;;  %v11033_v42 = vld [vmem:[%s13131_s16 + $0x1e0] ss:$24 sps:$4 sm:$0xff]   ;;  %v11035_v44 = vld [vmem:[%s13131_s16 + $0x214] ss:$24 sps:$4 sm:$0xff]  }
  0x8c   : > { %7538 = vmatpush1.bf16.msra.mxu0 %v10992_v15  ;;  %7334 = vmatprep.subr.bf16.mxu1 %v10993_v16  ;;  %v11034_v43 = vld [vmem:[%s13131_s16 + $0x10e0] ss:$24 sps:$4 sm:$0xff]   ;;  %v11037_v45 = vld [vmem:[%s13131_s16 + $0x1114] ss:$24 sps:$4 sm:$0xff]   ;;  %v11039_v47 = vld [vmem:[%s13131_s16 + $0x210] ss:$24 sps:$4 sm:$0xff]  }
  0x8d   : > { %7539 = vmatprep.subr.bf16.mxu0 %v10995_v17  ;;  %v335_v46 = vld [vmem:[%s14615_s0 + $0x8] sm:$0xff]  ;;  %v345_v50 = vld [vmem:[%s14615_s0 + $0x58] sm:$0xff]  ;;  %v334_v5 = vld [vmem:[%s14615_s0] sm:$0xff]  ;;  %s13989_s7 = scalar_lea.vmem [#allocation8], %s10907_s1  ;;  %s10906_s23 = smul.u32 384, %s13127_s11 }
  0x8e   : > { %v13195_v48 = vpack.c.bf16 %v335_v46, %v335_v46  ;;  %v11040_v49 = vld [vmem:[%s13131_s16 + $0x1110] ss:$24 sps:$4 sm:$0xff]   ;;  %v11041_v51 = vld [vmem:[%s13131_s16 + $0x244] ss:$24 sps:$4 sm:$0xff]   ;;  %v13203_v53 = vpack.c.bf16 %v345_v50, %v345_v50  ;;  %v11045_v54 = vld [vmem:[%s13131_s16 + $0x240] ss:$24 sps:$4 sm:$0xff]   ;;  %v13231_v10 = vpack.c.bf16 %v334_v5, %v334_v5 }
  0x8f   : > { %7335 = vmatpush1.bf16.msra.mxu1 %v10997_v18  ;;  %v11043_v52 = vld [vmem:[%s13131_s16 + $0x1144] ss:$24 sps:$4 sm:$0xff]   ;;  %v11046_v55 = vld [vmem:[%s13131_s16 + $0x1140] ss:$24 sps:$4 sm:$0xff]   ;;  %v11047_v56 = vld [vmem:[%s13131_s16 + $0x274] ss:$24 sps:$4 sm:$0xff]  }
  0x90   : > { %7540 = vmatpush1.bf16.msra.mxu0 %v10998_v19  ;;  %7336 = vmatprep.subr.bf16.mxu1 %v10999_v20  ;;  %v11049_v57 = vld [vmem:[%s13131_s16 + $0x1174] ss:$24 sps:$4 sm:$0xff]   ;;  %v11051_v58 = vld [vmem:[%s13131_s16 + $0x270] ss:$24 sps:$4 sm:$0xff]   ;;  %v11053_v60 = vld [vmem:[%s13131_s16 + $0x2a4] ss:$24 sps:$4 sm:$0xff]  }
  0x91   : > { %7541 = vmatprep.subr.bf16.mxu0 %v11001_v21  ;;  %7358 = vmatprep.mubr.bf16.mxu1 %v13195_v48  ;;  %v11052_v59 = vld [vmem:[%s13131_s16 + $0x1170] ss:$24 sps:$4 sm:$0xff]   ;;  %v11055_v61 = vld [vmem:[%s13131_s16 + $0x11a4] ss:$24 sps:$4 sm:$0xff]   ;;  %v11057_v62 = vld [vmem:[%s13131_s16 + $0x2a0] ss:$24 sps:$4 sm:$0xff]  }
  0x92   : > { %7563 = vmatprep.mubr.bf16.mxu0 %v13203_v53  ;;  %v11058_v63 = vld [vmem:[%s13131_s16 + $0x11a0] ss:$24 sps:$4 sm:$0xff]   ;;  %v11059_v0 = vld [vmem:[%s13131_s16 + $0x2d4] ss:$24 sps:$4 sm:$0xff]   ;;  %v11063_v2 = vld [vmem:[%s13131_s16 + $0x2d0] ss:$24 sps:$4 sm:$0xff]  }
  0x93   : > { %7337 = vmatpush1.bf16.msra.mxu1 %v11003_v22  ;;  %v11061_v1 = vld [vmem:[%s13131_s16 + $0x11d4] ss:$24 sps:$4 sm:$0xff]   ;;  %v11064_v3 = vld [vmem:[%s13131_s16 + $0x11d0] ss:$24 sps:$4 sm:$0xff]   ;;  %v11067_v4 = vld [vmem:[%s13131_s16 + $0x304] ss:$24 sps:$4 sm:$0xff]  }
  0x94   : > { %7542 = vmatpush1.bf16.msra.mxu0 %v11004_v23  ;;  %7338 = vmatprep.subr.bf16.mxu1 %v11005_v24  ;;  %v344_v6 = vld [vmem:[%s14615_s0 + $0x50] sm:$0xff]  ;;  %v11070_v7 = vld [vmem:[%s13131_s16 + $0x1204] ss:$24 sps:$4 sm:$0xff]   ;;  %v11065_v8 = vld [vmem:[%s13131_s16 + $0x300] ss:$24 sps:$4 sm:$0xff]   ;;  %s14306_s28 = scalar_lea.vmem [#allocation7], %s10906_s23 }
  0x95   : > { %7543 = vmatprep.subr.bf16.mxu0 %v11007_v25  ;;  %v11068_v9 = vld [vmem:[%s13131_s16 + $0x1200] ss:$24 sps:$4 sm:$0xff]   ;;  %v13233_v11 = vpack.c.bf16 %v344_v6, %v344_v6  ;;  %v11073_v12 = vld [vmem:[%s13131_s16 + $0x334] ss:$24 sps:$4 sm:$0xff]   ;;  %v11071_v14 = vld [vmem:[%s13131_s16 + $0x330] ss:$24 sps:$4 sm:$0xff]  }
  0x96   : > { %v11076_v13 = vld [vmem:[%s13131_s16 + $0x1234] ss:$24 sps:$4 sm:$0xff]   ;;  %v11074_v15 = vld [vmem:[%s13131_s16 + $0x1230] ss:$24 sps:$4 sm:$0xff]   ;;  %v11079_v16 = vld [vmem:[%s13131_s16 + $0x364] ss:$24 sps:$4 sm:$0xff]  }
  0x97   : > { %7339 = vmatpush1.bf16.msra.mxu1 %v11009_v26  ;;  %v11082_v17 = vld [vmem:[%s13131_s16 + $0x1264] ss:$24 sps:$4 sm:$0xff]   ;;  %v11077_v18 = vld [vmem:[%s13131_s16 + $0x360] ss:$24 sps:$4 sm:$0xff]   ;;  %v11085_v20 = vld [vmem:[%s13131_s16 + $0x394] ss:$24 sps:$4 sm:$0xff]  }
  0x98   : > { %7544 = vmatpush1.bf16.msra.mxu0 %v11010_v27  ;;  %7340 = vmatprep.subr.bf16.mxu1 %v11011_v28  ;;  %v11080_v19 = vld [vmem:[%s13131_s16 + $0x1260] ss:$24 sps:$4 sm:$0xff]   ;;  %v11088_v21 = vld [vmem:[%s13131_s16 + $0x1294] ss:$24 sps:$4 sm:$0xff]   ;;  %v11083_v22 = vld [vmem:[%s13131_s16 + $0x390] ss:$24 sps:$4 sm:$0xff]  }
  0x99   : > { %7545 = vmatprep.subr.bf16.mxu0 %v11013_v29  ;;  %v11086_v23 = vld [vmem:[%s13131_s16 + $0x1290] ss:$24 sps:$4 sm:$0xff]   ;;  %v11091_v24 = vld [vmem:[%s13131_s16 + $0x3c4] ss:$24 sps:$4 sm:$0xff]   ;;  %v11089_v26 = vld [vmem:[%s13131_s16 + $0x3c0] ss:$24 sps:$4 sm:$0xff]  }
  0x9a   : > { %v11094_v25 = vld [vmem:[%s13131_s16 + $0x12c4] ss:$24 sps:$4 sm:$0xff]   ;;  %v11092_v27 = vld [vmem:[%s13131_s16 + $0x12c0] ss:$24 sps:$4 sm:$0xff]   ;;  %v11097_v28 = vld [vmem:[%s13131_s16 + $0x3f4] ss:$24 sps:$4 sm:$0xff]  }
  0x9b   : > { %7341 = vmatpush1.bf16.msra.mxu1 %v11015_v30  ;;  %v11100_v29 = vld [vmem:[%s13131_s16 + $0x12f4] ss:$24 sps:$4 sm:$0xff]   ;;  %v11095_v30 = vld [vmem:[%s13131_s16 + $0x3f0] ss:$24 sps:$4 sm:$0xff]   ;;  %v11113_v46 = vld [vmem:[%s13131_s16 + $0x480] ss:$24 sps:$4 sm:$0xff]  }
  0x9c   : > { %7546 = vmatpush1.bf16.msra.mxu0 %v11016_v31  ;;  %7342 = vmatprep.subr.bf16.mxu1 %v11017_v32  ;;  %v11098_v31 = vld [vmem:[%s13131_s16 + $0x12f0] ss:$24 sps:$4 sm:$0xff]   ;;  %v11103_v32 = vld [vmem:[%s13131_s16 + $0x424] ss:$24 sps:$4 sm:$0xff]   ;;  %v11124_v50 = vld [vmem:[%s13131_s16 + $0x13b4] ss:$24 sps:$4 sm:$0xff]  }
  0x9d   : > { %7547 = vmatprep.subr.bf16.mxu0 %v11019_v33  ;;  %v11106_v33 = vld [vmem:[%s13131_s16 + $0x1324] ss:$24 sps:$4 sm:$0xff]   ;;  %v11146_v5 = vld [vmem:[%s13131_s16 + $0x1470] ss:$24 sps:$4 sm:$0xff]   ;;  %s9326_s12 = scalar_lea.sflag [#allocation4], %s13127_s11  ;;  %p14639_p5 = scmp.ne.s32.totalorder %s14629_s29, 0 }
  0x9e   : > { %v11151_v6 = vld [vmem:[%s13131_s16 + $0x5a4] ss:$24 sps:$4 sm:$0xff]   ;;  %s12918_s15 = smov [#allocation8]  }
  0x9f   : > { %7343 = vmatpush1.bf16.msra.mxu1 %v11021_v34  ;;  %v337_v34 = vld [vmem:[%s14615_s0 + $0x18] sm:$0xff]  ;;  %s12842_s8 = sshll.u32 %s12918_s15, 4  ;;  %s12843_s8 = int_to_ptr.vmem [resolvable:$false] %s12842_s8 }
  0xa0   : > { %7548 = vmatpush1.bf16.msra.mxu0 %v11022_v35  ;;  %7344 = vmatprep.subr.bf16.mxu1 %v11023_v36  ;;  %v11101_v35 = vld [vmem:[%s13131_s16 + $0x420] ss:$24 sps:$4 sm:$0xff]   ;;  %v13263_v36 = vpack.c.bf16 %v337_v34, %v337_v34  ;;  %s12844_s17 = scalar_lea.vmem %s12843_s8, 1536 }
  0xa1   : > { %7549 = vmatprep.subr.bf16.mxu0 %v11025_v37  ;;  %v11104_v37 = vld [vmem:[%s13131_s16 + $0x1320] ss:$24 sps:$4 sm:$0xff]  }
  0xa2   : > { %v11173_v34 = vld [vmem:[%s13131_s16 + $0x660] ss:$24 sps:$4 sm:$0xff]  }
  0xa3   : > { %7345 = vmatpush1.bf16.msra.mxu1 %v11027_v38  ;;  %v347_v38 = vld [vmem:[%s14615_s0 + $0x68] sm:$0xff] }
  0xa4   : > { %7550 = vmatpush1.bf16.msra.mxu0 %v11028_v39  ;;  %7346 = vmatprep.subr.bf16.mxu1 %v11029_v40  ;;  %v11109_v39 = vld [vmem:[%s13131_s16 + $0x454] ss:$24 sps:$4 sm:$0xff]  }
  0xa5   : > { %7551 = vmatprep.subr.bf16.mxu0 %v11031_v41  ;;  %v11112_v40 = vld [vmem:[%s13131_s16 + $0x1354] ss:$24 sps:$4 sm:$0xff]   ;;  %v13271_v41 = vpack.c.bf16 %v347_v38, %v347_v38 }
  0xa6   : > { %v11184_v38 = vld [vmem:[%s13131_s16 + $0x1594] ss:$24 sps:$4 sm:$0xff]  }
  0xa7   : > { %7347 = vmatpush1.bf16.msra.mxu1 %v11033_v42  ;;  %v11107_v42 = vld [vmem:[%s13131_s16 + $0x450] ss:$24 sps:$4 sm:$0xff]  }
  0xa8   : > { %7552 = vmatpush1.bf16.msra.mxu0 %v11034_v43  ;;  %7348 = vmatprep.subr.bf16.mxu1 %v11035_v44  ;;  %v11110_v43 = vld [vmem:[%s13131_s16 + $0x1350] ss:$24 sps:$4 sm:$0xff]   ;;  %v11115_v44 = vld [vmem:[%s13131_s16 + $0x484] ss:$24 sps:$4 sm:$0xff]  }
  0xa9   : > { %7553 = vmatprep.subr.bf16.mxu0 %v11037_v45  ;;  %v11118_v45 = vld [vmem:[%s13131_s16 + $0x1384] ss:$24 sps:$4 sm:$0xff]  }
  0xab   : > { %7349 = vmatpush1.bf16.msra.mxu1 %v11039_v47  ;;  %v11116_v47 = vld [vmem:[%s13131_s16 + $0x1380] ss:$24 sps:$4 sm:$0xff]  }
  0xac   : > { %7554 = vmatpush1.bf16.msra.mxu0 %v11040_v49  ;;  %7350 = vmatprep.subr.bf16.mxu1 %v11041_v51  ;;  %v11121_v49 = vld [vmem:[%s13131_s16 + $0x4b4] ss:$24 sps:$4 sm:$0xff]   ;;  %v11119_v51 = vld [vmem:[%s13131_s16 + $0x4b0] ss:$24 sps:$4 sm:$0xff]  }
  0xad   : > { %7555 = vmatprep.subr.bf16.mxu0 %v11043_v52  ;;  %v11122_v52 = vld [vmem:[%s13131_s16 + $0x13b0] ss:$24 sps:$4 sm:$0xff]  }
  0xaf   : > { %7351 = vmatpush1.bf16.msra.mxu1 %v11045_v54  ;;  %v11127_v54 = vld [vmem:[%s13131_s16 + $0x4e4] ss:$24 sps:$4 sm:$0xff]  }
  0xb0   : > { %7556 = vmatpush1.bf16.msra.mxu0 %v11046_v55  ;;  %7352 = vmatprep.subr.bf16.mxu1 %v11047_v56  ;;  %v11130_v55 = vld [vmem:[%s13131_s16 + $0x13e4] ss:$24 sps:$4 sm:$0xff]   ;;  %v11125_v56 = vld [vmem:[%s13131_s16 + $0x4e0] ss:$24 sps:$4 sm:$0xff]  }
  0xb1   : > { %7557 = vmatprep.subr.bf16.mxu0 %v11049_v57  ;;  %v11128_v57 = vld [vmem:[%s13131_s16 + $0x13e0] ss:$24 sps:$4 sm:$0xff]  }
  0xb3   : > { %7353 = vmatpush1.bf16.msra.mxu1 %v11051_v58  ;;  %v11133_v58 = vld [vmem:[%s13131_s16 + $0x514] ss:$24 sps:$4 sm:$0xff]  }
  0xb4   : > { %7558 = vmatpush1.bf16.msra.mxu0 %v11052_v59  ;;  %7354 = vmatprep.subr.bf16.mxu1 %v11053_v60  ;;  %v11136_v59 = vld [vmem:[%s13131_s16 + $0x1414] ss:$24 sps:$4 sm:$0xff]   ;;  %v11131_v60 = vld [vmem:[%s13131_s16 + $0x510] ss:$24 sps:$4 sm:$0xff]  }
  0xb5   : > { %7559 = vmatprep.subr.bf16.mxu0 %v11055_v61  ;;  %v11134_v61 = vld [vmem:[%s13131_s16 + $0x1410] ss:$24 sps:$4 sm:$0xff]  }
  0xb7   : > { %7355 = vmatpush1.bf16.msra.mxu1 %v11057_v62  ;;  %v11139_v62 = vld [vmem:[%s13131_s16 + $0x544] ss:$24 sps:$4 sm:$0xff]  }
  0xb8   : > { %7560 = vmatpush1.bf16.msra.mxu0 %v11058_v63  ;;  %7356 = vmatprep.subr.bf16.mxu1 %v11059_v0  ;;  %v11142_v63 = vld [vmem:[%s13131_s16 + $0x1444] ss:$24 sps:$4 sm:$0xff]   ;;  %v11137_v0 = vld [vmem:[%s13131_s16 + $0x540] ss:$24 sps:$4 sm:$0xff]  }
  0xb9   : > { %7561 = vmatprep.subr.bf16.mxu0 %v11061_v1  ;;  %v11140_v1 = vld [vmem:[%s13131_s16 + $0x1440] ss:$24 sps:$4 sm:$0xff]  }
  0xbb   : > { %7357 = vmatpush1.bf16.msra.mxu1 %v11063_v2  ;;  %v11145_v2 = vld [vmem:[%s13131_s16 + $0x574] ss:$24 sps:$4 sm:$0xff]  }
  0xbc   : > { %7562 = vmatpush1.bf16.msra.mxu0 %v11064_v3  ;;  %7367 = vmatprep.subr.bf16.mxu1 %v11067_v4  ;;  %v11148_v3 = vld [vmem:[%s13131_s16 + $0x1474] ss:$24 sps:$4 sm:$0xff]   ;;  %v11143_v4 = vld [vmem:[%s13131_s16 + $0x570] ss:$24 sps:$4 sm:$0xff]  }
  0xbd   : > { %7572 = vmatprep.subr.bf16.mxu0 %v11070_v7  ;;  %v11154_v7 = vld [vmem:[%s13131_s16 + $0x14a4] ss:$24 sps:$4 sm:$0xff]  }
  0xbe   : > { %7359 = vmatmul.mubr.bf16.vlgmr.msra.gmra.mrb[0].mxu1 %v13231_v10 }
  0xbf   : > { %7564 = vmatmul.mubr.bf16.vlgmr.msra.gmra.mrb[0].mxu0 %v13233_v11  ;;  %7368 = vmatpush1.bf16.msra.mxu1 %v11065_v8  ;;  %v11149_v8 = vld [vmem:[%s13131_s16 + $0x5a0] ss:$24 sps:$4 sm:$0xff]  }
  0xc0   : > { %7573 = vmatpush1.bf16.msra.mxu0 %v11068_v9  ;;  %7369 = vmatprep.subr.bf16.mxu1 %v11073_v12  ;;  %v11152_v9 = vld [vmem:[%s13131_s16 + $0x14a0] ss:$24 sps:$4 sm:$0xff]   ;;  %v11157_v12 = vld [vmem:[%s13131_s16 + $0x5d4] ss:$24 sps:$4 sm:$0xff]  }
  0xc1   : > { %7574 = vmatprep.subr.bf16.mxu0 %v11076_v13  ;;  %7399 = vmatprep.mubr.bf16.mxu1 %v13263_v36  ;;  %v11160_v13 = vld [vmem:[%s13131_s16 + $0x14d4] ss:$24 sps:$4 sm:$0xff]  }
  0xc2   : > { %7604 = vmatprep.mubr.bf16.mxu0 %v13271_v41 }
  0xc3   : > { %7370 = vmatpush1.bf16.msra.mxu1 %v11071_v14  ;;  %v11155_v14 = vld [vmem:[%s13131_s16 + $0x5d0] ss:$24 sps:$4 sm:$0xff]  }
  0xc4   : > { %7575 = vmatpush1.bf16.msra.mxu0 %v11074_v15  ;;  %7371 = vmatprep.subr.bf16.mxu1 %v11079_v16  ;;  %v11158_v15 = vld [vmem:[%s13131_s16 + $0x14d0] ss:$24 sps:$4 sm:$0xff]   ;;  %v11163_v16 = vld [vmem:[%s13131_s16 + $0x604] ss:$24 sps:$4 sm:$0xff]  }
  0xc5   : > { %7576 = vmatprep.subr.bf16.mxu0 %v11082_v17  ;;  %v336_v17 = vld [vmem:[%s14615_s0 + $0x10] sm:$0xff] }
  0xc7   : > { %7372 = vmatpush1.bf16.msra.mxu1 %v11077_v18  ;;  %v346_v18 = vld [vmem:[%s14615_s0 + $0x60] sm:$0xff] }
  0xc8   : > { %7577 = vmatpush1.bf16.msra.mxu0 %v11080_v19  ;;  %7373 = vmatprep.subr.bf16.mxu1 %v11085_v20  ;;  %v11166_v19 = vld [vmem:[%s13131_s16 + $0x1504] ss:$24 sps:$4 sm:$0xff]   ;;  %v11161_v20 = vld [vmem:[%s13131_s16 + $0x600] ss:$24 sps:$4 sm:$0xff]  }
  0xc9   : > { %7578 = vmatprep.subr.bf16.mxu0 %v11088_v21  ;;  %v11164_v21 = vld [vmem:[%s13131_s16 + $0x1500] ss:$24 sps:$4 sm:$0xff]  }
  0xcb   : > { %7374 = vmatpush1.bf16.msra.mxu1 %v11083_v22  ;;  %v13319_v22 = vpack.c.bf16 %v336_v17, %v336_v17  ;;  %v11236_v17 = vld [vmem:[%s13131_s16 + $0x1740] ss:$24 sps:$4 sm:$0xff]  }
  0xcc   : > { %7579 = vmatpush1.bf16.msra.mxu0 %v11086_v23  ;;  %7375 = vmatprep.subr.bf16.mxu1 %v11091_v24  ;;  %v13321_v23 = vpack.c.bf16 %v346_v18, %v346_v18  ;;  %v11169_v24 = vld [vmem:[%s13131_s16 + $0x634] ss:$24 sps:$4 sm:$0xff]  }
  0xcd   : > { %7580 = vmatprep.subr.bf16.mxu0 %v11094_v25  ;;  %v11172_v25 = vld [vmem:[%s13131_s16 + $0x1534] ss:$24 sps:$4 sm:$0xff]  }
  0xce   : > { %v11241_v18 = vld [vmem:[%s13131_s16 + $0x874] ss:$24 sps:$4 sm:$0xff]  }
  0xcf   : > { %7376 = vmatpush1.bf16.msra.mxu1 %v11089_v26  ;;  %v339_v26 = vld [vmem:[%s14615_s0 + $0x28] sm:$0xff] }
  0xd0   : > { %7581 = vmatpush1.bf16.msra.mxu0 %v11092_v27  ;;  %7377 = vmatprep.subr.bf16.mxu1 %v11097_v28  ;;  %v11167_v27 = vld [vmem:[%s13131_s16 + $0x630] ss:$24 sps:$4 sm:$0xff]   ;;  %v13331_v28 = vpack.c.bf16 %v339_v26, %v339_v26  ;;  %v11245_v26 = vld [vmem:[%s13131_s16 + $0x8a0] ss:$24 sps:$4 sm:$0xff]  }
  0xd1   : > { %7582 = vmatprep.subr.bf16.mxu0 %v11100_v29  ;;  %v11170_v29 = vld [vmem:[%s13131_s16 + $0x1530] ss:$24 sps:$4 sm:$0xff]  }
  0xd3   : > { %7378 = vmatpush1.bf16.msra.mxu1 %v11095_v30  ;;  %v349_v30 = vld [vmem:[%s14615_s0 + $0x78] sm:$0xff] }
  0xd4   : > { %7583 = vmatpush1.bf16.msra.mxu0 %v11098_v31  ;;  %7379 = vmatprep.subr.bf16.mxu1 %v11103_v32  ;;  %v11175_v31 = vld [vmem:[%s13131_s16 + $0x664] ss:$24 sps:$4 sm:$0xff]  }
  0xd5   : > { %7584 = vmatprep.subr.bf16.mxu0 %v11106_v33  ;;  %v11178_v32 = vld [vmem:[%s13131_s16 + $0x1564] ss:$24 sps:$4 sm:$0xff]   ;;  %v13339_v33 = vpack.c.bf16 %v349_v30, %v349_v30  ;;  %v11256_v30 = vld [vmem:[%s13131_s16 + $0x17d4] ss:$24 sps:$4 sm:$0xff]  }
  0xd7   : > { %7380 = vmatpush1.bf16.msra.mxu1 %v11101_v35  ;;  %v11176_v35 = vld [vmem:[%s13131_s16 + $0x1560] ss:$24 sps:$4 sm:$0xff]  }
  0xd8   : > { %7585 = vmatpush1.bf16.msra.mxu0 %v11104_v37  ;;  %7381 = vmatprep.subr.bf16.mxu1 %v11109_v39  ;;  %v11181_v37 = vld [vmem:[%s13131_s16 + $0x694] ss:$24 sps:$4 sm:$0xff]   ;;  %v11179_v39 = vld [vmem:[%s13131_s16 + $0x690] ss:$24 sps:$4 sm:$0xff]  }
  0xd9   : > { %7586 = vmatprep.subr.bf16.mxu0 %v11112_v40  ;;  %v11182_v40 = vld [vmem:[%s13131_s16 + $0x1590] ss:$24 sps:$4 sm:$0xff]  }
  0xdb   : > { %7382 = vmatpush1.bf16.msra.mxu1 %v11107_v42  ;;  %v11187_v42 = vld [vmem:[%s13131_s16 + $0x6c4] ss:$24 sps:$4 sm:$0xff]  }
  0xdc   : > { %7587 = vmatpush1.bf16.msra.mxu0 %v11110_v43  ;;  %7383 = vmatprep.subr.bf16.mxu1 %v11115_v44  ;;  %v11190_v43 = vld [vmem:[%s13131_s16 + $0x15c4] ss:$24 sps:$4 sm:$0xff]   ;;  %v11185_v44 = vld [vmem:[%s13131_s16 + $0x6c0] ss:$24 sps:$4 sm:$0xff]  }
  0xdd   : > { %7588 = vmatprep.subr.bf16.mxu0 %v11118_v45  ;;  %v11188_v45 = vld [vmem:[%s13131_s16 + $0x15c0] ss:$24 sps:$4 sm:$0xff]  }
  0xdf   : > { %7384 = vmatpush1.bf16.msra.mxu1 %v11113_v46  ;;  %v11193_v46 = vld [vmem:[%s13131_s16 + $0x6f4] ss:$24 sps:$4 sm:$0xff]  }
  0xe0   : > { %7589 = vmatpush1.bf16.msra.mxu0 %v11116_v47  ;;  %7385 = vmatprep.subr.bf16.mxu1 %v11121_v49  ;;  %v11196_v47 = vld [vmem:[%s13131_s16 + $0x15f4] ss:$24 sps:$4 sm:$0xff]   ;;  %v11191_v49 = vld [vmem:[%s13131_s16 + $0x6f0] ss:$24 sps:$4 sm:$0xff]  }
  0xe1   : > { %7590 = vmatprep.subr.bf16.mxu0 %v11124_v50  ;;  %v11194_v50 = vld [vmem:[%s13131_s16 + $0x15f0] ss:$24 sps:$4 sm:$0xff]  }
  0xe3   : > { %7386 = vmatpush1.bf16.msra.mxu1 %v11119_v51  ;;  %v11199_v51 = vld [vmem:[%s13131_s16 + $0x724] ss:$24 sps:$4 sm:$0xff]  }
  0xe4   : > { %7591 = vmatpush1.bf16.msra.mxu0 %v11122_v52  ;;  %7387 = vmatprep.subr.bf16.mxu1 %v11127_v54  ;;  %v11202_v52 = vld [vmem:[%s13131_s16 + $0x1624] ss:$24 sps:$4 sm:$0xff]   ;;  %v11197_v54 = vld [vmem:[%s13131_s16 + $0x720] ss:$24 sps:$4 sm:$0xff]  }
  0xe5   : > { %7592 = vmatprep.subr.bf16.mxu0 %v11130_v55  ;;  %v11200_v55 = vld [vmem:[%s13131_s16 + $0x1620] ss:$24 sps:$4 sm:$0xff]  }
  0xe7   : > { %7388 = vmatpush1.bf16.msra.mxu1 %v11125_v56  ;;  %v11205_v56 = vld [vmem:[%s13131_s16 + $0x754] ss:$24 sps:$4 sm:$0xff]  }
  0xe8   : > { %7593 = vmatpush1.bf16.msra.mxu0 %v11128_v57  ;;  %7389 = vmatprep.subr.bf16.mxu1 %v11133_v58  ;;  %v11208_v57 = vld [vmem:[%s13131_s16 + $0x1654] ss:$24 sps:$4 sm:$0xff]   ;;  %v11203_v58 = vld [vmem:[%s13131_s16 + $0x750] ss:$24 sps:$4 sm:$0xff]  }
  0xe9   : > { %7594 = vmatprep.subr.bf16.mxu0 %v11136_v59  ;;  %v11206_v59 = vld [vmem:[%s13131_s16 + $0x1650] ss:$24 sps:$4 sm:$0xff]  }
  0xeb   : > { %7390 = vmatpush1.bf16.msra.mxu1 %v11131_v60  ;;  %v11211_v60 = vld [vmem:[%s13131_s16 + $0x784] ss:$24 sps:$4 sm:$0xff]  }
  0xec   : > { %7595 = vmatpush1.bf16.msra.mxu0 %v11134_v61  ;;  %7391 = vmatprep.subr.bf16.mxu1 %v11139_v62  ;;  %v11214_v61 = vld [vmem:[%s13131_s16 + $0x1684] ss:$24 sps:$4 sm:$0xff]   ;;  %v11209_v62 = vld [vmem:[%s13131_s16 + $0x780] ss:$24 sps:$4 sm:$0xff]  }
  0xed   : > { %7596 = vmatprep.subr.bf16.mxu0 %v11142_v63  ;;  %v11212_v63 = vld [vmem:[%s13131_s16 + $0x1680] ss:$24 sps:$4 sm:$0xff]  }
  0xef   : > { %7392 = vmatpush1.bf16.msra.mxu1 %v11137_v0  ;;  %v11217_v0 = vld [vmem:[%s13131_s16 + $0x7b4] ss:$24 sps:$4 sm:$0xff]  }
  0xf0   : > { %7597 = vmatpush1.bf16.msra.mxu0 %v11140_v1  ;;  %7393 = vmatprep.subr.bf16.mxu1 %v11145_v2  ;;  %v11220_v1 = vld [vmem:[%s13131_s16 + $0x16b4] ss:$24 sps:$4 sm:$0xff]   ;;  %v11215_v2 = vld [vmem:[%s13131_s16 + $0x7b0] ss:$24 sps:$4 sm:$0xff]  }
  0xf1   : > { %7598 = vmatprep.subr.bf16.mxu0 %v11148_v3  ;;  %v11218_v3 = vld [vmem:[%s13131_s16 + $0x16b0] ss:$24 sps:$4 sm:$0xff]  }
  0xf3   : > { %7394 = vmatpush1.bf16.msra.mxu1 %v11143_v4  ;;  %v11223_v4 = vld [vmem:[%s13131_s16 + $0x7e4] ss:$24 sps:$4 sm:$0xff]  }
  0xf4   : > { %7599 = vmatpush1.bf16.msra.mxu0 %v11146_v5  ;;  %7395 = vmatprep.subr.bf16.mxu1 %v11151_v6  ;;  %v11226_v5 = vld [vmem:[%s13131_s16 + $0x16e4] ss:$24 sps:$4 sm:$0xff]   ;;  %v11221_v6 = vld [vmem:[%s13131_s16 + $0x7e0] ss:$24 sps:$4 sm:$0xff]  }
  0xf5   : > { %7600 = vmatprep.subr.bf16.mxu0 %v11154_v7  ;;  %v11224_v7 = vld [vmem:[%s13131_s16 + $0x16e0] ss:$24 sps:$4 sm:$0xff]  }
  0xf7   : > { %7396 = vmatpush1.bf16.msra.mxu1 %v11149_v8  ;;  %v11229_v8 = vld [vmem:[%s13131_s16 + $0x814] ss:$24 sps:$4 sm:$0xff]  }
  0xf8   : > { %7601 = vmatpush1.bf16.msra.mxu0 %v11152_v9  ;;  %7397 = vmatprep.subr.bf16.mxu1 %v11157_v12  ;;  %v11232_v9 = vld [vmem:[%s13131_s16 + $0x1714] ss:$24 sps:$4 sm:$0xff]   ;;  %v11227_v12 = vld [vmem:[%s13131_s16 + $0x810] ss:$24 sps:$4 sm:$0xff]  }
  0xf9   : > { %7602 = vmatprep.subr.bf16.mxu0 %v11160_v13  ;;  %v11230_v13 = vld [vmem:[%s13131_s16 + $0x1710] ss:$24 sps:$4 sm:$0xff]  }
  0xfb   : > { %7398 = vmatpush1.bf16.msra.mxu1 %v11155_v14  ;;  %v11235_v14 = vld [vmem:[%s13131_s16 + $0x844] ss:$24 sps:$4 sm:$0xff]  }
  0xfc   : > { %7603 = vmatpush1.bf16.msra.mxu0 %v11158_v15  ;;  %7408 = vmatprep.subr.bf16.mxu1 %v11163_v16  ;;  %v11238_v15 = vld [vmem:[%s13131_s16 + $0x1744] ss:$24 sps:$4 sm:$0xff]   ;;  %v11233_v16 = vld [vmem:[%s13131_s16 + $0x840] ss:$24 sps:$4 sm:$0xff]  }
  0xfd   : > { %7613 = vmatprep.subr.bf16.mxu0 %v11166_v19  ;;  %v11244_v19 = vld [vmem:[%s13131_s16 + $0x1774] ss:$24 sps:$4 sm:$0xff]  }
  0xfe   : > { %7400 = vmatmul.mubr.bf16.vlgmr.msra.gmra.mrb[0].mxu1 %v13319_v22 }
  0xff   : > { %7605 = vmatmul.mubr.bf16.vlgmr.msra.gmra.mrb[0].mxu0 %v13321_v23  ;;  %7409 = vmatpush1.bf16.msra.mxu1 %v11161_v20  ;;  %v11239_v20 = vld [vmem:[%s13131_s16 + $0x870] ss:$24 sps:$4 sm:$0xff]  }
 0x100   : > { %7614 = vmatpush1.bf16.msra.mxu0 %v11164_v21  ;;  %7410 = vmatprep.subr.bf16.mxu1 %v11169_v24  ;;  %v11242_v21 = vld [vmem:[%s13131_s16 + $0x1770] ss:$24 sps:$4 sm:$0xff]   ;;  %v11247_v24 = vld [vmem:[%s13131_s16 + $0x8a4] ss:$24 sps:$4 sm:$0xff]  }
 0x101   : > { %7615 = vmatprep.subr.bf16.mxu0 %v11172_v25  ;;  %7440 = vmatprep.mubr.bf16.mxu1 %v13331_v28  ;;  %v11250_v25 = vld [vmem:[%s13131_s16 + $0x17a4] ss:$24 sps:$4 sm:$0xff]  }
 0x102   : > { %7645 = vmatprep.mubr.bf16.mxu0 %v13339_v33 }
 0x103   : > { %7411 = vmatpush1.bf16.msra.mxu1 %v11167_v27  ;;  %v11248_v27 = vld [vmem:[%s13131_s16 + $0x17a0] ss:$24 sps:$4 sm:$0xff]  }
 0x104   : > { %7616 = vmatpush1.bf16.msra.mxu0 %v11170_v29  ;;  %7412 = vmatprep.subr.bf16.mxu1 %v11175_v31  ;;  %v11253_v29 = vld [vmem:[%s13131_s16 + $0x8d4] ss:$24 sps:$4 sm:$0xff]   ;;  %v11251_v31 = vld [vmem:[%s13131_s16 + $0x8d0] ss:$24 sps:$4 sm:$0xff]  }
 0x105   : > { %7617 = vmatprep.subr.bf16.mxu0 %v11178_v32  ;;  %v11254_v32 = vld [vmem:[%s13131_s16 + $0x17d0] ss:$24 sps:$4 sm:$0xff]  }
 0x107   : > { %7413 = vmatpush1.bf16.msra.mxu1 %v11173_v34  ;;  %v11259_v34 = vld [vmem:[%s13131_s16 + $0x904] ss:$24 sps:$4 sm:$0xff]  }
 0x108   : > { %7618 = vmatpush1.bf16.msra.mxu0 %v11176_v35  ;;  %7414 = vmatprep.subr.bf16.mxu1 %v11181_v37  ;;  %v338_v35 = vld [vmem:[%s14615_s0 + $0x20] sm:$0xff]  ;;  %v348_v37 = vld [vmem:[%s14615_s0 + $0x70] sm:$0xff] }
 0x109   : > { %7619 = vmatprep.subr.bf16.mxu0 %v11184_v38  ;;  %v11262_v38 = vld [vmem:[%s13131_s16 + $0x1804] ss:$24 sps:$4 sm:$0xff]  }
 0x10b   : > { %7415 = vmatpush1.bf16.msra.mxu1 %v11179_v39  ;;  %v11257_v39 = vld [vmem:[%s13131_s16 + $0x900] ss:$24 sps:$4 sm:$0xff]  }
 0x10c   : > { %7620 = vmatpush1.bf16.msra.mxu0 %v11182_v40  ;;  %7416 = vmatprep.subr.bf16.mxu1 %v11187_v42  ;;  %v11260_v40 = vld [vmem:[%s13131_s16 + $0x1800] ss:$24 sps:$4 sm:$0xff]   ;;  %v13407_v42 = vpack.c.bf16 %v338_v35, %v338_v35  ;;  %v11326_v35 = vld [vmem:[%s13131_s16 + $0x1a10] ss:$24 sps:$4 sm:$0xff]  }
 0x10d   : > { %7621 = vmatprep.subr.bf16.mxu0 %v11190_v43  ;;  %v13409_v43 = vpack.c.bf16 %v348_v37, %v348_v37  ;;  %v11331_v37 = vld [vmem:[%s13131_s16 + $0xb44] ss:$24 sps:$4 sm:$0xff]  }
 0x10f   : > { %7417 = vmatpush1.bf16.msra.mxu1 %v11185_v44  ;;  %v341_v44 = vld [vmem:[%s14615_s0 + $0x38] sm:$0xff] }
 0x110   : > { %7622 = vmatpush1.bf16.msra.mxu0 %v11188_v45  ;;  %7418 = vmatprep.subr.bf16.mxu1 %v11193_v46  ;;  %v351_v45 = vld [vmem:[%s14615_s0 + $0x88] sm:$0xff] }
 0x111   : > { %7623 = vmatprep.subr.bf16.mxu0 %v11196_v47  ;;  %v11265_v46 = vld [vmem:[%s13131_s16 + $0x934] ss:$24 sps:$4 sm:$0xff]  }
 0x112   : > { %v11268_v47 = vld [vmem:[%s13131_s16 + $0x1834] ss:$24 sps:$4 sm:$0xff]  }
 0x113   : > { %7419 = vmatpush1.bf16.msra.mxu1 %v11191_v49  ;;  %v13419_v49 = vpack.c.bf16 %v341_v44, %v341_v44  ;;  %v11337_v44 = vld [vmem:[%s13131_s16 + $0xb74] ss:$24 sps:$4 sm:$0xff]  }
 0x114   : > { %7624 = vmatpush1.bf16.msra.mxu0 %v11194_v50  ;;  %7420 = vmatprep.subr.bf16.mxu1 %v11199_v51  ;;  %v13421_v50 = vpack.c.bf16 %v351_v45, %v351_v45  ;;  %v11263_v51 = vld [vmem:[%s13131_s16 + $0x930] ss:$24 sps:$4 sm:$0xff]   ;;  %v11340_v45 = vld [vmem:[%s13131_s16 + $0x1a74] ss:$24 sps:$4 sm:$0xff]  }
 0x115   : > { %7625 = vmatprep.subr.bf16.mxu0 %v11202_v52  ;;  %v11266_v52 = vld [vmem:[%s13131_s16 + $0x1830] ss:$24 sps:$4 sm:$0xff]  }
 0x117   : > { %7421 = vmatpush1.bf16.msra.mxu1 %v11197_v54  ;;  %v11271_v54 = vld [vmem:[%s13131_s16 + $0x964] ss:$24 sps:$4 sm:$0xff]  }
 0x118   : > { %7626 = vmatpush1.bf16.msra.mxu0 %v11200_v55  ;;  %7422 = vmatprep.subr.bf16.mxu1 %v11205_v56  ;;  %v11274_v55 = vld [vmem:[%s13131_s16 + $0x1864] ss:$24 sps:$4 sm:$0xff]   ;;  %v11269_v56 = vld [vmem:[%s13131_s16 + $0x960] ss:$24 sps:$4 sm:$0xff]  }
 0x119   : > { %7627 = vmatprep.subr.bf16.mxu0 %v11208_v57  ;;  %v11272_v57 = vld [vmem:[%s13131_s16 + $0x1860] ss:$24 sps:$4 sm:$0xff]  }
 0x11b   : > { %7423 = vmatpush1.bf16.msra.mxu1 %v11203_v58  ;;  %v11277_v58 = vld [vmem:[%s13131_s16 + $0x994] ss:$24 sps:$4 sm:$0xff]  }
 0x11c   : > { %7628 = vmatpush1.bf16.msra.mxu0 %v11206_v59  ;;  %7424 = vmatprep.subr.bf16.mxu1 %v11211_v60  ;;  %v11280_v59 = vld [vmem:[%s13131_s16 + $0x1894] ss:$24 sps:$4 sm:$0xff]   ;;  %v11275_v60 = vld [vmem:[%s13131_s16 + $0x990] ss:$24 sps:$4 sm:$0xff]  }
 0x11d   : > { %7629 = vmatprep.subr.bf16.mxu0 %v11214_v61  ;;  %v11278_v61 = vld [vmem:[%s13131_s16 + $0x1890] ss:$24 sps:$4 sm:$0xff]  }
 0x11f   : > { %7425 = vmatpush1.bf16.msra.mxu1 %v11209_v62  ;;  %v11283_v62 = vld [vmem:[%s13131_s16 + $0x9c4] ss:$24 sps:$4 sm:$0xff]  }
 0x120   : > { %7630 = vmatpush1.bf16.msra.mxu0 %v11212_v63  ;;  %7426 = vmatprep.subr.bf16.mxu1 %v11217_v0  ;;  %v11286_v63 = vld [vmem:[%s13131_s16 + $0x18c4] ss:$24 sps:$4 sm:$0xff]   ;;  %v11281_v0 = vld [vmem:[%s13131_s16 + $0x9c0] ss:$24 sps:$4 sm:$0xff]  }
 0x121   : > { %7631 = vmatprep.subr.bf16.mxu0 %v11220_v1  ;;  %v11284_v1 = vld [vmem:[%s13131_s16 + $0x18c0] ss:$24 sps:$4 sm:$0xff]  }
 0x123   : > { %7427 = vmatpush1.bf16.msra.mxu1 %v11215_v2  ;;  %v11289_v2 = vld [vmem:[%s13131_s16 + $0x9f4] ss:$24 sps:$4 sm:$0xff]  }
 0x124   : > { %7632 = vmatpush1.bf16.msra.mxu0 %v11218_v3  ;;  %7428 = vmatprep.subr.bf16.mxu1 %v11223_v4  ;;  %v11292_v3 = vld [vmem:[%s13131_s16 + $0x18f4] ss:$24 sps:$4 sm:$0xff]   ;;  %v11287_v4 = vld [vmem:[%s13131_s16 + $0x9f0] ss:$24 sps:$4 sm:$0xff]  }
 0x125   : > { %7633 = vmatprep.subr.bf16.mxu0 %v11226_v5  ;;  %v11290_v5 = vld [vmem:[%s13131_s16 + $0x18f0] ss:$24 sps:$4 sm:$0xff]  }
 0x127   : > { %7429 = vmatpush1.bf16.msra.mxu1 %v11221_v6  ;;  %v11295_v6 = vld [vmem:[%s13131_s16 + $0xa24] ss:$24 sps:$4 sm:$0xff]  }
 0x128   : > { %7634 = vmatpush1.bf16.msra.mxu0 %v11224_v7  ;;  %7430 = vmatprep.subr.bf16.mxu1 %v11229_v8  ;;  %v11298_v7 = vld [vmem:[%s13131_s16 + $0x1924] ss:$24 sps:$4 sm:$0xff]   ;;  %v11293_v8 = vld [vmem:[%s13131_s16 + $0xa20] ss:$24 sps:$4 sm:$0xff]  }
 0x129   : > { %7635 = vmatprep.subr.bf16.mxu0 %v11232_v9  ;;  %v11296_v9 = vld [vmem:[%s13131_s16 + $0x1920] ss:$24 sps:$4 sm:$0xff]  }
 0x12b   : > { %7431 = vmatpush1.bf16.msra.mxu1 %v11227_v12  ;;  %v11301_v12 = vld [vmem:[%s13131_s16 + $0xa54] ss:$24 sps:$4 sm:$0xff]  }
 0x12c   : > { %7636 = vmatpush1.bf16.msra.mxu0 %v11230_v13  ;;  %7432 = vmatprep.subr.bf16.mxu1 %v11235_v14  ;;  %v11304_v13 = vld [vmem:[%s13131_s16 + $0x1954] ss:$24 sps:$4 sm:$0xff]   ;;  %v11299_v14 = vld [vmem:[%s13131_s16 + $0xa50] ss:$24 sps:$4 sm:$0xff]  }
 0x12d   : > { %7637 = vmatprep.subr.bf16.mxu0 %v11238_v15  ;;  %v11302_v15 = vld [vmem:[%s13131_s16 + $0x1950] ss:$24 sps:$4 sm:$0xff]  }
 0x12f   : > { %7433 = vmatpush1.bf16.msra.mxu1 %v11233_v16  ;;  %v11307_v16 = vld [vmem:[%s13131_s16 + $0xa84] ss:$24 sps:$4 sm:$0xff]  }
 0x130   : > { %7638 = vmatpush1.bf16.msra.mxu0 %v11236_v17  ;;  %7434 = vmatprep.subr.bf16.mxu1 %v11241_v18  ;;  %v11310_v17 = vld [vmem:[%s13131_s16 + $0x1984] ss:$24 sps:$4 sm:$0xff]   ;;  %v11305_v18 = vld [vmem:[%s13131_s16 + $0xa80] ss:$24 sps:$4 sm:$0xff]  }
 0x131   : > { %7639 = vmatprep.subr.bf16.mxu0 %v11244_v19  ;;  %v11308_v19 = vld [vmem:[%s13131_s16 + $0x1980] ss:$24 sps:$4 sm:$0xff]  }
 0x133   : > { %7435 = vmatpush1.bf16.msra.mxu1 %v11239_v20  ;;  %v11313_v20 = vld [vmem:[%s13131_s16 + $0xab4] ss:$24 sps:$4 sm:$0xff]  }
 0x134   : > { %7640 = vmatpush1.bf16.msra.mxu0 %v11242_v21  ;;  %7436 = vmatprep.subr.bf16.mxu1 %v11247_v24  ;;  %v11316_v21 = vld [vmem:[%s13131_s16 + $0x19b4] ss:$24 sps:$4 sm:$0xff]   ;;  %v11311_v24 = vld [vmem:[%s13131_s16 + $0xab0] ss:$24 sps:$4 sm:$0xff]  }
 0x135   : > { %7641 = vmatprep.subr.bf16.mxu0 %v11250_v25  ;;  %v11314_v25 = vld [vmem:[%s13131_s16 + $0x19b0] ss:$24 sps:$4 sm:$0xff]  }
 0x137   : > { %7437 = vmatpush1.bf16.msra.mxu1 %v11245_v26  ;;  %v11319_v26 = vld [vmem:[%s13131_s16 + $0xae4] ss:$24 sps:$4 sm:$0xff]  }
 0x138   : > { %7642 = vmatpush1.bf16.msra.mxu0 %v11248_v27  ;;  %7438 = vmatprep.subr.bf16.mxu1 %v11253_v29  ;;  %v11322_v27 = vld [vmem:[%s13131_s16 + $0x19e4] ss:$24 sps:$4 sm:$0xff]   ;;  %v11317_v29 = vld [vmem:[%s13131_s16 + $0xae0] ss:$24 sps:$4 sm:$0xff]  }
 0x139   : > { %7643 = vmatprep.subr.bf16.mxu0 %v11256_v30  ;;  %v11320_v30 = vld [vmem:[%s13131_s16 + $0x19e0] ss:$24 sps:$4 sm:$0xff]  }
 0x13b   : > { %7439 = vmatpush1.bf16.msra.mxu1 %v11251_v31  ;;  %v11325_v31 = vld [vmem:[%s13131_s16 + $0xb14] ss:$24 sps:$4 sm:$0xff]  }
 0x13c   : > { %7644 = vmatpush1.bf16.msra.mxu0 %v11254_v32  ;;  %7449 = vmatprep.subr.bf16.mxu1 %v11259_v34  ;;  %v11328_v32 = vld [vmem:[%s13131_s16 + $0x1a14] ss:$24 sps:$4 sm:$0xff]   ;;  %v11323_v34 = vld [vmem:[%s13131_s16 + $0xb10] ss:$24 sps:$4 sm:$0xff]  }
 0x13d   : > { %7654 = vmatprep.subr.bf16.mxu0 %v11262_v38  ;;  %v11334_v38 = vld [vmem:[%s13131_s16 + $0x1a44] ss:$24 sps:$4 sm:$0xff]  }
 0x13e   : > { %7441 = vmatmul.mubr.bf16.vlgmr.msra.gmra.mrb[0].mxu1 %v13407_v42 }
 0x13f   : > { %7646 = vmatmul.mubr.bf16.vlgmr.msra.gmra.mrb[0].mxu0 %v13409_v43  ;;  %7450 = vmatpush1.bf16.msra.mxu1 %v11257_v39  ;;  %v11329_v39 = vld [vmem:[%s13131_s16 + $0xb40] ss:$24 sps:$4 sm:$0xff]  }
 0x140   : > { %7655 = vmatpush1.bf16.msra.mxu0 %v11260_v40  ;;  %7451 = vmatprep.subr.bf16.mxu1 %v11265_v46  ;;  %v11332_v40 = vld [vmem:[%s13131_s16 + $0x1a40] ss:$24 sps:$4 sm:$0xff]   ;;  %v11335_v46 = vld [vmem:[%s13131_s16 + $0xb70] ss:$24 sps:$4 sm:$0xff]  }
 0x141   : > { %7656 = vmatprep.subr.bf16.mxu0 %v11268_v47  ;;  %7481 = vmatprep.mubr.bf16.mxu1 %v13419_v49  ;;  %v11338_v47 = vld [vmem:[%s13131_s16 + $0x1a70] ss:$24 sps:$4 sm:$0xff]  }
 0x142   : > { %7686 = vmatprep.mubr.bf16.mxu0 %v13421_v50 }
 0x143   : > { %7452 = vmatpush1.bf16.msra.mxu1 %v11263_v51  ;;  %v11343_v51 = vld [vmem:[%s13131_s16 + $0xba4] ss:$24 sps:$4 sm:$0xff]  }
 0x144   : > { %7657 = vmatpush1.bf16.msra.mxu0 %v11266_v52  ;;  %7453 = vmatprep.subr.bf16.mxu1 %v11271_v54  ;;  %v11346_v52 = vld [vmem:[%s13131_s16 + $0x1aa4] ss:$24 sps:$4 sm:$0xff]   ;;  %v11341_v54 = vld [vmem:[%s13131_s16 + $0xba0] ss:$24 sps:$4 sm:$0xff]  }
 0x145   : > { %7658 = vmatprep.subr.bf16.mxu0 %v11274_v55  ;;  %v11344_v55 = vld [vmem:[%s13131_s16 + $0x1aa0] ss:$24 sps:$4 sm:$0xff]  }
 0x147   : > { %7454 = vmatpush1.bf16.msra.mxu1 %v11269_v56  ;;  %v11349_v56 = vld [vmem:[%s13131_s16 + $0xbd4] ss:$24 sps:$4 sm:$0xff]  }
 0x148   : > { %7659 = vmatpush1.bf16.msra.mxu0 %v11272_v57  ;;  %7455 = vmatprep.subr.bf16.mxu1 %v11277_v58  ;;  %v11352_v57 = vld [vmem:[%s13131_s16 + $0x1ad4] ss:$24 sps:$4 sm:$0xff]   ;;  %v11347_v58 = vld [vmem:[%s13131_s16 + $0xbd0] ss:$24 sps:$4 sm:$0xff]  }
 0x149   : > { %7660 = vmatprep.subr.bf16.mxu0 %v11280_v59  ;;  %v11350_v59 = vld [vmem:[%s13131_s16 + $0x1ad0] ss:$24 sps:$4 sm:$0xff]  }
 0x14b   : > { %7456 = vmatpush1.bf16.msra.mxu1 %v11275_v60  ;;  %v11355_v60 = vld [vmem:[%s13131_s16 + $0xc04] ss:$24 sps:$4 sm:$0xff]  }
 0x14c   : > { %7661 = vmatpush1.bf16.msra.mxu0 %v11278_v61  ;;  %7457 = vmatprep.subr.bf16.mxu1 %v11283_v62  ;;  %v340_v61 = vld [vmem:[%s14615_s0 + $0x30] sm:$0xff]  ;;  %v350_v62 = vld [vmem:[%s14615_s0 + $0x80] sm:$0xff] }
 0x14d   : > { %7662 = vmatprep.subr.bf16.mxu0 %v11286_v63  ;;  %v11358_v63 = vld [vmem:[%s13131_s16 + $0x1b04] ss:$24 sps:$4 sm:$0xff]  }
 0x14f   : > { %7458 = vmatpush1.bf16.msra.mxu1 %v11281_v0  ;;  %v11353_v0 = vld [vmem:[%s13131_s16 + $0xc00] ss:$24 sps:$4 sm:$0xff]  }
 0x150   : > { %7663 = vmatpush1.bf16.msra.mxu0 %v11284_v1  ;;  %7459 = vmatprep.subr.bf16.mxu1 %v11289_v2  ;;  %v11356_v1 = vld [vmem:[%s13131_s16 + $0x1b00] ss:$24 sps:$4 sm:$0xff]   ;;  %v13495_v2 = vpack.c.bf16 %v340_v61, %v340_v61 }
 0x151   : > { %7664 = vmatprep.subr.bf16.mxu0 %v11292_v3  ;;  %v13497_v3 = vpack.c.bf16 %v350_v62, %v350_v62  ;;  %v11416_v61 = vld [vmem:[%s13131_s16 + $0x1ce0] ss:$24 sps:$4 sm:$0xff]   ;;  %v11421_v62 = vld [vmem:[%s13131_s16 + $0xe14] ss:$24 sps:$4 sm:$0xff]  }
 0x153   : > { %7460 = vmatpush1.bf16.msra.mxu1 %v11287_v4  ;;  %v343_v4 = vld [vmem:[%s14615_s0 + $0x48] sm:$0xff] }
 0x154   : > { %7665 = vmatpush1.bf16.msra.mxu0 %v11290_v5  ;;  %7461 = vmatprep.subr.bf16.mxu1 %v11295_v6  ;;  %v353_v5 = vld [vmem:[%s14615_s0 + $0x98] sm:$0xff]  ;;  %v11361_v6 = vld [vmem:[%s13131_s16 + $0xc34] ss:$24 sps:$4 sm:$0xff]  }
 0x155   : > { %7666 = vmatprep.subr.bf16.mxu0 %v11298_v7  ;;  %v11364_v7 = vld [vmem:[%s13131_s16 + $0x1b34] ss:$24 sps:$4 sm:$0xff]  }
 0x157   : > { %7462 = vmatpush1.bf16.msra.mxu1 %v11293_v8  ;;  %v13507_v8 = vpack.c.bf16 %v343_v4, %v343_v4  ;;  %v11427_v4 = vld [vmem:[%s13131_s16 + $0xe44] ss:$24 sps:$4 sm:$0xff]  }
 0x158   : > { %7667 = vmatpush1.bf16.msra.mxu0 %v11296_v9  ;;  %7463 = vmatprep.subr.bf16.mxu1 %v11301_v12  ;;  %v13509_v9 = vpack.c.bf16 %v353_v5, %v353_v5  ;;  %v11359_v12 = vld [vmem:[%s13131_s16 + $0xc30] ss:$24 sps:$4 sm:$0xff]   ;;  %v11430_v5 = vld [vmem:[%s13131_s16 + $0x1d44] ss:$24 sps:$4 sm:$0xff]  }
 0x159   : > { %7668 = vmatprep.subr.bf16.mxu0 %v11304_v13  ;;  %v11362_v13 = vld [vmem:[%s13131_s16 + $0x1b30] ss:$24 sps:$4 sm:$0xff]  }
 0x15b   : > { %7464 = vmatpush1.bf16.msra.mxu1 %v11299_v14  ;;  %v11367_v14 = vld [vmem:[%s13131_s16 + $0xc64] ss:$24 sps:$4 sm:$0xff]  }
 0x15c   : > { %7669 = vmatpush1.bf16.msra.mxu0 %v11302_v15  ;;  %7465 = vmatprep.subr.bf16.mxu1 %v11307_v16  ;;  %v11370_v15 = vld [vmem:[%s13131_s16 + $0x1b64] ss:$24 sps:$4 sm:$0xff]   ;;  %v11365_v16 = vld [vmem:[%s13131_s16 + $0xc60] ss:$24 sps:$4 sm:$0xff]  }
 0x15d   : > { %7670 = vmatprep.subr.bf16.mxu0 %v11310_v17  ;;  %v11368_v17 = vld [vmem:[%s13131_s16 + $0x1b60] ss:$24 sps:$4 sm:$0xff]  }
 0x15f   : > { %7466 = vmatpush1.bf16.msra.mxu1 %v11305_v18  ;;  %v11373_v18 = vld [vmem:[%s13131_s16 + $0xc94] ss:$24 sps:$4 sm:$0xff]  }
 0x160   : > { %7671 = vmatpush1.bf16.msra.mxu0 %v11308_v19  ;;  %7467 = vmatprep.subr.bf16.mxu1 %v11313_v20  ;;  %v11376_v19 = vld [vmem:[%s13131_s16 + $0x1b94] ss:$24 sps:$4 sm:$0xff]   ;;  %v11371_v20 = vld [vmem:[%s13131_s16 + $0xc90] ss:$24 sps:$4 sm:$0xff]  }
 0x161   : > { %7672 = vmatprep.subr.bf16.mxu0 %v11316_v21  ;;  %v11374_v21 = vld [vmem:[%s13131_s16 + $0x1b90] ss:$24 sps:$4 sm:$0xff]  }
 0x163   : > { %7468 = vmatpush1.bf16.msra.mxu1 %v11311_v24  ;;  %v11379_v24 = vld [vmem:[%s13131_s16 + $0xcc4] ss:$24 sps:$4 sm:$0xff]  }
 0x164   : > { %7673 = vmatpush1.bf16.msra.mxu0 %v11314_v25  ;;  %7469 = vmatprep.subr.bf16.mxu1 %v11319_v26  ;;  %v11382_v25 = vld [vmem:[%s13131_s16 + $0x1bc4] ss:$24 sps:$4 sm:$0xff]   ;;  %v11377_v26 = vld [vmem:[%s13131_s16 + $0xcc0] ss:$24 sps:$4 sm:$0xff]  }
 0x165   : > { %7674 = vmatprep.subr.bf16.mxu0 %v11322_v27  ;;  %v11380_v27 = vld [vmem:[%s13131_s16 + $0x1bc0] ss:$24 sps:$4 sm:$0xff]  }
 0x167   : > { %7470 = vmatpush1.bf16.msra.mxu1 %v11317_v29  ;;  %v11385_v29 = vld [vmem:[%s13131_s16 + $0xcf4] ss:$24 sps:$4 sm:$0xff]  }
 0x168   : > { %7675 = vmatpush1.bf16.msra.mxu0 %v11320_v30  ;;  %7471 = vmatprep.subr.bf16.mxu1 %v11325_v31  ;;  %v11388_v30 = vld [vmem:[%s13131_s16 + $0x1bf4] ss:$24 sps:$4 sm:$0xff]   ;;  %v11383_v31 = vld [vmem:[%s13131_s16 + $0xcf0] ss:$24 sps:$4 sm:$0xff]  }
 0x169   : > { %7676 = vmatprep.subr.bf16.mxu0 %v11328_v32  ;;  %v11386_v32 = vld [vmem:[%s13131_s16 + $0x1bf0] ss:$24 sps:$4 sm:$0xff]  }
 0x16b   : > { %7472 = vmatpush1.bf16.msra.mxu1 %v11323_v34  ;;  %v11391_v34 = vld [vmem:[%s13131_s16 + $0xd24] ss:$24 sps:$4 sm:$0xff]  }
 0x16c   : > { %7677 = vmatpush1.bf16.msra.mxu0 %v11326_v35  ;;  %7473 = vmatprep.subr.bf16.mxu1 %v11331_v37  ;;  %v11394_v35 = vld [vmem:[%s13131_s16 + $0x1c24] ss:$24 sps:$4 sm:$0xff]   ;;  %v11389_v37 = vld [vmem:[%s13131_s16 + $0xd20] ss:$24 sps:$4 sm:$0xff]  }
 0x16d   : > { %7678 = vmatprep.subr.bf16.mxu0 %v11334_v38  ;;  %v11392_v38 = vld [vmem:[%s13131_s16 + $0x1c20] ss:$24 sps:$4 sm:$0xff]  }
 0x16f   : > { %7474 = vmatpush1.bf16.msra.mxu1 %v11329_v39  ;;  %v11397_v39 = vld [vmem:[%s13131_s16 + $0xd54] ss:$24 sps:$4 sm:$0xff]  }
 0x170   : > { %7679 = vmatpush1.bf16.msra.mxu0 %v11332_v40  ;;  %7475 = vmatprep.subr.bf16.mxu1 %v11337_v44  ;;  %v11400_v40 = vld [vmem:[%s13131_s16 + $0x1c54] ss:$24 sps:$4 sm:$0xff]   ;;  %v11395_v44 = vld [vmem:[%s13131_s16 + $0xd50] ss:$24 sps:$4 sm:$0xff]  }
 0x171   : > { %7680 = vmatprep.subr.bf16.mxu0 %v11340_v45  ;;  %v11398_v45 = vld [vmem:[%s13131_s16 + $0x1c50] ss:$24 sps:$4 sm:$0xff]  }
 0x173   : > { %7476 = vmatpush1.bf16.msra.mxu1 %v11335_v46  ;;  %v11403_v46 = vld [vmem:[%s13131_s16 + $0xd84] ss:$24 sps:$4 sm:$0xff]  }
 0x174   : > { %7681 = vmatpush1.bf16.msra.mxu0 %v11338_v47  ;;  %7477 = vmatprep.subr.bf16.mxu1 %v11343_v51  ;;  %v11406_v47 = vld [vmem:[%s13131_s16 + $0x1c84] ss:$24 sps:$4 sm:$0xff]   ;;  %v11401_v51 = vld [vmem:[%s13131_s16 + $0xd80] ss:$24 sps:$4 sm:$0xff]  }
 0x175   : > { %7682 = vmatprep.subr.bf16.mxu0 %v11346_v52  ;;  %v11404_v52 = vld [vmem:[%s13131_s16 + $0x1c80] ss:$24 sps:$4 sm:$0xff]  }
 0x177   : > { %7478 = vmatpush1.bf16.msra.mxu1 %v11341_v54  ;;  %v11409_v54 = vld [vmem:[%s13131_s16 + $0xdb4] ss:$24 sps:$4 sm:$0xff]  }
 0x178   : > { %7683 = vmatpush1.bf16.msra.mxu0 %v11344_v55  ;;  %7479 = vmatprep.subr.bf16.mxu1 %v11349_v56  ;;  %v11412_v55 = vld [vmem:[%s13131_s16 + $0x1cb4] ss:$24 sps:$4 sm:$0xff]   ;;  %v11407_v56 = vld [vmem:[%s13131_s16 + $0xdb0] ss:$24 sps:$4 sm:$0xff]  }
 0x179   : > { %7684 = vmatprep.subr.bf16.mxu0 %v11352_v57  ;;  %v11410_v57 = vld [vmem:[%s13131_s16 + $0x1cb0] ss:$24 sps:$4 sm:$0xff]  }
 0x17b   : > { %7480 = vmatpush1.bf16.msra.mxu1 %v11347_v58  ;;  %v11415_v58 = vld [vmem:[%s13131_s16 + $0xde4] ss:$24 sps:$4 sm:$0xff]  }
 0x17c   : > { %7685 = vmatpush1.bf16.msra.mxu0 %v11350_v59  ;;  %7490 = vmatprep.subr.bf16.mxu1 %v11355_v60  ;;  %v11418_v59 = vld [vmem:[%s13131_s16 + $0x1ce4] ss:$24 sps:$4 sm:$0xff]   ;;  %v11413_v60 = vld [vmem:[%s13131_s16 + $0xde0] ss:$24 sps:$4 sm:$0xff]  }
 0x17d   : > { %7695 = vmatprep.subr.bf16.mxu0 %v11358_v63  ;;  %v11424_v63 = vld [vmem:[%s13131_s16 + $0x1d14] ss:$24 sps:$4 sm:$0xff]  }
 0x17e   : > { %7482 = vmatmul.mubr.bf16.vlgmr.msra.gmra.mrb[0].mxu1 %v13495_v2 }
 0x17f   : > { %7687 = vmatmul.mubr.bf16.vlgmr.msra.gmra.mrb[0].mxu0 %v13497_v3  ;;  %7491 = vmatpush1.bf16.msra.mxu1 %v11353_v0  ;;  %v11419_v0 = vld [vmem:[%s13131_s16 + $0xe10] ss:$24 sps:$4 sm:$0xff]  }
 0x180   : > { %7696 = vmatpush1.bf16.msra.mxu0 %v11356_v1  ;;  %7492 = vmatprep.subr.bf16.mxu1 %v11361_v6  ;;  %v11422_v1 = vld [vmem:[%s13131_s16 + $0x1d10] ss:$24 sps:$4 sm:$0xff]   ;;  %v11425_v6 = vld [vmem:[%s13131_s16 + $0xe40] ss:$24 sps:$4 sm:$0xff]  }
 0x181   : > { %7697 = vmatprep.subr.bf16.mxu0 %v11364_v7  ;;  %7522 = vmatprep.mubr.bf16.mxu1 %v13507_v8  ;;  %v11428_v7 = vld [vmem:[%s13131_s16 + $0x1d40] ss:$24 sps:$4 sm:$0xff]  }
 0x182   : > { %7727 = vmatprep.mubr.bf16.mxu0 %v13509_v9 }
 0x183   : > { %7493 = vmatpush1.bf16.msra.mxu1 %v11359_v12  ;;  %v11433_v12 = vld [vmem:[%s13131_s16 + $0xe74] ss:$24 sps:$4 sm:$0xff]  }
 0x184   : > { %7698 = vmatpush1.bf16.msra.mxu0 %v11362_v13  ;;  %7494 = vmatprep.subr.bf16.mxu1 %v11367_v14  ;;  %v11436_v13 = vld [vmem:[%s13131_s16 + $0x1d74] ss:$24 sps:$4 sm:$0xff]   ;;  %v11431_v14 = vld [vmem:[%s13131_s16 + $0xe70] ss:$24 sps:$4 sm:$0xff]  }
 0x185   : > { %7699 = vmatprep.subr.bf16.mxu0 %v11370_v15  ;;  %v11434_v15 = vld [vmem:[%s13131_s16 + $0x1d70] ss:$24 sps:$4 sm:$0xff]  }
 0x187   : > { %7495 = vmatpush1.bf16.msra.mxu1 %v11365_v16  ;;  %v11439_v16 = vld [vmem:[%s13131_s16 + $0xea4] ss:$24 sps:$4 sm:$0xff]  }
 0x188   : > { %7700 = vmatpush1.bf16.msra.mxu0 %v11368_v17  ;;  %7496 = vmatprep.subr.bf16.mxu1 %v11373_v18  ;;  %v11442_v17 = vld [vmem:[%s13131_s16 + $0x1da4] ss:$24 sps:$4 sm:$0xff]   ;;  %v11437_v18 = vld [vmem:[%s13131_s16 + $0xea0] ss:$24 sps:$4 sm:$0xff]  }
 0x189   : > { %7701 = vmatprep.subr.bf16.mxu0 %v11376_v19  ;;  %v11440_v19 = vld [vmem:[%s13131_s16 + $0x1da0] ss:$24 sps:$4 sm:$0xff]  }
 0x18b   : > { %7497 = vmatpush1.bf16.msra.mxu1 %v11371_v20  ;;  %v11445_v20 = vld [vmem:[%s13131_s16 + $0xed4] ss:$24 sps:$4 sm:$0xff]  }
 0x18c   : > { %7702 = vmatpush1.bf16.msra.mxu0 %v11374_v21  ;;  %7498 = vmatprep.subr.bf16.mxu1 %v11379_v24  ;;  %v11448_v21 = vld [vmem:[%s13131_s16 + $0x1dd4] ss:$24 sps:$4 sm:$0xff]   ;;  %v11443_v24 = vld [vmem:[%s13131_s16 + $0xed0] ss:$24 sps:$4 sm:$0xff]  }
 0x18d   : > { %7703 = vmatprep.subr.bf16.mxu0 %v11382_v25  ;;  %v11446_v25 = vld [vmem:[%s13131_s16 + $0x1dd0] ss:$24 sps:$4 sm:$0xff]  }
 0x18f   : > { %7499 = vmatpush1.bf16.msra.mxu1 %v11377_v26  ;;  %v342_v26 = vld [vmem:[%s14615_s0 + $0x40] sm:$0xff] }
 0x190   : > { %7704 = vmatpush1.bf16.msra.mxu0 %v11380_v27  ;;  %7500 = vmatprep.subr.bf16.mxu1 %v11385_v29  ;;  %v352_v27 = vld [vmem:[%s14615_s0 + $0x90] sm:$0xff]  ;;  %v11451_v29 = vld [vmem:[%s13131_s16 + $0x1e04] ss:$24 sps:$4 sm:$0xff]  }
 0x191   : > { %7705 = vmatprep.subr.bf16.mxu0 %v11388_v30  ;;  %v11454_v30 = vld [vmem:[%s13131_s16 + $0xc] ss:$24 sps:$4 sm:$0xff]  }
 0x193   : > { %7501 = vmatpush1.bf16.msra.mxu1 %v11383_v31  ;;  %v11449_v31 = vld [vmem:[%s13131_s16 + $0x1e00] ss:$24 sps:$4 sm:$0xff]  }
 0x194   : > { %7706 = vmatpush1.bf16.msra.mxu0 %v11386_v32  ;;  %7502 = vmatprep.subr.bf16.mxu1 %v11391_v34  ;;  %v13582_v32 = vpack.c.bf16 %v342_v26, %v342_v26  ;;  %v13584_v34 = vpack.c.bf16 %v352_v27, %v352_v27  ;;  %v11511_v26 = vld [vmem:[%s13131_s16 + $0x1fe4] ss:$24 sps:$4 sm:$0xff]  }
 0x195   : > { %7707 = vmatprep.subr.bf16.mxu0 %v11394_v35  ;;  %v355_v35 = vld [vmem:[%s14615_s0 + $0xa8] sm:$0xff] }
 0x196   : > { %v11514_v27 = vld [vmem:[%s13131_s16 + $0x1ec] ss:$24 sps:$4 sm:$0xff]  }
 0x197   : > { %7503 = vmatpush1.bf16.msra.mxu1 %v11389_v37  ;;  %v11452_v37 = vld [vmem:[%s13131_s16 + $0x8] ss:$24 sps:$4 sm:$0xff]  }
 0x198   : > { %7708 = vmatpush1.bf16.msra.mxu0 %v11392_v38  ;;  %7504 = vmatprep.subr.bf16.mxu1 %v11397_v39  ;;  %v11457_v38 = vld [vmem:[%s13131_s16 + $0x1e34] ss:$24 sps:$4 sm:$0xff]  }
 0x199   : > { %7709 = vmatprep.subr.bf16.mxu0 %v11400_v40  ;;  %v11460_v39 = vld [vmem:[%s13131_s16 + $0x3c] ss:$24 sps:$4 sm:$0xff]   ;;  %v13592_v40 = vpack.c.bf16 %v355_v35, %v355_v35 }
 0x19a   : > { %v11520_v35 = vld [vmem:[%s13131_s16 + $0x21c] ss:$24 sps:$4 sm:$0xff]  }
 0x19b   : > { %7505 = vmatpush1.bf16.msra.mxu1 %v11395_v44  ;;  %v11455_v44 = vld [vmem:[%s13131_s16 + $0x1e30] ss:$24 sps:$4 sm:$0xff]  }
 0x19c   : > { %7710 = vmatpush1.bf16.msra.mxu0 %v11398_v45  ;;  %7506 = vmatprep.subr.bf16.mxu1 %v11403_v46  ;;  %v11458_v45 = vld [vmem:[%s13131_s16 + $0x38] ss:$24 sps:$4 sm:$0xff]   ;;  %v11463_v46 = vld [vmem:[%s13131_s16 + $0x1e64] ss:$24 sps:$4 sm:$0xff]  }
 0x19d   : > { %7711 = vmatprep.subr.bf16.mxu0 %v11406_v47  ;;  %v11466_v47 = vld [vmem:[%s13131_s16 + $0x6c] ss:$24 sps:$4 sm:$0xff]  }
 0x19f   : > { %7507 = vmatpush1.bf16.msra.mxu1 %v11401_v51  ;;  %v11461_v51 = vld [vmem:[%s13131_s16 + $0x1e60] ss:$24 sps:$4 sm:$0xff]  }
 0x1a0   : > { %7712 = vmatpush1.bf16.msra.mxu0 %v11404_v52  ;;  %7508 = vmatprep.subr.bf16.mxu1 %v11409_v54  ;;  %v11464_v52 = vld [vmem:[%s13131_s16 + $0x68] ss:$24 sps:$4 sm:$0xff]   ;;  %v11469_v54 = vld [vmem:[%s13131_s16 + $0x1e94] ss:$24 sps:$4 sm:$0xff]  }
 0x1a1   : > { %7713 = vmatprep.subr.bf16.mxu0 %v11412_v55  ;;  %v11472_v55 = vld [vmem:[%s13131_s16 + $0x9c] ss:$24 sps:$4 sm:$0xff]  }
 0x1a3   : > { %7509 = vmatpush1.bf16.msra.mxu1 %v11407_v56  ;;  %v11467_v56 = vld [vmem:[%s13131_s16 + $0x1e90] ss:$24 sps:$4 sm:$0xff]  }
 0x1a4   : > { %7714 = vmatpush1.bf16.msra.mxu0 %v11410_v57  ;;  %7510 = vmatprep.subr.bf16.mxu1 %v11415_v58  ;;  %v11470_v57 = vld [vmem:[%s13131_s16 + $0x98] ss:$24 sps:$4 sm:$0xff]   ;;  %v11475_v58 = vld [vmem:[%s13131_s16 + $0x1ec4] ss:$24 sps:$4 sm:$0xff]  }
 0x1a5   : > { %7715 = vmatprep.subr.bf16.mxu0 %v11418_v59  ;;  %v11478_v59 = vld [vmem:[%s13131_s16 + $0xcc] ss:$24 sps:$4 sm:$0xff]  }
 0x1a7   : > { %7511 = vmatpush1.bf16.msra.mxu1 %v11413_v60  ;;  %v11473_v60 = vld [vmem:[%s13131_s16 + $0x1ec0] ss:$24 sps:$4 sm:$0xff]  }
 0x1a8   : > { %7716 = vmatpush1.bf16.msra.mxu0 %v11416_v61  ;;  %7512 = vmatprep.subr.bf16.mxu1 %v11421_v62  ;;  %v11476_v61 = vld [vmem:[%s13131_s16 + $0xc8] ss:$24 sps:$4 sm:$0xff]   ;;  %v11481_v62 = vld [vmem:[%s13131_s16 + $0x1ef4] ss:$24 sps:$4 sm:$0xff]  }
 0x1a9   : > { %7717 = vmatprep.subr.bf16.mxu0 %v11424_v63  ;;  %v11484_v63 = vld [vmem:[%s13131_s16 + $0xfc] ss:$24 sps:$4 sm:$0xff]  }
 0x1ab   : > { %7513 = vmatpush1.bf16.msra.mxu1 %v11419_v0  ;;  %v11479_v0 = vld [vmem:[%s13131_s16 + $0x1ef0] ss:$24 sps:$4 sm:$0xff]  }
 0x1ac   : > { %7718 = vmatpush1.bf16.msra.mxu0 %v11422_v1  ;;  %7514 = vmatprep.subr.bf16.mxu1 %v11427_v4  ;;  %v11482_v1 = vld [vmem:[%s13131_s16 + $0xf8] ss:$24 sps:$4 sm:$0xff]   ;;  %v11487_v4 = vld [vmem:[%s13131_s16 + $0x1f24] ss:$24 sps:$4 sm:$0xff]  }
 0x1ad   : > { %7719 = vmatprep.subr.bf16.mxu0 %v11430_v5  ;;  %v11490_v5 = vld [vmem:[%s13131_s16 + $0x12c] ss:$24 sps:$4 sm:$0xff]  }
 0x1af   : > { %7515 = vmatpush1.bf16.msra.mxu1 %v11425_v6  ;;  %v11485_v6 = vld [vmem:[%s13131_s16 + $0x1f20] ss:$24 sps:$4 sm:$0xff]  }
 0x1b0   : > { %7720 = vmatpush1.bf16.msra.mxu0 %v11428_v7  ;;  %7516 = vmatprep.subr.bf16.mxu1 %v11433_v12  ;;  %v11488_v7 = vld [vmem:[%s13131_s16 + $0x128] ss:$24 sps:$4 sm:$0xff]   ;;  %v11493_v12 = vld [vmem:[%s13131_s16 + $0x1f54] ss:$24 sps:$4 sm:$0xff]  }
 0x1b1   : > { %7721 = vmatprep.subr.bf16.mxu0 %v11436_v13  ;;  %v11496_v13 = vld [vmem:[%s13131_s16 + $0x15c] ss:$24 sps:$4 sm:$0xff]  }
 0x1b3   : > { %7517 = vmatpush1.bf16.msra.mxu1 %v11431_v14  ;;  %v11491_v14 = vld [vmem:[%s13131_s16 + $0x1f50] ss:$24 sps:$4 sm:$0xff]  }
 0x1b4   : > { %7722 = vmatpush1.bf16.msra.mxu0 %v11434_v15  ;;  %7518 = vmatprep.subr.bf16.mxu1 %v11439_v16  ;;  %v11494_v15 = vld [vmem:[%s13131_s16 + $0x158] ss:$24 sps:$4 sm:$0xff]   ;;  %v11499_v16 = vld [vmem:[%s13131_s16 + $0x1f84] ss:$24 sps:$4 sm:$0xff]  }
 0x1b5   : > { %7723 = vmatprep.subr.bf16.mxu0 %v11442_v17  ;;  %v11502_v17 = vld [vmem:[%s13131_s16 + $0x18c] ss:$24 sps:$4 sm:$0xff]  }
 0x1b7   : > { %7519 = vmatpush1.bf16.msra.mxu1 %v11437_v18  ;;  %v11497_v18 = vld [vmem:[%s13131_s16 + $0x1f80] ss:$24 sps:$4 sm:$0xff]  }
 0x1b8   : > { %7724 = vmatpush1.bf16.msra.mxu0 %v11440_v19  ;;  %7520 = vmatprep.subr.bf16.mxu1 %v11445_v20  ;;  %v11500_v19 = vld [vmem:[%s13131_s16 + $0x188] ss:$24 sps:$4 sm:$0xff]   ;;  %v11505_v20 = vld [vmem:[%s13131_s16 + $0x1fb4] ss:$24 sps:$4 sm:$0xff]  }
 0x1b9   : > { %7725 = vmatprep.subr.bf16.mxu0 %v11448_v21  ;;  %v11508_v21 = vld [vmem:[%s13131_s16 + $0x1bc] ss:$24 sps:$4 sm:$0xff]  }
 0x1bb   : > { %7521 = vmatpush1.bf16.msra.mxu1 %v11443_v24  ;;  %v11503_v24 = vld [vmem:[%s13131_s16 + $0x1fb0] ss:$24 sps:$4 sm:$0xff]  }
 0x1bc   : > { %7726 = vmatpush1.bf16.msra.mxu0 %v11446_v25  ;;  %7818 = vmatprep.subr.bf16.mxu1 %v11454_v30  ;;  %v11506_v25 = vld [vmem:[%s13131_s16 + $0x1b8] ss:$24 sps:$4 sm:$0xff]   ;;  %v11512_v30 = vld [vmem:[%s13131_s16 + $0x1e8] ss:$24 sps:$4 sm:$0xff]  }
 0x1bd   : > { %7736 = vmatprep.subr.bf16.mxu0 %v11451_v29  ;;  %v11509_v29 = vld [vmem:[%s13131_s16 + $0x1fe0] ss:$24 sps:$4 sm:$0xff]  }
 0x1be   : > { %7523 = vmatmul.mubr.bf16.vlgmr.msra.gmra.mrb[0].mxu1 %v13582_v32 }
 0x1bf   : > { %7728 = vmatmul.mubr.bf16.vlgmr.msra.gmra.mrb[0].mxu0 %v13584_v34  ;;  %7819 = vmatpush1.bf16.msra.mxu1 %v11452_v37  ;;  %v11515_v37 = vld [vmem:[%s13131_s16 + $0x2010] ss:$24 sps:$4 sm:$0xff]  }
 0x1c0   : > { %7737 = vmatpush1.bf16.msra.mxu0 %v11449_v31  ;;  %7820 = vmatprep.subr.bf16.mxu1 %v11460_v39  ;;  %v11517_v31 = vld [vmem:[%s13131_s16 + $0x2014] ss:$24 sps:$4 sm:$0xff]   ;;  %v11523_v39 = vld [vmem:[%s13131_s16 + $0x2044] ss:$24 sps:$4 sm:$0xff]  }
 0x1c1   : > { %7738 = vmatprep.subr.bf16.mxu0 %v11457_v38  ;;  %7768 = vmatprep.mubr.bf16.mxu0 %v13592_v40  ;;  %v11518_v38 = vld [vmem:[%s13131_s16 + $0x218] ss:$24 sps:$4 sm:$0xff]  }
 0x1c2   : > { %7850 = vmatprep.mubr.bf16.mxu1 %v13195_v48 }
 0x1c3   : > { %7821 = vmatpush1.bf16.msra.mxu1 %v11458_v45  ;;  %v11521_v45 = vld [vmem:[%s13131_s16 + $0x2040] ss:$24 sps:$4 sm:$0xff]  }
 0x1c4   : > { %7739 = vmatpush1.bf16.msra.mxu0 %v11455_v44  ;;  %7822 = vmatprep.subr.bf16.mxu1 %v11466_v47  ;;  %v11526_v44 = vld [vmem:[%s13131_s16 + $0x24c] ss:$24 sps:$4 sm:$0xff]  }
 0x1c5   : > { %7740 = vmatprep.subr.bf16.mxu0 %v11463_v46  ;;  %v11524_v46 = vld [vmem:[%s13131_s16 + $0x248] ss:$24 sps:$4 sm:$0xff]   ;;  %v11529_v47 = vld [vmem:[%s13131_s16 + $0x2074] ss:$24 sps:$4 sm:$0xff]  }
 0x1c7   : > { %7823 = vmatpush1.bf16.msra.mxu1 %v11464_v52  ;;  %v11527_v52 = vld [vmem:[%s13131_s16 + $0x2070] ss:$24 sps:$4 sm:$0xff]  }
 0x1c8   : > { %7741 = vmatpush1.bf16.msra.mxu0 %v11461_v51  ;;  %7824 = vmatprep.subr.bf16.mxu1 %v11472_v55  ;;  %v11532_v51 = vld [vmem:[%s13131_s16 + $0x27c] ss:$24 sps:$4 sm:$0xff]  }
 0x1c9   : > { %7742 = vmatprep.subr.bf16.mxu0 %v11469_v54  ;;  %v11530_v54 = vld [vmem:[%s13131_s16 + $0x278] ss:$24 sps:$4 sm:$0xff]   ;;  %v11535_v55 = vld [vmem:[%s13131_s16 + $0x20a4] ss:$24 sps:$4 sm:$0xff]  }
 0x1cb   : > { %7825 = vmatpush1.bf16.msra.mxu1 %v11470_v57  ;;  %v11533_v57 = vld [vmem:[%s13131_s16 + $0x20a0] ss:$24 sps:$4 sm:$0xff]  }
 0x1cc   : > { %7743 = vmatpush1.bf16.msra.mxu0 %v11467_v56  ;;  %7826 = vmatprep.subr.bf16.mxu1 %v11478_v59  ;;  %v11538_v56 = vld [vmem:[%s13131_s16 + $0x2ac] ss:$24 sps:$4 sm:$0xff]  }
 0x1cd   : > { %7744 = vmatprep.subr.bf16.mxu0 %v11475_v58  ;;  %v11536_v58 = vld [vmem:[%s13131_s16 + $0x2a8] ss:$24 sps:$4 sm:$0xff]   ;;  %v11541_v59 = vld [vmem:[%s13131_s16 + $0x20d4] ss:$24 sps:$4 sm:$0xff]  }
 0x1cf   : > { %7827 = vmatpush1.bf16.msra.mxu1 %v11476_v61  ;;  %v11539_v61 = vld [vmem:[%s13131_s16 + $0x20d0] ss:$24 sps:$4 sm:$0xff]  }
 0x1d0   : > { %7745 = vmatpush1.bf16.msra.mxu0 %v11473_v60  ;;  %7828 = vmatprep.subr.bf16.mxu1 %v11484_v63  ;;  %v11544_v60 = vld [vmem:[%s13131_s16 + $0x2dc] ss:$24 sps:$4 sm:$0xff]  }
 0x1d1   : > { %7746 = vmatprep.subr.bf16.mxu0 %v11481_v62  ;;  %v11542_v62 = vld [vmem:[%s13131_s16 + $0x2d8] ss:$24 sps:$4 sm:$0xff]   ;;  %v11547_v63 = vld [vmem:[%s13131_s16 + $0x2104] ss:$24 sps:$4 sm:$0xff]  }
 0x1d3   : > { %7829 = vmatpush1.bf16.msra.mxu1 %v11482_v1  ;;  %v11550_v1 = vld [vmem:[%s13131_s16 + $0x30c] ss:$24 sps:$4 sm:$0xff]  }
 0x1d4   : > { %7747 = vmatpush1.bf16.msra.mxu0 %v11479_v0  ;;  %7830 = vmatprep.subr.bf16.mxu1 %v11490_v5  ;;  %v354_v0 = vld [vmem:[%s14615_s0 + $0xa0] sm:$0xff] }
 0x1d5   : > { %7748 = vmatprep.subr.bf16.mxu0 %v11487_v4  ;;  %v357_v4 = vld [vmem:[%s14615_s0 + $0xb8] sm:$0xff]  ;;  %v13664_v5 = vpack.c.bf16 %v354_v0, %v354_v0 }
 0x1d6   : > { %v11607_v0 = vld [vmem:[%s13131_s16 + $0x22e4] ss:$24 sps:$4 sm:$0xff]  }
 0x1d7   : > { %7831 = vmatpush1.bf16.msra.mxu1 %v11488_v7  ;;  %v11548_v7 = vld [vmem:[%s13131_s16 + $0x308] ss:$24 sps:$4 sm:$0xff]  }
 0x1d8   : > { %7749 = vmatpush1.bf16.msra.mxu0 %v11485_v6  ;;  %7832 = vmatprep.subr.bf16.mxu1 %v11496_v13  ;;  %v11545_v6 = vld [vmem:[%s13131_s16 + $0x2100] ss:$24 sps:$4 sm:$0xff]   ;;  %v11556_v13 = vld [vmem:[%s13131_s16 + $0x33c] ss:$24 sps:$4 sm:$0xff]  }
 0x1d9   : > { %7750 = vmatprep.subr.bf16.mxu0 %v11493_v12  ;;  %v11553_v12 = vld [vmem:[%s13131_s16 + $0x2134] ss:$24 sps:$4 sm:$0xff]  }
 0x1db   : > { %7833 = vmatpush1.bf16.msra.mxu1 %v11494_v15  ;;  %v11551_v15 = vld [vmem:[%s13131_s16 + $0x2130] ss:$24 sps:$4 sm:$0xff]  }
 0x1dc   : > { %7751 = vmatpush1.bf16.msra.mxu0 %v11491_v14  ;;  %7834 = vmatprep.subr.bf16.mxu1 %v11502_v17  ;;  %v13670_v14 = vpack.c.bf16 %v357_v4, %v357_v4  ;;  %v11559_v17 = vld [vmem:[%s13131_s16 + $0x2164] ss:$24 sps:$4 sm:$0xff]   ;;  %v11605_v4 = vld [vmem:[%s13131_s16 + $0x22e0] ss:$24 sps:$4 sm:$0xff]  }
 0x1dd   : > { %7752 = vmatprep.subr.bf16.mxu0 %v11499_v16  ;;  %v11554_v16 = vld [vmem:[%s13131_s16 + $0x338] ss:$24 sps:$4 sm:$0xff]  }
 0x1df   : > { %7835 = vmatpush1.bf16.msra.mxu1 %v11500_v19  ;;  %v11557_v19 = vld [vmem:[%s13131_s16 + $0x2160] ss:$24 sps:$4 sm:$0xff]  }
 0x1e0   : > { %7753 = vmatpush1.bf16.msra.mxu0 %v11497_v18  ;;  %7836 = vmatprep.subr.bf16.mxu1 %v11508_v21  ;;  %v11562_v18 = vld [vmem:[%s13131_s16 + $0x36c] ss:$24 sps:$4 sm:$0xff]  }
 0x1e1   : > { %7754 = vmatprep.subr.bf16.mxu0 %v11505_v20  ;;  %v11560_v20 = vld [vmem:[%s13131_s16 + $0x368] ss:$24 sps:$4 sm:$0xff]   ;;  %v11565_v21 = vld [vmem:[%s13131_s16 + $0x2194] ss:$24 sps:$4 sm:$0xff]  }
 0x1e3   : > { %7837 = vmatpush1.bf16.msra.mxu1 %v11506_v25  ;;  %v11563_v25 = vld [vmem:[%s13131_s16 + $0x2190] ss:$24 sps:$4 sm:$0xff]  }
 0x1e4   : > { %7755 = vmatpush1.bf16.msra.mxu0 %v11503_v24  ;;  %7838 = vmatprep.subr.bf16.mxu1 %v11514_v27  ;;  %v11568_v24 = vld [vmem:[%s13131_s16 + $0x39c] ss:$24 sps:$4 sm:$0xff]  }
 0x1e5   : > { %7756 = vmatprep.subr.bf16.mxu0 %v11511_v26  ;;  %v11566_v26 = vld [vmem:[%s13131_s16 + $0x398] ss:$24 sps:$4 sm:$0xff]   ;;  %v11571_v27 = vld [vmem:[%s13131_s16 + $0x21c4] ss:$24 sps:$4 sm:$0xff]  }
 0x1e7   : > { %7839 = vmatpush1.bf16.msra.mxu1 %v11512_v30  ;;  %v11569_v30 = vld [vmem:[%s13131_s16 + $0x21c0] ss:$24 sps:$4 sm:$0xff]  }
 0x1e8   : > { %7757 = vmatpush1.bf16.msra.mxu0 %v11509_v29  ;;  %7840 = vmatprep.subr.bf16.mxu1 %v11520_v35  ;;  %v11574_v29 = vld [vmem:[%s13131_s16 + $0x3cc] ss:$24 sps:$4 sm:$0xff]  }
 0x1e9   : > { %7758 = vmatprep.subr.bf16.mxu0 %v11517_v31  ;;  %v11572_v31 = vld [vmem:[%s13131_s16 + $0x3c8] ss:$24 sps:$4 sm:$0xff]   ;;  %v11577_v35 = vld [vmem:[%s13131_s16 + $0x21f4] ss:$24 sps:$4 sm:$0xff]  }
 0x1eb   : > { %7841 = vmatpush1.bf16.msra.mxu1 %v11518_v38  ;;  %v11575_v38 = vld [vmem:[%s13131_s16 + $0x21f0] ss:$24 sps:$4 sm:$0xff]  }
 0x1ec   : > { %7759 = vmatpush1.bf16.msra.mxu0 %v11515_v37  ;;  %7842 = vmatprep.subr.bf16.mxu1 %v11526_v44  ;;  %v11580_v37 = vld [vmem:[%s13131_s16 + $0x3fc] ss:$24 sps:$4 sm:$0xff]  }
 0x1ed   : > { %7760 = vmatprep.subr.bf16.mxu0 %v11523_v39  ;;  %v11578_v39 = vld [vmem:[%s13131_s16 + $0x3f8] ss:$24 sps:$4 sm:$0xff]   ;;  %v11583_v44 = vld [vmem:[%s13131_s16 + $0x2224] ss:$24 sps:$4 sm:$0xff]  }
 0x1ef   : > { %7843 = vmatpush1.bf16.msra.mxu1 %v11524_v46  ;;  %v11581_v46 = vld [vmem:[%s13131_s16 + $0x2220] ss:$24 sps:$4 sm:$0xff]  }
 0x1f0   : > { %7761 = vmatpush1.bf16.msra.mxu0 %v11521_v45  ;;  %7844 = vmatprep.subr.bf16.mxu1 %v11532_v51  ;;  %v11586_v45 = vld [vmem:[%s13131_s16 + $0x42c] ss:$24 sps:$4 sm:$0xff]  }
 0x1f1   : > { %7762 = vmatprep.subr.bf16.mxu0 %v11529_v47  ;;  %v11584_v47 = vld [vmem:[%s13131_s16 + $0x428] ss:$24 sps:$4 sm:$0xff]   ;;  %v11589_v51 = vld [vmem:[%s13131_s16 + $0x2254] ss:$24 sps:$4 sm:$0xff]  }
 0x1f3   : > { %7845 = vmatpush1.bf16.msra.mxu1 %v11530_v54  ;;  %v11587_v54 = vld [vmem:[%s13131_s16 + $0x2250] ss:$24 sps:$4 sm:$0xff]  }
 0x1f4   : > { %7763 = vmatpush1.bf16.msra.mxu0 %v11527_v52  ;;  %7846 = vmatprep.subr.bf16.mxu1 %v11538_v56  ;;  %v11592_v52 = vld [vmem:[%s13131_s16 + $0x45c] ss:$24 sps:$4 sm:$0xff]  }
 0x1f5   : > { %7764 = vmatprep.subr.bf16.mxu0 %v11535_v55  ;;  %v11590_v55 = vld [vmem:[%s13131_s16 + $0x458] ss:$24 sps:$4 sm:$0xff]   ;;  %v11595_v56 = vld [vmem:[%s13131_s16 + $0x2284] ss:$24 sps:$4 sm:$0xff]  }
 0x1f7   : > { %7847 = vmatpush1.bf16.msra.mxu1 %v11536_v58  ;;  %v11593_v58 = vld [vmem:[%s13131_s16 + $0x2280] ss:$24 sps:$4 sm:$0xff]  }
 0x1f8   : > { %7765 = vmatpush1.bf16.msra.mxu0 %v11533_v57  ;;  %7848 = vmatprep.subr.bf16.mxu1 %v11544_v60  ;;  %v11598_v57 = vld [vmem:[%s13131_s16 + $0x48c] ss:$24 sps:$4 sm:$0xff]  }
 0x1f9   : > { %7766 = vmatprep.subr.bf16.mxu0 %v11541_v59  ;;  %v11596_v59 = vld [vmem:[%s13131_s16 + $0x488] ss:$24 sps:$4 sm:$0xff]   ;;  %v11601_v60 = vld [vmem:[%s13131_s16 + $0x22b4] ss:$24 sps:$4 sm:$0xff]  }
 0x1fb   : > { %7849 = vmatpush1.bf16.msra.mxu1 %v11542_v62  ;;  %v11599_v62 = vld [vmem:[%s13131_s16 + $0x22b0] ss:$24 sps:$4 sm:$0xff]  }
 0x1fc   : > { %7767 = vmatpush1.bf16.msra.mxu0 %v11539_v61  ;;  %7859 = vmatprep.subr.bf16.mxu1 %v11550_v1  ;;  %v11604_v61 = vld [vmem:[%s13131_s16 + $0x4bc] ss:$24 sps:$4 sm:$0xff]   ;;  %v11610_v1 = vld [vmem:[%s13131_s16 + $0x4ec] ss:$24 sps:$4 sm:$0xff]  }
 0x1fd   : > { %7777 = vmatprep.subr.bf16.mxu0 %v11547_v63  ;;  %v11602_v63 = vld [vmem:[%s13131_s16 + $0x4b8] ss:$24 sps:$4 sm:$0xff]  }
 0x1fe   : > { %7851 = vmatmul.mubr.bf16.vlgmr.msra.gmra.mrb[4].mxu1 %v13231_v10 }
 0x1ff   : > { %7769 = vmatmul.mubr.bf16.vlgmr.msra.gmra.mrb[0].mxu0 %v13664_v5  ;;  %7860 = vmatpush1.bf16.msra.mxu1 %v11548_v7  ;;  %v11613_v7 = vld [vmem:[%s13131_s16 + $0x2314] ss:$24 sps:$4 sm:$0xff]  }
 0x200   : > { %7778 = vmatpush1.bf16.msra.mxu0 %v11545_v6  ;;  %7861 = vmatprep.subr.bf16.mxu1 %v11556_v13  ;;  %v11608_v6 = vld [vmem:[%s13131_s16 + $0x4e8] ss:$24 sps:$4 sm:$0xff]  }
 0x201   : > { %7779 = vmatprep.subr.bf16.mxu0 %v11553_v12  ;;  %7809 = vmatprep.mubr.bf16.mxu0 %v13670_v14  ;;  %v11616_v12 = vld [vmem:[%s13131_s16 + $0x51c] ss:$24 sps:$4 sm:$0xff]   ;;  %v11611_v13 = vld [vmem:[%s13131_s16 + $0x2310] ss:$24 sps:$4 sm:$0xff]  }
 0x202   : > { %7891 = vmatprep.mubr.bf16.mxu1 %v13263_v36 }
 0x203   : > { %7862 = vmatpush1.bf16.msra.mxu1 %v11554_v16  ;;  %v11619_v16 = vld [vmem:[%s13131_s16 + $0x2344] ss:$24 sps:$4 sm:$0xff]  }
 0x204   : > { %7780 = vmatpush1.bf16.msra.mxu0 %v11551_v15  ;;  %7863 = vmatprep.subr.bf16.mxu1 %v11562_v18  ;;  %v11614_v15 = vld [vmem:[%s13131_s16 + $0x518] ss:$24 sps:$4 sm:$0xff]  }
 0x205   : > { %7781 = vmatprep.subr.bf16.mxu0 %v11559_v17  ;;  %v11622_v17 = vld [vmem:[%s13131_s16 + $0x54c] ss:$24 sps:$4 sm:$0xff]   ;;  %v11617_v18 = vld [vmem:[%s13131_s16 + $0x2340] ss:$24 sps:$4 sm:$0xff]  }
 0x207   : > { %7864 = vmatpush1.bf16.msra.mxu1 %v11560_v20  ;;  %v11625_v20 = vld [vmem:[%s13131_s16 + $0x2374] ss:$24 sps:$4 sm:$0xff]  }
 0x208   : > { %7782 = vmatpush1.bf16.msra.mxu0 %v11557_v19  ;;  %7865 = vmatprep.subr.bf16.mxu1 %v11568_v24  ;;  %v11620_v19 = vld [vmem:[%s13131_s16 + $0x548] ss:$24 sps:$4 sm:$0xff]  }
 0x209   : > { %7783 = vmatprep.subr.bf16.mxu0 %v11565_v21  ;;  %v11628_v21 = vld [vmem:[%s13131_s16 + $0x57c] ss:$24 sps:$4 sm:$0xff]   ;;  %v11623_v24 = vld [vmem:[%s13131_s16 + $0x2370] ss:$24 sps:$4 sm:$0xff]  }
 0x20b   : > { %7866 = vmatpush1.bf16.msra.mxu1 %v11566_v26  ;;  %v11631_v26 = vld [vmem:[%s13131_s16 + $0x23a4] ss:$24 sps:$4 sm:$0xff]  }
 0x20c   : > { %7784 = vmatpush1.bf16.msra.mxu0 %v11563_v25  ;;  %7867 = vmatprep.subr.bf16.mxu1 %v11574_v29  ;;  %v11626_v25 = vld [vmem:[%s13131_s16 + $0x578] ss:$24 sps:$4 sm:$0xff]  }
 0x20d   : > { %7785 = vmatprep.subr.bf16.mxu0 %v11571_v27  ;;  %v11634_v27 = vld [vmem:[%s13131_s16 + $0x5ac] ss:$24 sps:$4 sm:$0xff]   ;;  %v11629_v29 = vld [vmem:[%s13131_s16 + $0x23a0] ss:$24 sps:$4 sm:$0xff]  }
 0x20f   : > { %7868 = vmatpush1.bf16.msra.mxu1 %v11572_v31  ;;  %v11637_v31 = vld [vmem:[%s13131_s16 + $0x23d4] ss:$24 sps:$4 sm:$0xff]  }
 0x210   : > { %7786 = vmatpush1.bf16.msra.mxu0 %v11569_v30  ;;  %7869 = vmatprep.subr.bf16.mxu1 %v11580_v37  ;;  %v11632_v30 = vld [vmem:[%s13131_s16 + $0x5a8] ss:$24 sps:$4 sm:$0xff]  }
 0x211   : > { %7787 = vmatprep.subr.bf16.mxu0 %v11577_v35  ;;  %v11640_v35 = vld [vmem:[%s13131_s16 + $0x5dc] ss:$24 sps:$4 sm:$0xff]   ;;  %v11635_v37 = vld [vmem:[%s13131_s16 + $0x23d0] ss:$24 sps:$4 sm:$0xff]  }
 0x213   : > { %7870 = vmatpush1.bf16.msra.mxu1 %v11578_v39  ;;  %v356_v39 = vld [vmem:[%s14615_s0 + $0xb0] sm:$0xff] }
 0x214   : > { %7788 = vmatpush1.bf16.msra.mxu0 %v11575_v38  ;;  %7871 = vmatprep.subr.bf16.mxu1 %v11586_v45  ;;  %v11638_v38 = vld [vmem:[%s13131_s16 + $0x5d8] ss:$24 sps:$4 sm:$0xff]   ;;  %v11646_v45 = vld [vmem:[%s13131_s16 + $0x14] ss:$24 sps:$4 sm:$0xff]  }
 0x215   : > { %7789 = vmatprep.subr.bf16.mxu0 %v11583_v44  ;;  %v11643_v44 = vld [vmem:[%s13131_s16 + $0x60c] ss:$24 sps:$4 sm:$0xff]  }
 0x217   : > { %7872 = vmatpush1.bf16.msra.mxu1 %v11584_v47  ;;  %v11641_v47 = vld [vmem:[%s13131_s16 + $0x608] ss:$24 sps:$4 sm:$0xff]  }
 0x218   : > { %7790 = vmatpush1.bf16.msra.mxu0 %v11581_v46  ;;  %7873 = vmatprep.subr.bf16.mxu1 %v11592_v52  ;;  %v13739_v46 = vpack.c.bf16 %v356_v39, %v356_v39  ;;  %v11649_v52 = vld [vmem:[%s13131_s16 + $0x63c] ss:$24 sps:$4 sm:$0xff]   ;;  %v11703_v39 = vld [vmem:[%s13131_s16 + $0x7ec] ss:$24 sps:$4 sm:$0xff]  }
 0x219   : > { %7791 = vmatprep.subr.bf16.mxu0 %v11589_v51  ;;  %v11644_v51 = vld [vmem:[%s13131_s16 + $0x10] ss:$24 sps:$4 sm:$0xff]  }
 0x21b   : > { %7874 = vmatpush1.bf16.msra.mxu1 %v11590_v55  ;;  %v11647_v55 = vld [vmem:[%s13131_s16 + $0x638] ss:$24 sps:$4 sm:$0xff]  }
 0x21c   : > { %7792 = vmatpush1.bf16.msra.mxu0 %v11587_v54  ;;  %7875 = vmatprep.subr.bf16.mxu1 %v11598_v57  ;;  %v11652_v54 = vld [vmem:[%s13131_s16 + $0x44] ss:$24 sps:$4 sm:$0xff]  }
 0x21d   : > { %7793 = vmatprep.subr.bf16.mxu0 %v11595_v56  ;;  %v11650_v56 = vld [vmem:[%s13131_s16 + $0x40] ss:$24 sps:$4 sm:$0xff]   ;;  %v11655_v57 = vld [vmem:[%s13131_s16 + $0x66c] ss:$24 sps:$4 sm:$0xff]  }
 0x21f   : > { %7876 = vmatpush1.bf16.msra.mxu1 %v11596_v59  ;;  %v11653_v59 = vld [vmem:[%s13131_s16 + $0x668] ss:$24 sps:$4 sm:$0xff]  }
 0x220   : > { %7794 = vmatpush1.bf16.msra.mxu0 %v11593_v58  ;;  %7877 = vmatprep.subr.bf16.mxu1 %v11604_v61  ;;  %v11658_v58 = vld [vmem:[%s13131_s16 + $0x74] ss:$24 sps:$4 sm:$0xff]  }
 0x221   : > { %7795 = vmatprep.subr.bf16.mxu0 %v11601_v60  ;;  %v11656_v60 = vld [vmem:[%s13131_s16 + $0x70] ss:$24 sps:$4 sm:$0xff]   ;;  %v11661_v61 = vld [vmem:[%s13131_s16 + $0x69c] ss:$24 sps:$4 sm:$0xff]  }
 0x223   : > { %7878 = vmatpush1.bf16.msra.mxu1 %v11602_v63  ;;  %v11659_v63 = vld [vmem:[%s13131_s16 + $0x698] ss:$24 sps:$4 sm:$0xff]  }
 0x224   : > { %7796 = vmatpush1.bf16.msra.mxu0 %v11599_v62  ;;  %7879 = vmatprep.subr.bf16.mxu1 %v11610_v1  ;;  %v11664_v62 = vld [vmem:[%s13131_s16 + $0xa4] ss:$24 sps:$4 sm:$0xff]   ;;  %v11670_v1 = vld [vmem:[%s13131_s16 + $0xd4] ss:$24 sps:$4 sm:$0xff]  }
 0x225   : > { %7797 = vmatprep.subr.bf16.mxu0 %v11607_v0  ;;  %v11662_v0 = vld [vmem:[%s13131_s16 + $0xa0] ss:$24 sps:$4 sm:$0xff]  }
 0x227   : > { %7880 = vmatpush1.bf16.msra.mxu1 %v11608_v6  ;;  %v11668_v6 = vld [vmem:[%s13131_s16 + $0xd0] ss:$24 sps:$4 sm:$0xff]  }
 0x228   : > { %7798 = vmatpush1.bf16.msra.mxu0 %v11605_v4  ;;  %7881 = vmatprep.subr.bf16.mxu1 %v11616_v12  ;;  %v11665_v4 = vld [vmem:[%s13131_s16 + $0x6c8] ss:$24 sps:$4 sm:$0xff]   ;;  %v11676_v12 = vld [vmem:[%s13131_s16 + $0x104] ss:$24 sps:$4 sm:$0xff]  }
 0x229   : > { %7799 = vmatprep.subr.bf16.mxu0 %v11613_v7  ;;  %v11673_v7 = vld [vmem:[%s13131_s16 + $0x6fc] ss:$24 sps:$4 sm:$0xff]  }
 0x22b   : > { %7882 = vmatpush1.bf16.msra.mxu1 %v11614_v15  ;;  %v11674_v15 = vld [vmem:[%s13131_s16 + $0x100] ss:$24 sps:$4 sm:$0xff]  }
 0x22c   : > { %7800 = vmatpush1.bf16.msra.mxu0 %v11611_v13  ;;  %7883 = vmatprep.subr.bf16.mxu1 %v11622_v17  ;;  %v11671_v13 = vld [vmem:[%s13131_s16 + $0x6f8] ss:$24 sps:$4 sm:$0xff]   ;;  %v11682_v17 = vld [vmem:[%s13131_s16 + $0x134] ss:$24 sps:$4 sm:$0xff]  }
 0x22d   : > { %7801 = vmatprep.subr.bf16.mxu0 %v11619_v16  ;;  %v11679_v16 = vld [vmem:[%s13131_s16 + $0x72c] ss:$24 sps:$4 sm:$0xff]  }
 0x22f   : > { %7884 = vmatpush1.bf16.msra.mxu1 %v11620_v19  ;;  %v11680_v19 = vld [vmem:[%s13131_s16 + $0x130] ss:$24 sps:$4 sm:$0xff]  }
 0x230   : > { %7802 = vmatpush1.bf16.msra.mxu0 %v11617_v18  ;;  %7885 = vmatprep.subr.bf16.mxu1 %v11628_v21  ;;  %v11677_v18 = vld [vmem:[%s13131_s16 + $0x728] ss:$24 sps:$4 sm:$0xff]   ;;  %v11688_v21 = vld [vmem:[%s13131_s16 + $0x164] ss:$24 sps:$4 sm:$0xff]  }
 0x231   : > { %7803 = vmatprep.subr.bf16.mxu0 %v11625_v20  ;;  %v11685_v20 = vld [vmem:[%s13131_s16 + $0x75c] ss:$24 sps:$4 sm:$0xff]  }
 0x233   : > { %7886 = vmatpush1.bf16.msra.mxu1 %v11626_v25  ;;  %v11686_v25 = vld [vmem:[%s13131_s16 + $0x160] ss:$24 sps:$4 sm:$0xff]  }
 0x234   : > { %7804 = vmatpush1.bf16.msra.mxu0 %v11623_v24  ;;  %7887 = vmatprep.subr.bf16.mxu1 %v11634_v27  ;;  %v11683_v24 = vld [vmem:[%s13131_s16 + $0x758] ss:$24 sps:$4 sm:$0xff]   ;;  %v11694_v27 = vld [vmem:[%s13131_s16 + $0x194] ss:$24 sps:$4 sm:$0xff]  }
 0x235   : > { %7805 = vmatprep.subr.bf16.mxu0 %v11631_v26  ;;  %v11691_v26 = vld [vmem:[%s13131_s16 + $0x78c] ss:$24 sps:$4 sm:$0xff]  }
 0x237   : > { %7888 = vmatpush1.bf16.msra.mxu1 %v11632_v30  ;;  %v11692_v30 = vld [vmem:[%s13131_s16 + $0x190] ss:$24 sps:$4 sm:$0xff]  }
 0x238   : > { %7806 = vmatpush1.bf16.msra.mxu0 %v11629_v29  ;;  %7889 = vmatprep.subr.bf16.mxu1 %v11640_v35  ;;  %v11689_v29 = vld [vmem:[%s13131_s16 + $0x788] ss:$24 sps:$4 sm:$0xff]   ;;  %v11700_v35 = vld [vmem:[%s13131_s16 + $0x1c4] ss:$24 sps:$4 sm:$0xff]  }
 0x239   : > { %7807 = vmatprep.subr.bf16.mxu0 %v11637_v31  ;;  %v11697_v31 = vld [vmem:[%s13131_s16 + $0x7bc] ss:$24 sps:$4 sm:$0xff]  }
 0x23b   : > { %7890 = vmatpush1.bf16.msra.mxu1 %v11638_v38  ;;  %v11698_v38 = vld [vmem:[%s13131_s16 + $0x1c0] ss:$24 sps:$4 sm:$0xff]  }
 0x23c   : > { %7808 = vmatpush1.bf16.msra.mxu0 %v11635_v37  ;;  %7900 = vmatprep.subr.bf16.mxu1 %v11643_v44  ;;  %v11695_v37 = vld [vmem:[%s13131_s16 + $0x7b8] ss:$24 sps:$4 sm:$0xff]   ;;  %v11706_v44 = vld [vmem:[%s13131_s16 + $0x1f4] ss:$24 sps:$4 sm:$0xff]  }
 0x23d   : > { %8310 = vmatprep.subr.bf16.mxu0 %v11646_v45  ;;  %v11701_v45 = vld [vmem:[%s13131_s16 + $0x7e8] ss:$24 sps:$4 sm:$0xff]  }
 0x23e   : > { %7892 = vmatmul.mubr.bf16.vlgmr.msra.gmra.mrb[4].mxu1 %v13319_v22 }
 0x23f   : > { %7810 = vmatmul.mubr.bf16.vlgmr.msra.gmra.mrb[0].mxu0 %v13739_v46  ;;  %7901 = vmatpush1.bf16.msra.mxu1 %v11641_v47  ;;  %v11704_v47 = vld [vmem:[%s13131_s16 + $0x1f0] ss:$24 sps:$4 sm:$0xff]  }
 0x240   : > { %8311 = vmatpush1.bf16.msra.mxu0 %v11644_v51  ;;  %7902 = vmatprep.subr.bf16.mxu1 %v11649_v52  ;;  %v11709_v51 = vld [vmem:[%s13131_s16 + $0x81c] ss:$24 sps:$4 sm:$0xff]  }
 0x241   : > { %8312 = vmatprep.subr.bf16.mxu0 %v11652_v54  ;;  %7932 = vmatprep.mubr.bf16.mxu1 %v13331_v28  ;;  %v11712_v52 = vld [vmem:[%s13131_s16 + $0x224] ss:$24 sps:$4 sm:$0xff]   ;;  %v11707_v54 = vld [vmem:[%s13131_s16 + $0x818] ss:$24 sps:$4 sm:$0xff]  }
 0x242   : > { %8342 = vmatprep.mubr.bf16.mxu0 %v13195_v48  ;;  %v11667_v48 = vld [vmem:[%s13131_s16 + $0x6cc] ss:$24 sps:$4 sm:$0xff]  }
 0x243   : > { %7903 = vmatpush1.bf16.msra.mxu1 %v11647_v55  ;;  %v11710_v55 = vld [vmem:[%s13131_s16 + $0x220] ss:$24 sps:$4 sm:$0xff]  }
 0x244   : > { %8313 = vmatpush1.bf16.msra.mxu0 %v11650_v56  ;;  %7904 = vmatprep.subr.bf16.mxu1 %v11655_v57  ;;  %v11715_v56 = vld [vmem:[%s13131_s16 + $0x84c] ss:$24 sps:$4 sm:$0xff]  }
 0x245   : > { %8314 = vmatprep.subr.bf16.mxu0 %v11658_v58  ;;  %v11718_v57 = vld [vmem:[%s13131_s16 + $0x254] ss:$24 sps:$4 sm:$0xff]   ;;  %v11713_v58 = vld [vmem:[%s13131_s16 + $0x848] ss:$24 sps:$4 sm:$0xff]  }
 0x247   : > { %7905 = vmatpush1.bf16.msra.mxu1 %v11653_v59  ;;  %v11716_v59 = vld [vmem:[%s13131_s16 + $0x250] ss:$24 sps:$4 sm:$0xff]  }
 0x248   : > { %8315 = vmatpush1.bf16.msra.mxu0 %v11656_v60  ;;  %7906 = vmatprep.subr.bf16.mxu1 %v11661_v61  ;;  %v11721_v60 = vld [vmem:[%s13131_s16 + $0x87c] ss:$24 sps:$4 sm:$0xff]  }
 0x249   : > { %8316 = vmatprep.subr.bf16.mxu0 %v11664_v62  ;;  %v11724_v61 = vld [vmem:[%s13131_s16 + $0x284] ss:$24 sps:$4 sm:$0xff]   ;;  %v11719_v62 = vld [vmem:[%s13131_s16 + $0x878] ss:$24 sps:$4 sm:$0xff]  }
 0x24b   : > { %7907 = vmatpush1.bf16.msra.mxu1 %v11659_v63  ;;  %v11722_v63 = vld [vmem:[%s13131_s16 + $0x280] ss:$24 sps:$4 sm:$0xff]  }
 0x24c   : > { %8317 = vmatpush1.bf16.msra.mxu0 %v11662_v0  ;;  %7908 = vmatprep.subr.bf16.mxu1 %v11667_v48  ;;  %v11727_v0 = vld [vmem:[%s13131_s16 + $0x8ac] ss:$24 sps:$4 sm:$0xff]  }
 0x24d   : > { %8318 = vmatprep.subr.bf16.mxu0 %v11670_v1  ;;  %v11730_v48 = vld [vmem:[%s13131_s16 + $0x2b4] ss:$24 sps:$4 sm:$0xff]   ;;  %v11725_v1 = vld [vmem:[%s13131_s16 + $0x8a8] ss:$24 sps:$4 sm:$0xff]  }
 0x24f   : > { %7909 = vmatpush1.bf16.msra.mxu1 %v11665_v4  ;;  %v11728_v4 = vld [vmem:[%s13131_s16 + $0x2b0] ss:$24 sps:$4 sm:$0xff]  }
 0x250   : > { %8319 = vmatpush1.bf16.msra.mxu0 %v11668_v6  ;;  %7910 = vmatprep.subr.bf16.mxu1 %v11673_v7  ;;  %v11733_v6 = vld [vmem:[%s13131_s16 + $0x8dc] ss:$24 sps:$4 sm:$0xff]  }
 0x251   : > { %8320 = vmatprep.subr.bf16.mxu0 %v11676_v12  ;;  %v11736_v7 = vld [vmem:[%s13131_s16 + $0x2e4] ss:$24 sps:$4 sm:$0xff]   ;;  %v11731_v12 = vld [vmem:[%s13131_s16 + $0x8d8] ss:$24 sps:$4 sm:$0xff]  }
 0x253   : > { %7911 = vmatpush1.bf16.msra.mxu1 %v11671_v13  ;;  %v11734_v13 = vld [vmem:[%s13131_s16 + $0x2e0] ss:$24 sps:$4 sm:$0xff]  }
 0x254   : > { %8321 = vmatpush1.bf16.msra.mxu0 %v11674_v15  ;;  %7912 = vmatprep.subr.bf16.mxu1 %v11679_v16  ;;  %v11739_v15 = vld [vmem:[%s13131_s16 + $0x90c] ss:$24 sps:$4 sm:$0xff]  }
 0x255   : > { %8322 = vmatprep.subr.bf16.mxu0 %v11682_v17  ;;  %v11742_v16 = vld [vmem:[%s13131_s16 + $0x314] ss:$24 sps:$4 sm:$0xff]   ;;  %v11737_v17 = vld [vmem:[%s13131_s16 + $0x908] ss:$24 sps:$4 sm:$0xff]  }
 0x257   : > { %7913 = vmatpush1.bf16.msra.mxu1 %v11677_v18  ;;  %v11740_v18 = vld [vmem:[%s13131_s16 + $0x310] ss:$24 sps:$4 sm:$0xff]  }
 0x258   : > { %8323 = vmatpush1.bf16.msra.mxu0 %v11680_v19  ;;  %7914 = vmatprep.subr.bf16.mxu1 %v11685_v20  ;;  %v11745_v19 = vld [vmem:[%s13131_s16 + $0x93c] ss:$24 sps:$4 sm:$0xff]  }
 0x259   : > { %8324 = vmatprep.subr.bf16.mxu0 %v11688_v21  ;;  %v11748_v20 = vld [vmem:[%s13131_s16 + $0x344] ss:$24 sps:$4 sm:$0xff]   ;;  %v11743_v21 = vld [vmem:[%s13131_s16 + $0x938] ss:$24 sps:$4 sm:$0xff]  }
 0x25b   : > { %7915 = vmatpush1.bf16.msra.mxu1 %v11683_v24  ;;  %v11746_v24 = vld [vmem:[%s13131_s16 + $0x340] ss:$24 sps:$4 sm:$0xff]  }
 0x25c   : > { %8325 = vmatpush1.bf16.msra.mxu0 %v11686_v25  ;;  %7916 = vmatprep.subr.bf16.mxu1 %v11691_v26  ;;  %v11751_v25 = vld [vmem:[%s13131_s16 + $0x96c] ss:$24 sps:$4 sm:$0xff]  }
 0x25d   : > { %8326 = vmatprep.subr.bf16.mxu0 %v11694_v27  ;;  %v11754_v26 = vld [vmem:[%s13131_s16 + $0x374] ss:$24 sps:$4 sm:$0xff]   ;;  %v11752_v27 = vld [vmem:[%s13131_s16 + $0x370] ss:$24 sps:$4 sm:$0xff]  }
 0x25f   : > { %7917 = vmatpush1.bf16.msra.mxu1 %v11689_v29  ;;  %v11757_v29 = vld [vmem:[%s13131_s16 + $0x99c] ss:$24 sps:$4 sm:$0xff]  }
 0x260   : > { %8327 = vmatpush1.bf16.msra.mxu0 %v11692_v30  ;;  %7918 = vmatprep.subr.bf16.mxu1 %v11697_v31  ;;  %v11760_v30 = vld [vmem:[%s13131_s16 + $0x3a4] ss:$24 sps:$4 sm:$0xff]   ;;  %v11755_v31 = vld [vmem:[%s13131_s16 + $0x998] ss:$24 sps:$4 sm:$0xff]  }
 0x261   : > { %8328 = vmatprep.subr.bf16.mxu0 %v11700_v35  ;;  %v11758_v35 = vld [vmem:[%s13131_s16 + $0x3a0] ss:$24 sps:$4 sm:$0xff]  }
 0x263   : > { %7919 = vmatpush1.bf16.msra.mxu1 %v11695_v37  ;;  %v11766_v37 = vld [vmem:[%s13131_s16 + $0x3d4] ss:$24 sps:$4 sm:$0xff]  }
 0x264   : > { %8329 = vmatpush1.bf16.msra.mxu0 %v11698_v38  ;;  %7920 = vmatprep.subr.bf16.mxu1 %v11703_v39  ;;  %v11761_v38 = vld [vmem:[%s13131_s16 + $0x9c8] ss:$24 sps:$4 sm:$0xff]  }
 0x265   : > { %8330 = vmatprep.subr.bf16.mxu0 %v11706_v44  ;;  %v11764_v39 = vld [vmem:[%s13131_s16 + $0x3d0] ss:$24 sps:$4 sm:$0xff]   ;;  %v11769_v44 = vld [vmem:[%s13131_s16 + $0x9fc] ss:$24 sps:$4 sm:$0xff]  }
 0x267   : > { %7921 = vmatpush1.bf16.msra.mxu1 %v11701_v45  ;;  %v11772_v45 = vld [vmem:[%s13131_s16 + $0x404] ss:$24 sps:$4 sm:$0xff]  }
 0x268   : > { %8331 = vmatpush1.bf16.msra.mxu0 %v11704_v47  ;;  %7922 = vmatprep.subr.bf16.mxu1 %v11709_v51  ;;  %v11767_v47 = vld [vmem:[%s13131_s16 + $0x9f8] ss:$24 sps:$4 sm:$0xff]  }
 0x269   : > { %8332 = vmatprep.subr.bf16.mxu0 %v11712_v52  ;;  %v11770_v51 = vld [vmem:[%s13131_s16 + $0x400] ss:$24 sps:$4 sm:$0xff]   ;;  %v11775_v52 = vld [vmem:[%s13131_s16 + $0xa2c] ss:$24 sps:$4 sm:$0xff]  }
 0x26b   : > { %7923 = vmatpush1.bf16.msra.mxu1 %v11707_v54  ;;  %v11778_v54 = vld [vmem:[%s13131_s16 + $0x434] ss:$24 sps:$4 sm:$0xff]  }
 0x26c   : > { %8333 = vmatpush1.bf16.msra.mxu0 %v11710_v55  ;;  %7924 = vmatprep.subr.bf16.mxu1 %v11715_v56  ;;  %v11773_v56 = vld [vmem:[%s13131_s16 + $0xa28] ss:$24 sps:$4 sm:$0xff]  }
 0x26d   : > { %8334 = vmatprep.subr.bf16.mxu0 %v11718_v57  ;;  %v11776_v57 = vld [vmem:[%s13131_s16 + $0x430] ss:$24 sps:$4 sm:$0xff]  }
 0x26f   : > { %7925 = vmatpush1.bf16.msra.mxu1 %v11713_v58 }
 0x270   : > { %8335 = vmatpush1.bf16.msra.mxu0 %v11716_v59  ;;  %7926 = vmatprep.subr.bf16.mxu1 %v11721_v60 }
 0x271   : > { %8336 = vmatprep.subr.bf16.mxu0 %v11724_v61  ;;  %v11781_v61 = vld [vmem:[%s13131_s16 + $0xa5c] ss:$24 sps:$4 sm:$0xff]  }
 0x273   : > { %7927 = vmatpush1.bf16.msra.mxu1 %v11719_v62  ;;  %v11784_v62 = vld [vmem:[%s13131_s16 + $0x464] ss:$24 sps:$4 sm:$0xff]  }
 0x274   : > { %8337 = vmatpush1.bf16.msra.mxu0 %v11722_v63  ;;  %7928 = vmatprep.subr.bf16.mxu1 %v11727_v0  ;;  %v11779_v63 = vld [vmem:[%s13131_s16 + $0xa58] ss:$24 sps:$4 sm:$0xff]  }
 0x275   : > { %8338 = vmatprep.subr.bf16.mxu0 %v11730_v48  ;;  %v11782_v0 = vld [vmem:[%s13131_s16 + $0x460] ss:$24 sps:$4 sm:$0xff]   ;;  %v11787_v48 = vld [vmem:[%s13131_s16 + $0xa8c] ss:$24 sps:$4 sm:$0xff]  }
 0x277   : > { %7929 = vmatpush1.bf16.msra.mxu1 %v11725_v1  ;;  %v11790_v1 = vld [vmem:[%s13131_s16 + $0x494] ss:$24 sps:$4 sm:$0xff]  }
 0x278   : > { %8339 = vmatpush1.bf16.msra.mxu0 %v11728_v4  ;;  %7930 = vmatprep.subr.bf16.mxu1 %v11733_v6  ;;  %v11785_v4 = vld [vmem:[%s13131_s16 + $0xa88] ss:$24 sps:$4 sm:$0xff]  }
 0x279   : > { %8340 = vmatprep.subr.bf16.mxu0 %v11736_v7  ;;  %v11788_v6 = vld [vmem:[%s13131_s16 + $0x490] ss:$24 sps:$4 sm:$0xff]   ;;  %v11793_v7 = vld [vmem:[%s13131_s16 + $0xabc] ss:$24 sps:$4 sm:$0xff]  }
 0x27b   : > { %7931 = vmatpush1.bf16.msra.mxu1 %v11731_v12  ;;  %v11796_v12 = vld [vmem:[%s13131_s16 + $0x4c4] ss:$24 sps:$4 sm:$0xff]  }
 0x27c   : > { %8341 = vmatpush1.bf16.msra.mxu0 %v11734_v13  ;;  %7941 = vmatprep.subr.bf16.mxu1 %v11739_v15  ;;  %v11791_v13 = vld [vmem:[%s13131_s16 + $0xab8] ss:$24 sps:$4 sm:$0xff]  }
 0x27d   : > { %8351 = vmatprep.subr.bf16.mxu0 %v11742_v16  ;;  %v11794_v15 = vld [vmem:[%s13131_s16 + $0x4c0] ss:$24 sps:$4 sm:$0xff]   ;;  %v11799_v16 = vld [vmem:[%s13131_s16 + $0xaec] ss:$24 sps:$4 sm:$0xff]  }
 0x27e   : > { %7933 = vmatmul.mubr.bf16.vlgmr.msra.gmra.mrb[4].mxu1 %v13407_v42 }
 0x27f   : > { %8343 = vmatmul.mubr.bf16.vlgmr.msra.gmra.mrb[4].mxu0 %v13231_v10  ;;  %7942 = vmatpush1.bf16.msra.mxu1 %v11737_v17  ;;  %v11749_v10 = vld [vmem:[%s13131_s16 + $0x968] ss:$24 sps:$4 sm:$0xff]   ;;  %v11802_v17 = vld [vmem:[%s13131_s16 + $0x4f4] ss:$24 sps:$4 sm:$0xff]  }
 0x280   : > { %8352 = vmatpush1.bf16.msra.mxu0 %v11740_v18  ;;  %7943 = vmatprep.subr.bf16.mxu1 %v11745_v19  ;;  %v11797_v18 = vld [vmem:[%s13131_s16 + $0xae8] ss:$24 sps:$4 sm:$0xff]  }
 0x281   : > { %8353 = vmatprep.subr.bf16.mxu0 %v11748_v20  ;;  %7973 = vmatprep.mubr.bf16.mxu1 %v13419_v49  ;;  %v11800_v19 = vld [vmem:[%s13131_s16 + $0x4f0] ss:$24 sps:$4 sm:$0xff]   ;;  %v11805_v20 = vld [vmem:[%s13131_s16 + $0xb1c] ss:$24 sps:$4 sm:$0xff]  }
 0x282   : > { %8383 = vmatprep.mubr.bf16.mxu0 %v13263_v36  ;;  %v11763_v36 = vld [vmem:[%s13131_s16 + $0x9cc] ss:$24 sps:$4 sm:$0xff]  }
 0x283   : > { %7944 = vmatpush1.bf16.msra.mxu1 %v11743_v21  ;;  %v11808_v21 = vld [vmem:[%s13131_s16 + $0x524] ss:$24 sps:$4 sm:$0xff]  }
 0x284   : > { %8354 = vmatpush1.bf16.msra.mxu0 %v11746_v24  ;;  %7945 = vmatprep.subr.bf16.mxu1 %v11751_v25  ;;  %v11803_v24 = vld [vmem:[%s13131_s16 + $0xb18] ss:$24 sps:$4 sm:$0xff]  }
 0x285   : > { %8355 = vmatprep.subr.bf16.mxu0 %v11754_v26  ;;  %v11806_v25 = vld [vmem:[%s13131_s16 + $0x520] ss:$24 sps:$4 sm:$0xff]   ;;  %v11811_v26 = vld [vmem:[%s13131_s16 + $0xb4c] ss:$24 sps:$4 sm:$0xff]  }
 0x287   : > { %7946 = vmatpush1.bf16.msra.mxu1 %v11749_v10  ;;  %v11814_v10 = vld [vmem:[%s13131_s16 + $0x554] ss:$24 sps:$4 sm:$0xff]  }
 0x288   : > { %8356 = vmatpush1.bf16.msra.mxu0 %v11752_v27  ;;  %7947 = vmatprep.subr.bf16.mxu1 %v11757_v29  ;;  %v11809_v27 = vld [vmem:[%s13131_s16 + $0xb48] ss:$24 sps:$4 sm:$0xff]  }
 0x289   : > { %8357 = vmatprep.subr.bf16.mxu0 %v11760_v30  ;;  %v11812_v29 = vld [vmem:[%s13131_s16 + $0x550] ss:$24 sps:$4 sm:$0xff]   ;;  %v11817_v30 = vld [vmem:[%s13131_s16 + $0xb7c] ss:$24 sps:$4 sm:$0xff]  }
 0x28b   : > { %7948 = vmatpush1.bf16.msra.mxu1 %v11755_v31  ;;  %v11820_v31 = vld [vmem:[%s13131_s16 + $0x584] ss:$24 sps:$4 sm:$0xff]  }
 0x28c   : > { %8358 = vmatpush1.bf16.msra.mxu0 %v11758_v35  ;;  %7949 = vmatprep.subr.bf16.mxu1 %v11763_v36  ;;  %v11815_v35 = vld [vmem:[%s13131_s16 + $0xb78] ss:$24 sps:$4 sm:$0xff]  }
 0x28d   : > { %8359 = vmatprep.subr.bf16.mxu0 %v11766_v37  ;;  %v11818_v36 = vld [vmem:[%s13131_s16 + $0x580] ss:$24 sps:$4 sm:$0xff]   ;;  %v11823_v37 = vld [vmem:[%s13131_s16 + $0xbac] ss:$24 sps:$4 sm:$0xff]  }
 0x28f   : > { %7950 = vmatpush1.bf16.msra.mxu1 %v11761_v38  ;;  %v11826_v38 = vld [vmem:[%s13131_s16 + $0x5b4] ss:$24 sps:$4 sm:$0xff]  }
 0x290   : > { %8360 = vmatpush1.bf16.msra.mxu0 %v11764_v39  ;;  %7951 = vmatprep.subr.bf16.mxu1 %v11769_v44  ;;  %v11821_v39 = vld [vmem:[%s13131_s16 + $0xba8] ss:$24 sps:$4 sm:$0xff]  }
 0x291   : > { %8361 = vmatprep.subr.bf16.mxu0 %v11772_v45  ;;  %v13837_v55 = vpop.f32.mrb[0].mxu1  ;;  %v11824_v44 = vld [vmem:[%s13131_s16 + $0x5b0] ss:$24 sps:$4 sm:$0xff]   ;;  %v11829_v45 = vld [vmem:[%s13131_s16 + $0xbdc] ss:$24 sps:$4 sm:$0xff]  }
 0x292   : > { %v13841_v58 = vpop.f32.mrb[1].mxu1 }
 0x293   : > { %v7528_v59 = vpop.f32.mrb[2].mxu1  ;;  %7952 = vmatpush1.bf16.msra.mxu1 %v11767_v47  ;;  %v11832_v47 = vld [vmem:[%s13131_s16 + $0x5e4] ss:$24 sps:$4 sm:$0xff]  }
 0x294   : > { %8362 = vmatpush1.bf16.msra.mxu0 %v11770_v51  ;;  %v7529_v60 = vpop.f32.mrb[3].mxu1  ;;  %7953 = vmatprep.subr.bf16.mxu1 %v11775_v52  ;;  %v11827_v51 = vld [vmem:[%s13131_s16 + $0xbd8] ss:$24 sps:$4 sm:$0xff]  }
 0x295   : > { %8363 = vmatprep.subr.bf16.mxu0 %v11778_v54  ;;  %v11830_v52 = vld [vmem:[%s13131_s16 + $0x5e0] ss:$24 sps:$4 sm:$0xff]   ;;  %v11835_v54 = vld [vmem:[%s13131_s16 + $0xc0c] ss:$24 sps:$4 sm:$0xff]   ;;  %v11836_v59 = vld [vmem:[%s13131_s16 + $0x610] ss:$24 sps:$4 sm:$0xff]  }
 0x296   : > { %v11841_v60 = vld [vmem:[%s13131_s16 + $0xc3c] ss:$24 sps:$4 sm:$0xff]  }
 0x297   : > { %7954 = vmatpush1.bf16.msra.mxu1 %v11773_v56  ;;  %v11838_v56 = vld [vmem:[%s13131_s16 + $0x614] ss:$24 sps:$4 sm:$0xff]  }
 0x298   : > { %8364 = vmatpush1.bf16.msra.mxu0 %v11776_v57  ;;  %7955 = vmatprep.subr.bf16.mxu1 %v11781_v61  ;;  %v11833_v57 = vld [vmem:[%s13131_s16 + $0xc08] ss:$24 sps:$4 sm:$0xff]   ;;  %v11844_v61 = vld [vmem:[%s13131_s16 + $0x644] ss:$24 sps:$4 sm:$0xff]  }
 0x299   : > { %8365 = vmatprep.subr.bf16.mxu0 %v11784_v62  ;;  %v11839_v62 = vld [vmem:[%s13131_s16 + $0xc38] ss:$24 sps:$4 sm:$0xff]  }
 0x29b   : > { %7956 = vmatpush1.bf16.msra.mxu1 %v11779_v63  ;;  %v11842_v63 = vld [vmem:[%s13131_s16 + $0x640] ss:$24 sps:$4 sm:$0xff]  }
 0x29c   : > { %8366 = vmatpush1.bf16.msra.mxu0 %v11782_v0  ;;  %7957 = vmatprep.subr.bf16.mxu1 %v11787_v48  ;;  %v11847_v0 = vld [vmem:[%s13131_s16 + $0xc6c] ss:$24 sps:$4 sm:$0xff]  }
 0x29d   : > { %8367 = vmatprep.subr.bf16.mxu0 %v11790_v1  ;;  %v11850_v48 = vld [vmem:[%s13131_s16 + $0x674] ss:$24 sps:$4 sm:$0xff]   ;;  %v11848_v1 = vld [vmem:[%s13131_s16 + $0x670] ss:$24 sps:$4 sm:$0xff]  }
 0x29f   : > { %7958 = vmatpush1.bf16.msra.mxu1 %v11785_v4  ;;  %v11853_v4 = vld [vmem:[%s13131_s16 + $0xc9c] ss:$24 sps:$4 sm:$0xff]  }
 0x2a0   : > { %8368 = vmatpush1.bf16.msra.mxu0 %v11788_v6  ;;  %7959 = vmatprep.subr.bf16.mxu1 %v11793_v7  ;;  %v11856_v6 = vld [vmem:[%s13131_s16 + $0x6a4] ss:$24 sps:$4 sm:$0xff]   ;;  %v11851_v7 = vld [vmem:[%s13131_s16 + $0xc98] ss:$24 sps:$4 sm:$0xff]  }
 0x2a1   : > { %8369 = vmatprep.subr.bf16.mxu0 %v11796_v12  ;;  %v11854_v12 = vld [vmem:[%s13131_s16 + $0x6a0] ss:$24 sps:$4 sm:$0xff]  }
 0x2a3   : > { %7960 = vmatpush1.bf16.msra.mxu1 %v11791_v13  ;;  %v11862_v13 = vld [vmem:[%s13131_s16 + $0x6d4] ss:$24 sps:$4 sm:$0xff]  }
 0x2a4   : > { %8370 = vmatpush1.bf16.msra.mxu0 %v11794_v15  ;;  %7961 = vmatprep.subr.bf16.mxu1 %v11799_v16  ;;  %v11857_v15 = vld [vmem:[%s13131_s16 + $0xcc8] ss:$24 sps:$4 sm:$0xff]  }
 0x2a5   : > { %8371 = vmatprep.subr.bf16.mxu0 %v11802_v17  ;;  %v11860_v16 = vld [vmem:[%s13131_s16 + $0x6d0] ss:$24 sps:$4 sm:$0xff]   ;;  %v11865_v17 = vld [vmem:[%s13131_s16 + $0xcfc] ss:$24 sps:$4 sm:$0xff]  }
 0x2a7   : > { %7962 = vmatpush1.bf16.msra.mxu1 %v11797_v18  ;;  %v11868_v18 = vld [vmem:[%s13131_s16 + $0x704] ss:$24 sps:$4 sm:$0xff]  }
 0x2a8   : > { %8372 = vmatpush1.bf16.msra.mxu0 %v11800_v19  ;;  %7963 = vmatprep.subr.bf16.mxu1 %v11805_v20  ;;  %v11863_v19 = vld [vmem:[%s13131_s16 + $0xcf8] ss:$24 sps:$4 sm:$0xff]  }
 0x2a9   : > { %8373 = vmatprep.subr.bf16.mxu0 %v11808_v21  ;;  %v11866_v20 = vld [vmem:[%s13131_s16 + $0x700] ss:$24 sps:$4 sm:$0xff]   ;;  %v11871_v21 = vld [vmem:[%s13131_s16 + $0xd2c] ss:$24 sps:$4 sm:$0xff]  }
 0x2ab   : > { %7964 = vmatpush1.bf16.msra.mxu1 %v11803_v24  ;;  %v11874_v24 = vld [vmem:[%s13131_s16 + $0x734] ss:$24 sps:$4 sm:$0xff]  }
 0x2ac   : > { %8374 = vmatpush1.bf16.msra.mxu0 %v11806_v25  ;;  %7965 = vmatprep.subr.bf16.mxu1 %v11811_v26  ;;  %v11869_v25 = vld [vmem:[%s13131_s16 + $0xd28] ss:$24 sps:$4 sm:$0xff]  }
 0x2ad   : > { %8375 = vmatprep.subr.bf16.mxu0 %v11814_v10  ;;  %v11872_v26 = vld [vmem:[%s13131_s16 + $0x730] ss:$24 sps:$4 sm:$0xff]   ;;  %v11877_v10 = vld [vmem:[%s13131_s16 + $0xd5c] ss:$24 sps:$4 sm:$0xff]  }
 0x2af   : > { %7966 = vmatpush1.bf16.msra.mxu1 %v11809_v27  ;;  %v11880_v27 = vld [vmem:[%s13131_s16 + $0x764] ss:$24 sps:$4 sm:$0xff]  }
 0x2b0   : > { %8376 = vmatpush1.bf16.msra.mxu0 %v11812_v29  ;;  %7967 = vmatprep.subr.bf16.mxu1 %v11817_v30  ;;  %v11875_v29 = vld [vmem:[%s13131_s16 + $0xd58] ss:$24 sps:$4 sm:$0xff]  }
 0x2b1   : > { %8377 = vmatprep.subr.bf16.mxu0 %v11820_v31  ;;  %v11878_v30 = vld [vmem:[%s13131_s16 + $0x760] ss:$24 sps:$4 sm:$0xff]   ;;  %v11883_v31 = vld [vmem:[%s13131_s16 + $0xd8c] ss:$24 sps:$4 sm:$0xff]  }
 0x2b3   : > { %7968 = vmatpush1.bf16.msra.mxu1 %v11815_v35  ;;  %v11886_v35 = vld [vmem:[%s13131_s16 + $0x794] ss:$24 sps:$4 sm:$0xff]  }
 0x2b4   : > { %8378 = vmatpush1.bf16.msra.mxu0 %v11818_v36  ;;  %7969 = vmatprep.subr.bf16.mxu1 %v11823_v37  ;;  %v11881_v36 = vld [vmem:[%s13131_s16 + $0xd88] ss:$24 sps:$4 sm:$0xff]  }
 0x2b5   : > { %8379 = vmatprep.subr.bf16.mxu0 %v11826_v38  ;;  %v11884_v37 = vld [vmem:[%s13131_s16 + $0x790] ss:$24 sps:$4 sm:$0xff]   ;;  %v11889_v38 = vld [vmem:[%s13131_s16 + $0xdbc] ss:$24 sps:$4 sm:$0xff]  }
 0x2b7   : > { %7970 = vmatpush1.bf16.msra.mxu1 %v11821_v39  ;;  %v11892_v39 = vld [vmem:[%s13131_s16 + $0x7c4] ss:$24 sps:$4 sm:$0xff]  }
 0x2b8   : > { %8380 = vmatpush1.bf16.msra.mxu0 %v11824_v44  ;;  %7971 = vmatprep.subr.bf16.mxu1 %v11829_v45  ;;  %v11887_v44 = vld [vmem:[%s13131_s16 + $0xdb8] ss:$24 sps:$4 sm:$0xff]  }
 0x2b9   : > { %8381 = vmatprep.subr.bf16.mxu0 %v11832_v47  ;;  %v11890_v45 = vld [vmem:[%s13131_s16 + $0x7c0] ss:$24 sps:$4 sm:$0xff]   ;;  %v11895_v47 = vld [vmem:[%s13131_s16 + $0xdec] ss:$24 sps:$4 sm:$0xff]  }
 0x2bb   : > { %7972 = vmatpush1.bf16.msra.mxu1 %v11827_v51  ;;  %v11898_v51 = vld [vmem:[%s13131_s16 + $0x7f4] ss:$24 sps:$4 sm:$0xff]  }
 0x2bc   : > { %8382 = vmatpush1.bf16.msra.mxu0 %v11830_v52  ;;  %7982 = vmatprep.subr.bf16.mxu1 %v11835_v54  ;;  %v11893_v52 = vld [vmem:[%s13131_s16 + $0xde8] ss:$24 sps:$4 sm:$0xff]  }
 0x2bd   : > { %8392 = vmatprep.subr.bf16.mxu0 %v11838_v56  ;;  %v11896_v54 = vld [vmem:[%s13131_s16 + $0x7f0] ss:$24 sps:$4 sm:$0xff]   ;;  %v11901_v56 = vld [vmem:[%s13131_s16 + $0xe1c] ss:$24 sps:$4 sm:$0xff]  }
 0x2be   : > { %7974 = vmatmul.mubr.bf16.vlgmr.msra.gmra.mrb[4].mxu1 %v13495_v2 }
 0x2bf   : > { %8384 = vmatmul.mubr.bf16.vlgmr.msra.gmra.mrb[4].mxu0 %v13319_v22  ;;  %7983 = vmatpush1.bf16.msra.mxu1 %v11833_v57  ;;  %v11845_v22 = vld [vmem:[%s13131_s16 + $0xc68] ss:$24 sps:$4 sm:$0xff]   ;;  %v11904_v57 = vld [vmem:[%s13131_s16 + $0x824] ss:$24 sps:$4 sm:$0xff]  }
 0x2c0   : > { %8393 = vmatpush1.bf16.msra.mxu0 %v11836_v59  ;;  %7984 = vmatprep.subr.bf16.mxu1 %v11841_v60  ;;  %v11899_v59 = vld [vmem:[%s13131_s16 + $0xe18] ss:$24 sps:$4 sm:$0xff]  }
 0x2c1   : > { %8394 = vmatprep.subr.bf16.mxu0 %v11844_v61  ;;  %8014 = vmatprep.mubr.bf16.mxu1 %v13507_v8  ;;  %v11902_v60 = vld [vmem:[%s13131_s16 + $0x820] ss:$24 sps:$4 sm:$0xff]   ;;  %v11907_v61 = vld [vmem:[%s13131_s16 + $0xe4c] ss:$24 sps:$4 sm:$0xff]  }
 0x2c2   : > { %8424 = vmatprep.mubr.bf16.mxu0 %v13331_v28  ;;  %v11859_v28 = vld [vmem:[%s13131_s16 + $0xccc] ss:$24 sps:$4 sm:$0xff]  }
 0x2c3   : > { %7985 = vmatpush1.bf16.msra.mxu1 %v11839_v62  ;;  %v11910_v62 = vld [vmem:[%s13131_s16 + $0x854] ss:$24 sps:$4 sm:$0xff]  }
 0x2c4   : > { %8395 = vmatpush1.bf16.msra.mxu0 %v11842_v63  ;;  %7986 = vmatprep.subr.bf16.mxu1 %v11847_v0  ;;  %v11905_v63 = vld [vmem:[%s13131_s16 + $0xe48] ss:$24 sps:$4 sm:$0xff]  }
 0x2c5   : > { %8396 = vmatprep.subr.bf16.mxu0 %v11850_v48  ;;  %v11908_v0 = vld [vmem:[%s13131_s16 + $0x850] ss:$24 sps:$4 sm:$0xff]   ;;  %v11913_v48 = vld [vmem:[%s13131_s16 + $0xe7c] ss:$24 sps:$4 sm:$0xff]  }
 0x2c7   : > { %7987 = vmatpush1.bf16.msra.mxu1 %v11845_v22  ;;  %v11916_v22 = vld [vmem:[%s13131_s16 + $0x884] ss:$24 sps:$4 sm:$0xff]  }
 0x2c8   : > { %8397 = vmatpush1.bf16.msra.mxu0 %v11848_v1  ;;  %7988 = vmatprep.subr.bf16.mxu1 %v11853_v4  ;;  %v11911_v1 = vld [vmem:[%s13131_s16 + $0xe78] ss:$24 sps:$4 sm:$0xff]  }
 0x2c9   : > { %8398 = vmatprep.subr.bf16.mxu0 %v11856_v6  ;;  %v11914_v4 = vld [vmem:[%s13131_s16 + $0x880] ss:$24 sps:$4 sm:$0xff]   ;;  %v11919_v6 = vld [vmem:[%s13131_s16 + $0xeac] ss:$24 sps:$4 sm:$0xff]  }
 0x2cb   : > { %7989 = vmatpush1.bf16.msra.mxu1 %v11851_v7  ;;  %v11922_v7 = vld [vmem:[%s13131_s16 + $0x8b4] ss:$24 sps:$4 sm:$0xff]  }
 0x2cc   : > { %8399 = vmatpush1.bf16.msra.mxu0 %v11854_v12  ;;  %7990 = vmatprep.subr.bf16.mxu1 %v11859_v28  ;;  %v11917_v12 = vld [vmem:[%s13131_s16 + $0xea8] ss:$24 sps:$4 sm:$0xff]  }
 0x2cd   : > { %8400 = vmatprep.subr.bf16.mxu0 %v11862_v13  ;;  %v11920_v28 = vld [vmem:[%s13131_s16 + $0x8b0] ss:$24 sps:$4 sm:$0xff]   ;;  %v11925_v13 = vld [vmem:[%s13131_s16 + $0xedc] ss:$24 sps:$4 sm:$0xff]  }
 0x2cf   : > { %7991 = vmatpush1.bf16.msra.mxu1 %v11857_v15  ;;  %v11928_v15 = vld [vmem:[%s13131_s16 + $0x8e4] ss:$24 sps:$4 sm:$0xff]  }
 0x2d0   : > { %8401 = vmatpush1.bf16.msra.mxu0 %v11860_v16  ;;  %7992 = vmatprep.subr.bf16.mxu1 %v11865_v17  ;;  %v11923_v16 = vld [vmem:[%s13131_s16 + $0xed8] ss:$24 sps:$4 sm:$0xff]  }
 0x2d1   : > { %8402 = vmatprep.subr.bf16.mxu0 %v11868_v18  ;;  %v11926_v17 = vld [vmem:[%s13131_s16 + $0x8e0] ss:$24 sps:$4 sm:$0xff]   ;;  %v11931_v18 = vld [vmem:[%s13131_s16 + $0xf0c] ss:$24 sps:$4 sm:$0xff]  }
 0x2d3   : > { %7993 = vmatpush1.bf16.msra.mxu1 %v11863_v19  ;;  %v11934_v19 = vld [vmem:[%s13131_s16 + $0x914] ss:$24 sps:$4 sm:$0xff]  }
 0x2d4   : > { %8403 = vmatpush1.bf16.msra.mxu0 %v11866_v20  ;;  %7994 = vmatprep.subr.bf16.mxu1 %v11871_v21  ;;  %v11929_v20 = vld [vmem:[%s13131_s16 + $0xf08] ss:$24 sps:$4 sm:$0xff]  }
 0x2d5   : > { %8404 = vmatprep.subr.bf16.mxu0 %v11874_v24  ;;  %v11932_v21 = vld [vmem:[%s13131_s16 + $0x910] ss:$24 sps:$4 sm:$0xff]   ;;  %v11937_v24 = vld [vmem:[%s13131_s16 + $0xf3c] ss:$24 sps:$4 sm:$0xff]  }
 0x2d7   : > { %7995 = vmatpush1.bf16.msra.mxu1 %v11869_v25  ;;  %v11940_v25 = vld [vmem:[%s13131_s16 + $0x944] ss:$24 sps:$4 sm:$0xff]  }
 0x2d8   : > { %8405 = vmatpush1.bf16.msra.mxu0 %v11872_v26  ;;  %7996 = vmatprep.subr.bf16.mxu1 %v11877_v10  ;;  %v11935_v26 = vld [vmem:[%s13131_s16 + $0xf38] ss:$24 sps:$4 sm:$0xff]  }
 0x2d9   : > { %8406 = vmatprep.subr.bf16.mxu0 %v11880_v27  ;;  %v11938_v10 = vld [vmem:[%s13131_s16 + $0x940] ss:$24 sps:$4 sm:$0xff]   ;;  %v1536_v27 = vlaneseq }
 0x2db   : > { %7997 = vmatpush1.bf16.msra.mxu1 %v11875_v29  ;;  %v11943_v29 = vld [vmem:[%s13131_s16 + $0xf6c] ss:$24 sps:$4 sm:$0xff]  }
 0x2dc   : > { %8407 = vmatpush1.bf16.msra.mxu0 %v11878_v30  ;;  %7998 = vmatprep.subr.bf16.mxu1 %v11883_v31  ;;  %v11946_v30 = vld [vmem:[%s13131_s16 + $0x974] ss:$24 sps:$4 sm:$0xff]   ;;  %v11944_v31 = vld [vmem:[%s13131_s16 + $0x970] ss:$24 sps:$4 sm:$0xff]  }
 0x2dd   : > { %8408 = vmatprep.subr.bf16.mxu0 %v11886_v35  ;;  %v13963_v35 = vshrl.u32 %v1536_v27, 7  ;;  %v11983_v27 = vld [vmem:[%s13131_s16 + $0x10b8] ss:$24 sps:$4 sm:$0xff]  }
 0x2df   : > { %7999 = vmatpush1.bf16.msra.mxu1 %v11881_v36  ;;  %v11949_v36 = vld [vmem:[%s13131_s16 + $0xf9c] ss:$24 sps:$4 sm:$0xff]  }
 0x2e0   : > { %8409 = vmatpush1.bf16.msra.mxu0 %v11884_v37  ;;  %8000 = vmatprep.subr.bf16.mxu1 %v11889_v38  ;;  %v11952_v37 = vld [vmem:[%s13131_s16 + $0x9a4] ss:$24 sps:$4 sm:$0xff]   ;;  %v11947_v38 = vld [vmem:[%s13131_s16 + $0xf98] ss:$24 sps:$4 sm:$0xff]  }
 0x2e1   : > { %8410 = vmatprep.subr.bf16.mxu0 %v11892_v39  ;;  %v1538_v39 = vsub.s32 0, %v13963_v35 }
 0x2e3   : > { %8001 = vmatpush1.bf16.msra.mxu1 %v11887_v44  ;;  %v11955_v44 = vld [vmem:[%s13131_s16 + $0xfcc] ss:$24 sps:$4 sm:$0xff]  }
 0x2e4   : > { %8411 = vmatpush1.bf16.msra.mxu0 %v11890_v45  ;;  %8002 = vmatprep.subr.bf16.mxu1 %v11895_v47  ;;  %v11958_v45 = vld [vmem:[%s13131_s16 + $0x9d4] ss:$24 sps:$4 sm:$0xff]   ;;  %v1534_v47 = vld [vmem:[%s13139_s25] sm:$0x3f] }
 0x2e5   : > { %8412 = vmatprep.subr.bf16.mxu0 %v11898_v51  ;;  %v1542_v51 = vsub.s32 1, %v13963_v35 }
 0x2e7   : > { %8003 = vmatpush1.bf16.msra.mxu1 %v11893_v52  ;;  %v11953_v52 = vld [vmem:[%s13131_s16 + $0xfc8] ss:$24 sps:$4 sm:$0xff]  }
 0x2e8   : > { %8413 = vmatpush1.bf16.msra.mxu0 %v11896_v54  ;;  %8004 = vmatprep.subr.bf16.mxu1 %v11901_v56  ;;  %v11956_v54 = vld [vmem:[%s13131_s16 + $0x9d0] ss:$24 sps:$4 sm:$0xff]   ;;  %v1539_v56 = vrot.slane %v1534_v47, %v1538_v39  ;;  %v11998_v39 = vld [vmem:[%s13131_s16 + $0xb20] ss:$24 sps:$4 sm:$0xff]  }
 0x2e9   : > { %8414 = vmatprep.subr.bf16.mxu0 %v11904_v57  ;;  %v11961_v57 = vld [vmem:[%s13131_s16 + $0xffc] ss:$24 sps:$4 sm:$0xff]  }
 0x2eb   : > { %8005 = vmatpush1.bf16.msra.mxu1 %v11899_v59  ;;  %v11964_v59 = vld [vmem:[%s13131_s16 + $0xa04] ss:$24 sps:$4 sm:$0xff]  }
 0x2ec   : > { %8415 = vmatpush1.bf16.msra.mxu0 %v11902_v60  ;;  %8006 = vmatprep.subr.bf16.mxu1 %v11907_v61  ;;  %v1543_v60 = vrot.slane %v1534_v47, %v1542_v51  ;;  %v11959_v61 = vld [vmem:[%s13131_s16 + $0xff8] ss:$24 sps:$4 sm:$0xff]   ;;  %v12001_v47 = vld [vmem:[%s13131_s16 + $0x1148] ss:$24 sps:$4 sm:$0xff]  }
 0x2ed   : > { %8416 = vmatprep.subr.bf16.mxu0 %v11910_v62  ;;  %v11962_v62 = vld [vmem:[%s13131_s16 + $0xa00] ss:$24 sps:$4 sm:$0xff]   ;;  %v12004_v51 = vld [vmem:[%s13131_s16 + $0xb50] ss:$24 sps:$4 sm:$0xff]  }
 0x2ef   : > { %8007 = vmatpush1.bf16.msra.mxu1 %v11905_v63  ;;  %v10765_v63 = vadd.f32 %v13837_v55, %v1539_v56  ;;  %v12007_v56 = vld [vmem:[%s13131_s16 + $0x1178] ss:$24 sps:$4 sm:$0xff]  }
 0x2f0   : > { %8417 = vmatpush1.bf16.msra.mxu0 %v11908_v0  ;;  %8008 = vmatprep.subr.bf16.mxu1 %v11913_v48  ;;  %v11967_v0 = vld [vmem:[%s13131_s16 + $0x102c] ss:$24 sps:$4 sm:$0xff]  }
 0x2f1   : > { %8418 = vmatprep.subr.bf16.mxu0 %v11916_v22  ;;  %v11970_v48 = vld [vmem:[%s13131_s16 + $0xa34] ss:$24 sps:$4 sm:$0xff]   ;;  %v10767_v22 = vadd.f32 %v13841_v58, %v1543_v60  ;;  %v11976_v58 = vld [vmem:[%s13131_s16 + $0xa64] ss:$24 sps:$4 sm:$0xff]  }
 0x2f2   : > { %v12018_v60 = vld [vmem:[%s13131_s16 + $0xbb4] ss:$24 sps:$4 sm:$0xff]  }
 0x2f3   : > { %8009 = vmatpush1.bf16.msra.mxu1 %v11911_v1 }
 0x2f4   : > { %8419 = vmatpush1.bf16.msra.mxu0 %v11914_v4  ;;  %8010 = vmatprep.subr.bf16.mxu1 %v11919_v6 }
 0x2f5   : > { %8420 = vmatprep.subr.bf16.mxu0 %v11922_v7 }
 0x2f7   : > { %8011 = vmatpush1.bf16.msra.mxu1 %v11917_v12 }
 0x2f8   : > { %8421 = vmatpush1.bf16.msra.mxu0 %v11920_v28  ;;  %8012 = vmatprep.subr.bf16.mxu1 %v11925_v13  ;;  %v11965_v28 = vld [vmem:[%s13131_s16 + $0x1028] ss:$24 sps:$4 sm:$0xff]  }
 0x2f9   : > { %8422 = vmatprep.subr.bf16.mxu0 %v11928_v15  ;;  %v11968_v13 = vld [vmem:[%s13131_s16 + $0xa30] ss:$24 sps:$4 sm:$0xff]  }
 0x2fb   : > { %8013 = vmatpush1.bf16.msra.mxu1 %v11923_v16  ;;  %v11973_v16 = vld [vmem:[%s13131_s16 + $0x105c] ss:$24 sps:$4 sm:$0xff]  }
 0x2fc   : > { %8423 = vmatpush1.bf16.msra.mxu0 %v11926_v17  ;;  %8023 = vmatprep.subr.bf16.mxu1 %v11931_v18  ;;  %v11971_v18 = vld [vmem:[%s13131_s16 + $0x1058] ss:$24 sps:$4 sm:$0xff]  }
 0x2fd   : > { %8433 = vmatprep.subr.bf16.mxu0 %v11934_v19  ;;  %v11974_v19 = vld [vmem:[%s13131_s16 + $0xa60] ss:$24 sps:$4 sm:$0xff]  }
 0x2fe   : > { %8015 = vmatmul.mubr.bf16.vlgmr.msra.gmra.mrb[4].mxu1 %v13582_v32 }
 0x2ff   : > { %8425 = vmatmul.mubr.bf16.vlgmr.msra.gmra.mrb[4].mxu0 %v13407_v42  ;;  %8024 = vmatpush1.bf16.msra.mxu1 %v11929_v20  ;;  %v11941_v42 = vld [vmem:[%s13131_s16 + $0xf68] ss:$24 sps:$4 sm:$0xff]   ;;  %v11979_v20 = vld [vmem:[%s13131_s16 + $0x108c] ss:$24 sps:$4 sm:$0xff]  }
 0x300   : > { %8434 = vmatpush1.bf16.msra.mxu0 %v11932_v21  ;;  %8025 = vmatprep.subr.bf16.mxu1 %v11937_v24  ;;  %v11982_v21 = vld [vmem:[%s13131_s16 + $0xa94] ss:$24 sps:$4 sm:$0xff]   ;;  %v11977_v24 = vld [vmem:[%s13131_s16 + $0x1088] ss:$24 sps:$4 sm:$0xff]  }
 0x301   : > { %8435 = vmatprep.subr.bf16.mxu0 %v11940_v25  ;;  %8055 = vmatprep.mubr.bf16.mxu1 %v13203_v53  ;;  %v11980_v25 = vld [vmem:[%s13131_s16 + $0xa90] ss:$24 sps:$4 sm:$0xff]  }
 0x302   : > { %8465 = vmatprep.mubr.bf16.mxu0 %v13419_v49  ;;  %v11950_v49 = vld [vmem:[%s13131_s16 + $0x9a0] ss:$24 sps:$4 sm:$0xff]  }
 0x303   : > { %8026 = vmatpush1.bf16.msra.mxu1 %v11935_v26  ;;  %v11985_v26 = vld [vmem:[%s13131_s16 + $0x10bc] ss:$24 sps:$4 sm:$0xff]  }
 0x304   : > { %8436 = vmatpush1.bf16.msra.mxu0 %v11938_v10  ;;  %8027 = vmatprep.subr.bf16.mxu1 %v11943_v29  ;;  %v11988_v10 = vld [vmem:[%s13131_s16 + $0xac4] ss:$24 sps:$4 sm:$0xff]   ;;  %v11986_v29 = vld [vmem:[%s13131_s16 + $0xac0] ss:$24 sps:$4 sm:$0xff]  }
 0x305   : > { %8437 = vmatprep.subr.bf16.mxu0 %v11946_v30  ;;  %v11991_v30 = vld [vmem:[%s13131_s16 + $0x10ec] ss:$24 sps:$4 sm:$0xff]  }
 0x307   : > { %8028 = vmatpush1.bf16.msra.mxu1 %v11941_v42  ;;  %v11994_v42 = vld [vmem:[%s13131_s16 + $0xaf4] ss:$24 sps:$4 sm:$0xff]  }
 0x308   : > { %8438 = vmatpush1.bf16.msra.mxu0 %v11944_v31  ;;  %8029 = vmatprep.subr.bf16.mxu1 %v11949_v36  ;;  %v11989_v31 = vld [vmem:[%s13131_s16 + $0x10e8] ss:$24 sps:$4 sm:$0xff]  }
 0x309   : > { %8439 = vmatprep.subr.bf16.mxu0 %v11952_v37  ;;  %v11992_v36 = vld [vmem:[%s13131_s16 + $0xaf0] ss:$24 sps:$4 sm:$0xff]   ;;  %v11997_v37 = vld [vmem:[%s13131_s16 + $0x111c] ss:$24 sps:$4 sm:$0xff]  }
 0x30b   : > { %8030 = vmatpush1.bf16.msra.mxu1 %v11947_v38  ;;  %v12000_v38 = vld [vmem:[%s13131_s16 + $0xb24] ss:$24 sps:$4 sm:$0xff]  }
 0x30c   : > { %8440 = vmatpush1.bf16.msra.mxu0 %v11950_v49  ;;  %8031 = vmatprep.subr.bf16.mxu1 %v11955_v44  ;;  %v11995_v49 = vld [vmem:[%s13131_s16 + $0x1118] ss:$24 sps:$4 sm:$0xff]   ;;  %v12003_v44 = vld [vmem:[%s13131_s16 + $0x114c] ss:$24 sps:$4 sm:$0xff]  }
 0x30d   : > { %8441 = vmatprep.subr.bf16.mxu0 %v11958_v45  ;;  %v12006_v45 = vld [vmem:[%s13131_s16 + $0xb54] ss:$24 sps:$4 sm:$0xff]  }
 0x30f   : > { %8032 = vmatpush1.bf16.msra.mxu1 %v11953_v52  ;;  %v12009_v52 = vld [vmem:[%s13131_s16 + $0x117c] ss:$24 sps:$4 sm:$0xff]  }
 0x310   : > { %8442 = vmatpush1.bf16.msra.mxu0 %v11956_v54  ;;  %8033 = vmatprep.subr.bf16.mxu1 %v11961_v57  ;;  %v12012_v54 = vld [vmem:[%s13131_s16 + $0xb84] ss:$24 sps:$4 sm:$0xff]   ;;  %v12010_v57 = vld [vmem:[%s13131_s16 + $0xb80] ss:$24 sps:$4 sm:$0xff]  }
 0x311   : > { %8443 = vmatprep.subr.bf16.mxu0 %v11964_v59  ;;  %v12015_v59 = vld [vmem:[%s13131_s16 + $0x11ac] ss:$24 sps:$4 sm:$0xff]  }
 0x312   : > { %v7811_v1 = vpop.f32.mrb[0].mxu0 }
 0x313   : > { %v10766_v4 = vadd.f32 %v10765_v63, %v7811_v1  ;;  %v7813_v6 = vpop.f32.mrb[1].mxu0  ;;  %8034 = vmatpush1.bf16.msra.mxu1 %v11959_v61  ;;  %v12013_v61 = vld [vmem:[%s13131_s16 + $0x11a8] ss:$24 sps:$4 sm:$0xff]   ;;  %v12021_v63 = vld [vmem:[%s13131_s16 + $0x11dc] ss:$24 sps:$4 sm:$0xff]  }
 0x314   : > { %v10768_v7 = vadd.f32 %v10767_v22, %v7813_v6  ;;  %v7815_v12 = vpop.f32.mrb[2].mxu0  ;;  %8444 = vmatpush1.bf16.msra.mxu0 %v11962_v62  ;;  %8035 = vmatprep.subr.bf16.mxu1 %v11967_v0  ;;  %v12016_v62 = vld [vmem:[%s13131_s16 + $0xbb0] ss:$24 sps:$4 sm:$0xff]   ;;  %v12024_v0 = vld [vmem:[%s13131_s16 + $0xbe4] ss:$24 sps:$4 sm:$0xff]  }
 0x315   : > { %v8802_v55 = vmax.f32 %v10766_v4, 0.0  ;;  %v7816_v15 = vpop.f32.mrb[3].mxu0  ;;  %8445 = vmatprep.subr.bf16.mxu0 %v11970_v48  ;;  %v12019_v48 = vld [vmem:[%s13131_s16 + $0x11d8] ss:$24 sps:$4 sm:$0xff]   ;;  %v12027_v1 = vld [vmem:[%s13131_s16 + $0x120c] ss:$24 sps:$4 sm:$0xff]  }
 0x316   : > { %v8803_v17 = vmax.f32 %v10768_v7, 0.0  ;;  %v12022_v22 = vld [vmem:[%s13131_s16 + $0xbe0] ss:$24 sps:$4 sm:$0xff]   ;;  %v12030_v4 = vld [vmem:[%s13131_s16 + $0xc14] ss:$24 sps:$4 sm:$0xff]  }
 0x317   : > { %8808 = vst [vmem:[%s13989_s7] sm:$0xff] %v8802_v55  ;;  %8036 = vmatpush1.bf16.msra.mxu1 %v11965_v28  ;;  %v12025_v6 = vld [vmem:[%s13131_s16 + $0x1208] ss:$24 sps:$4 sm:$0xff]   ;;  %v12033_v12 = vld [vmem:[%s13131_s16 + $0x123c] ss:$24 sps:$4 sm:$0xff]   ;;  %v12039_v15 = vld [vmem:[%s13131_s16 + $0x126c] ss:$24 sps:$4 sm:$0xff]  }
 0x318   : > { %8809 = vst [vmem:[%s13989_s7 + $0x8] sm:$0xff] %v8803_v17  ;;  %8446 = vmatpush1.bf16.msra.mxu0 %v11968_v13  ;;  %8037 = vmatprep.subr.bf16.mxu1 %v11973_v16  ;;  %v12028_v7 = vld [vmem:[%s13131_s16 + $0xc10] ss:$24 sps:$4 sm:$0xff]   ;;  %v12036_v28 = vld [vmem:[%s13131_s16 + $0xc44] ss:$24 sps:$4 sm:$0xff]  }
 0x319   : > { %8447 = vmatprep.subr.bf16.mxu0 %v11976_v58  ;;  %v12031_v13 = vld [vmem:[%s13131_s16 + $0x1238] ss:$24 sps:$4 sm:$0xff]   ;;  %v12042_v16 = vld [vmem:[%s13131_s16 + $0xc74] ss:$24 sps:$4 sm:$0xff]  }
 0x31a   : > { %v12034_v55 = vld [vmem:[%s13131_s16 + $0xc40] ss:$24 sps:$4 sm:$0xff]   ;;  %v12040_v58 = vld [vmem:[%s13131_s16 + $0xc70] ss:$24 sps:$4 sm:$0xff]   ;;  %v12045_v17 = vld [vmem:[%s13131_s16 + $0x129c] ss:$24 sps:$4 sm:$0xff]  }
 0x31b   : > { %8038 = vmatpush1.bf16.msra.mxu1 %v11971_v18  ;;  %v12048_v18 = vld [vmem:[%s13131_s16 + $0xca4] ss:$24 sps:$4 sm:$0xff]  }
 0x31c   : > { %8448 = vmatpush1.bf16.msra.mxu0 %v11974_v19  ;;  %8039 = vmatprep.subr.bf16.mxu1 %v11979_v20  ;;  %v12043_v19 = vld [vmem:[%s13131_s16 + $0x1298] ss:$24 sps:$4 sm:$0xff]  }
 0x31d   : > { %8449 = vmatprep.subr.bf16.mxu0 %v11982_v21  ;;  %v12046_v20 = vld [vmem:[%s13131_s16 + $0xca0] ss:$24 sps:$4 sm:$0xff]   ;;  %v12054_v21 = vld [vmem:[%s13131_s16 + $0xcd4] ss:$24 sps:$4 sm:$0xff]  }
 0x31f   : > { %8040 = vmatpush1.bf16.msra.mxu1 %v11977_v24  ;;  %v12049_v24 = vld [vmem:[%s13131_s16 + $0x12c8] ss:$24 sps:$4 sm:$0xff]  }
 0x320   : > { %8450 = vmatpush1.bf16.msra.mxu0 %v11980_v25  ;;  %8041 = vmatprep.subr.bf16.mxu1 %v11985_v26  ;;  %v12052_v25 = vld [vmem:[%s13131_s16 + $0xcd0] ss:$24 sps:$4 sm:$0xff]   ;;  %v12057_v26 = vld [vmem:[%s13131_s16 + $0x12fc] ss:$24 sps:$4 sm:$0xff]  }
 0x321   : > { %8451 = vmatprep.subr.bf16.mxu0 %v11988_v10  ;;  %v12060_v10 = vld [vmem:[%s13131_s16 + $0xd04] ss:$24 sps:$4 sm:$0xff]  }
 0x323   : > { %8042 = vmatpush1.bf16.msra.mxu1 %v11983_v27  ;;  %v12055_v27 = vld [vmem:[%s13131_s16 + $0x12f8] ss:$24 sps:$4 sm:$0xff]  }
 0x324   : > { %8452 = vmatpush1.bf16.msra.mxu0 %v11986_v29  ;;  %8043 = vmatprep.subr.bf16.mxu1 %v11991_v30  ;;  %v12058_v29 = vld [vmem:[%s13131_s16 + $0xd00] ss:$24 sps:$4 sm:$0xff]   ;;  %v12063_v30 = vld [vmem:[%s13131_s16 + $0x132c] ss:$24 sps:$4 sm:$0xff]  }
 0x325   : > { %8453 = vmatprep.subr.bf16.mxu0 %v11994_v42  ;;  %v12066_v42 = vld [vmem:[%s13131_s16 + $0xd34] ss:$24 sps:$4 sm:$0xff]  }
 0x327   : > { %8044 = vmatpush1.bf16.msra.mxu1 %v11989_v31  ;;  %v12061_v31 = vld [vmem:[%s13131_s16 + $0x1328] ss:$24 sps:$4 sm:$0xff]  }
 0x328   : > { %8454 = vmatpush1.bf16.msra.mxu0 %v11992_v36  ;;  %8045 = vmatprep.subr.bf16.mxu1 %v11997_v37  ;;  %v12064_v36 = vld [vmem:[%s13131_s16 + $0xd30] ss:$24 sps:$4 sm:$0xff]   ;;  %v12069_v37 = vld [vmem:[%s13131_s16 + $0x135c] ss:$24 sps:$4 sm:$0xff]  }
 0x329   : > { %8455 = vmatprep.subr.bf16.mxu0 %v12000_v38  ;;  %v12072_v38 = vld [vmem:[%s13131_s16 + $0xd64] ss:$24 sps:$4 sm:$0xff]  }
 0x32b   : > { %8046 = vmatpush1.bf16.msra.mxu1 %v11995_v49  ;;  %v12067_v49 = vld [vmem:[%s13131_s16 + $0x1358] ss:$24 sps:$4 sm:$0xff]  }
 0x32c   : > { %8456 = vmatpush1.bf16.msra.mxu0 %v11998_v39  ;;  %8047 = vmatprep.subr.bf16.mxu1 %v12003_v44  ;;  %v12070_v39 = vld [vmem:[%s13131_s16 + $0xd60] ss:$24 sps:$4 sm:$0xff]   ;;  %v12075_v44 = vld [vmem:[%s13131_s16 + $0x138c] ss:$24 sps:$4 sm:$0xff]  }
 0x32d   : > { %8457 = vmatprep.subr.bf16.mxu0 %v12006_v45  ;;  %v12078_v45 = vld [vmem:[%s13131_s16 + $0xd94] ss:$24 sps:$4 sm:$0xff]  }
 0x32f   : > { %8048 = vmatpush1.bf16.msra.mxu1 %v12001_v47  ;;  %v12073_v47 = vld [vmem:[%s13131_s16 + $0x1388] ss:$24 sps:$4 sm:$0xff]  }
 0x330   : > { %8458 = vmatpush1.bf16.msra.mxu0 %v12004_v51  ;;  %8049 = vmatprep.subr.bf16.mxu1 %v12009_v52  ;;  %v12076_v51 = vld [vmem:[%s13131_s16 + $0xd90] ss:$24 sps:$4 sm:$0xff]   ;;  %v12081_v52 = vld [vmem:[%s13131_s16 + $0x13bc] ss:$24 sps:$4 sm:$0xff]  }
 0x331   : > { %8459 = vmatprep.subr.bf16.mxu0 %v12012_v54  ;;  %v12084_v54 = vld [vmem:[%s13131_s16 + $0xdc4] ss:$24 sps:$4 sm:$0xff]  }
 0x333   : > { %8050 = vmatpush1.bf16.msra.mxu1 %v12007_v56  ;;  %v12079_v56 = vld [vmem:[%s13131_s16 + $0x13b8] ss:$24 sps:$4 sm:$0xff]  }
 0x334   : > { %8460 = vmatpush1.bf16.msra.mxu0 %v12010_v57  ;;  %8051 = vmatprep.subr.bf16.mxu1 %v12015_v59  ;;  %v12082_v57 = vld [vmem:[%s13131_s16 + $0xdc0] ss:$24 sps:$4 sm:$0xff]   ;;  %v12087_v59 = vld [vmem:[%s13131_s16 + $0x13ec] ss:$24 sps:$4 sm:$0xff]  }
 0x335   : > { %8461 = vmatprep.subr.bf16.mxu0 %v12018_v60  ;;  %v12090_v60 = vld [vmem:[%s13131_s16 + $0xdf4] ss:$24 sps:$4 sm:$0xff]  }
 0x337   : > { %8052 = vmatpush1.bf16.msra.mxu1 %v12013_v61  ;;  %v12085_v61 = vld [vmem:[%s13131_s16 + $0x13e8] ss:$24 sps:$4 sm:$0xff]  }
 0x338   : > { %8462 = vmatpush1.bf16.msra.mxu0 %v12016_v62  ;;  %8053 = vmatprep.subr.bf16.mxu1 %v12021_v63  ;;  %v12088_v62 = vld [vmem:[%s13131_s16 + $0xdf0] ss:$24 sps:$4 sm:$0xff]   ;;  %v12093_v63 = vld [vmem:[%s13131_s16 + $0x141c] ss:$24 sps:$4 sm:$0xff]  }
 0x339   : > { %8463 = vmatprep.subr.bf16.mxu0 %v12024_v0  ;;  %v12096_v0 = vld [vmem:[%s13131_s16 + $0xe24] ss:$24 sps:$4 sm:$0xff]  }
 0x33b   : > { %8054 = vmatpush1.bf16.msra.mxu1 %v12019_v48  ;;  %v12091_v48 = vld [vmem:[%s13131_s16 + $0x1418] ss:$24 sps:$4 sm:$0xff]  }
 0x33c   : > { %8464 = vmatpush1.bf16.msra.mxu0 %v12022_v22  ;;  %8064 = vmatprep.subr.bf16.mxu1 %v12027_v1  ;;  %v12094_v22 = vld [vmem:[%s13131_s16 + $0xe20] ss:$24 sps:$4 sm:$0xff]   ;;  %v12099_v1 = vld [vmem:[%s13131_s16 + $0x144c] ss:$24 sps:$4 sm:$0xff]  }
 0x33d   : > { %8474 = vmatprep.subr.bf16.mxu0 %v12030_v4  ;;  %v12102_v4 = vld [vmem:[%s13131_s16 + $0xe54] ss:$24 sps:$4 sm:$0xff]  }
 0x33e   : > { %8056 = vmatmul.mubr.bf16.vlgmr.msra.gmra.mrb[4].mxu1 %v13233_v11 }
 0x33f   : > { %8466 = vmatmul.mubr.bf16.vlgmr.msra.gmra.mrb[4].mxu0 %v13495_v2  ;;  %8065 = vmatpush1.bf16.msra.mxu1 %v12025_v6  ;;  %v12037_v2 = vld [vmem:[%s13131_s16 + $0x1268] ss:$24 sps:$4 sm:$0xff]  }
 0x340   : > { %8475 = vmatpush1.bf16.msra.mxu0 %v12028_v7  ;;  %8066 = vmatprep.subr.bf16.mxu1 %v12033_v12  ;;  %v12097_v6 = vld [vmem:[%s13131_s16 + $0x1448] ss:$24 sps:$4 sm:$0xff]   ;;  %v12105_v12 = vld [vmem:[%s13131_s16 + $0x147c] ss:$24 sps:$4 sm:$0xff]  }
 0x341   : > { %8476 = vmatprep.subr.bf16.mxu0 %v12036_v28  ;;  %8096 = vmatprep.mubr.bf16.mxu1 %v13271_v41  ;;  %v12100_v7 = vld [vmem:[%s13131_s16 + $0xe50] ss:$24 sps:$4 sm:$0xff]   ;;  %v12108_v28 = vld [vmem:[%s13131_s16 + $0xe84] ss:$24 sps:$4 sm:$0xff]  }
 0x342   : > { %8506 = vmatprep.mubr.bf16.mxu0 %v13507_v8  ;;  %v12051_v8 = vld [vmem:[%s13131_s16 + $0x12cc] ss:$24 sps:$4 sm:$0xff]  }
 0x343   : > { %8067 = vmatpush1.bf16.msra.mxu1 %v12031_v13  ;;  %v12103_v13 = vld [vmem:[%s13131_s16 + $0x1478] ss:$24 sps:$4 sm:$0xff]  }
 0x344   : > { %8477 = vmatpush1.bf16.msra.mxu0 %v12034_v55  ;;  %8068 = vmatprep.subr.bf16.mxu1 %v12039_v15  ;;  %v12106_v55 = vld [vmem:[%s13131_s16 + $0xe80] ss:$24 sps:$4 sm:$0xff]   ;;  %v12111_v15 = vld [vmem:[%s13131_s16 + $0x14ac] ss:$24 sps:$4 sm:$0xff]  }
 0x345   : > { %8478 = vmatprep.subr.bf16.mxu0 %v12042_v16  ;;  %v12114_v16 = vld [vmem:[%s13131_s16 + $0xeb4] ss:$24 sps:$4 sm:$0xff]  }
 0x347   : > { %8069 = vmatpush1.bf16.msra.mxu1 %v12037_v2  ;;  %v12109_v2 = vld [vmem:[%s13131_s16 + $0x14a8] ss:$24 sps:$4 sm:$0xff]  }
 0x348   : > { %8479 = vmatpush1.bf16.msra.mxu0 %v12040_v58  ;;  %8070 = vmatprep.subr.bf16.mxu1 %v12045_v17  ;;  %v12112_v58 = vld [vmem:[%s13131_s16 + $0xeb0] ss:$24 sps:$4 sm:$0xff]   ;;  %v12117_v17 = vld [vmem:[%s13131_s16 + $0x14dc] ss:$24 sps:$4 sm:$0xff]  }
 0x349   : > { %8480 = vmatprep.subr.bf16.mxu0 %v12048_v18  ;;  %v12120_v18 = vld [vmem:[%s13131_s16 + $0xee4] ss:$24 sps:$4 sm:$0xff]  }
 0x34b   : > { %8071 = vmatpush1.bf16.msra.mxu1 %v12043_v19  ;;  %v12115_v19 = vld [vmem:[%s13131_s16 + $0x14d8] ss:$24 sps:$4 sm:$0xff]  }
 0x34c   : > { %8481 = vmatpush1.bf16.msra.mxu0 %v12046_v20  ;;  %8072 = vmatprep.subr.bf16.mxu1 %v12051_v8  ;;  %v12118_v20 = vld [vmem:[%s13131_s16 + $0xee0] ss:$24 sps:$4 sm:$0xff]   ;;  %v12123_v8 = vld [vmem:[%s13131_s16 + $0x150c] ss:$24 sps:$4 sm:$0xff]  }
 0x34d   : > { %8482 = vmatprep.subr.bf16.mxu0 %v12054_v21  ;;  %v12126_v21 = vld [vmem:[%s13131_s16 + $0xf14] ss:$24 sps:$4 sm:$0xff]  }
 0x34f   : > { %8073 = vmatpush1.bf16.msra.mxu1 %v12049_v24  ;;  %v12121_v24 = vld [vmem:[%s13131_s16 + $0x1508] ss:$24 sps:$4 sm:$0xff]  }
 0x350   : > { %8483 = vmatpush1.bf16.msra.mxu0 %v12052_v25  ;;  %8074 = vmatprep.subr.bf16.mxu1 %v12057_v26  ;;  %v12124_v25 = vld [vmem:[%s13131_s16 + $0xf10] ss:$24 sps:$4 sm:$0xff]   ;;  %v12129_v26 = vld [vmem:[%s13131_s16 + $0x153c] ss:$24 sps:$4 sm:$0xff]  }
 0x351   : > { %8484 = vmatprep.subr.bf16.mxu0 %v12060_v10  ;;  %v12132_v10 = vld [vmem:[%s13131_s16 + $0xf44] ss:$24 sps:$4 sm:$0xff]  }
 0x353   : > { %8075 = vmatpush1.bf16.msra.mxu1 %v12055_v27  ;;  %v12127_v27 = vld [vmem:[%s13131_s16 + $0x1538] ss:$24 sps:$4 sm:$0xff]  }
 0x354   : > { %8485 = vmatpush1.bf16.msra.mxu0 %v12058_v29  ;;  %8076 = vmatprep.subr.bf16.mxu1 %v12063_v30  ;;  %v12130_v29 = vld [vmem:[%s13131_s16 + $0xf40] ss:$24 sps:$4 sm:$0xff]   ;;  %v12135_v30 = vld [vmem:[%s13131_s16 + $0x156c] ss:$24 sps:$4 sm:$0xff]  }
 0x355   : > { %8486 = vmatprep.subr.bf16.mxu0 %v12066_v42  ;;  %v12138_v42 = vld [vmem:[%s13131_s16 + $0xf74] ss:$24 sps:$4 sm:$0xff]  }
 0x357   : > { %8077 = vmatpush1.bf16.msra.mxu1 %v12061_v31  ;;  %v12136_v31 = vld [vmem:[%s13131_s16 + $0xf70] ss:$24 sps:$4 sm:$0xff]  }
 0x358   : > { %8487 = vmatpush1.bf16.msra.mxu0 %v12064_v36  ;;  %8078 = vmatprep.subr.bf16.mxu1 %v12069_v37  ;;  %v12141_v36 = vld [vmem:[%s13131_s16 + $0x159c] ss:$24 sps:$4 sm:$0xff]  }
 0x359   : > { %8488 = vmatprep.subr.bf16.mxu0 %v12072_v38  ;;  %v12144_v37 = vld [vmem:[%s13131_s16 + $0xfa4] ss:$24 sps:$4 sm:$0xff]   ;;  %v12139_v38 = vld [vmem:[%s13131_s16 + $0x1598] ss:$24 sps:$4 sm:$0xff]  }
 0x35b   : > { %8079 = vmatpush1.bf16.msra.mxu1 %v12067_v49  ;;  %v12142_v49 = vld [vmem:[%s13131_s16 + $0xfa0] ss:$24 sps:$4 sm:$0xff]  }
 0x35c   : > { %8489 = vmatpush1.bf16.msra.mxu0 %v12070_v39  ;;  %8080 = vmatprep.subr.bf16.mxu1 %v12075_v44  ;;  %v12150_v39 = vld [vmem:[%s13131_s16 + $0xfd4] ss:$24 sps:$4 sm:$0xff]   ;;  %v12145_v44 = vld [vmem:[%s13131_s16 + $0x15c8] ss:$24 sps:$4 sm:$0xff]  }
 0x35d   : > { %8490 = vmatprep.subr.bf16.mxu0 %v12078_v45  ;;  %v12148_v45 = vld [vmem:[%s13131_s16 + $0xfd0] ss:$24 sps:$4 sm:$0xff]  }
 0x35f   : > { %8081 = vmatpush1.bf16.msra.mxu1 %v12073_v47  ;;  %v12153_v47 = vld [vmem:[%s13131_s16 + $0x15fc] ss:$24 sps:$4 sm:$0xff]  }
 0x360   : > { %8491 = vmatpush1.bf16.msra.mxu0 %v12076_v51  ;;  %8082 = vmatprep.subr.bf16.mxu1 %v12081_v52  ;;  %v12156_v51 = vld [vmem:[%s13131_s16 + $0x1004] ss:$24 sps:$4 sm:$0xff]   ;;  %v12151_v52 = vld [vmem:[%s13131_s16 + $0x15f8] ss:$24 sps:$4 sm:$0xff]  }
 0x361   : > { %8492 = vmatprep.subr.bf16.mxu0 %v12084_v54  ;;  %v12154_v54 = vld [vmem:[%s13131_s16 + $0x1000] ss:$24 sps:$4 sm:$0xff]  }
 0x363   : > { %8083 = vmatpush1.bf16.msra.mxu1 %v12079_v56  ;;  %v12159_v56 = vld [vmem:[%s13131_s16 + $0x162c] ss:$24 sps:$4 sm:$0xff]  }
 0x364   : > { %8493 = vmatpush1.bf16.msra.mxu0 %v12082_v57  ;;  %8084 = vmatprep.subr.bf16.mxu1 %v12087_v59  ;;  %v12162_v57 = vld [vmem:[%s13131_s16 + $0x1034] ss:$24 sps:$4 sm:$0xff]   ;;  %v12157_v59 = vld [vmem:[%s13131_s16 + $0x1628] ss:$24 sps:$4 sm:$0xff]  }
 0x365   : > { %8494 = vmatprep.subr.bf16.mxu0 %v12090_v60  ;;  %v12160_v60 = vld [vmem:[%s13131_s16 + $0x1030] ss:$24 sps:$4 sm:$0xff]  }
 0x367   : > { %8085 = vmatpush1.bf16.msra.mxu1 %v12085_v61  ;;  %v12165_v61 = vld [vmem:[%s13131_s16 + $0x165c] ss:$24 sps:$4 sm:$0xff]  }
 0x368   : > { %8495 = vmatpush1.bf16.msra.mxu0 %v12088_v62  ;;  %8086 = vmatprep.subr.bf16.mxu1 %v12093_v63  ;;  %v12168_v62 = vld [vmem:[%s13131_s16 + $0x1064] ss:$24 sps:$4 sm:$0xff]   ;;  %v12163_v63 = vld [vmem:[%s13131_s16 + $0x1658] ss:$24 sps:$4 sm:$0xff]  }
 0x369   : > { %8496 = vmatprep.subr.bf16.mxu0 %v12096_v0  ;;  %v12166_v0 = vld [vmem:[%s13131_s16 + $0x1060] ss:$24 sps:$4 sm:$0xff]  }
 0x36b   : > { %8087 = vmatpush1.bf16.msra.mxu1 %v12091_v48  ;;  %v12171_v48 = vld [vmem:[%s13131_s16 + $0x168c] ss:$24 sps:$4 sm:$0xff]  }
 0x36c   : > { %8497 = vmatpush1.bf16.msra.mxu0 %v12094_v22  ;;  %8088 = vmatprep.subr.bf16.mxu1 %v12099_v1  ;;  %v12174_v22 = vld [vmem:[%s13131_s16 + $0x1094] ss:$24 sps:$4 sm:$0xff]   ;;  %v12169_v1 = vld [vmem:[%s13131_s16 + $0x1688] ss:$24 sps:$4 sm:$0xff]  }
 0x36d   : > { %8498 = vmatprep.subr.bf16.mxu0 %v12102_v4  ;;  %v12172_v4 = vld [vmem:[%s13131_s16 + $0x1090] ss:$24 sps:$4 sm:$0xff]  }
 0x36f   : > { %8089 = vmatpush1.bf16.msra.mxu1 %v12097_v6  ;;  %v12177_v6 = vld [vmem:[%s13131_s16 + $0x16bc] ss:$24 sps:$4 sm:$0xff]  }
 0x370   : > { %8499 = vmatpush1.bf16.msra.mxu0 %v12100_v7  ;;  %8090 = vmatprep.subr.bf16.mxu1 %v12105_v12  ;;  %v12180_v7 = vld [vmem:[%s13131_s16 + $0x10c4] ss:$24 sps:$4 sm:$0xff]   ;;  %v12175_v12 = vld [vmem:[%s13131_s16 + $0x16b8] ss:$24 sps:$4 sm:$0xff]  }
 0x371   : > { %8500 = vmatprep.subr.bf16.mxu0 %v12108_v28  ;;  %v12178_v28 = vld [vmem:[%s13131_s16 + $0x10c0] ss:$24 sps:$4 sm:$0xff]  }
 0x373   : > { %8091 = vmatpush1.bf16.msra.mxu1 %v12103_v13  ;;  %v12183_v13 = vld [vmem:[%s13131_s16 + $0x16ec] ss:$24 sps:$4 sm:$0xff]  }
 0x374   : > { %8501 = vmatpush1.bf16.msra.mxu0 %v12106_v55  ;;  %8092 = vmatprep.subr.bf16.mxu1 %v12111_v15  ;;  %v12186_v55 = vld [vmem:[%s13131_s16 + $0x10f4] ss:$24 sps:$4 sm:$0xff]   ;;  %v12181_v15 = vld [vmem:[%s13131_s16 + $0x16e8] ss:$24 sps:$4 sm:$0xff]  }
 0x375   : > { %8502 = vmatprep.subr.bf16.mxu0 %v12114_v16  ;;  %v12184_v16 = vld [vmem:[%s13131_s16 + $0x10f0] ss:$24 sps:$4 sm:$0xff]  }
 0x377   : > { %8093 = vmatpush1.bf16.msra.mxu1 %v12109_v2  ;;  %v12189_v2 = vld [vmem:[%s13131_s16 + $0x171c] ss:$24 sps:$4 sm:$0xff]  }
 0x378   : > { %8503 = vmatpush1.bf16.msra.mxu0 %v12112_v58  ;;  %8094 = vmatprep.subr.bf16.mxu1 %v12117_v17  ;;  %v12192_v58 = vld [vmem:[%s13131_s16 + $0x1124] ss:$24 sps:$4 sm:$0xff]   ;;  %v12187_v17 = vld [vmem:[%s13131_s16 + $0x1718] ss:$24 sps:$4 sm:$0xff]  }
 0x379   : > { %8504 = vmatprep.subr.bf16.mxu0 %v12120_v18  ;;  %v12190_v18 = vld [vmem:[%s13131_s16 + $0x1120] ss:$24 sps:$4 sm:$0xff]  }
 0x37b   : > { %8095 = vmatpush1.bf16.msra.mxu1 %v12115_v19  ;;  %v12195_v19 = vld [vmem:[%s13131_s16 + $0x174c] ss:$24 sps:$4 sm:$0xff]  }
 0x37c   : > { %8505 = vmatpush1.bf16.msra.mxu0 %v12118_v20  ;;  %8105 = vmatprep.subr.bf16.mxu1 %v12123_v8  ;;  %v12198_v20 = vld [vmem:[%s13131_s16 + $0x1154] ss:$24 sps:$4 sm:$0xff]   ;;  %v12193_v8 = vld [vmem:[%s13131_s16 + $0x1748] ss:$24 sps:$4 sm:$0xff]  }
 0x37d   : > { %8515 = vmatprep.subr.bf16.mxu0 %v12126_v21  ;;  %v12196_v21 = vld [vmem:[%s13131_s16 + $0x1150] ss:$24 sps:$4 sm:$0xff]  }
 0x37e   : > { %8097 = vmatmul.mubr.bf16.vlgmr.msra.gmra.mrb[4].mxu1 %v13321_v23 }
 0x37f   : > { %8507 = vmatmul.mubr.bf16.vlgmr.msra.gmra.mrb[4].mxu0 %v13582_v32  ;;  %8106 = vmatpush1.bf16.msra.mxu1 %v12121_v24  ;;  %v12133_v32 = vld [vmem:[%s13131_s16 + $0x1568] ss:$24 sps:$4 sm:$0xff]   ;;  %v12201_v24 = vld [vmem:[%s13131_s16 + $0x177c] ss:$24 sps:$4 sm:$0xff]  }
 0x380   : > { %8516 = vmatpush1.bf16.msra.mxu0 %v12124_v25  ;;  %8107 = vmatprep.subr.bf16.mxu1 %v12129_v26  ;;  %v12204_v25 = vld [vmem:[%s13131_s16 + $0x1184] ss:$24 sps:$4 sm:$0xff]   ;;  %v12199_v26 = vld [vmem:[%s13131_s16 + $0x1778] ss:$24 sps:$4 sm:$0xff]  }
 0x381   : > { %8517 = vmatprep.subr.bf16.mxu0 %v12132_v10  ;;  %8137 = vmatprep.mubr.bf16.mxu1 %v13339_v33  ;;  %v12202_v10 = vld [vmem:[%s13131_s16 + $0x1180] ss:$24 sps:$4 sm:$0xff]  }
 0x382   : > { %8547 = vmatprep.mubr.bf16.mxu0 %v13203_v53  ;;  %v12147_v53 = vld [vmem:[%s13131_s16 + $0x15cc] ss:$24 sps:$4 sm:$0xff]  }
 0x383   : > { %8108 = vmatpush1.bf16.msra.mxu1 %v12127_v27  ;;  %v12207_v27 = vld [vmem:[%s13131_s16 + $0x17ac] ss:$24 sps:$4 sm:$0xff]  }
 0x384   : > { %8518 = vmatpush1.bf16.msra.mxu0 %v12130_v29  ;;  %8109 = vmatprep.subr.bf16.mxu1 %v12135_v30  ;;  %v12210_v29 = vld [vmem:[%s13131_s16 + $0x11b4] ss:$24 sps:$4 sm:$0xff]   ;;  %v12205_v30 = vld [vmem:[%s13131_s16 + $0x17a8] ss:$24 sps:$4 sm:$0xff]  }
 0x385   : > { %8519 = vmatprep.subr.bf16.mxu0 %v12138_v42  ;;  %v12208_v42 = vld [vmem:[%s13131_s16 + $0x11b0] ss:$24 sps:$4 sm:$0xff]  }
 0x387   : > { %8110 = vmatpush1.bf16.msra.mxu1 %v12133_v32  ;;  %v12213_v32 = vld [vmem:[%s13131_s16 + $0x17dc] ss:$24 sps:$4 sm:$0xff]  }
 0x388   : > { %8520 = vmatpush1.bf16.msra.mxu0 %v12136_v31  ;;  %8111 = vmatprep.subr.bf16.mxu1 %v12141_v36  ;;  %v12216_v31 = vld [vmem:[%s13131_s16 + $0x11e4] ss:$24 sps:$4 sm:$0xff]   ;;  %v12211_v36 = vld [vmem:[%s13131_s16 + $0x17d8] ss:$24 sps:$4 sm:$0xff]  }
 0x389   : > { %8521 = vmatprep.subr.bf16.mxu0 %v12144_v37  ;;  %v12214_v37 = vld [vmem:[%s13131_s16 + $0x11e0] ss:$24 sps:$4 sm:$0xff]  }
 0x38b   : > { %8112 = vmatpush1.bf16.msra.mxu1 %v12139_v38  ;;  %v12219_v38 = vld [vmem:[%s13131_s16 + $0x180c] ss:$24 sps:$4 sm:$0xff]  }
 0x38c   : > { %8522 = vmatpush1.bf16.msra.mxu0 %v12142_v49  ;;  %8113 = vmatprep.subr.bf16.mxu1 %v12147_v53  ;;  %v12222_v49 = vld [vmem:[%s13131_s16 + $0x1214] ss:$24 sps:$4 sm:$0xff]   ;;  %v12217_v53 = vld [vmem:[%s13131_s16 + $0x1808] ss:$24 sps:$4 sm:$0xff]  }
 0x38d   : > { %8523 = vmatprep.subr.bf16.mxu0 %v12150_v39  ;;  %v12220_v39 = vld [vmem:[%s13131_s16 + $0x1210] ss:$24 sps:$4 sm:$0xff]  }
 0x38f   : > { %8114 = vmatpush1.bf16.msra.mxu1 %v12145_v44  ;;  %v12225_v44 = vld [vmem:[%s13131_s16 + $0x183c] ss:$24 sps:$4 sm:$0xff]  }
 0x390   : > { %8524 = vmatpush1.bf16.msra.mxu0 %v12148_v45  ;;  %8115 = vmatprep.subr.bf16.mxu1 %v12153_v47  ;;  %v12228_v45 = vld [vmem:[%s13131_s16 + $0x1244] ss:$24 sps:$4 sm:$0xff]   ;;  %v12223_v47 = vld [vmem:[%s13131_s16 + $0x1838] ss:$24 sps:$4 sm:$0xff]  }
 0x391   : > { %8525 = vmatprep.subr.bf16.mxu0 %v12156_v51  ;;  %v12226_v51 = vld [vmem:[%s13131_s16 + $0x1240] ss:$24 sps:$4 sm:$0xff]  }
 0x393   : > { %8116 = vmatpush1.bf16.msra.mxu1 %v12151_v52  ;;  %v12231_v52 = vld [vmem:[%s13131_s16 + $0x186c] ss:$24 sps:$4 sm:$0xff]  }
 0x394   : > { %8526 = vmatpush1.bf16.msra.mxu0 %v12154_v54  ;;  %8117 = vmatprep.subr.bf16.mxu1 %v12159_v56  ;;  %v12234_v54 = vld [vmem:[%s13131_s16 + $0x1274] ss:$24 sps:$4 sm:$0xff]   ;;  %v12232_v56 = vld [vmem:[%s13131_s16 + $0x1270] ss:$24 sps:$4 sm:$0xff]  }
 0x395   : > { %8527 = vmatprep.subr.bf16.mxu0 %v12162_v57  ;;  %v12237_v57 = vld [vmem:[%s13131_s16 + $0x189c] ss:$24 sps:$4 sm:$0xff]  }
 0x397   : > { %8118 = vmatpush1.bf16.msra.mxu1 %v12157_v59  ;;  %v12240_v59 = vld [vmem:[%s13131_s16 + $0x12a4] ss:$24 sps:$4 sm:$0xff]  }
 0x398   : > { %8528 = vmatpush1.bf16.msra.mxu0 %v12160_v60  ;;  %8119 = vmatprep.subr.bf16.mxu1 %v12165_v61  ;;  %v12235_v60 = vld [vmem:[%s13131_s16 + $0x1898] ss:$24 sps:$4 sm:$0xff]  }
 0x399   : > { %8529 = vmatprep.subr.bf16.mxu0 %v12168_v62  ;;  %v12238_v61 = vld [vmem:[%s13131_s16 + $0x12a0] ss:$24 sps:$4 sm:$0xff]   ;;  %v12246_v62 = vld [vmem:[%s13131_s16 + $0x12d4] ss:$24 sps:$4 sm:$0xff]  }
 0x39b   : > { %8120 = vmatpush1.bf16.msra.mxu1 %v12163_v63  ;;  %v12241_v63 = vld [vmem:[%s13131_s16 + $0x18c8] ss:$24 sps:$4 sm:$0xff]  }
 0x39c   : > { %8530 = vmatpush1.bf16.msra.mxu0 %v12166_v0  ;;  %8121 = vmatprep.subr.bf16.mxu1 %v12171_v48  ;;  %v12244_v0 = vld [vmem:[%s13131_s16 + $0x12d0] ss:$24 sps:$4 sm:$0xff]   ;;  %v12249_v48 = vld [vmem:[%s13131_s16 + $0x18fc] ss:$24 sps:$4 sm:$0xff]  }
 0x39d   : > { %8531 = vmatprep.subr.bf16.mxu0 %v12174_v22  ;;  %v12252_v22 = vld [vmem:[%s13131_s16 + $0x1304] ss:$24 sps:$4 sm:$0xff]  }
 0x39f   : > { %8122 = vmatpush1.bf16.msra.mxu1 %v12169_v1  ;;  %v12247_v1 = vld [vmem:[%s13131_s16 + $0x18f8] ss:$24 sps:$4 sm:$0xff]  }
 0x3a0   : > { %8532 = vmatpush1.bf16.msra.mxu0 %v12172_v4  ;;  %8123 = vmatprep.subr.bf16.mxu1 %v12177_v6  ;;  %v12250_v4 = vld [vmem:[%s13131_s16 + $0x1300] ss:$24 sps:$4 sm:$0xff]   ;;  %v12255_v6 = vld [vmem:[%s13131_s16 + $0x192c] ss:$24 sps:$4 sm:$0xff]  }
 0x3a1   : > { %8533 = vmatprep.subr.bf16.mxu0 %v12180_v7  ;;  %v12258_v7 = vld [vmem:[%s13131_s16 + $0x1334] ss:$24 sps:$4 sm:$0xff]  }
 0x3a3   : > { %8124 = vmatpush1.bf16.msra.mxu1 %v12175_v12  ;;  %v12253_v12 = vld [vmem:[%s13131_s16 + $0x1928] ss:$24 sps:$4 sm:$0xff]  }
 0x3a4   : > { %8534 = vmatpush1.bf16.msra.mxu0 %v12178_v28  ;;  %8125 = vmatprep.subr.bf16.mxu1 %v12183_v13  ;;  %v12256_v28 = vld [vmem:[%s13131_s16 + $0x1330] ss:$24 sps:$4 sm:$0xff]   ;;  %v12261_v13 = vld [vmem:[%s13131_s16 + $0x195c] ss:$24 sps:$4 sm:$0xff]  }
 0x3a5   : > { %8535 = vmatprep.subr.bf16.mxu0 %v12186_v55  ;;  %v12264_v55 = vld [vmem:[%s13131_s16 + $0x1364] ss:$24 sps:$4 sm:$0xff]  }
 0x3a7   : > { %8126 = vmatpush1.bf16.msra.mxu1 %v12181_v15  ;;  %v12259_v15 = vld [vmem:[%s13131_s16 + $0x1958] ss:$24 sps:$4 sm:$0xff]  }
 0x3a8   : > { %8536 = vmatpush1.bf16.msra.mxu0 %v12184_v16  ;;  %8127 = vmatprep.subr.bf16.mxu1 %v12189_v2  ;;  %v12262_v16 = vld [vmem:[%s13131_s16 + $0x1360] ss:$24 sps:$4 sm:$0xff]   ;;  %v12267_v2 = vld [vmem:[%s13131_s16 + $0x198c] ss:$24 sps:$4 sm:$0xff]  }
 0x3a9   : > { %8537 = vmatprep.subr.bf16.mxu0 %v12192_v58  ;;  %v12270_v58 = vld [vmem:[%s13131_s16 + $0x1394] ss:$24 sps:$4 sm:$0xff]  }
 0x3ab   : > { %8128 = vmatpush1.bf16.msra.mxu1 %v12187_v17  ;;  %v12265_v17 = vld [vmem:[%s13131_s16 + $0x1988] ss:$24 sps:$4 sm:$0xff]  }
 0x3ac   : > { %8538 = vmatpush1.bf16.msra.mxu0 %v12190_v18  ;;  %8129 = vmatprep.subr.bf16.mxu1 %v12195_v19  ;;  %v12268_v18 = vld [vmem:[%s13131_s16 + $0x1390] ss:$24 sps:$4 sm:$0xff]   ;;  %v12273_v19 = vld [vmem:[%s13131_s16 + $0x19bc] ss:$24 sps:$4 sm:$0xff]  }
 0x3ad   : > { %8539 = vmatprep.subr.bf16.mxu0 %v12198_v20  ;;  %v12276_v20 = vld [vmem:[%s13131_s16 + $0x13c4] ss:$24 sps:$4 sm:$0xff]  }
 0x3af   : > { %8130 = vmatpush1.bf16.msra.mxu1 %v12193_v8  ;;  %v12271_v8 = vld [vmem:[%s13131_s16 + $0x19b8] ss:$24 sps:$4 sm:$0xff]  }
 0x3b0   : > { %8540 = vmatpush1.bf16.msra.mxu0 %v12196_v21  ;;  %8131 = vmatprep.subr.bf16.mxu1 %v12201_v24  ;;  %v12274_v21 = vld [vmem:[%s13131_s16 + $0x13c0] ss:$24 sps:$4 sm:$0xff]   ;;  %v12279_v24 = vld [vmem:[%s13131_s16 + $0x19ec] ss:$24 sps:$4 sm:$0xff]  }
 0x3b1   : > { %8541 = vmatprep.subr.bf16.mxu0 %v12204_v25  ;;  %v12282_v25 = vld [vmem:[%s13131_s16 + $0x13f4] ss:$24 sps:$4 sm:$0xff]  }
 0x3b3   : > { %8132 = vmatpush1.bf16.msra.mxu1 %v12199_v26  ;;  %v12277_v26 = vld [vmem:[%s13131_s16 + $0x19e8] ss:$24 sps:$4 sm:$0xff]  }
 0x3b4   : > { %8542 = vmatpush1.bf16.msra.mxu0 %v12202_v10  ;;  %8133 = vmatprep.subr.bf16.mxu1 %v12207_v27  ;;  %v12280_v10 = vld [vmem:[%s13131_s16 + $0x13f0] ss:$24 sps:$4 sm:$0xff]   ;;  %v12285_v27 = vld [vmem:[%s13131_s16 + $0x1a1c] ss:$24 sps:$4 sm:$0xff]  }
 0x3b5   : > { %8543 = vmatprep.subr.bf16.mxu0 %v12210_v29  ;;  %v12288_v29 = vld [vmem:[%s13131_s16 + $0x1424] ss:$24 sps:$4 sm:$0xff]  }
 0x3b7   : > { %8134 = vmatpush1.bf16.msra.mxu1 %v12205_v30  ;;  %v12283_v30 = vld [vmem:[%s13131_s16 + $0x1a18] ss:$24 sps:$4 sm:$0xff]  }
 0x3b8   : > { %8544 = vmatpush1.bf16.msra.mxu0 %v12208_v42  ;;  %8135 = vmatprep.subr.bf16.mxu1 %v12213_v32  ;;  %v12286_v42 = vld [vmem:[%s13131_s16 + $0x1420] ss:$24 sps:$4 sm:$0xff]   ;;  %v12291_v32 = vld [vmem:[%s13131_s16 + $0x1a4c] ss:$24 sps:$4 sm:$0xff]  }
 0x3b9   : > { %8545 = vmatprep.subr.bf16.mxu0 %v12216_v31  ;;  %v12294_v31 = vld [vmem:[%s13131_s16 + $0x1454] ss:$24 sps:$4 sm:$0xff]  }
 0x3bb   : > { %8136 = vmatpush1.bf16.msra.mxu1 %v12211_v36  ;;  %v12289_v36 = vld [vmem:[%s13131_s16 + $0x1a48] ss:$24 sps:$4 sm:$0xff]  }
 0x3bc   : > { %8546 = vmatpush1.bf16.msra.mxu0 %v12214_v37  ;;  %8146 = vmatprep.subr.bf16.mxu1 %v12219_v38  ;;  %v12292_v37 = vld [vmem:[%s13131_s16 + $0x1450] ss:$24 sps:$4 sm:$0xff]   ;;  %v12297_v38 = vld [vmem:[%s13131_s16 + $0x1a7c] ss:$24 sps:$4 sm:$0xff]  }
 0x3bd   : > { %8556 = vmatprep.subr.bf16.mxu0 %v12222_v49  ;;  %v12300_v49 = vld [vmem:[%s13131_s16 + $0x1484] ss:$24 sps:$4 sm:$0xff]  }
 0x3be   : > { %8138 = vmatmul.mubr.bf16.vlgmr.msra.gmra.mrb[4].mxu1 %v13409_v43 }
 0x3bf   : > { %8548 = vmatmul.mubr.bf16.vlgmr.msra.gmra.mrb[4].mxu0 %v13233_v11  ;;  %8147 = vmatpush1.bf16.msra.mxu1 %v12217_v53  ;;  %v12229_v11 = vld [vmem:[%s13131_s16 + $0x1868] ss:$24 sps:$4 sm:$0xff]   ;;  %v12295_v53 = vld [vmem:[%s13131_s16 + $0x1a78] ss:$24 sps:$4 sm:$0xff]  }
 0x3c0   : > { %8557 = vmatpush1.bf16.msra.mxu0 %v12220_v39  ;;  %8148 = vmatprep.subr.bf16.mxu1 %v12225_v44  ;;  %v12298_v39 = vld [vmem:[%s13131_s16 + $0x1480] ss:$24 sps:$4 sm:$0xff]   ;;  %v12303_v44 = vld [vmem:[%s13131_s16 + $0x1aac] ss:$24 sps:$4 sm:$0xff]  }
 0x3c1   : > { %8558 = vmatprep.subr.bf16.mxu0 %v12228_v45  ;;  %8178 = vmatprep.mubr.bf16.mxu1 %v13421_v50  ;;  %v12306_v45 = vld [vmem:[%s13131_s16 + $0x14b4] ss:$24 sps:$4 sm:$0xff]  }
 0x3c2   : > { %8588 = vmatprep.mubr.bf16.mxu0 %v13271_v41  ;;  %v12243_v41 = vld [vmem:[%s13131_s16 + $0x18cc] ss:$24 sps:$4 sm:$0xff]  }
 0x3c3   : > { %8149 = vmatpush1.bf16.msra.mxu1 %v12223_v47  ;;  %v12301_v47 = vld [vmem:[%s13131_s16 + $0x1aa8] ss:$24 sps:$4 sm:$0xff]  }
 0x3c4   : > { %8559 = vmatpush1.bf16.msra.mxu0 %v12226_v51  ;;  %8150 = vmatprep.subr.bf16.mxu1 %v12231_v52  ;;  %v12304_v51 = vld [vmem:[%s13131_s16 + $0x14b0] ss:$24 sps:$4 sm:$0xff]   ;;  %v12309_v52 = vld [vmem:[%s13131_s16 + $0x1adc] ss:$24 sps:$4 sm:$0xff]  }
 0x3c5   : > { %8560 = vmatprep.subr.bf16.mxu0 %v12234_v54  ;;  %v12312_v54 = vld [vmem:[%s13131_s16 + $0x14e4] ss:$24 sps:$4 sm:$0xff]  }
 0x3c7   : > { %8151 = vmatpush1.bf16.msra.mxu1 %v12229_v11  ;;  %v12307_v11 = vld [vmem:[%s13131_s16 + $0x1ad8] ss:$24 sps:$4 sm:$0xff]  }
 0x3c8   : > { %8561 = vmatpush1.bf16.msra.mxu0 %v12232_v56  ;;  %8152 = vmatprep.subr.bf16.mxu1 %v12237_v57  ;;  %v12310_v56 = vld [vmem:[%s13131_s16 + $0x14e0] ss:$24 sps:$4 sm:$0xff]   ;;  %v12315_v57 = vld [vmem:[%s13131_s16 + $0x1b0c] ss:$24 sps:$4 sm:$0xff]  }
 0x3c9   : > { %8562 = vmatprep.subr.bf16.mxu0 %v12240_v59  ;;  %v12318_v59 = vld [vmem:[%s13131_s16 + $0x1514] ss:$24 sps:$4 sm:$0xff]  }
 0x3cb   : > { %8153 = vmatpush1.bf16.msra.mxu1 %v12235_v60  ;;  %v12313_v60 = vld [vmem:[%s13131_s16 + $0x1b08] ss:$24 sps:$4 sm:$0xff]  }
 0x3cc   : > { %8563 = vmatpush1.bf16.msra.mxu0 %v12238_v61  ;;  %8154 = vmatprep.subr.bf16.mxu1 %v12243_v41  ;;  %v12316_v61 = vld [vmem:[%s13131_s16 + $0x1510] ss:$24 sps:$4 sm:$0xff]   ;;  %v12321_v41 = vld [vmem:[%s13131_s16 + $0x1b3c] ss:$24 sps:$4 sm:$0xff]  }
 0x3cd   : > { %8564 = vmatprep.subr.bf16.mxu0 %v12246_v62  ;;  %v12324_v62 = vld [vmem:[%s13131_s16 + $0x1544] ss:$24 sps:$4 sm:$0xff]  }
 0x3cf   : > { %8155 = vmatpush1.bf16.msra.mxu1 %v12241_v63  ;;  %v12319_v63 = vld [vmem:[%s13131_s16 + $0x1b38] ss:$24 sps:$4 sm:$0xff]  }
 0x3d0   : > { %8565 = vmatpush1.bf16.msra.mxu0 %v12244_v0  ;;  %8156 = vmatprep.subr.bf16.mxu1 %v12249_v48  ;;  %v12322_v0 = vld [vmem:[%s13131_s16 + $0x1540] ss:$24 sps:$4 sm:$0xff]   ;;  %v12327_v48 = vld [vmem:[%s13131_s16 + $0x1b6c] ss:$24 sps:$4 sm:$0xff]  }
 0x3d1   : > { %8566 = vmatprep.subr.bf16.mxu0 %v12252_v22  ;;  %v12330_v22 = vld [vmem:[%s13131_s16 + $0x1574] ss:$24 sps:$4 sm:$0xff]  }
 0x3d3   : > { %8157 = vmatpush1.bf16.msra.mxu1 %v12247_v1  ;;  %v12328_v1 = vld [vmem:[%s13131_s16 + $0x1570] ss:$24 sps:$4 sm:$0xff]  }
 0x3d4   : > { %8567 = vmatpush1.bf16.msra.mxu0 %v12250_v4  ;;  %8158 = vmatprep.subr.bf16.mxu1 %v12255_v6  ;;  %v12333_v4 = vld [vmem:[%s13131_s16 + $0x1b9c] ss:$24 sps:$4 sm:$0xff]  }
 0x3d5   : > { %8568 = vmatprep.subr.bf16.mxu0 %v12258_v7  ;;  %v12336_v6 = vld [vmem:[%s13131_s16 + $0x15a4] ss:$24 sps:$4 sm:$0xff]   ;;  %v12331_v7 = vld [vmem:[%s13131_s16 + $0x1b98] ss:$24 sps:$4 sm:$0xff]  }
 0x3d7   : > { %8159 = vmatpush1.bf16.msra.mxu1 %v12253_v12  ;;  %v12334_v12 = vld [vmem:[%s13131_s16 + $0x15a0] ss:$24 sps:$4 sm:$0xff]  }
 0x3d8   : > { %8569 = vmatpush1.bf16.msra.mxu0 %v12256_v28  ;;  %8160 = vmatprep.subr.bf16.mxu1 %v12261_v13  ;;  %v12342_v28 = vld [vmem:[%s13131_s16 + $0x15d4] ss:$24 sps:$4 sm:$0xff]   ;;  %v12337_v13 = vld [vmem:[%s13131_s16 + $0x1bc8] ss:$24 sps:$4 sm:$0xff]  }
 0x3d9   : > { %8570 = vmatprep.subr.bf16.mxu0 %v12264_v55  ;;  %v12340_v55 = vld [vmem:[%s13131_s16 + $0x15d0] ss:$24 sps:$4 sm:$0xff]  }
 0x3db   : > { %8161 = vmatpush1.bf16.msra.mxu1 %v12259_v15  ;;  %v12345_v15 = vld [vmem:[%s13131_s16 + $0x1bfc] ss:$24 sps:$4 sm:$0xff]  }
 0x3dc   : > { %8571 = vmatpush1.bf16.msra.mxu0 %v12262_v16  ;;  %8162 = vmatprep.subr.bf16.mxu1 %v12267_v2  ;;  %v12348_v16 = vld [vmem:[%s13131_s16 + $0x1604] ss:$24 sps:$4 sm:$0xff]   ;;  %v12343_v2 = vld [vmem:[%s13131_s16 + $0x1bf8] ss:$24 sps:$4 sm:$0xff]  }
 0x3dd   : > { %8572 = vmatprep.subr.bf16.mxu0 %v12270_v58  ;;  %v12346_v58 = vld [vmem:[%s13131_s16 + $0x1600] ss:$24 sps:$4 sm:$0xff]  }
 0x3df   : > { %8163 = vmatpush1.bf16.msra.mxu1 %v12265_v17  ;;  %v12351_v17 = vld [vmem:[%s13131_s16 + $0x1c2c] ss:$24 sps:$4 sm:$0xff]  }
 0x3e0   : > { %8573 = vmatpush1.bf16.msra.mxu0 %v12268_v18  ;;  %8164 = vmatprep.subr.bf16.mxu1 %v12273_v19  ;;  %v12354_v18 = vld [vmem:[%s13131_s16 + $0x1634] ss:$24 sps:$4 sm:$0xff]   ;;  %v12349_v19 = vld [vmem:[%s13131_s16 + $0x1c28] ss:$24 sps:$4 sm:$0xff]  }
 0x3e1   : > { %8574 = vmatprep.subr.bf16.mxu0 %v12276_v20  ;;  %v12352_v20 = vld [vmem:[%s13131_s16 + $0x1630] ss:$24 sps:$4 sm:$0xff]  }
 0x3e3   : > { %8165 = vmatpush1.bf16.msra.mxu1 %v12271_v8  ;;  %v12357_v8 = vld [vmem:[%s13131_s16 + $0x1c5c] ss:$24 sps:$4 sm:$0xff]  }
 0x3e4   : > { %8575 = vmatpush1.bf16.msra.mxu0 %v12274_v21  ;;  %8166 = vmatprep.subr.bf16.mxu1 %v12279_v24  ;;  %v12360_v21 = vld [vmem:[%s13131_s16 + $0x1664] ss:$24 sps:$4 sm:$0xff]   ;;  %v12355_v24 = vld [vmem:[%s13131_s16 + $0x1c58] ss:$24 sps:$4 sm:$0xff]  }
 0x3e5   : > { %8576 = vmatprep.subr.bf16.mxu0 %v12282_v25  ;;  %v12358_v25 = vld [vmem:[%s13131_s16 + $0x1660] ss:$24 sps:$4 sm:$0xff]  }
 0x3e7   : > { %8167 = vmatpush1.bf16.msra.mxu1 %v12277_v26  ;;  %v12363_v26 = vld [vmem:[%s13131_s16 + $0x1c8c] ss:$24 sps:$4 sm:$0xff]  }
 0x3e8   : > { %8577 = vmatpush1.bf16.msra.mxu0 %v12280_v10  ;;  %8168 = vmatprep.subr.bf16.mxu1 %v12285_v27  ;;  %v12366_v10 = vld [vmem:[%s13131_s16 + $0x1694] ss:$24 sps:$4 sm:$0xff]   ;;  %v12361_v27 = vld [vmem:[%s13131_s16 + $0x1c88] ss:$24 sps:$4 sm:$0xff]  }
 0x3e9   : > { %8578 = vmatprep.subr.bf16.mxu0 %v12288_v29  ;;  %v12364_v29 = vld [vmem:[%s13131_s16 + $0x1690] ss:$24 sps:$4 sm:$0xff]  }
 0x3eb   : > { %8169 = vmatpush1.bf16.msra.mxu1 %v12283_v30  ;;  %v12369_v30 = vld [vmem:[%s13131_s16 + $0x1cbc] ss:$24 sps:$4 sm:$0xff]  }
 0x3ec   : > { %8579 = vmatpush1.bf16.msra.mxu0 %v12286_v42  ;;  %8170 = vmatprep.subr.bf16.mxu1 %v12291_v32  ;;  %v12372_v42 = vld [vmem:[%s13131_s16 + $0x16c4] ss:$24 sps:$4 sm:$0xff]   ;;  %v12367_v32 = vld [vmem:[%s13131_s16 + $0x1cb8] ss:$24 sps:$4 sm:$0xff]  }
 0x3ed   : > { %8580 = vmatprep.subr.bf16.mxu0 %v12294_v31  ;;  %v12370_v31 = vld [vmem:[%s13131_s16 + $0x16c0] ss:$24 sps:$4 sm:$0xff]  }
 0x3ef   : > { %8171 = vmatpush1.bf16.msra.mxu1 %v12289_v36  ;;  %v12375_v36 = vld [vmem:[%s13131_s16 + $0x1cec] ss:$24 sps:$4 sm:$0xff]  }
 0x3f0   : > { %8581 = vmatpush1.bf16.msra.mxu0 %v12292_v37  ;;  %8172 = vmatprep.subr.bf16.mxu1 %v12297_v38  ;;  %v12378_v37 = vld [vmem:[%s13131_s16 + $0x16f4] ss:$24 sps:$4 sm:$0xff]   ;;  %v12373_v38 = vld [vmem:[%s13131_s16 + $0x1ce8] ss:$24 sps:$4 sm:$0xff]  }
 0x3f1   : > { %8582 = vmatprep.subr.bf16.mxu0 %v12300_v49  ;;  %v12376_v49 = vld [vmem:[%s13131_s16 + $0x16f0] ss:$24 sps:$4 sm:$0xff]  }
 0x3f3   : > { %8173 = vmatpush1.bf16.msra.mxu1 %v12295_v53  ;;  %v12381_v53 = vld [vmem:[%s13131_s16 + $0x1d1c] ss:$24 sps:$4 sm:$0xff]  }
 0x3f4   : > { %8583 = vmatpush1.bf16.msra.mxu0 %v12298_v39  ;;  %8174 = vmatprep.subr.bf16.mxu1 %v12303_v44  ;;  %v12384_v39 = vld [vmem:[%s13131_s16 + $0x1724] ss:$24 sps:$4 sm:$0xff]   ;;  %v12379_v44 = vld [vmem:[%s13131_s16 + $0x1d18] ss:$24 sps:$4 sm:$0xff]  }
 0x3f5   : > { %8584 = vmatprep.subr.bf16.mxu0 %v12306_v45  ;;  %v12382_v45 = vld [vmem:[%s13131_s16 + $0x1720] ss:$24 sps:$4 sm:$0xff]  }
 0x3f7   : > { %8175 = vmatpush1.bf16.msra.mxu1 %v12301_v47  ;;  %v12387_v47 = vld [vmem:[%s13131_s16 + $0x1d4c] ss:$24 sps:$4 sm:$0xff]  }
 0x3f8   : > { %8585 = vmatpush1.bf16.msra.mxu0 %v12304_v51  ;;  %8176 = vmatprep.subr.bf16.mxu1 %v12309_v52  ;;  %v12390_v51 = vld [vmem:[%s13131_s16 + $0x1754] ss:$24 sps:$4 sm:$0xff]   ;;  %v12385_v52 = vld [vmem:[%s13131_s16 + $0x1d48] ss:$24 sps:$4 sm:$0xff]  }
 0x3f9   : > { %8586 = vmatprep.subr.bf16.mxu0 %v12312_v54  ;;  %v12388_v54 = vld [vmem:[%s13131_s16 + $0x1750] ss:$24 sps:$4 sm:$0xff]  }
 0x3fb   : > { %8177 = vmatpush1.bf16.msra.mxu1 %v12307_v11  ;;  %v12393_v11 = vld [vmem:[%s13131_s16 + $0x1d7c] ss:$24 sps:$4 sm:$0xff]  }
 0x3fc   : > { %8587 = vmatpush1.bf16.msra.mxu0 %v12310_v56  ;;  %8187 = vmatprep.subr.bf16.mxu1 %v12315_v57  ;;  %v12396_v56 = vld [vmem:[%s13131_s16 + $0x1784] ss:$24 sps:$4 sm:$0xff]   ;;  %v12391_v57 = vld [vmem:[%s13131_s16 + $0x1d78] ss:$24 sps:$4 sm:$0xff]  }
 0x3fd   : > { %8597 = vmatprep.subr.bf16.mxu0 %v12318_v59  ;;  %v12394_v59 = vld [vmem:[%s13131_s16 + $0x1780] ss:$24 sps:$4 sm:$0xff]  }
 0x3fe   : > { %8179 = vmatmul.mubr.bf16.vlgmr.msra.gmra.mrb[4].mxu1 %v13497_v3 }
 0x3ff   : > { %8589 = vmatmul.mubr.bf16.vlgmr.msra.gmra.mrb[4].mxu0 %v13321_v23  ;;  %8188 = vmatpush1.bf16.msra.mxu1 %v12313_v60  ;;  %v12325_v23 = vld [vmem:[%s13131_s16 + $0x1b68] ss:$24 sps:$4 sm:$0xff]   ;;  %v12399_v60 = vld [vmem:[%s13131_s16 + $0x1dac] ss:$24 sps:$4 sm:$0xff]  }
 0x400   : > { %8598 = vmatpush1.bf16.msra.mxu0 %v12316_v61  ;;  %8189 = vmatprep.subr.bf16.mxu1 %v12321_v41  ;;  %v12402_v61 = vld [vmem:[%s13131_s16 + $0x17b4] ss:$24 sps:$4 sm:$0xff]   ;;  %v12397_v41 = vld [vmem:[%s13131_s16 + $0x1da8] ss:$24 sps:$4 sm:$0xff]  }
 0x401   : > { %8599 = vmatprep.subr.bf16.mxu0 %v12324_v62  ;;  %8219 = vmatprep.mubr.bf16.mxu1 %v13509_v9  ;;  %v12400_v62 = vld [vmem:[%s13131_s16 + $0x17b0] ss:$24 sps:$4 sm:$0xff]  }
 0x402   : > { %8629 = vmatprep.mubr.bf16.mxu0 %v13339_v33  ;;  %v12339_v33 = vld [vmem:[%s13131_s16 + $0x1bcc] ss:$24 sps:$4 sm:$0xff]  }
 0x403   : > { %8190 = vmatpush1.bf16.msra.mxu1 %v12319_v63  ;;  %v12405_v63 = vld [vmem:[%s13131_s16 + $0x1ddc] ss:$24 sps:$4 sm:$0xff]  }
 0x404   : > { %8600 = vmatpush1.bf16.msra.mxu0 %v12322_v0  ;;  %8191 = vmatprep.subr.bf16.mxu1 %v12327_v48  ;;  %v12408_v0 = vld [vmem:[%s13131_s16 + $0x17e4] ss:$24 sps:$4 sm:$0xff]   ;;  %v12403_v48 = vld [vmem:[%s13131_s16 + $0x1dd8] ss:$24 sps:$4 sm:$0xff]  }
 0x405   : > { %8601 = vmatprep.subr.bf16.mxu0 %v12330_v22  ;;  %v12406_v22 = vld [vmem:[%s13131_s16 + $0x17e0] ss:$24 sps:$4 sm:$0xff]  }
 0x407   : > { %8192 = vmatpush1.bf16.msra.mxu1 %v12325_v23  ;;  %v12411_v23 = vld [vmem:[%s13131_s16 + $0x1e0c] ss:$24 sps:$4 sm:$0xff]  }
 0x408   : > { %8602 = vmatpush1.bf16.msra.mxu0 %v12328_v1  ;;  %8193 = vmatprep.subr.bf16.mxu1 %v12333_v4  ;;  %v12414_v1 = vld [vmem:[%s13131_s16 + $0x1814] ss:$24 sps:$4 sm:$0xff]   ;;  %v12409_v4 = vld [vmem:[%s13131_s16 + $0x1e08] ss:$24 sps:$4 sm:$0xff]  }
 0x409   : > { %8603 = vmatprep.subr.bf16.mxu0 %v12336_v6  ;;  %v12412_v6 = vld [vmem:[%s13131_s16 + $0x1810] ss:$24 sps:$4 sm:$0xff]  }
 0x40b   : > { %8194 = vmatpush1.bf16.msra.mxu1 %v12331_v7  ;;  %v12417_v7 = vld [vmem:[%s13131_s16 + $0x1e3c] ss:$24 sps:$4 sm:$0xff]  }
 0x40c   : > { %8604 = vmatpush1.bf16.msra.mxu0 %v12334_v12  ;;  %8195 = vmatprep.subr.bf16.mxu1 %v12339_v33  ;;  %v12420_v12 = vld [vmem:[%s13131_s16 + $0x1844] ss:$24 sps:$4 sm:$0xff]   ;;  %v12415_v33 = vld [vmem:[%s13131_s16 + $0x1e38] ss:$24 sps:$4 sm:$0xff]  }
 0x40d   : > { %8605 = vmatprep.subr.bf16.mxu0 %v12342_v28  ;;  %v12418_v28 = vld [vmem:[%s13131_s16 + $0x1840] ss:$24 sps:$4 sm:$0xff]  }
 0x40f   : > { %8196 = vmatpush1.bf16.msra.mxu1 %v12337_v13  ;;  %v12423_v13 = vld [vmem:[%s13131_s16 + $0x1e6c] ss:$24 sps:$4 sm:$0xff]  }
 0x410   : > { %8606 = vmatpush1.bf16.msra.mxu0 %v12340_v55  ;;  %8197 = vmatprep.subr.bf16.mxu1 %v12345_v15  ;;  %v12426_v55 = vld [vmem:[%s13131_s16 + $0x1874] ss:$24 sps:$4 sm:$0xff]   ;;  %v12421_v15 = vld [vmem:[%s13131_s16 + $0x1e68] ss:$24 sps:$4 sm:$0xff]  }
 0x411   : > { %8607 = vmatprep.subr.bf16.mxu0 %v12348_v16  ;;  %v12429_v16 = vld [vmem:[%s13131_s16 + $0x1e9c] ss:$24 sps:$4 sm:$0xff]  }
 0x413   : > { %8198 = vmatpush1.bf16.msra.mxu1 %v12343_v2  ;;  %v12432_v2 = vld [vmem:[%s13131_s16 + $0x18a4] ss:$24 sps:$4 sm:$0xff]  }
 0x414   : > { %8608 = vmatpush1.bf16.msra.mxu0 %v12346_v58  ;;  %8199 = vmatprep.subr.bf16.mxu1 %v12351_v17  ;;  %v12427_v58 = vld [vmem:[%s13131_s16 + $0x1e98] ss:$24 sps:$4 sm:$0xff]  }
 0x415   : > { %8609 = vmatprep.subr.bf16.mxu0 %v12354_v18  ;;  %v12430_v17 = vld [vmem:[%s13131_s16 + $0x18a0] ss:$24 sps:$4 sm:$0xff]   ;;  %v12438_v18 = vld [vmem:[%s13131_s16 + $0x18d4] ss:$24 sps:$4 sm:$0xff]  }
 0x417   : > { %8200 = vmatpush1.bf16.msra.mxu1 %v12349_v19  ;;  %v12433_v19 = vld [vmem:[%s13131_s16 + $0x1ec8] ss:$24 sps:$4 sm:$0xff]  }
 0x418   : > { %8610 = vmatpush1.bf16.msra.mxu0 %v12352_v20  ;;  %8201 = vmatprep.subr.bf16.mxu1 %v12357_v8  ;;  %v12436_v20 = vld [vmem:[%s13131_s16 + $0x18d0] ss:$24 sps:$4 sm:$0xff]   ;;  %v12441_v8 = vld [vmem:[%s13131_s16 + $0x1efc] ss:$24 sps:$4 sm:$0xff]  }
 0x419   : > { %8611 = vmatprep.subr.bf16.mxu0 %v12360_v21  ;;  %v12444_v21 = vld [vmem:[%s13131_s16 + $0x1904] ss:$24 sps:$4 sm:$0xff]  }
 0x41b   : > { %8202 = vmatpush1.bf16.msra.mxu1 %v12355_v24  ;;  %v12439_v24 = vld [vmem:[%s13131_s16 + $0x1ef8] ss:$24 sps:$4 sm:$0xff]  }
 0x41c   : > { %8612 = vmatpush1.bf16.msra.mxu0 %v12358_v25  ;;  %8203 = vmatprep.subr.bf16.mxu1 %v12363_v26  ;;  %v12442_v25 = vld [vmem:[%s13131_s16 + $0x1900] ss:$24 sps:$4 sm:$0xff]   ;;  %v12447_v26 = vld [vmem:[%s13131_s16 + $0x1f2c] ss:$24 sps:$4 sm:$0xff]  }
 0x41d   : > { %8613 = vmatprep.subr.bf16.mxu0 %v12366_v10  ;;  %v12450_v10 = vld [vmem:[%s13131_s16 + $0x1934] ss:$24 sps:$4 sm:$0xff]  }
 0x41f   : > { %8204 = vmatpush1.bf16.msra.mxu1 %v12361_v27  ;;  %v12445_v27 = vld [vmem:[%s13131_s16 + $0x1f28] ss:$24 sps:$4 sm:$0xff]  }
 0x420   : > { %8614 = vmatpush1.bf16.msra.mxu0 %v12364_v29  ;;  %8205 = vmatprep.subr.bf16.mxu1 %v12369_v30  ;;  %v12448_v29 = vld [vmem:[%s13131_s16 + $0x1930] ss:$24 sps:$4 sm:$0xff]   ;;  %v12453_v30 = vld [vmem:[%s13131_s16 + $0x1f5c] ss:$24 sps:$4 sm:$0xff]  }
 0x421   : > { %8615 = vmatprep.subr.bf16.mxu0 %v12372_v42  ;;  %v12456_v42 = vld [vmem:[%s13131_s16 + $0x1964] ss:$24 sps:$4 sm:$0xff]  }
 0x423   : > { %8206 = vmatpush1.bf16.msra.mxu1 %v12367_v32  ;;  %v12451_v32 = vld [vmem:[%s13131_s16 + $0x1f58] ss:$24 sps:$4 sm:$0xff]  }
 0x424   : > { %8616 = vmatpush1.bf16.msra.mxu0 %v12370_v31  ;;  %8207 = vmatprep.subr.bf16.mxu1 %v12375_v36  ;;  %v12454_v31 = vld [vmem:[%s13131_s16 + $0x1960] ss:$24 sps:$4 sm:$0xff]   ;;  %v12459_v36 = vld [vmem:[%s13131_s16 + $0x1f8c] ss:$24 sps:$4 sm:$0xff]  }
 0x425   : > { %8617 = vmatprep.subr.bf16.mxu0 %v12378_v37  ;;  %v12462_v37 = vld [vmem:[%s13131_s16 + $0x1994] ss:$24 sps:$4 sm:$0xff]  }
 0x427   : > { %8208 = vmatpush1.bf16.msra.mxu1 %v12373_v38  ;;  %v12457_v38 = vld [vmem:[%s13131_s16 + $0x1f88] ss:$24 sps:$4 sm:$0xff]  }
 0x428   : > { %8618 = vmatpush1.bf16.msra.mxu0 %v12376_v49  ;;  %8209 = vmatprep.subr.bf16.mxu1 %v12381_v53  ;;  %v12460_v49 = vld [vmem:[%s13131_s16 + $0x1990] ss:$24 sps:$4 sm:$0xff]   ;;  %v12465_v53 = vld [vmem:[%s13131_s16 + $0x1fbc] ss:$24 sps:$4 sm:$0xff]  }
 0x429   : > { %8619 = vmatprep.subr.bf16.mxu0 %v12384_v39  ;;  %v12468_v39 = vld [vmem:[%s13131_s16 + $0x19c4] ss:$24 sps:$4 sm:$0xff]  }
 0x42b   : > { %8210 = vmatpush1.bf16.msra.mxu1 %v12379_v44  ;;  %v12463_v44 = vld [vmem:[%s13131_s16 + $0x1fb8] ss:$24 sps:$4 sm:$0xff]  }
 0x42c   : > { %8620 = vmatpush1.bf16.msra.mxu0 %v12382_v45  ;;  %8211 = vmatprep.subr.bf16.mxu1 %v12387_v47  ;;  %v12466_v45 = vld [vmem:[%s13131_s16 + $0x19c0] ss:$24 sps:$4 sm:$0xff]   ;;  %v12471_v47 = vld [vmem:[%s13131_s16 + $0x1fec] ss:$24 sps:$4 sm:$0xff]  }
 0x42d   : > { %8621 = vmatprep.subr.bf16.mxu0 %v12390_v51  ;;  %v12474_v51 = vld [vmem:[%s13131_s16 + $0x19f4] ss:$24 sps:$4 sm:$0xff]  }
 0x42f   : > { %8212 = vmatpush1.bf16.msra.mxu1 %v12385_v52  ;;  %v12469_v52 = vld [vmem:[%s13131_s16 + $0x1fe8] ss:$24 sps:$4 sm:$0xff]  }
 0x430   : > { %8622 = vmatpush1.bf16.msra.mxu0 %v12388_v54  ;;  %8213 = vmatprep.subr.bf16.mxu1 %v12393_v11  ;;  %v12472_v54 = vld [vmem:[%s13131_s16 + $0x19f0] ss:$24 sps:$4 sm:$0xff]   ;;  %v12477_v11 = vld [vmem:[%s13131_s16 + $0x201c] ss:$24 sps:$4 sm:$0xff]  }
 0x431   : > { %8623 = vmatprep.subr.bf16.mxu0 %v12396_v56  ;;  %v12480_v56 = vld [vmem:[%s13131_s16 + $0x1a24] ss:$24 sps:$4 sm:$0xff]  }
 0x433   : > { %8214 = vmatpush1.bf16.msra.mxu1 %v12391_v57  ;;  %v12475_v57 = vld [vmem:[%s13131_s16 + $0x2018] ss:$24 sps:$4 sm:$0xff]  }
 0x434   : > { %8624 = vmatpush1.bf16.msra.mxu0 %v12394_v59  ;;  %8215 = vmatprep.subr.bf16.mxu1 %v12399_v60  ;;  %v12478_v59 = vld [vmem:[%s13131_s16 + $0x1a20] ss:$24 sps:$4 sm:$0xff]   ;;  %v12483_v60 = vld [vmem:[%s13131_s16 + $0x204c] ss:$24 sps:$4 sm:$0xff]  }
 0x435   : > { %8625 = vmatprep.subr.bf16.mxu0 %v12402_v61  ;;  %v12486_v61 = vld [vmem:[%s13131_s16 + $0x1a54] ss:$24 sps:$4 sm:$0xff]  }
 0x437   : > { %8216 = vmatpush1.bf16.msra.mxu1 %v12397_v41  ;;  %v12481_v41 = vld [vmem:[%s13131_s16 + $0x2048] ss:$24 sps:$4 sm:$0xff]  }
 0x438   : > { %8626 = vmatpush1.bf16.msra.mxu0 %v12400_v62  ;;  %8217 = vmatprep.subr.bf16.mxu1 %v12405_v63  ;;  %v12484_v62 = vld [vmem:[%s13131_s16 + $0x1a50] ss:$24 sps:$4 sm:$0xff]   ;;  %v12489_v63 = vld [vmem:[%s13131_s16 + $0x207c] ss:$24 sps:$4 sm:$0xff]  }
 0x439   : > { %8627 = vmatprep.subr.bf16.mxu0 %v12408_v0  ;;  %v12492_v0 = vld [vmem:[%s13131_s16 + $0x1a84] ss:$24 sps:$4 sm:$0xff]  }
 0x43b   : > { %8218 = vmatpush1.bf16.msra.mxu1 %v12403_v48  ;;  %v12487_v48 = vld [vmem:[%s13131_s16 + $0x2078] ss:$24 sps:$4 sm:$0xff]  }
 0x43c   : > { %8628 = vmatpush1.bf16.msra.mxu0 %v12406_v22  ;;  %8228 = vmatprep.subr.bf16.mxu1 %v12411_v23  ;;  %v12490_v22 = vld [vmem:[%s13131_s16 + $0x1a80] ss:$24 sps:$4 sm:$0xff]   ;;  %v12495_v23 = vld [vmem:[%s13131_s16 + $0x20ac] ss:$24 sps:$4 sm:$0xff]  }
 0x43d   : > { %8638 = vmatprep.subr.bf16.mxu0 %v12414_v1  ;;  %v12498_v1 = vld [vmem:[%s13131_s16 + $0x1ab4] ss:$24 sps:$4 sm:$0xff]  }
 0x43e   : > { %8220 = vmatmul.mubr.bf16.vlgmr.msra.gmra.mrb[4].mxu1 %v13584_v34 }
 0x43f   : > { %8630 = vmatmul.mubr.bf16.vlgmr.msra.gmra.mrb[4].mxu0 %v13409_v43  ;;  %8229 = vmatpush1.bf16.msra.mxu1 %v12409_v4  ;;  %v12424_v43 = vld [vmem:[%s13131_s16 + $0x1870] ss:$24 sps:$4 sm:$0xff]  }
 0x440   : > { %8639 = vmatpush1.bf16.msra.mxu0 %v12412_v6  ;;  %8230 = vmatprep.subr.bf16.mxu1 %v12417_v7  ;;  %v12493_v4 = vld [vmem:[%s13131_s16 + $0x20a8] ss:$24 sps:$4 sm:$0xff]   ;;  %v12501_v7 = vld [vmem:[%s13131_s16 + $0x20dc] ss:$24 sps:$4 sm:$0xff]  }
 0x441   : > { %8640 = vmatprep.subr.bf16.mxu0 %v12420_v12  ;;  %8260 = vmatprep.mubr.bf16.mxu1 %v13592_v40  ;;  %v12496_v6 = vld [vmem:[%s13131_s16 + $0x1ab0] ss:$24 sps:$4 sm:$0xff]   ;;  %v12504_v12 = vld [vmem:[%s13131_s16 + $0x1ae4] ss:$24 sps:$4 sm:$0xff]  }
 0x442   : > { %8670 = vmatprep.mubr.bf16.mxu0 %v13421_v50  ;;  %v12435_v50 = vld [vmem:[%s13131_s16 + $0x1ecc] ss:$24 sps:$4 sm:$0xff]  }
 0x443   : > { %8231 = vmatpush1.bf16.msra.mxu1 %v12415_v33  ;;  %v12499_v33 = vld [vmem:[%s13131_s16 + $0x20d8] ss:$24 sps:$4 sm:$0xff]  }
 0x444   : > { %8641 = vmatpush1.bf16.msra.mxu0 %v12418_v28  ;;  %8232 = vmatprep.subr.bf16.mxu1 %v12423_v13  ;;  %v12502_v28 = vld [vmem:[%s13131_s16 + $0x1ae0] ss:$24 sps:$4 sm:$0xff]   ;;  %v12507_v13 = vld [vmem:[%s13131_s16 + $0x210c] ss:$24 sps:$4 sm:$0xff]  }
 0x445   : > { %8642 = vmatprep.subr.bf16.mxu0 %v12426_v55  ;;  %v12510_v55 = vld [vmem:[%s13131_s16 + $0x1b14] ss:$24 sps:$4 sm:$0xff]  }
 0x447   : > { %8233 = vmatpush1.bf16.msra.mxu1 %v12421_v15  ;;  %v12505_v15 = vld [vmem:[%s13131_s16 + $0x2108] ss:$24 sps:$4 sm:$0xff]  }
 0x448   : > { %8643 = vmatpush1.bf16.msra.mxu0 %v12424_v43  ;;  %8234 = vmatprep.subr.bf16.mxu1 %v12429_v16  ;;  %v12508_v43 = vld [vmem:[%s13131_s16 + $0x1b10] ss:$24 sps:$4 sm:$0xff]   ;;  %v12513_v16 = vld [vmem:[%s13131_s16 + $0x213c] ss:$24 sps:$4 sm:$0xff]  }
 0x449   : > { %8644 = vmatprep.subr.bf16.mxu0 %v12432_v2  ;;  %v12516_v2 = vld [vmem:[%s13131_s16 + $0x1b44] ss:$24 sps:$4 sm:$0xff]  }
 0x44b   : > { %8235 = vmatpush1.bf16.msra.mxu1 %v12427_v58  ;;  %v12511_v58 = vld [vmem:[%s13131_s16 + $0x2138] ss:$24 sps:$4 sm:$0xff]  }
 0x44c   : > { %8645 = vmatpush1.bf16.msra.mxu0 %v12430_v17  ;;  %8236 = vmatprep.subr.bf16.mxu1 %v12435_v50  ;;  %v12514_v17 = vld [vmem:[%s13131_s16 + $0x1b40] ss:$24 sps:$4 sm:$0xff]   ;;  %v12519_v50 = vld [vmem:[%s13131_s16 + $0x216c] ss:$24 sps:$4 sm:$0xff]  }
 0x44d   : > { %8646 = vmatprep.subr.bf16.mxu0 %v12438_v18  ;;  %v12522_v18 = vld [vmem:[%s13131_s16 + $0x1b74] ss:$24 sps:$4 sm:$0xff]  }
 0x44f   : > { %8237 = vmatpush1.bf16.msra.mxu1 %v12433_v19  ;;  %v12520_v19 = vld [vmem:[%s13131_s16 + $0x1b70] ss:$24 sps:$4 sm:$0xff]  }
 0x450   : > { %8647 = vmatpush1.bf16.msra.mxu0 %v12436_v20  ;;  %8238 = vmatprep.subr.bf16.mxu1 %v12441_v8  ;;  %v12525_v20 = vld [vmem:[%s13131_s16 + $0x219c] ss:$24 sps:$4 sm:$0xff]  }
 0x451   : > { %8648 = vmatprep.subr.bf16.mxu0 %v12444_v21  ;;  %v12528_v8 = vld [vmem:[%s13131_s16 + $0x1ba4] ss:$24 sps:$4 sm:$0xff]   ;;  %v12523_v21 = vld [vmem:[%s13131_s16 + $0x2198] ss:$24 sps:$4 sm:$0xff]  }
 0x453   : > { %8239 = vmatpush1.bf16.msra.mxu1 %v12439_v24  ;;  %v12526_v24 = vld [vmem:[%s13131_s16 + $0x1ba0] ss:$24 sps:$4 sm:$0xff]  }
 0x454   : > { %8649 = vmatpush1.bf16.msra.mxu0 %v12442_v25  ;;  %8240 = vmatprep.subr.bf16.mxu1 %v12447_v26  ;;  %v12534_v25 = vld [vmem:[%s13131_s16 + $0x1bd4] ss:$24 sps:$4 sm:$0xff]   ;;  %v12529_v26 = vld [vmem:[%s13131_s16 + $0x21c8] ss:$24 sps:$4 sm:$0xff]  }
 0x455   : > { %8650 = vmatprep.subr.bf16.mxu0 %v12450_v10  ;;  %v12532_v10 = vld [vmem:[%s13131_s16 + $0x1bd0] ss:$24 sps:$4 sm:$0xff]  }
 0x457   : > { %8241 = vmatpush1.bf16.msra.mxu1 %v12445_v27  ;;  %v12537_v27 = vld [vmem:[%s13131_s16 + $0x21fc] ss:$24 sps:$4 sm:$0xff]  }
 0x458   : > { %8651 = vmatpush1.bf16.msra.mxu0 %v12448_v29  ;;  %8242 = vmatprep.subr.bf16.mxu1 %v12453_v30  ;;  %v12540_v29 = vld [vmem:[%s13131_s16 + $0x1c04] ss:$24 sps:$4 sm:$0xff]   ;;  %v12535_v30 = vld [vmem:[%s13131_s16 + $0x21f8] ss:$24 sps:$4 sm:$0xff]  }
 0x459   : > { %8652 = vmatprep.subr.bf16.mxu0 %v12456_v42  ;;  %v12538_v42 = vld [vmem:[%s13131_s16 + $0x1c00] ss:$24 sps:$4 sm:$0xff]  }
 0x45b   : > { %8243 = vmatpush1.bf16.msra.mxu1 %v12451_v32  ;;  %v12543_v32 = vld [vmem:[%s13131_s16 + $0x222c] ss:$24 sps:$4 sm:$0xff]  }
 0x45c   : > { %8653 = vmatpush1.bf16.msra.mxu0 %v12454_v31  ;;  %8244 = vmatprep.subr.bf16.mxu1 %v12459_v36  ;;  %v12546_v31 = vld [vmem:[%s13131_s16 + $0x1c34] ss:$24 sps:$4 sm:$0xff]   ;;  %v12541_v36 = vld [vmem:[%s13131_s16 + $0x2228] ss:$24 sps:$4 sm:$0xff]  }
 0x45d   : > { %8654 = vmatprep.subr.bf16.mxu0 %v12462_v37  ;;  %v12544_v37 = vld [vmem:[%s13131_s16 + $0x1c30] ss:$24 sps:$4 sm:$0xff]  }
 0x45f   : > { %8245 = vmatpush1.bf16.msra.mxu1 %v12457_v38  ;;  %v12549_v38 = vld [vmem:[%s13131_s16 + $0x225c] ss:$24 sps:$4 sm:$0xff]  }
 0x460   : > { %8655 = vmatpush1.bf16.msra.mxu0 %v12460_v49  ;;  %8246 = vmatprep.subr.bf16.mxu1 %v12465_v53  ;;  %v12552_v49 = vld [vmem:[%s13131_s16 + $0x1c64] ss:$24 sps:$4 sm:$0xff]   ;;  %v12547_v53 = vld [vmem:[%s13131_s16 + $0x2258] ss:$24 sps:$4 sm:$0xff]  }
 0x461   : > { %8656 = vmatprep.subr.bf16.mxu0 %v12468_v39  ;;  %v12550_v39 = vld [vmem:[%s13131_s16 + $0x1c60] ss:$24 sps:$4 sm:$0xff]  }
 0x463   : > { %8247 = vmatpush1.bf16.msra.mxu1 %v12463_v44  ;;  %v12555_v44 = vld [vmem:[%s13131_s16 + $0x228c] ss:$24 sps:$4 sm:$0xff]  }
 0x464   : > { %8657 = vmatpush1.bf16.msra.mxu0 %v12466_v45  ;;  %8248 = vmatprep.subr.bf16.mxu1 %v12471_v47  ;;  %v12558_v45 = vld [vmem:[%s13131_s16 + $0x1c94] ss:$24 sps:$4 sm:$0xff]   ;;  %v12553_v47 = vld [vmem:[%s13131_s16 + $0x2288] ss:$24 sps:$4 sm:$0xff]  }
 0x465   : > { %8658 = vmatprep.subr.bf16.mxu0 %v12474_v51  ;;  %v12556_v51 = vld [vmem:[%s13131_s16 + $0x1c90] ss:$24 sps:$4 sm:$0xff]  }
 0x467   : > { %8249 = vmatpush1.bf16.msra.mxu1 %v12469_v52  ;;  %v12561_v52 = vld [vmem:[%s13131_s16 + $0x22bc] ss:$24 sps:$4 sm:$0xff]  }
 0x468   : > { %8659 = vmatpush1.bf16.msra.mxu0 %v12472_v54  ;;  %8250 = vmatprep.subr.bf16.mxu1 %v12477_v11  ;;  %v12564_v54 = vld [vmem:[%s13131_s16 + $0x1cc4] ss:$24 sps:$4 sm:$0xff]   ;;  %v12559_v11 = vld [vmem:[%s13131_s16 + $0x22b8] ss:$24 sps:$4 sm:$0xff]  }
 0x469   : > { %8660 = vmatprep.subr.bf16.mxu0 %v12480_v56  ;;  %v12562_v56 = vld [vmem:[%s13131_s16 + $0x1cc0] ss:$24 sps:$4 sm:$0xff]  }
 0x46b   : > { %8251 = vmatpush1.bf16.msra.mxu1 %v12475_v57  ;;  %v12567_v57 = vld [vmem:[%s13131_s16 + $0x22ec] ss:$24 sps:$4 sm:$0xff]  }
 0x46c   : > { %8661 = vmatpush1.bf16.msra.mxu0 %v12478_v59  ;;  %8252 = vmatprep.subr.bf16.mxu1 %v12483_v60  ;;  %v12570_v59 = vld [vmem:[%s13131_s16 + $0x1cf4] ss:$24 sps:$4 sm:$0xff]   ;;  %v12565_v60 = vld [vmem:[%s13131_s16 + $0x22e8] ss:$24 sps:$4 sm:$0xff]  }
 0x46d   : > { %8662 = vmatprep.subr.bf16.mxu0 %v12486_v61  ;;  %v12568_v61 = vld [vmem:[%s13131_s16 + $0x1cf0] ss:$24 sps:$4 sm:$0xff]  }
 0x46f   : > { %8253 = vmatpush1.bf16.msra.mxu1 %v12481_v41  ;;  %v12573_v41 = vld [vmem:[%s13131_s16 + $0x231c] ss:$24 sps:$4 sm:$0xff]  }
 0x470   : > { %8663 = vmatpush1.bf16.msra.mxu0 %v12484_v62  ;;  %8254 = vmatprep.subr.bf16.mxu1 %v12489_v63  ;;  %v12576_v62 = vld [vmem:[%s13131_s16 + $0x1d24] ss:$24 sps:$4 sm:$0xff]   ;;  %v12571_v63 = vld [vmem:[%s13131_s16 + $0x2318] ss:$24 sps:$4 sm:$0xff]  }
 0x471   : > { %8664 = vmatprep.subr.bf16.mxu0 %v12492_v0  ;;  %v12574_v0 = vld [vmem:[%s13131_s16 + $0x1d20] ss:$24 sps:$4 sm:$0xff]  }
 0x473   : > { %8255 = vmatpush1.bf16.msra.mxu1 %v12487_v48  ;;  %v12579_v48 = vld [vmem:[%s13131_s16 + $0x234c] ss:$24 sps:$4 sm:$0xff]  }
 0x474   : > { %8665 = vmatpush1.bf16.msra.mxu0 %v12490_v22  ;;  %8256 = vmatprep.subr.bf16.mxu1 %v12495_v23  ;;  %v12582_v22 = vld [vmem:[%s13131_s16 + $0x1d54] ss:$24 sps:$4 sm:$0xff]   ;;  %v12577_v23 = vld [vmem:[%s13131_s16 + $0x2348] ss:$24 sps:$4 sm:$0xff]  }
 0x475   : > { %8666 = vmatprep.subr.bf16.mxu0 %v12498_v1  ;;  %v12580_v1 = vld [vmem:[%s13131_s16 + $0x1d50] ss:$24 sps:$4 sm:$0xff]  }
 0x477   : > { %8257 = vmatpush1.bf16.msra.mxu1 %v12493_v4  ;;  %v12585_v4 = vld [vmem:[%s13131_s16 + $0x237c] ss:$24 sps:$4 sm:$0xff]  }
 0x478   : > { %8667 = vmatpush1.bf16.msra.mxu0 %v12496_v6  ;;  %8258 = vmatprep.subr.bf16.mxu1 %v12501_v7  ;;  %v12588_v6 = vld [vmem:[%s13131_s16 + $0x1d84] ss:$24 sps:$4 sm:$0xff]   ;;  %v12583_v7 = vld [vmem:[%s13131_s16 + $0x2378] ss:$24 sps:$4 sm:$0xff]  }
 0x479   : > { %8668 = vmatprep.subr.bf16.mxu0 %v12504_v12  ;;  %v12586_v12 = vld [vmem:[%s13131_s16 + $0x1d80] ss:$24 sps:$4 sm:$0xff]  }
 0x47b   : > { %8259 = vmatpush1.bf16.msra.mxu1 %v12499_v33  ;;  %v12591_v33 = vld [vmem:[%s13131_s16 + $0x23ac] ss:$24 sps:$4 sm:$0xff]  }
 0x47c   : > { %8669 = vmatpush1.bf16.msra.mxu0 %v12502_v28  ;;  %8269 = vmatprep.subr.bf16.mxu1 %v12507_v13  ;;  %v12594_v28 = vld [vmem:[%s13131_s16 + $0x1db4] ss:$24 sps:$4 sm:$0xff]   ;;  %v12589_v13 = vld [vmem:[%s13131_s16 + $0x23a8] ss:$24 sps:$4 sm:$0xff]  }
 0x47d   : > { %8679 = vmatprep.subr.bf16.mxu0 %v12510_v55  ;;  %v12592_v55 = vld [vmem:[%s13131_s16 + $0x1db0] ss:$24 sps:$4 sm:$0xff]  }
 0x47e   : > { %8261 = vmatmul.mubr.bf16.vlgmr.msra.gmra.mrb[4].mxu1 %v13664_v5 }
 0x47f   : > { %8671 = vmatmul.mubr.bf16.vlgmr.msra.gmra.mrb[4].mxu0 %v13497_v3  ;;  %8270 = vmatpush1.bf16.msra.mxu1 %v12505_v15  ;;  %v12517_v3 = vld [vmem:[%s13131_s16 + $0x2168] ss:$24 sps:$4 sm:$0xff]   ;;  %v12597_v15 = vld [vmem:[%s13131_s16 + $0x23dc] ss:$24 sps:$4 sm:$0xff]  }
 0x480   : > { %8680 = vmatpush1.bf16.msra.mxu0 %v12508_v43  ;;  %8271 = vmatprep.subr.bf16.mxu1 %v12513_v16  ;;  %v12600_v43 = vld [vmem:[%s13131_s16 + $0x1de4] ss:$24 sps:$4 sm:$0xff]   ;;  %v12595_v16 = vld [vmem:[%s13131_s16 + $0x23d8] ss:$24 sps:$4 sm:$0xff]  }
 0x481   : > { %8681 = vmatprep.subr.bf16.mxu0 %v12516_v2  ;;  %8301 = vmatprep.mubr.bf16.mxu1 %v13670_v14  ;;  %v12598_v2 = vld [vmem:[%s13131_s16 + $0x1de0] ss:$24 sps:$4 sm:$0xff]  }
 0x482   : > { %8711 = vmatprep.mubr.bf16.mxu0 %v13509_v9  ;;  %v12531_v9 = vld [vmem:[%s13131_s16 + $0x21cc] ss:$24 sps:$4 sm:$0xff]  }
 0x483   : > { %8272 = vmatpush1.bf16.msra.mxu1 %v12511_v58  ;;  %v12603_v58 = vld [vmem:[%s13131_s16 + $0x1e14] ss:$24 sps:$4 sm:$0xff]  }
 0x484   : > { %8682 = vmatpush1.bf16.msra.mxu0 %v12514_v17  ;;  %8273 = vmatprep.subr.bf16.mxu1 %v12519_v50  ;;  %v12604_v17 = vld [vmem:[%s14306_s28 + $0x40] sm:$0xff]  }
 0x485   : > { %8683 = vmatprep.subr.bf16.mxu0 %v12522_v18  ;;  %v12601_v50 = vld [vmem:[%s13131_s16 + $0x1e10] ss:$24 sps:$4 sm:$0xff]  }
 0x486   : > { %v12605_v18 = vld [vmem:[%s14306_s28] sm:$0xff]  }
 0x487   : > { %8274 = vmatpush1.bf16.msra.mxu1 %v12517_v3  ;;  %v12608_v3 = vld [vmem:[%s13131_s16 + $0x1e44] ss:$24 sps:$4 sm:$0xff]  }
 0x488   : > { %8684 = vmatpush1.bf16.msra.mxu0 %v12520_v19  ;;  %8275 = vmatprep.subr.bf16.mxu1 %v12525_v20  ;;  %v12609_v19 = vld [vmem:[%s14306_s28 + $0x48] sm:$0xff]  }
 0x489   : > { %8685 = vmatprep.subr.bf16.mxu0 %v12528_v8  ;;  %v12745_v20 = vld [vmem:[%s13989_s7 + $0x8] sm:$0xff] }
 0x48a   : > { %v8815_v8 = vpack.c.bf16 %v12745_v20, %v12745_v20  ;;  %v12670_v20 = vld [vmem:[%s13131_s16 + $0x2144] ss:$24 sps:$4 sm:$0xff]  }
 0x48b   : > { %8276 = vmatpush1.bf16.msra.mxu1 %v12523_v21  ;;  %v12606_v21 = vld [vmem:[%s13131_s16 + $0x1e40] ss:$24 sps:$4 sm:$0xff]  }
 0x48c   : > { %8686 = vmatpush1.bf16.msra.mxu0 %v12526_v24  ;;  %8277 = vmatprep.subr.bf16.mxu1 %v12531_v9  ;;  %v12610_v24 = vld [vmem:[%s14306_s28 + $0x8] sm:$0xff]  }
 0x48d   : > { %8687 = vmatprep.subr.bf16.mxu0 %v12534_v25  ;;  %v12613_v9 = vld [vmem:[%s13131_s16 + $0x1e74] ss:$24 sps:$4 sm:$0xff]   ;;  %v12614_v25 = vld [vmem:[%s14306_s28 + $0x50] sm:$0xff]  }
 0x48f   : > { %8278 = vmatpush1.bf16.msra.mxu1 %v12529_v26  ;;  %v12615_v26 = vld [vmem:[%s14306_s28 + $0x10] sm:$0xff]  }
 0x490   : > { %8688 = vmatpush1.bf16.msra.mxu0 %v12532_v10  ;;  %8279 = vmatprep.subr.bf16.mxu1 %v12537_v27  ;;  %v12618_v10 = vld [vmem:[%s13131_s16 + $0x1ea4] ss:$24 sps:$4 sm:$0xff]  }
 0x491   : > { %8689 = vmatprep.subr.bf16.mxu0 %v12540_v29  ;;  %v12619_v27 = vld [vmem:[%s14306_s28 + $0x58] sm:$0xff]   ;;  %v12616_v29 = vld [vmem:[%s13131_s16 + $0x1ea0] ss:$24 sps:$4 sm:$0xff]  }
 0x493   : > { %8280 = vmatpush1.bf16.msra.mxu1 %v12535_v30  ;;  %v12620_v30 = vld [vmem:[%s14306_s28 + $0x18] sm:$0xff]  }
 0x494   : > { %8690 = vmatpush1.bf16.msra.mxu0 %v12538_v42  ;;  %8281 = vmatprep.subr.bf16.mxu1 %v12543_v32  ;;  %v12624_v42 = vld [vmem:[%s14306_s28 + $0x60] sm:$0xff]  }
 0x495   : > { %8691 = vmatprep.subr.bf16.mxu0 %v12546_v31  ;;  %v12621_v32 = vld [vmem:[%s13131_s16 + $0x1ed0] ss:$24 sps:$4 sm:$0xff]  }
 0x496   : > { %v12625_v31 = vld [vmem:[%s14306_s28 + $0x20] sm:$0xff]  }
 0x497   : > { %8282 = vmatpush1.bf16.msra.mxu1 %v12541_v36  ;;  %v12628_v36 = vld [vmem:[%s13131_s16 + $0x1f04] ss:$24 sps:$4 sm:$0xff]  }
 0x498   : > { %8692 = vmatpush1.bf16.msra.mxu0 %v12544_v37  ;;  %8283 = vmatprep.subr.bf16.mxu1 %v12549_v38  ;;  %v12629_v37 = vld [vmem:[%s14306_s28 + $0x68] sm:$0xff]  }
 0x499   : > { %8693 = vmatprep.subr.bf16.mxu0 %v12552_v49  ;;  %v12626_v38 = vld [vmem:[%s13131_s16 + $0x1f00] ss:$24 sps:$4 sm:$0xff]  }
 0x49a   : > { %v12630_v49 = vld [vmem:[%s14306_s28 + $0x28] sm:$0xff]  }
 0x49b   : > { %8284 = vmatpush1.bf16.msra.mxu1 %v12547_v53  ;;  %v12633_v53 = vld [vmem:[%s13131_s16 + $0x1f34] ss:$24 sps:$4 sm:$0xff]  }
 0x49c   : > { %8694 = vmatpush1.bf16.msra.mxu0 %v12550_v39  ;;  %8285 = vmatprep.subr.bf16.mxu1 %v12555_v44  ;;  %v12634_v39 = vld [vmem:[%s14306_s28 + $0x70] sm:$0xff]   ;;  %v12631_v44 = vld [vmem:[%s13131_s16 + $0x1f30] ss:$24 sps:$4 sm:$0xff]  }
 0x49d   : > { %8695 = vmatprep.subr.bf16.mxu0 %v12558_v45  ;;  %v12635_v45 = vld [vmem:[%s14306_s28 + $0x30] sm:$0xff]  }
 0x49f   : > { %8286 = vmatpush1.bf16.msra.mxu1 %v12553_v47  ;;  %v12638_v47 = vld [vmem:[%s13131_s16 + $0x1f64] ss:$24 sps:$4 sm:$0xff]  }
 0x4a0   : > { %8696 = vmatpush1.bf16.msra.mxu0 %v12556_v51  ;;  %8287 = vmatprep.subr.bf16.mxu1 %v12561_v52  ;;  %v12639_v51 = vld [vmem:[%s14306_s28 + $0x78] sm:$0xff]   ;;  %v12636_v52 = vld [vmem:[%s13131_s16 + $0x1f60] ss:$24 sps:$4 sm:$0xff]  }
 0x4a1   : > { %8697 = vmatprep.subr.bf16.mxu0 %v12564_v54  ;;  %v12640_v54 = vld [vmem:[%s14306_s28 + $0x38] sm:$0xff]  }
 0x4a3   : > { %8288 = vmatpush1.bf16.msra.mxu1 %v12559_v11  ;;  %v12643_v11 = vld [vmem:[%s13131_s16 + $0x1f94] ss:$24 sps:$4 sm:$0xff]  }
 0x4a4   : > { %8698 = vmatpush1.bf16.msra.mxu0 %v12562_v56  ;;  %8289 = vmatprep.subr.bf16.mxu1 %v12567_v57  ;;  %v12713_v56 = vld [vmem:[%s14306_s28 + $0xc0] sm:$0xff]  }
 0x4a5   : > { %8699 = vmatprep.subr.bf16.mxu0 %v12570_v59  ;;  %v12641_v57 = vld [vmem:[%s13131_s16 + $0x1f90] ss:$24 sps:$4 sm:$0xff]  }
 0x4a6   : > { %v12714_v59 = vld [vmem:[%s14306_s28 + $0x80] sm:$0xff]  }
 0x4a7   : > { %8290 = vmatpush1.bf16.msra.mxu1 %v12565_v60  ;;  %v12746_v60 = vld [vmem:[%s13989_s7] sm:$0xff] }
 0x4a8   : > { %8700 = vmatpush1.bf16.msra.mxu0 %v12568_v61  ;;  %8291 = vmatprep.subr.bf16.mxu1 %v12573_v41  ;;  %v8814_v61 = vpack.c.bf16 %v12746_v60, %v12746_v60  ;;  %v12646_v41 = vld [vmem:[%s13131_s16 + $0x1fc4] ss:$24 sps:$4 sm:$0xff]   ;;  %v12710_v60 = vld [vmem:[%s13131_s16 + $0x23e0] ss:$24 sps:$4 sm:$0xff]  }
 0x4a9   : > { %8701 = vmatprep.subr.bf16.mxu0 %v12576_v62  ;;  %v12715_v62 = vld [vmem:[%s14306_s28 + $0xc8] sm:$0xff]  }
 0x4ab   : > { %8292 = vmatpush1.bf16.msra.mxu1 %v12571_v63  ;;  %v12644_v63 = vld [vmem:[%s13131_s16 + $0x1fc0] ss:$24 sps:$4 sm:$0xff]  }
 0x4ac   : > { %8702 = vmatpush1.bf16.msra.mxu0 %v12574_v0  ;;  %8293 = vmatprep.subr.bf16.mxu1 %v12579_v48  ;;  %v12716_v0 = vld [vmem:[%s14306_s28 + $0x88] sm:$0xff]  }
 0x4ad   : > { %8703 = vmatprep.subr.bf16.mxu0 %v12582_v22  ;;  %v12649_v48 = vld [vmem:[%s13131_s16 + $0x1ff4] ss:$24 sps:$4 sm:$0xff]   ;;  %v12717_v22 = vld [vmem:[%s14306_s28 + $0xd0] sm:$0xff]  }
 0x4af   : > { %8294 = vmatpush1.bf16.msra.mxu1 %v12577_v23  ;;  %v12647_v23 = vld [vmem:[%s13131_s16 + $0x1ff0] ss:$24 sps:$4 sm:$0xff]  }
 0x4b0   : > { %8704 = vmatpush1.bf16.msra.mxu0 %v12580_v1  ;;  %8295 = vmatprep.subr.bf16.mxu1 %v12585_v4  ;;  %v12718_v1 = vld [vmem:[%s14306_s28 + $0x90] sm:$0xff]  }
 0x4b1   : > { %8705 = vmatprep.subr.bf16.mxu0 %v12588_v6  ;;  %v12652_v4 = vld [vmem:[%s13131_s16 + $0x2024] ss:$24 sps:$4 sm:$0xff]  }
 0x4b2   : > { %v12719_v6 = vld [vmem:[%s14306_s28 + $0xd8] sm:$0xff]  }
 0x4b3   : > { %8296 = vmatpush1.bf16.msra.mxu1 %v12583_v7  ;;  %v12650_v7 = vld [vmem:[%s13131_s16 + $0x2020] ss:$24 sps:$4 sm:$0xff]  }
 0x4b4   : > { %8706 = vmatpush1.bf16.msra.mxu0 %v12586_v12  ;;  %8297 = vmatprep.subr.bf16.mxu1 %v12591_v33  ;;  %v12720_v12 = vld [vmem:[%s14306_s28 + $0x98] sm:$0xff]   ;;  %v12655_v33 = vld [vmem:[%s13131_s16 + $0x2054] ss:$24 sps:$4 sm:$0xff]  }
 0x4b5   : > { %8707 = vmatprep.subr.bf16.mxu0 %v12594_v28  ;;  %v12721_v28 = vld [vmem:[%s14306_s28 + $0xe0] sm:$0xff]  }
 0x4b7   : > { %8298 = vmatpush1.bf16.msra.mxu1 %v12589_v13  ;;  %v12653_v13 = vld [vmem:[%s13131_s16 + $0x2050] ss:$24 sps:$4 sm:$0xff]  }
 0x4b8   : > { %8708 = vmatpush1.bf16.msra.mxu0 %v12592_v55  ;;  %8299 = vmatprep.subr.bf16.mxu1 %v12597_v15  ;;  %v12722_v55 = vld [vmem:[%s14306_s28 + $0xa0] sm:$0xff]   ;;  %v12658_v15 = vld [vmem:[%s13131_s16 + $0x2084] ss:$24 sps:$4 sm:$0xff]  }
 0x4b9   : > { %8709 = vmatprep.subr.bf16.mxu0 %v12600_v43  ;;  %v12723_v43 = vld [vmem:[%s14306_s28 + $0xe8] sm:$0xff]  }
 0x4bb   : > { %8300 = vmatpush1.bf16.msra.mxu1 %v12595_v16  ;;  %v12656_v16 = vld [vmem:[%s13131_s16 + $0x2080] ss:$24 sps:$4 sm:$0xff]  }
 0x4bc   : > { %8710 = vmatpush1.bf16.msra.mxu0 %v12598_v2  ;;  %10699 = vmatprep.subr.bf16.mxu1 %v12604_v17  ;;  %v12724_v2 = vld [vmem:[%s14306_s28 + $0xa8] sm:$0xff]   ;;  %v12659_v17 = vld [vmem:[%s13131_s16 + $0x20b0] ss:$24 sps:$4 sm:$0xff]  }
 0x4bd   : > { %8720 = vmatprep.subr.bf16.mxu0 %v12603_v58  ;;  %v12661_v58 = vld [vmem:[%s13131_s16 + $0x20b4] ss:$24 sps:$4 sm:$0xff]  }
 0x4be   : > { %8302 = vmatmul.mubr.bf16.vlgmr.msra.gmra.mrb[4].mxu1 %v13739_v46 }
 0x4bf   : > { %8712 = vmatmul.mubr.bf16.vlgmr.msra.gmra.mrb[4].mxu0 %v13584_v34  ;;  %10700 = vmatpush3.bf16.msra.mxu1 %v12605_v18  ;;  %v12611_v34 = vld [vmem:[%s13131_s16 + $0x1e70] ss:$24 sps:$4 sm:$0xff]   ;;  %v12662_v18 = vld [vmem:[%s13131_s16 + $0x20e0] ss:$24 sps:$4 sm:$0xff]  }
 0x4c0   : > { %8721 = vmatpush1.bf16.msra.mxu0 %v12601_v50  ;;  %9236 = vmatprep.mubr.bf16.mxu1 %v8815_v8  ;;  %v12664_v50 = vld [vmem:[%s13131_s16 + $0x20e4] ss:$24 sps:$4 sm:$0xff]   ;;  %v12668_v8 = vld [vmem:[%s13131_s16 + $0x2140] ss:$24 sps:$4 sm:$0xff]  }
 0x4c1   : > { %8722 = vmatprep.subr.bf16.mxu0 %v12608_v3  ;;  %10701 = vmatprep.subr.bf16.mxu1 %v12609_v19  ;;  %v12667_v3 = vld [vmem:[%s13131_s16 + $0x2114] ss:$24 sps:$4 sm:$0xff]   ;;  %v12665_v19 = vld [vmem:[%s13131_s16 + $0x2110] ss:$24 sps:$4 sm:$0xff]  }
 0x4c2   : > { %8752 = vmatprep.mubr.bf16.mxu0 %v13592_v40  ;;  %v12623_v40 = vld [vmem:[%s13131_s16 + $0x1ed4] ss:$24 sps:$4 sm:$0xff]  }
 0x4c3   : > { %10702 = vmatpush3.bf16.msra.mxu1 %v12610_v24  ;;  %v12671_v24 = vld [vmem:[%s13131_s16 + $0x2170] ss:$24 sps:$4 sm:$0xff]  }
 0x4c4   : > { %8723 = vmatpush1.bf16.msra.mxu0 %v12606_v21  ;;  %10703 = vmatprep.subr.bf16.mxu1 %v12614_v25  ;;  %v12673_v21 = vld [vmem:[%s13131_s16 + $0x2174] ss:$24 sps:$4 sm:$0xff]   ;;  %v12674_v25 = vld [vmem:[%s13131_s16 + $0x21a0] ss:$24 sps:$4 sm:$0xff]  }
 0x4c5   : > { %8724 = vmatprep.subr.bf16.mxu0 %v12613_v9  ;;  %v12676_v9 = vld [vmem:[%s13131_s16 + $0x21a4] ss:$24 sps:$4 sm:$0xff]  }
 0x4c7   : > { %10704 = vmatpush3.bf16.msra.mxu1 %v12615_v26  ;;  %v12680_v26 = vld [vmem:[%s13131_s16 + $0x2200] ss:$24 sps:$4 sm:$0xff]  }
 0x4c8   : > { %8725 = vmatpush1.bf16.msra.mxu0 %v12611_v34  ;;  %10705 = vmatprep.subr.bf16.mxu1 %v12619_v27  ;;  %v12677_v34 = vld [vmem:[%s13131_s16 + $0x21d0] ss:$24 sps:$4 sm:$0xff]   ;;  %v12725_v27 = vld [vmem:[%s14306_s28 + $0xf0] sm:$0xff]  }
 0x4c9   : > { %8726 = vmatprep.subr.bf16.mxu0 %v12618_v10  ;;  %v12685_v10 = vld [vmem:[%s13131_s16 + $0x2234] ss:$24 sps:$4 sm:$0xff]  }
 0x4cb   : > { %10706 = vmatpush3.bf16.msra.mxu1 %v12620_v30  ;;  %v12683_v30 = vld [vmem:[%s13131_s16 + $0x2230] ss:$24 sps:$4 sm:$0xff]  }
 0x4cc   : > { %8727 = vmatpush1.bf16.msra.mxu0 %v12616_v29  ;;  %10707 = vmatprep.subr.bf16.mxu1 %v12624_v42  ;;  %v12726_v29 = vld [vmem:[%s14306_s28 + $0xb0] sm:$0xff]   ;;  %v12727_v42 = vld [vmem:[%s14306_s28 + $0xf8] sm:$0xff]  }
 0x4cd   : > { %8728 = vmatprep.subr.bf16.mxu0 %v12623_v40  ;;  %v12688_v40 = vld [vmem:[%s13131_s16 + $0x2264] ss:$24 sps:$4 sm:$0xff]  }
 0x4cf   : > { %10708 = vmatpush3.bf16.msra.mxu1 %v12625_v31  ;;  %v12686_v31 = vld [vmem:[%s13131_s16 + $0x2260] ss:$24 sps:$4 sm:$0xff]  }
 0x4d0   : > { %8729 = vmatpush1.bf16.msra.mxu0 %v12621_v32  ;;  %10709 = vmatprep.subr.bf16.mxu1 %v12629_v37  ;;  %v12728_v32 = vld [vmem:[%s14306_s28 + $0xb8] sm:$0xff]  }
 0x4d1   : > { %8730 = vmatprep.subr.bf16.mxu0 %v12628_v36  ;;  %v12691_v36 = vld [vmem:[%s13131_s16 + $0x2294] ss:$24 sps:$4 sm:$0xff]   ;;  %v12689_v37 = vld [vmem:[%s13131_s16 + $0x2290] ss:$24 sps:$4 sm:$0xff]  }
 0x4d3   : > { %10710 = vmatpush3.bf16.msra.mxu1 %v12630_v49  ;;  %v12692_v49 = vld [vmem:[%s13131_s16 + $0x22c0] ss:$24 sps:$4 sm:$0xff]  }
 0x4d4   : > { %8731 = vmatpush1.bf16.msra.mxu0 %v12626_v38  ;;  %10711 = vmatprep.subr.bf16.mxu1 %v12634_v39  ;;  %v12694_v38 = vld [vmem:[%s13131_s16 + $0x22c4] ss:$24 sps:$4 sm:$0xff]   ;;  %v12695_v39 = vld [vmem:[%s13131_s16 + $0x22f0] ss:$24 sps:$4 sm:$0xff]  }
 0x4d5   : > { %8732 = vmatprep.subr.bf16.mxu0 %v12633_v53  ;;  %v12697_v53 = vld [vmem:[%s13131_s16 + $0x22f4] ss:$24 sps:$4 sm:$0xff]  }
 0x4d7   : > { %10712 = vmatpush3.bf16.msra.mxu1 %v12635_v45  ;;  %v12698_v45 = vld [vmem:[%s13131_s16 + $0x2320] ss:$24 sps:$4 sm:$0xff]  }
 0x4d8   : > { %8733 = vmatpush1.bf16.msra.mxu0 %v12631_v44  ;;  %10713 = vmatprep.subr.bf16.mxu1 %v12639_v51  ;;  %v12700_v44 = vld [vmem:[%s13131_s16 + $0x2324] ss:$24 sps:$4 sm:$0xff]   ;;  %v12701_v51 = vld [vmem:[%s13131_s16 + $0x2350] ss:$24 sps:$4 sm:$0xff]  }
 0x4d9   : > { %8734 = vmatprep.subr.bf16.mxu0 %v12638_v47  ;;  %v12703_v47 = vld [vmem:[%s13131_s16 + $0x2354] ss:$24 sps:$4 sm:$0xff]  }
 0x4db   : > { %10714 = vmatpush3.bf16.msra.mxu1 %v12640_v54  ;;  %v12704_v54 = vld [vmem:[%s13131_s16 + $0x2380] ss:$24 sps:$4 sm:$0xff]  }
 0x4dc   : > { %8735 = vmatpush1.bf16.msra.mxu0 %v12636_v52  ;;  %10721 = vmatprep.subr.bf16.mxu1 %v12713_v56  ;;  %v12706_v52 = vld [vmem:[%s13131_s16 + $0x2384] ss:$24 sps:$4 sm:$0xff]   ;;  %v12707_v56 = vld [vmem:[%s13131_s16 + $0x23b0] ss:$24 sps:$4 sm:$0xff]  }
 0x4dd   : > { %8736 = vmatprep.subr.bf16.mxu0 %v12643_v11  ;;  %v12709_v11 = vld [vmem:[%s13131_s16 + $0x23b4] ss:$24 sps:$4 sm:$0xff]  }
 0x4de   : > { %9237 = vmatmul.mubr.bf16.vlgmr.msra.gmra.mrb[8].mxu1 %v8814_v61  ;;  %v1546_v61 = vsub.s32 2, %v13963_v35 }
 0x4df   : > { %10722 = vmatpush3.bf16.msra.mxu1 %v12714_v59  ;;  %v12729_v59 = vld [vmem:[%s14306_s28 + $0x140] sm:$0xff]  }
 0x4e0   : > { %8737 = vmatpush1.bf16.msra.mxu0 %v12641_v57  ;;  %10723 = vmatprep.subr.bf16.mxu1 %v12715_v62  ;;  %v12712_v57 = vld [vmem:[%s13131_s16 + $0x23e4] ss:$24 sps:$4 sm:$0xff]  }
 0x4e1   : > { %8738 = vmatprep.subr.bf16.mxu0 %v12646_v41  ;;  %v1550_v41 = vsub.s32 3, %v13963_v35  ;;  %v12747_v62 = vld [vmem:[%s13139_s25] sm:$0x3f]  ;;  %s9344_s25 = sshll.u32 %s13989_s7, 4  ;;  %s9345_s25 = int_to_ptr.vmem [resolvable:$true] %s9344_s25 }
 0x4e2   : > { %s12838_s2 = scalar_lea.vmem %s9345_s25, 768  ;;  %p12845_p6 = scmp.lt.s32.totalorder %s9345_s25, %s12843_s8 }
 0x4e3   : > { %10724 = vmatpush3.bf16.msra.mxu1 %v12716_v0  ;;  %v1551_v0 = vrot.slane %v12747_v62, %v1550_v41  ;;  %p12839_p13 = scmp.ne.s32.totalorder %s9345_s25, %s12838_s2  ;;  %p12846_p9 = scmp.lt.s32.totalorder %s12844_s17, %s12838_s2 }
 0x4e4   : > { %8739 = vmatpush1.bf16.msra.mxu0 %v12644_v63  ;;  %10725 = vmatprep.subr.bf16.mxu1 %v12717_v22  ;;  %v1547_v63 = vrot.slane %v12747_v62, %v1546_v61 }
 0x4e5   : > { %8740 = vmatprep.subr.bf16.mxu0 %v12649_v48  ;;  %p12840_p8 = pnand %p12839_p13, %p14639_p5  ;;  %p12847_p12 = por %p12846_p9, %p12845_p6 }
 0x4e7   : > { %10726 = vmatpush3.bf16.msra.mxu1 %v12718_v1  ;;  %p12841_p10 = pneg %p12840_p8 }
 0x4e8   : > { %8741 = vmatpush1.bf16.msra.mxu0 %v12647_v23  ;;  %10727 = vmatprep.subr.bf16.mxu1 %v12719_v6 }
 0x4e9   : > { %8742 = vmatprep.subr.bf16.mxu0 %v12652_v4  ;;  %p12848_p2 = pnand %p12847_p12, %p12841_p10 }
 0x4eb   : > { %10728 = vmatpush3.bf16.msra.mxu1 %v12720_v12 }
 0x4ec   : > { %8743 = vmatpush1.bf16.msra.mxu0 %v12650_v7  ;;  %10729 = vmatprep.subr.bf16.mxu1 %v12721_v28 }
 0x4ed   : > { %8744 = vmatprep.subr.bf16.mxu0 %v12655_v33  ;;  %v12730_v33 = vld [vmem:[%s14306_s28 + $0x100] sm:$0xff]  }
 0x4ef   : > { %10730 = vmatpush3.bf16.msra.mxu1 %v12722_v55  ;;  %v12732_v55 = vld [vmem:[%s14306_s28 + $0x108] sm:$0xff]  }
 0x4f0   : > { %8745 = vmatpush1.bf16.msra.mxu0 %v12653_v13  ;;  %10731 = vmatprep.subr.bf16.mxu1 %v12723_v43  ;;  %v12731_v13 = vld [vmem:[%s14306_s28 + $0x148] sm:$0xff]   ;;  %v12734_v43 = vld [vmem:[%s14306_s28 + $0x110] sm:$0xff]  }
 0x4f1   : > { %8746 = vmatprep.subr.bf16.mxu0 %v12658_v15  ;;  %v12733_v15 = vld [vmem:[%s14306_s28 + $0x150] sm:$0xff]  }
 0x4f3   : > { %10732 = vmatpush3.bf16.msra.mxu1 %v12724_v2  ;;  %v12736_v2 = vld [vmem:[%s14306_s28 + $0x118] sm:$0xff]  }
 0x4f4   : > { %8747 = vmatpush1.bf16.msra.mxu0 %v12656_v16  ;;  %10733 = vmatprep.subr.bf16.mxu1 %v12725_v27  ;;  %v12735_v16 = vld [vmem:[%s14306_s28 + $0x158] sm:$0xff]  }
 0x4f5   : > { %8748 = vmatprep.subr.bf16.mxu0 %v12661_v58  ;;  %v12737_v58 = vld [vmem:[%s14306_s28 + $0x160] sm:$0xff]  }
 0x4f7   : > { %10734 = vmatpush3.bf16.msra.mxu1 %v12726_v29 }
 0x4f8   : > { %8749 = vmatpush1.bf16.msra.mxu0 %v12659_v17  ;;  %10735 = vmatprep.subr.bf16.mxu1 %v12727_v42  ;;  %v12738_v17 = vld [vmem:[%s14306_s28 + $0x120] sm:$0xff]  }
 0x4f9   : > { %8750 = vmatprep.subr.bf16.mxu0 %v12664_v50  ;;  %v12739_v50 = vld [vmem:[%s14306_s28 + $0x168] sm:$0xff]  }
 0x4fb   : > { %10736 = vmatpush3.bf16.msra.mxu1 %v12728_v32 }
 0x4fc   : > { %8751 = vmatpush1.bf16.msra.mxu0 %v12662_v18  ;;  %10743 = vmatprep.subr.bf16.mxu1 %v12729_v59  ;;  %v12740_v18 = vld [vmem:[%s14306_s28 + $0x128] sm:$0xff]  }
 0x4fd   : > { %8761 = vmatprep.subr.bf16.mxu0 %v12667_v3  ;;  %v12741_v3 = vld [vmem:[%s14306_s28 + $0x170] sm:$0xff]  }
 0x4ff   : > { %8753 = vmatmul.mubr.bf16.vlgmr.msra.gmra.mrb[4].mxu0 %v13664_v5  ;;  %v12679_v5 = vld [vmem:[%s13131_s16 + $0x21d4] ss:$24 sps:$4 sm:$0xff]  }
 0x500   : > { %8762 = vmatpush1.bf16.msra.mxu0 %v12665_v19  ;;  %8793 = vmatprep.mubr.bf16.mxu0 %v13670_v14  ;;  %v12682_v14 = vld [vmem:[%s13131_s16 + $0x2204] ss:$24 sps:$4 sm:$0xff]   ;;  %s10698_s16 = smul.u32 768, %s12970_s22 }
 0x501   : > { %8763 = vmatprep.subr.bf16.mxu0 %v12670_v20  ;;  %v12742_v19 = vld [vmem:[%s14306_s28 + $0x130] sm:$0xff]   ;;  %v12743_v20 = vld [vmem:[%s14306_s28 + $0x178] sm:$0xff]  }
 0x502   : > { %s14572_s13 = scalar_lea.hbm %s14619_s4, %s10698_s16 }
 0x504   : > { %8764 = vmatpush1.bf16.msra.mxu0 %v12668_v8 }
 0x505   : > { %8765 = vmatprep.subr.bf16.mxu0 %v12673_v21 }
 0x508   : > { %8766 = vmatpush1.bf16.msra.mxu0 %v12671_v24 }
 0x509   : > { %8767 = vmatprep.subr.bf16.mxu0 %v12676_v9 }
 0x50c   : > { %8768 = vmatpush1.bf16.msra.mxu0 %v12674_v25  ;;  %v12744_v25 = vld [vmem:[%s14306_s28 + $0x138] sm:$0xff]  }
 0x50d   : > { %8769 = vmatprep.subr.bf16.mxu0 %v12679_v5 }
 0x510   : > { %8770 = vmatpush1.bf16.msra.mxu0 %v12677_v34  ;;  %v1554_v34 = vsub.s32 4, %v13963_v35 }
 0x511   : > { %8771 = vmatprep.subr.bf16.mxu0 %v12682_v14  ;;  %v1558_v14 = vsub.s32 5, %v13963_v35 }
 0x514   : > { %8772 = vmatpush1.bf16.msra.mxu0 %v12680_v26  ;;  %v1555_v26 = vrot.slane %v12747_v62, %v1554_v34 }
 0x515   : > { %8773 = vmatprep.subr.bf16.mxu0 %v12685_v10  ;;  %v1559_v10 = vrot.slane %v12747_v62, %v1558_v14 }
 0x518   : > { %8774 = vmatpush1.bf16.msra.mxu0 %v12683_v30 }
 0x519   : > { %8775 = vmatprep.subr.bf16.mxu0 %v12688_v40 }
 0x51c   : > { %8776 = vmatpush1.bf16.msra.mxu0 %v12686_v31 }
 0x51d   : > { %8777 = vmatprep.subr.bf16.mxu0 %v12691_v36 }
 0x520   : > { %8778 = vmatpush1.bf16.msra.mxu0 %v12689_v37 }
 0x521   : > { %8779 = vmatprep.subr.bf16.mxu0 %v12694_v38 }
 0x524   : > { %8780 = vmatpush1.bf16.msra.mxu0 %v12692_v49 }
 0x525   : > { %8781 = vmatprep.subr.bf16.mxu0 %v12697_v53 }
 0x528   : > { %8782 = vmatpush1.bf16.msra.mxu0 %v12695_v39 }
 0x529   : > { %8783 = vmatprep.subr.bf16.mxu0 %v12700_v44 }
 0x52c   : > { %8784 = vmatpush1.bf16.msra.mxu0 %v12698_v45 }
 0x52d   : > { %8785 = vmatprep.subr.bf16.mxu0 %v12703_v47 }
 0x530   : > { %8786 = vmatpush1.bf16.msra.mxu0 %v12701_v51 }
 0x531   : > { %8787 = vmatprep.subr.bf16.mxu0 %v12706_v52 }
 0x534   : > { %8788 = vmatpush1.bf16.msra.mxu0 %v12704_v54 }
 0x535   : > { %8789 = vmatprep.subr.bf16.mxu0 %v12709_v11 }
 0x538   : > { %8790 = vmatpush1.bf16.msra.mxu0 %v12707_v56 }
 0x539   : > { %8791 = vmatprep.subr.bf16.mxu0 %v12712_v57 }
 0x53c   : > { %8792 = vmatpush1.bf16.msra.mxu0 %v12710_v60 }
 0x53f   : > { %8794 = vmatmul.mubr.bf16.vlgmr.msra.gmra.mrb[4].mxu0 %v13739_v46 }
 0x591   : > { %v8303_v48 = vpop.f32.mrb[4].mxu1 }
 0x592   : > { %v10769_v22 = vadd.f32 %v8303_v48, %v1547_v63  ;;  %v8305_v23 = vpop.f32.mrb[5].mxu1 }
 0x593   : > { %v10770_v1 = vadd.f32 %v8305_v23, %v1551_v0  ;;  %v8307_v4 = vpop.f32.mrb[6].mxu1 }
 0x594   : > { %v8804_v6 = vmax.f32 %v10769_v22, 0.0  ;;  %v8308_v7 = vpop.f32.mrb[7].mxu1 }
 0x595   : > { %v8805_v46 = vmax.f32 %v10770_v1, 0.0 }
 0x596   : > { %8810 = vst [vmem:[%s13989_s7 + $0x10] sm:$0xff] %v8804_v6  ;;  %v8816_v28 = vpack.c.bf16 %v8804_v6, %v8804_v6 }
 0x597   : > { %8811 = vst [vmem:[%s13989_s7 + $0x18] sm:$0xff] %v8805_v46  ;;  %v8817_v12 = vpack.c.bf16 %v8805_v46, %v8805_v46 }
 0x599   : > { %9276 = vmatprep.mubr.bf16.mxu1 %v8817_v12 }
 0x59a   : > { %9277 = vmatmul.mubr.bf16.vlgmr.msra.gmra.mrb[12].mxu1 %v8816_v28 }
 0x59b   : > { %10744 = vmatpush3.bf16.msra.mxu1 %v12730_v33 }
 0x59c   : > { %10745 = vmatprep.subr.bf16.mxu1 %v12731_v13 }
 0x59f   : > { %10746 = vmatpush3.bf16.msra.mxu1 %v12732_v55 }
 0x5a0   : > { %10747 = vmatprep.subr.bf16.mxu1 %v12733_v15 }
 0x5a3   : > { %10748 = vmatpush3.bf16.msra.mxu1 %v12734_v43 }
 0x5a4   : > { %10749 = vmatprep.subr.bf16.mxu1 %v12735_v16 }
 0x5a7   : > { %10750 = vmatpush3.bf16.msra.mxu1 %v12736_v2 }
 0x5a8   : > { %10751 = vmatprep.subr.bf16.mxu1 %v12737_v58 }
 0x5ab   : > { %10752 = vmatpush3.bf16.msra.mxu1 %v12738_v17 }
 0x5ac   : > { %10753 = vmatprep.subr.bf16.mxu1 %v12739_v50 }
 0x5af   : > { %10754 = vmatpush3.bf16.msra.mxu1 %v12740_v18 }
 0x5b0   : > { %10755 = vmatprep.subr.bf16.mxu1 %v12741_v3 }
 0x5b1   : > { %v10715_v8 = vpop.f32.mrb[8].mxu1 }
 0x5b2   : > { %v10716_v21 = vpop.f32.mrb[9].mxu1 }
 0x5b3   : > { %v10717_v24 = vadd.f32 %v10716_v21, %v10715_v8  ;;  %v10718_v9 = vpop.f32.mrb[10].mxu1  ;;  %10756 = vmatpush3.bf16.msra.mxu1 %v12742_v19 }
 0x5b4   : > { %v10719_v5 = vpop.f32.mrb[11].mxu1  ;;  %10757 = vmatprep.subr.bf16.mxu1 %v12743_v20 }
 0x5b7   : > { %10758 = vmatpush3.bf16.msra.mxu1 %v12744_v25 }
 0x612   : > { %v8795_v27 = vpop.f32.mrb[4].mxu0 }
 0x613   : > { %v10771_v29 = vadd.f32 %v8795_v27, %v1555_v26  ;;  %v8797_v30 = vpop.f32.mrb[5].mxu0 }
 0x614   : > { %v10772_v40 = vadd.f32 %v8797_v30, %v1559_v10  ;;  %v8799_v42 = vpop.f32.mrb[6].mxu0 }
 0x615   : > { %v8806_v32 = vmax.f32 %v10771_v29, 0.0  ;;  %v8800_v31 = vpop.f32.mrb[7].mxu0 }
 0x616   : > { %v8807_v36 = vmax.f32 %v10772_v40, 0.0 }
 0x617   : > { %8812 = vst [vmem:[%s13989_s7 + $0x20] sm:$0xff] %v8806_v32  ;;  %v8818_v38 = vpack.c.bf16 %v8806_v32, %v8806_v32 }
 0x618   : > { %8813 = vst [vmem:[%s13989_s7 + $0x28] sm:$0xff] %v8807_v36  ;;  %v8819_v37 = vpack.c.bf16 %v8807_v36, %v8807_v36 }
 0x61a   : > { %9316 = vmatprep.mubr.bf16.mxu1 %v8819_v37 }
 0x61b   : > { %9317 = vmatmul.mubr.bf16.vlgmr.msra.gmra.mrb[16].mxu1 %v8818_v38 }
 0x66d   : > { %v10737_v35 = vpop.f32.mrb[12].mxu1 }
 0x66e   : > { %v10738_v49 = vpop.f32.mrb[13].mxu1 }
 0x66f   : > { %v10739_v53 = vadd.f32 %v10738_v49, %v10737_v35  ;;  %v10740_v39 = vpop.f32.mrb[14].mxu1 }
 0x670   : > { %v10741_v44 = vpop.f32.mrb[15].mxu1 }
 0x671   : > { %v9279_v45 = vadd.f32 %v10739_v53, %v10717_v24 }
 0x672   : > { %12851 = shalt.err (!%p12848_p2)
}
 0x673   : > { %s12852_s11 = scalar_lea.hbm %s14572_s13, 768  ;;  %s12856_s9 = scalar_lea.hbm %s14619_s4, 1536 }
 0x674   : > { %p12853_p11 = scmp.ne.s32.totalorder %s14572_s13, %s12852_s11  ;;  %p12857_p3 = scmp.lt.u32.totalorder %s14572_s13, %s14619_s4 }
 0x675   : > { %p12858_p4 = scmp.lt.u32.totalorder %s12856_s9, %s12852_s11  ;;  %p12860_p13 = scmp.lt.u32.totalorder %s12852_s11, %s14572_s13 }
 0x676   : > { %p12854_p7 = pnand %p12853_p11, %p14639_p5 }
 0x677   : > { %p12859_p0 = por %p12858_p4, %p12857_p3 }
 0x678   : > { %p12855_p1 = pneg %p12854_p7 }
 0x679   : > { %p12861_p8 = por %p12860_p13, %p12859_p0 }
 0x67b   : > { %p12862_p10 = pnand %p12861_p8, %p12855_p1 }
 0x67d   : > { %12865 = shalt.err (!%p12862_p10)
}
 0x67e   : > { %10914 = dma.vmem_to_hbm [thread:$0]  (%p14639_p5), %s9345_s25, 768, %s14572_s13, %s9326_s12  }
 0x67f   : > { %p329_p6 = scmp.lt.s32.totalorder %s12970_s22, 1 }
 0x681   : > { %s14648_s22 = smov (!%p329_p6, %s12970_s22), 1 }
 0x682   : > { %s9491_s1 = sshll.u32 %s14648_s22, 3 }
 0x683   : > { %s332_s28 = scalar_lea.vmem %s14620_s5, %s9491_s1 }
 0x6ee   : > { %v10759_v47 = vpop.f32.mrb[16].mxu1 }
 0x6ef   : > { %v10760_v51 = vpop.f32.mrb[17].mxu1 }
 0x6f0   : > { %v10761_v52 = vadd.f32 %v10760_v51, %v10759_v47  ;;  %v10762_v54 = vpop.f32.mrb[18].mxu1 }
 0x6f1   : > { %v10763_v11 = vpop.f32.mrb[19].mxu1 }
 0x6f2   : > { %v9319_v56 = vadd.f32 %v10761_v52, %v9279_v45 }
 0x6f4   : > { %9324 = vst [vmem:[%s332_s28] sm:$0xff] %v9319_v56 }
 0x6f5 PF: > { %s9359_s29 = sand.u32 1, %s12896_s18   ;;  %p14640_p5 = scmp.ne.s32.totalorder %s14630_s30, 0 }
 0x6f6   : > { %p14641_p9 = scmp.ge.s32.totalorder %s12908_s21, 2  ;;  %s9360_s16 = scalar_lea.sflag [#allocation4], %s9359_s29 }
 0x6f8   : > { %p10927_p12 = pnand %p14641_p9, %p14640_p5 }
 0x6fa   : > { %12891 = dma.done.wait (!%p10927_p12), %s9360_s16, 768  }
 0x6fb   : > { %12893 = vsyncadd (!%p10927_p12), %s9360_s16, 4294966528  ;;  %s14642_s22 = sld [smem:[#allocation12_spill]]  ;;  %s14643_s20 = sld [smem:[#allocation13_spill]] }
 0x6fc   : > { %p22_p2 = scmp.ge.s32.totalorder %s12974_s24, 4   ;;  %s14644_s18 = smov %s12900_s19 }
 0x6fd   : > { %s14646_s21 = smov %s12974_s24 }
 0x6fe   :  { %24 = sbr.rel (!%p22_p2) target bundleno = 10 (0xa), region = 117 }
 0x701   : > { %s14645_s19 = smov %s14642_s22 }
 0x705   :  { %9372 = vsyncpa [#allocation3], 1 }
 0x706   :  { %9374 = vsyncpa [#allocation3 + $0x1], 1 }
 0x707   :  { %9375 = vsyncpa [#allocation6], 1 }
 0x708   :  { %9377 = vsyncpa [#allocation6 + $0x1], 1 }
 0x709   :  { %9378 = vsyncpa [#allocation4], 1 }
 0x70a   :  { %9380 = vsyncpa [#allocation4 + $0x1], 1 }

</bundles_post_ra>
